<compile_context>
chip_gen: v7x
topology: tpu7x:2x2x1
jax: 0.10.0
libtpu: 0.0.40
codegen_flags: <defaults>
</compile_context>

<pallas_src>
import functools

import jax
import jax.numpy as jnp
from jax.experimental import pallas as pl
from jax.experimental.pallas import tpu as pltpu

EPS = 1e-5


def _conv_taps_matmul(src_f32, w_ref, patches_ref, conv_dtype):
    """3x3 / stride-1 / pad-1 conv of `src_f32` (1,H,W,C) against w_ref (9,C,C).

    The 9 shifted taps are scattered into the tap-major VMEM scratch
    `patches_ref` (9,H,W,C) -- every write targets lanes 0..C-1 -- and the
    conv is 9 accumulated 2-D MXU matmuls (M=H*W, K=C) with f32 accumulation.
    Returns the (H*W, C) f32 accumulator.
    """
    _, H, W, C = src_f32.shape
    src = src_f32.astype(conv_dtype)

    # Out-of-image rows: taps with kh=0 (indices 0..2) read row -1 -> output
    # row 0 is zero; taps with kh=2 (indices 6..8) read row H -> output row
    # H-1 is zero.  Two grouped stores instead of six per-tap strips.
    patches_ref[0:3, 0:1, :, :] = jnp.zeros((3, 1, W, C), conv_dtype)
    patches_ref[6:9, H - 1:H, :, :] = jnp.zeros((3, 1, W, C), conv_dtype)

    for kh in range(3):
        for kw in range(3):
            dh, dw = kh - 1, kw - 1
            t = kh * 3 + kw
            if dw != 0:  # the single out-of-image output column for this tap
                zc = 0 if dw < 0 else W - 1
                patches_ref[t, :, zc:zc + 1, :] = jnp.zeros((H, 1, C),
                                                            conv_dtype)
            dr0, dr1 = max(0, -dh), H - max(0, dh)
            dc0, dc1 = max(0, -dw), W - max(0, dw)
            sr0, sr1 = max(0, dh), H - max(0, -dh)
            sc0, sc1 = max(0, dw), W - max(0, -dw)
            patches_ref[t, dr0:dr1, dc0:dc1, :] = src[0, sr0:sr1, sc0:sc1, :]

    acc = jnp.dot(patches_ref[0].reshape(H * W, C), w_ref[0],
                  preferred_element_type=jnp.float32)
    for t in range(1, 9):
        acc = acc + jnp.dot(patches_ref[t].reshape(H * W, C), w_ref[t],
                            preferred_element_type=jnp.float32)
    return acc


def _conv_stats_tail(acc, out_ref, sum_ref, sumsq_ref):
    """Write the conv result (bf16) plus single-pass partial BN statistics."""
    _, H, W, C = out_ref.shape
    out_ref[...] = acc.reshape(1, H, W, C).astype(out_ref.dtype)
    sum_ref[...] = jnp.sum(acc, axis=0).reshape(1, 1, C)
    sumsq_ref[...] = jnp.sum(acc * acc, axis=0).reshape(1, 1, C)


def _conv_stats_kernel(x_ref, w_ref, out_ref, sum_ref, sumsq_ref, patches_ref,
                       *, conv_dtype):
    acc = _conv_taps_matmul(x_ref[...].astype(jnp.float32), w_ref,
                            patches_ref, conv_dtype)
    _conv_stats_tail(acc, out_ref, sum_ref, sumsq_ref)


def _bn_relu_conv_kernel(y_ref, scale_ref, shift_ref, w_ref,
                         out_ref, sum_ref, sumsq_ref, patches_ref, *,
                         conv_dtype):
    C = out_ref.shape[-1]
    scale = scale_ref[...].reshape(1, 1, 1, C)
    shift = shift_ref[...].reshape(1, 1, 1, C)
    # bn1 affine + ReLU in f32 on the bf16 inter-pass activation.
    src = jnp.maximum(y_ref[...].astype(jnp.float32) * scale + shift, 0.0)
    acc = _conv_taps_matmul(src, w_ref, patches_ref, conv_dtype)
    _conv_stats_tail(acc, out_ref, sum_ref, sumsq_ref)


def _bn_residual_relu_kernel(x_ref, acc2_ref, scale_ref, shift_ref, out_ref):
    C = out_ref.shape[-1]
    scale = scale_ref[...].reshape(1, 1, 1, C)
    shift = shift_ref[...].reshape(1, 1, 1, C)
    y = acc2_ref[...].astype(jnp.float32) * scale + shift       # bn2 affine
    out_ref[...] = jnp.maximum(x_ref[...].astype(jnp.float32) + y,
                               0.0).astype(out_ref.dtype)


def restnet_basic_block(x_nhwc, w1_hwio, w2_hwio, g1, b1, g2, b2,
                        *, conv_dtype=jnp.bfloat16):
    """x_nhwc: (N,H,W,C) f32.  Conv weights HWIO (3,3,C,C).  Returns (N,H,W,C)."""
    N, H, W, C = x_nhwc.shape
    assert w1_hwio.shape == (3, 3, C, C) and w2_hwio.shape == (3, 3, C, C)

    # HWIO (kh,kw,ci,co) -> (9, ci, co); tap index t = kh*3 + kw matches the
    # scatter order in _conv_taps_matmul.
    w1 = w1_hwio.reshape(9, C, C).astype(conv_dtype)
    w2 = w2_hwio.reshape(9, C, C).astype(conv_dtype)
    count = N * H * W

    def tile(shape):    # one block per batch element
        return pl.BlockSpec(shape, lambda b: (b,) + (0,) * (len(shape) - 1))

    def whole(shape):   # whole (small) array, replicated across the grid
        return pl.BlockSpec(shape, lambda b: (0,) * len(shape))

    conv_out_shape = (
        jax.ShapeDtypeStruct((N, H, W, C), conv_dtype),    # conv out (bf16)
        jax.ShapeDtypeStruct((N, 1, C), jnp.float32),      # per-sample sum
        jax.ShapeDtypeStruct((N, 1, C), jnp.float32),      # per-sample sum-sq
    )
    conv_out_specs = (tile((1, H, W, C)),
                      tile((1, 1, C)),
                      tile((1, 1, C)))
    tap_scratch = [pltpu.VMEM((9, H, W, C), conv_dtype)]
    cparams = pltpu.CompilerParams(
        dimension_semantics=("parallel",),
        vmem_limit_bytes=48 * 1024 * 1024)

    # ---- pass 1: conv1 + partial BN1 stats ---------------------------------
    acc1, s1, q1 = pl.pallas_call(
        functools.partial(_conv_stats_kernel, conv_dtype=conv_dtype),
        out_shape=conv_out_shape,
        grid=(N,),
        in_specs=[tile((1, H, W, C)), whole((9, C, C))],
        out_specs=conv_out_specs,
        scratch_shapes=tap_scratch,
        compiler_params=cparams,
    )(x_nhwc, w1)

    def fold_bn(sum_, sumsq, gamma, beta):
        mean = jnp.sum(sum_, axis=(0, 1)) / count
        var = jnp.sum(sumsq, axis=(0, 1)) / count - mean * mean
        var = jnp.maximum(var, 0.0)   # single-pass variance can dip below 0
        scale = gamma * jax.lax.rsqrt(var + EPS)
        shift = beta - mean * scale
        return (scale.reshape(1, C).astype(jnp.float32),
                shift.reshape(1, C).astype(jnp.float32))

    scale1, shift1 = fold_bn(s1, q1, g1, b1)

    # ---- pass 2: bn1 affine + ReLU + conv2 + partial BN2 stats -------------
    acc2, s2, q2 = pl.pallas_call(
        functools.partial(_bn_relu_conv_kernel, conv_dtype=conv_dtype),
        out_shape=conv_out_shape,
        grid=(N,),
        in_specs=[tile((1, H, W, C)), whole((1, C)), whole((1, C)),
                  whole((9, C, C))],
        out_specs=conv_out_specs,
        scratch_shapes=tap_scratch,
        compiler_params=cparams,
    )(acc1, scale1, shift1, w2)

    scale2, shift2 = fold_bn(s2, q2, g2, b2)

    # ---- pass 3: bn2 affine + residual + ReLU ------------------------------
    return pl.pallas_call(
        _bn_residual_relu_kernel,
        out_shape=jax.ShapeDtypeStruct((N, H, W, C), x_nhwc.dtype),
        grid=(N,),
        in_specs=[tile((1, H, W, C)), tile((1, H, W, C)),
                  whole((1, C)), whole((1, C))],
        out_specs=tile((1, H, W, C)),
        compiler_params=cparams,
    )(x_nhwc, acc2, scale2, shift2)


def _reference(x_nhwc, w1_hwio, w2_hwio, g1, b1, g2, b2):
    """Pure-JAX f32 reference of the same forward pass (sanity check)."""
    dn = ('NHWC', 'HWIO', 'NHWC')

    def conv(x, w):
        return jax.lax.conv_general_dilated(x, w, (1, 1), ((1, 1), (1, 1)),
                                            dimension_numbers=dn)

    def bn(x, g, b):
        m = jnp.mean(x, axis=(0, 1, 2), keepdims=True)
        v = jnp.mean((x - m) ** 2, axis=(0, 1, 2), keepdims=True)
        return (x - m) * jax.lax.rsqrt(v + EPS) * g + b

    y = jax.nn.relu(bn(conv(x_nhwc, w1_hwio), g1, b1))
    y = bn(conv(y, w2_hwio), g2, b2)
    return jax.nn.relu(x_nhwc + y)


if __name__ == "__main__":
    N, C, H, W = 2, 4, 16, 16          # in_channels == out_channels, stride=1
    key = jax.random.PRNGKey(0)
    kx, kw1, kw2, kg1, kb1, kg2, kb2 = jax.random.split(key, 7)

    # PyTorch-facing input is NCHW; transpose once to NHWC for the kernels.
    x_nchw = jax.random.normal(kx, (N, C, H, W), jnp.float32)
    x_nhwc = jnp.transpose(x_nchw, (0, 2, 3, 1))

    w1 = 0.1 * jax.random.normal(kw1, (3, 3, C, C), jnp.float32)   # HWIO
    w2 = 0.1 * jax.random.normal(kw2, (3, 3, C, C), jnp.float32)   # HWIO
    g1 = 1.0 + 0.1 * jax.random.normal(kg1, (C,), jnp.float32)
    b1 = 0.1 * jax.random.normal(kb1, (C,), jnp.float32)
    g2 = 1.0 + 0.1 * jax.random.normal(kg2, (C,), jnp.float32)
    b2 = 0.1 * jax.random.normal(kb2, (C,), jnp.float32)

    out = jax.jit(restnet_basic_block)(x_nhwc, w1, w2, g1, b1, g2, b2)
    out = jax.block_until_ready(out)

    ref = _reference(x_nhwc, w1, w2, g1, b1, g2, b2)
    assert out.shape == (N, H, W, C)
    # bf16 MXU inputs + bf16 inter-pass activations vs f32 reference -> small
    # drift; tolerance loosened accordingly (review correctness note).
    err = float(jnp.max(jnp.abs(out - ref)))
    assert jnp.allclose(out, ref, atol=3e-2, rtol=3e-2), err

    print("KERNEL_OK")
</pallas_src>

<mosaic_0001>
module attributes {stable_mosaic.version = 11 : i64} {
  func.func @_conv_stats_kernel(%arg0: i32, %arg1: memref<1x16x16x4xf32, #tpu.memory_space<vmem>>, %arg2: memref<9x4x4xbf16, #tpu.memory_space<vmem>>, %arg3: memref<1x16x16x4xbf16, #tpu.memory_space<vmem>>, %arg4: memref<1x1x4xf32, #tpu.memory_space<vmem>>, %arg5: memref<1x1x4xf32, #tpu.memory_space<vmem>>, %arg6: memref<9x16x16x4xbf16, #tpu.memory_space<vmem>>) attributes {dimension_semantics = [#tpu.dimension_semantics<parallel>], iteration_bounds = array<i64: 2>, scalar_prefetch = 0 : i64, scratch_operands = 1 : i64, tpu.core_type = #tpu.core_type<tc>, window_params = [{transform_indices = @transform_0, window_bounds = array<i64: 1, 16, 16, 4>}, {pipeline_mode = #tpu.pipeline_mode<synchronous>, transform_indices = @transform_1, window_bounds = array<i64: 9, 4, 4>}, {transform_indices = @transform_2, window_bounds = array<i64: 1, 16, 16, 4>}, {transform_indices = @transform_3, window_bounds = array<i64: 1, 1, 4>}, {transform_indices = @transform_4, window_bounds = array<i64: 1, 1, 4>}]} {
    %c0 = arith.constant 0 : index
    %c0_0 = arith.constant 0 : index
    %c0_1 = arith.constant 0 : index
    %c0_2 = arith.constant 0 : index
    %0 = vector.load %arg1[%c0, %c0_0, %c0_1, %c0_2] : memref<1x16x16x4xf32, #tpu.memory_space<vmem>>, vector<1x16x16x4xf32>
    %1 = arith.truncf %0 : vector<1x16x16x4xf32> to vector<1x16x16x4xbf16>
    %cst = arith.constant 0.000000e+00 : bf16
    %2 = vector.broadcast %cst : bf16 to vector<3x1x16x4xbf16>
    %c0_3 = arith.constant 0 : index
    %c0_4 = arith.constant 0 : index
    %c0_5 = arith.constant 0 : index
    %c0_6 = arith.constant 0 : index
    %3 = vector.load %arg6[%c0_3, %c0_4, %c0_5, %c0_6] : memref<9x16x16x4xbf16, #tpu.memory_space<vmem>>, vector<3x1x16x4xbf16>
    tpu.vector_store %arg6[%c0_3, %c0_4, %c0_5, %c0_6], %2 {strides = array<i32>} : memref<9x16x16x4xbf16, #tpu.memory_space<vmem>>, vector<3x1x16x4xbf16>,
    %cst_7 = arith.constant 0.000000e+00 : bf16
    %4 = vector.broadcast %cst_7 : bf16 to vector<3x1x16x4xbf16>
    %c6 = arith.constant 6 : index
    %c15 = arith.constant 15 : index
    %c0_8 = arith.constant 0 : index
    %c0_9 = arith.constant 0 : index
    %5 = vector.load %arg6[%c6, %c15, %c0_8, %c0_9] : memref<9x16x16x4xbf16, #tpu.memory_space<vmem>>, vector<3x1x16x4xbf16>
    tpu.vector_store %arg6[%c6, %c15, %c0_8, %c0_9], %4 {strides = array<i32>} : memref<9x16x16x4xbf16, #tpu.memory_space<vmem>>, vector<3x1x16x4xbf16>,
    %cst_10 = arith.constant 0.000000e+00 : bf16
    %6 = vector.broadcast %cst_10 : bf16 to vector<16x1x4xbf16>
    %c0_11 = arith.constant 0 : index
    %c0_12 = arith.constant 0 : index
    %c0_13 = arith.constant 0 : index
    %c0_14 = arith.constant 0 : index
    %7 = vector.load %arg6[%c0_11, %c0_12, %c0_13, %c0_14] : memref<9x16x16x4xbf16, #tpu.memory_space<vmem>>, vector<1x16x1x4xbf16>
    %8 = vector.shape_cast %7 : vector<1x16x1x4xbf16> to vector<16x1x4xbf16>
    %9 = vector.shape_cast %6 : vector<16x1x4xbf16> to vector<1x16x1x4xbf16>
    tpu.vector_store %arg6[%c0_11, %c0_12, %c0_13, %c0_14], %9 {strides = array<i32>} : memref<9x16x16x4xbf16, #tpu.memory_space<vmem>>, vector<1x16x1x4xbf16>,
    %10 = vector.extract_strided_slice %1 {offsets = [0, 0, 0, 0], sizes = [1, 15, 15, 4], strides = [1, 1, 1, 1]} : vector<1x16x16x4xbf16> to vector<1x15x15x4xbf16>
    %11 = vector.shape_cast %10 : vector<1x15x15x4xbf16> to vector<15x15x4xbf16>
    %c0_15 = arith.constant 0 : index
    %c1 = arith.constant 1 : index
    %c1_16 = arith.constant 1 : index
    %c0_17 = arith.constant 0 : index
    %12 = vector.load %arg6[%c0_15, %c1, %c1_16, %c0_17] : memref<9x16x16x4xbf16, #tpu.memory_space<vmem>>, vector<1x15x15x4xbf16>
    %13 = vector.shape_cast %12 : vector<1x15x15x4xbf16> to vector<15x15x4xbf16>
    %14 = vector.shape_cast %11 : vector<15x15x4xbf16> to vector<1x15x15x4xbf16>
    tpu.vector_store %arg6[%c0_15, %c1, %c1_16, %c0_17], %14 {strides = array<i32>} : memref<9x16x16x4xbf16, #tpu.memory_space<vmem>>, vector<1x15x15x4xbf16>,
    %15 = vector.extract_strided_slice %1 {offsets = [0, 0, 0, 0], sizes = [1, 15, 16, 4], strides = [1, 1, 1, 1]} : vector<1x16x16x4xbf16> to vector<1x15x16x4xbf16>
    %16 = vector.shape_cast %15 : vector<1x15x16x4xbf16> to vector<15x16x4xbf16>
    %c1_18 = arith.constant 1 : index
    %c1_19 = arith.constant 1 : index
    %c0_20 = arith.constant 0 : index
    %c0_21 = arith.constant 0 : index
    %17 = vector.load %arg6[%c1_18, %c1_19, %c0_20, %c0_21] : memref<9x16x16x4xbf16, #tpu.memory_space<vmem>>, vector<1x15x16x4xbf16>
    %18 = vector.shape_cast %17 : vector<1x15x16x4xbf16> to vector<15x16x4xbf16>
    %19 = vector.shape_cast %16 : vector<15x16x4xbf16> to vector<1x15x16x4xbf16>
    tpu.vector_store %arg6[%c1_18, %c1_19, %c0_20, %c0_21], %19 {strides = array<i32>} : memref<9x16x16x4xbf16, #tpu.memory_space<vmem>>, vector<1x15x16x4xbf16>,
    %cst_22 = arith.constant 0.000000e+00 : bf16
    %20 = vector.broadcast %cst_22 : bf16 to vector<16x1x4xbf16>
    %c2 = arith.constant 2 : index
    %c0_23 = arith.constant 0 : index
    %c15_24 = arith.constant 15 : index
    %c0_25 = arith.constant 0 : index
    %21 = vector.load %arg6[%c2, %c0_23, %c15_24, %c0_25] : memref<9x16x16x4xbf16, #tpu.memory_space<vmem>>, vector<1x16x1x4xbf16>
    %22 = vector.shape_cast %21 : vector<1x16x1x4xbf16> to vector<16x1x4xbf16>
    %23 = vector.shape_cast %20 : vector<16x1x4xbf16> to vector<1x16x1x4xbf16>
    tpu.vector_store %arg6[%c2, %c0_23, %c15_24, %c0_25], %23 {strides = array<i32>} : memref<9x16x16x4xbf16, #tpu.memory_space<vmem>>, vector<1x16x1x4xbf16>,
    %24 = vector.extract_strided_slice %1 {offsets = [0, 0, 1, 0], sizes = [1, 15, 15, 4], strides = [1, 1, 1, 1]} : vector<1x16x16x4xbf16> to vector<1x15x15x4xbf16>
    %25 = vector.shape_cast %24 : vector<1x15x15x4xbf16> to vector<15x15x4xbf16>
    %c2_26 = arith.constant 2 : index
    %c1_27 = arith.constant 1 : index
    %c0_28 = arith.constant 0 : index
    %c0_29 = arith.constant 0 : index
    %26 = vector.load %arg6[%c2_26, %c1_27, %c0_28, %c0_29] : memref<9x16x16x4xbf16, #tpu.memory_space<vmem>>, vector<1x15x15x4xbf16>
    %27 = vector.shape_cast %26 : vector<1x15x15x4xbf16> to vector<15x15x4xbf16>
    %28 = vector.shape_cast %25 : vector<15x15x4xbf16> to vector<1x15x15x4xbf16>
    tpu.vector_store %arg6[%c2_26, %c1_27, %c0_28, %c0_29], %28 {strides = array<i32>} : memref<9x16x16x4xbf16, #tpu.memory_space<vmem>>, vector<1x15x15x4xbf16>,
    %cst_30 = arith.constant 0.000000e+00 : bf16
    %29 = vector.broadcast %cst_30 : bf16 to vector<16x1x4xbf16>
    %c3 = arith.constant 3 : index
    %c0_31 = arith.constant 0 : index
    %c0_32 = arith.constant 0 : index
    %c0_33 = arith.constant 0 : index
    %30 = vector.load %arg6[%c3, %c0_31, %c0_32, %c0_33] : memref<9x16x16x4xbf16, #tpu.memory_space<vmem>>, vector<1x16x1x4xbf16>
    %31 = vector.shape_cast %30 : vector<1x16x1x4xbf16> to vector<16x1x4xbf16>
    %32 = vector.shape_cast %29 : vector<16x1x4xbf16> to vector<1x16x1x4xbf16>
    tpu.vector_store %arg6[%c3, %c0_31, %c0_32, %c0_33], %32 {strides = array<i32>} : memref<9x16x16x4xbf16, #tpu.memory_space<vmem>>, vector<1x16x1x4xbf16>,
    %33 = vector.extract_strided_slice %1 {offsets = [0, 0, 0, 0], sizes = [1, 16, 15, 4], strides = [1, 1, 1, 1]} : vector<1x16x16x4xbf16> to vector<1x16x15x4xbf16>
    %34 = vector.shape_cast %33 : vector<1x16x15x4xbf16> to vector<16x15x4xbf16>
    %c3_34 = arith.constant 3 : index
    %c0_35 = arith.constant 0 : index
    %c1_36 = arith.constant 1 : index
    %c0_37 = arith.constant 0 : index
    %35 = vector.load %arg6[%c3_34, %c0_35, %c1_36, %c0_37] : memref<9x16x16x4xbf16, #tpu.memory_space<vmem>>, vector<1x16x15x4xbf16>
    %36 = vector.shape_cast %35 : vector<1x16x15x4xbf16> to vector<16x15x4xbf16>
    %37 = vector.shape_cast %34 : vector<16x15x4xbf16> to vector<1x16x15x4xbf16>
    tpu.vector_store %arg6[%c3_34, %c0_35, %c1_36, %c0_37], %37 {strides = array<i32>} : memref<9x16x16x4xbf16, #tpu.memory_space<vmem>>, vector<1x16x15x4xbf16>,
    %38 = vector.shape_cast %1 : vector<1x16x16x4xbf16> to vector<16x16x4xbf16>
    %c4 = arith.constant 4 : index
    %c0_38 = arith.constant 0 : index
    %c0_39 = arith.constant 0 : index
    %c0_40 = arith.constant 0 : index
    %39 = vector.load %arg6[%c4, %c0_38, %c0_39, %c0_40] : memref<9x16x16x4xbf16, #tpu.memory_space<vmem>>, vector<1x16x16x4xbf16>
    %40 = vector.shape_cast %39 : vector<1x16x16x4xbf16> to vector<16x16x4xbf16>
    %41 = vector.shape_cast %38 : vector<16x16x4xbf16> to vector<1x16x16x4xbf16>
    tpu.vector_store %arg6[%c4, %c0_38, %c0_39, %c0_40], %41 {strides = array<i32>} : memref<9x16x16x4xbf16, #tpu.memory_space<vmem>>, vector<1x16x16x4xbf16>,
    %cst_41 = arith.constant 0.000000e+00 : bf16
    %42 = vector.broadcast %cst_41 : bf16 to vector<16x1x4xbf16>
    %c5 = arith.constant 5 : index
    %c0_42 = arith.constant 0 : index
    %c15_43 = arith.constant 15 : index
    %c0_44 = arith.constant 0 : index
    %43 = vector.load %arg6[%c5, %c0_42, %c15_43, %c0_44] : memref<9x16x16x4xbf16, #tpu.memory_space<vmem>>, vector<1x16x1x4xbf16>
    %44 = vector.shape_cast %43 : vector<1x16x1x4xbf16> to vector<16x1x4xbf16>
    %45 = vector.shape_cast %42 : vector<16x1x4xbf16> to vector<1x16x1x4xbf16>
    tpu.vector_store %arg6[%c5, %c0_42, %c15_43, %c0_44], %45 {strides = array<i32>} : memref<9x16x16x4xbf16, #tpu.memory_space<vmem>>, vector<1x16x1x4xbf16>,
    %46 = vector.extract_strided_slice %1 {offsets = [0, 0, 1, 0], sizes = [1, 16, 15, 4], strides = [1, 1, 1, 1]} : vector<1x16x16x4xbf16> to vector<1x16x15x4xbf16>
    %47 = vector.shape_cast %46 : vector<1x16x15x4xbf16> to vector<16x15x4xbf16>
    %c5_45 = arith.constant 5 : index
    %c0_46 = arith.constant 0 : index
    %c0_47 = arith.constant 0 : index
    %c0_48 = arith.constant 0 : index
    %48 = vector.load %arg6[%c5_45, %c0_46, %c0_47, %c0_48] : memref<9x16x16x4xbf16, #tpu.memory_space<vmem>>, vector<1x16x15x4xbf16>
    %49 = vector.shape_cast %48 : vector<1x16x15x4xbf16> to vector<16x15x4xbf16>
    %50 = vector.shape_cast %47 : vector<16x15x4xbf16> to vector<1x16x15x4xbf16>
    tpu.vector_store %arg6[%c5_45, %c0_46, %c0_47, %c0_48], %50 {strides = array<i32>} : memref<9x16x16x4xbf16, #tpu.memory_space<vmem>>, vector<1x16x15x4xbf16>,
    %cst_49 = arith.constant 0.000000e+00 : bf16
    %51 = vector.broadcast %cst_49 : bf16 to vector<16x1x4xbf16>
    %c6_50 = arith.constant 6 : index
    %c0_51 = arith.constant 0 : index
    %c0_52 = arith.constant 0 : index
    %c0_53 = arith.constant 0 : index
    %52 = vector.load %arg6[%c6_50, %c0_51, %c0_52, %c0_53] : memref<9x16x16x4xbf16, #tpu.memory_space<vmem>>, vector<1x16x1x4xbf16>
    %53 = vector.shape_cast %52 : vector<1x16x1x4xbf16> to vector<16x1x4xbf16>
    %54 = vector.shape_cast %51 : vector<16x1x4xbf16> to vector<1x16x1x4xbf16>
    tpu.vector_store %arg6[%c6_50, %c0_51, %c0_52, %c0_53], %54 {strides = array<i32>} : memref<9x16x16x4xbf16, #tpu.memory_space<vmem>>, vector<1x16x1x4xbf16>,
    %55 = vector.extract_strided_slice %1 {offsets = [0, 1, 0, 0], sizes = [1, 15, 15, 4], strides = [1, 1, 1, 1]} : vector<1x16x16x4xbf16> to vector<1x15x15x4xbf16>
    %56 = vector.shape_cast %55 : vector<1x15x15x4xbf16> to vector<15x15x4xbf16>
    %c6_54 = arith.constant 6 : index
    %c0_55 = arith.constant 0 : index
    %c1_56 = arith.constant 1 : index
    %c0_57 = arith.constant 0 : index
    %57 = vector.load %arg6[%c6_54, %c0_55, %c1_56, %c0_57] : memref<9x16x16x4xbf16, #tpu.memory_space<vmem>>, vector<1x15x15x4xbf16>
    %58 = vector.shape_cast %57 : vector<1x15x15x4xbf16> to vector<15x15x4xbf16>
    %59 = vector.shape_cast %56 : vector<15x15x4xbf16> to vector<1x15x15x4xbf16>
    tpu.vector_store %arg6[%c6_54, %c0_55, %c1_56, %c0_57], %59 {strides = array<i32>} : memref<9x16x16x4xbf16, #tpu.memory_space<vmem>>, vector<1x15x15x4xbf16>,
    %60 = vector.extract_strided_slice %1 {offsets = [0, 1, 0, 0], sizes = [1, 15, 16, 4], strides = [1, 1, 1, 1]} : vector<1x16x16x4xbf16> to vector<1x15x16x4xbf16>
    %61 = vector.shape_cast %60 : vector<1x15x16x4xbf16> to vector<15x16x4xbf16>
    %c7 = arith.constant 7 : index
    %c0_58 = arith.constant 0 : index
    %c0_59 = arith.constant 0 : index
    %c0_60 = arith.constant 0 : index
    %62 = vector.load %arg6[%c7, %c0_58, %c0_59, %c0_60] : memref<9x16x16x4xbf16, #tpu.memory_space<vmem>>, vector<1x15x16x4xbf16>
    %63 = vector.shape_cast %62 : vector<1x15x16x4xbf16> to vector<15x16x4xbf16>
    %64 = vector.shape_cast %61 : vector<15x16x4xbf16> to vector<1x15x16x4xbf16>
    tpu.vector_store %arg6[%c7, %c0_58, %c0_59, %c0_60], %64 {strides = array<i32>} : memref<9x16x16x4xbf16, #tpu.memory_space<vmem>>, vector<1x15x16x4xbf16>,
    %cst_61 = arith.constant 0.000000e+00 : bf16
    %65 = vector.broadcast %cst_61 : bf16 to vector<16x1x4xbf16>
    %c8 = arith.constant 8 : index
    %c0_62 = arith.constant 0 : index
    %c15_63 = arith.constant 15 : index
    %c0_64 = arith.constant 0 : index
    %66 = vector.load %arg6[%c8, %c0_62, %c15_63, %c0_64] : memref<9x16x16x4xbf16, #tpu.memory_space<vmem>>, vector<1x16x1x4xbf16>
    %67 = vector.shape_cast %66 : vector<1x16x1x4xbf16> to vector<16x1x4xbf16>
    %68 = vector.shape_cast %65 : vector<16x1x4xbf16> to vector<1x16x1x4xbf16>
    tpu.vector_store %arg6[%c8, %c0_62, %c15_63, %c0_64], %68 {strides = array<i32>} : memref<9x16x16x4xbf16, #tpu.memory_space<vmem>>, vector<1x16x1x4xbf16>,
    %69 = vector.extract_strided_slice %1 {offsets = [0, 1, 1, 0], sizes = [1, 15, 15, 4], strides = [1, 1, 1, 1]} : vector<1x16x16x4xbf16> to vector<1x15x15x4xbf16>
    %70 = vector.shape_cast %69 : vector<1x15x15x4xbf16> to vector<15x15x4xbf16>
    %c8_65 = arith.constant 8 : index
    %c0_66 = arith.constant 0 : index
    %c0_67 = arith.constant 0 : index
    %c0_68 = arith.constant 0 : index
    %71 = vector.load %arg6[%c8_65, %c0_66, %c0_67, %c0_68] : memref<9x16x16x4xbf16, #tpu.memory_space<vmem>>, vector<1x15x15x4xbf16>
    %72 = vector.shape_cast %71 : vector<1x15x15x4xbf16> to vector<15x15x4xbf16>
    %73 = vector.shape_cast %70 : vector<15x15x4xbf16> to vector<1x15x15x4xbf16>
    tpu.vector_store %arg6[%c8_65, %c0_66, %c0_67, %c0_68], %73 {strides = array<i32>} : memref<9x16x16x4xbf16, #tpu.memory_space<vmem>>, vector<1x15x15x4xbf16>,
    %c0_69 = arith.constant 0 : index
    %c0_70 = arith.constant 0 : index
    %c0_71 = arith.constant 0 : index
    %c0_72 = arith.constant 0 : index
    %74 = vector.load %arg6[%c0_69, %c0_70, %c0_71, %c0_72] : memref<9x16x16x4xbf16, #tpu.memory_space<vmem>>, vector<1x16x16x4xbf16>
    %75 = vector.shape_cast %74 : vector<1x16x16x4xbf16> to vector<16x16x4xbf16>
    %76 = vector.shape_cast %75 : vector<16x16x4xbf16> to vector<256x4xbf16>
    %c0_73 = arith.constant 0 : index
    %c0_74 = arith.constant 0 : index
    %c0_75 = arith.constant 0 : index
    %77 = vector.load %arg2[%c0_73, %c0_74, %c0_75] : memref<9x4x4xbf16, #tpu.memory_space<vmem>>, vector<1x4x4xbf16>
    %78 = vector.shape_cast %77 : vector<1x4x4xbf16> to vector<4x4xbf16>
    %cst_76 = arith.constant dense<0.000000e+00> : vector<256x4xf32>
    %79 = tpu.matmul %76, %78, %cst_76 {dimension_numbers = #tpu.dot_dimension_numbers<[1], [0], [0], [1], [0, 0, 1, 1], [], []>} : vector<256x4xbf16>, vector<4x4xbf16>, vector<256x4xf32> -> vector<256x4xf32>
    %c1_77 = arith.constant 1 : index
    %c0_78 = arith.constant 0 : index
    %c0_79 = arith.constant 0 : index
    %c0_80 = arith.constant 0 : index
    %80 = vector.load %arg6[%c1_77, %c0_78, %c0_79, %c0_80] : memref<9x16x16x4xbf16, #tpu.memory_space<vmem>>, vector<1x16x16x4xbf16>
    %81 = vector.shape_cast %80 : vector<1x16x16x4xbf16> to vector<16x16x4xbf16>
    %82 = vector.shape_cast %81 : vector<16x16x4xbf16> to vector<256x4xbf16>
    %c1_81 = arith.constant 1 : index
    %c0_82 = arith.constant 0 : index
    %c0_83 = arith.constant 0 : index
    %83 = vector.load %arg2[%c1_81, %c0_82, %c0_83] : memref<9x4x4xbf16, #tpu.memory_space<vmem>>, vector<1x4x4xbf16>
    %84 = vector.shape_cast %83 : vector<1x4x4xbf16> to vector<4x4xbf16>
    %cst_84 = arith.constant dense<0.000000e+00> : vector<256x4xf32>
    %85 = tpu.matmul %82, %84, %cst_84 {dimension_numbers = #tpu.dot_dimension_numbers<[1], [0], [0], [1], [0, 0, 1, 1], [], []>} : vector<256x4xbf16>, vector<4x4xbf16>, vector<256x4xf32> -> vector<256x4xf32>
    %86 = arith.addf %79, %85 : vector<256x4xf32>
    %c2_85 = arith.constant 2 : index
    %c0_86 = arith.constant 0 : index
    %c0_87 = arith.constant 0 : index
    %c0_88 = arith.constant 0 : index
    %87 = vector.load %arg6[%c2_85, %c0_86, %c0_87, %c0_88] : memref<9x16x16x4xbf16, #tpu.memory_space<vmem>>, vector<1x16x16x4xbf16>
    %88 = vector.shape_cast %87 : vector<1x16x16x4xbf16> to vector<16x16x4xbf16>
    %89 = vector.shape_cast %88 : vector<16x16x4xbf16> to vector<256x4xbf16>
    %c2_89 = arith.constant 2 : index
    %c0_90 = arith.constant 0 : index
    %c0_91 = arith.constant 0 : index
    %90 = vector.load %arg2[%c2_89, %c0_90, %c0_91] : memref<9x4x4xbf16, #tpu.memory_space<vmem>>, vector<1x4x4xbf16>
    %91 = vector.shape_cast %90 : vector<1x4x4xbf16> to vector<4x4xbf16>
    %cst_92 = arith.constant dense<0.000000e+00> : vector<256x4xf32>
    %92 = tpu.matmul %89, %91, %cst_92 {dimension_numbers = #tpu.dot_dimension_numbers<[1], [0], [0], [1], [0, 0, 1, 1], [], []>} : vector<256x4xbf16>, vector<4x4xbf16>, vector<256x4xf32> -> vector<256x4xf32>
    %93 = arith.addf %86, %92 : vector<256x4xf32>
    %c3_93 = arith.constant 3 : index
    %c0_94 = arith.constant 0 : index
    %c0_95 = arith.constant 0 : index
    %c0_96 = arith.constant 0 : index
    %94 = vector.load %arg6[%c3_93, %c0_94, %c0_95, %c0_96] : memref<9x16x16x4xbf16, #tpu.memory_space<vmem>>, vector<1x16x16x4xbf16>
    %95 = vector.shape_cast %94 : vector<1x16x16x4xbf16> to vector<16x16x4xbf16>
    %96 = vector.shape_cast %95 : vector<16x16x4xbf16> to vector<256x4xbf16>
    %c3_97 = arith.constant 3 : index
    %c0_98 = arith.constant 0 : index
    %c0_99 = arith.constant 0 : index
    %97 = vector.load %arg2[%c3_97, %c0_98, %c0_99] : memref<9x4x4xbf16, #tpu.memory_space<vmem>>, vector<1x4x4xbf16>
    %98 = vector.shape_cast %97 : vector<1x4x4xbf16> to vector<4x4xbf16>
    %cst_100 = arith.constant dense<0.000000e+00> : vector<256x4xf32>
    %99 = tpu.matmul %96, %98, %cst_100 {dimension_numbers = #tpu.dot_dimension_numbers<[1], [0], [0], [1], [0, 0, 1, 1], [], []>} : vector<256x4xbf16>, vector<4x4xbf16>, vector<256x4xf32> -> vector<256x4xf32>
    %100 = arith.addf %93, %99 : vector<256x4xf32>
    %c4_101 = arith.constant 4 : index
    %c0_102 = arith.constant 0 : index
    %c0_103 = arith.constant 0 : index
    %c0_104 = arith.constant 0 : index
    %101 = vector.load %arg6[%c4_101, %c0_102, %c0_103, %c0_104] : memref<9x16x16x4xbf16, #tpu.memory_space<vmem>>, vector<1x16x16x4xbf16>
    %102 = vector.shape_cast %101 : vector<1x16x16x4xbf16> to vector<16x16x4xbf16>
    %103 = vector.shape_cast %102 : vector<16x16x4xbf16> to vector<256x4xbf16>
    %c4_105 = arith.constant 4 : index
    %c0_106 = arith.constant 0 : index
    %c0_107 = arith.constant 0 : index
    %104 = vector.load %arg2[%c4_105, %c0_106, %c0_107] : memref<9x4x4xbf16, #tpu.memory_space<vmem>>, vector<1x4x4xbf16>
    %105 = vector.shape_cast %104 : vector<1x4x4xbf16> to vector<4x4xbf16>
    %cst_108 = arith.constant dense<0.000000e+00> : vector<256x4xf32>
    %106 = tpu.matmul %103, %105, %cst_108 {dimension_numbers = #tpu.dot_dimension_numbers<[1], [0], [0], [1], [0, 0, 1, 1], [], []>} : vector<256x4xbf16>, vector<4x4xbf16>, vector<256x4xf32> -> vector<256x4xf32>
    %107 = arith.addf %100, %106 : vector<256x4xf32>
    %c5_109 = arith.constant 5 : index
    %c0_110 = arith.constant 0 : index
    %c0_111 = arith.constant 0 : index
    %c0_112 = arith.constant 0 : index
    %108 = vector.load %arg6[%c5_109, %c0_110, %c0_111, %c0_112] : memref<9x16x16x4xbf16, #tpu.memory_space<vmem>>, vector<1x16x16x4xbf16>
    %109 = vector.shape_cast %108 : vector<1x16x16x4xbf16> to vector<16x16x4xbf16>
    %110 = vector.shape_cast %109 : vector<16x16x4xbf16> to vector<256x4xbf16>
    %c5_113 = arith.constant 5 : index
    %c0_114 = arith.constant 0 : index
    %c0_115 = arith.constant 0 : index
    %111 = vector.load %arg2[%c5_113, %c0_114, %c0_115] : memref<9x4x4xbf16, #tpu.memory_space<vmem>>, vector<1x4x4xbf16>
    %112 = vector.shape_cast %111 : vector<1x4x4xbf16> to vector<4x4xbf16>
    %cst_116 = arith.constant dense<0.000000e+00> : vector<256x4xf32>
    %113 = tpu.matmul %110, %112, %cst_116 {dimension_numbers = #tpu.dot_dimension_numbers<[1], [0], [0], [1], [0, 0, 1, 1], [], []>} : vector<256x4xbf16>, vector<4x4xbf16>, vector<256x4xf32> -> vector<256x4xf32>
    %114 = arith.addf %107, %113 : vector<256x4xf32>
    %c6_117 = arith.constant 6 : index
    %c0_118 = arith.constant 0 : index
    %c0_119 = arith.constant 0 : index
    %c0_120 = arith.constant 0 : index
    %115 = vector.load %arg6[%c6_117, %c0_118, %c0_119, %c0_120] : memref<9x16x16x4xbf16, #tpu.memory_space<vmem>>, vector<1x16x16x4xbf16>
    %116 = vector.shape_cast %115 : vector<1x16x16x4xbf16> to vector<16x16x4xbf16>
    %117 = vector.shape_cast %116 : vector<16x16x4xbf16> to vector<256x4xbf16>
    %c6_121 = arith.constant 6 : index
    %c0_122 = arith.constant 0 : index
    %c0_123 = arith.constant 0 : index
    %118 = vector.load %arg2[%c6_121, %c0_122, %c0_123] : memref<9x4x4xbf16, #tpu.memory_space<vmem>>, vector<1x4x4xbf16>
    %119 = vector.shape_cast %118 : vector<1x4x4xbf16> to vector<4x4xbf16>
    %cst_124 = arith.constant dense<0.000000e+00> : vector<256x4xf32>
    %120 = tpu.matmul %117, %119, %cst_124 {dimension_numbers = #tpu.dot_dimension_numbers<[1], [0], [0], [1], [0, 0, 1, 1], [], []>} : vector<256x4xbf16>, vector<4x4xbf16>, vector<256x4xf32> -> vector<256x4xf32>
    %121 = arith.addf %114, %120 : vector<256x4xf32>
    %c7_125 = arith.constant 7 : index
    %c0_126 = arith.constant 0 : index
    %c0_127 = arith.constant 0 : index
    %c0_128 = arith.constant 0 : index
    %122 = vector.load %arg6[%c7_125, %c0_126, %c0_127, %c0_128] : memref<9x16x16x4xbf16, #tpu.memory_space<vmem>>, vector<1x16x16x4xbf16>
    %123 = vector.shape_cast %122 : vector<1x16x16x4xbf16> to vector<16x16x4xbf16>
    %124 = vector.shape_cast %123 : vector<16x16x4xbf16> to vector<256x4xbf16>
    %c7_129 = arith.constant 7 : index
    %c0_130 = arith.constant 0 : index
    %c0_131 = arith.constant 0 : index
    %125 = vector.load %arg2[%c7_129, %c0_130, %c0_131] : memref<9x4x4xbf16, #tpu.memory_space<vmem>>, vector<1x4x4xbf16>
    %126 = vector.shape_cast %125 : vector<1x4x4xbf16> to vector<4x4xbf16>
    %cst_132 = arith.constant dense<0.000000e+00> : vector<256x4xf32>
    %127 = tpu.matmul %124, %126, %cst_132 {dimension_numbers = #tpu.dot_dimension_numbers<[1], [0], [0], [1], [0, 0, 1, 1], [], []>} : vector<256x4xbf16>, vector<4x4xbf16>, vector<256x4xf32> -> vector<256x4xf32>
    %128 = arith.addf %121, %127 : vector<256x4xf32>
    %c8_133 = arith.constant 8 : index
    %c0_134 = arith.constant 0 : index
    %c0_135 = arith.constant 0 : index
    %c0_136 = arith.constant 0 : index
    %129 = vector.load %arg6[%c8_133, %c0_134, %c0_135, %c0_136] : memref<9x16x16x4xbf16, #tpu.memory_space<vmem>>, vector<1x16x16x4xbf16>
    %130 = vector.shape_cast %129 : vector<1x16x16x4xbf16> to vector<16x16x4xbf16>
    %131 = vector.shape_cast %130 : vector<16x16x4xbf16> to vector<256x4xbf16>
    %c8_137 = arith.constant 8 : index
    %c0_138 = arith.constant 0 : index
    %c0_139 = arith.constant 0 : index
    %132 = vector.load %arg2[%c8_137, %c0_138, %c0_139] : memref<9x4x4xbf16, #tpu.memory_space<vmem>>, vector<1x4x4xbf16>
    %133 = vector.shape_cast %132 : vector<1x4x4xbf16> to vector<4x4xbf16>
    %cst_140 = arith.constant dense<0.000000e+00> : vector<256x4xf32>
    %134 = tpu.matmul %131, %133, %cst_140 {dimension_numbers = #tpu.dot_dimension_numbers<[1], [0], [0], [1], [0, 0, 1, 1], [], []>} : vector<256x4xbf16>, vector<4x4xbf16>, vector<256x4xf32> -> vector<256x4xf32>
    %135 = arith.addf %128, %134 : vector<256x4xf32>
    %136 = vector.shape_cast %135 : vector<256x4xf32> to vector<1x16x16x4xf32>
    %137 = arith.truncf %136 : vector<1x16x16x4xf32> to vector<1x16x16x4xbf16>
    %c0_141 = arith.constant 0 : index
    %c0_142 = arith.constant 0 : index
    %c0_143 = arith.constant 0 : index
    %c0_144 = arith.constant 0 : index
    %138 = vector.load %arg3[%c0_141, %c0_142, %c0_143, %c0_144] : memref<1x16x16x4xbf16, #tpu.memory_space<vmem>>, vector<1x16x16x4xbf16>
    tpu.vector_store %arg3[%c0_141, %c0_142, %c0_143, %c0_144], %137 {strides = array<i32>} : memref<1x16x16x4xbf16, #tpu.memory_space<vmem>>, vector<1x16x16x4xbf16>,
    %cst_145 = arith.constant dense<0.000000e+00> : vector<4xf32>
    %139 = vector.multi_reduction <add>, %135, %cst_145 [0] : vector<256x4xf32> to vector<4xf32>
    %140 = vector.shape_cast %139 : vector<4xf32> to vector<1x1x4xf32>
    %c0_146 = arith.constant 0 : index
    %c0_147 = arith.constant 0 : index
    %c0_148 = arith.constant 0 : index
    %141 = vector.load %arg4[%c0_146, %c0_147, %c0_148] : memref<1x1x4xf32, #tpu.memory_space<vmem>>, vector<1x1x4xf32>
    tpu.vector_store %arg4[%c0_146, %c0_147, %c0_148], %140 {strides = array<i32>} : memref<1x1x4xf32, #tpu.memory_space<vmem>>, vector<1x1x4xf32>,
    %142 = arith.mulf %135, %135 : vector<256x4xf32>
    %cst_149 = arith.constant dense<0.000000e+00> : vector<4xf32>
    %143 = vector.multi_reduction <add>, %142, %cst_149 [0] : vector<256x4xf32> to vector<4xf32>
    %144 = vector.shape_cast %143 : vector<4xf32> to vector<1x1x4xf32>
    %c0_150 = arith.constant 0 : index
    %c0_151 = arith.constant 0 : index
    %c0_152 = arith.constant 0 : index
    %145 = vector.load %arg5[%c0_150, %c0_151, %c0_152] : memref<1x1x4xf32, #tpu.memory_space<vmem>>, vector<1x1x4xf32>
    tpu.vector_store %arg5[%c0_150, %c0_151, %c0_152], %144 {strides = array<i32>} : memref<1x1x4xf32, #tpu.memory_space<vmem>>, vector<1x1x4xf32>,
    return
  }
  func.func @transform_0(%arg0: i32) -> (i32, i32, i32, i32) {
    %c0_i32 = arith.constant 0 : i32
    %c0_i32_0 = arith.constant 0 : i32
    %c0_i32_1 = arith.constant 0 : i32
    %c0_i32_2 = arith.constant 0 : i32
    return %arg0, %c0_i32, %c0_i32_0, %c0_i32_1 : i32, i32, i32, i32
  }
  func.func @transform_1(%arg0: i32) -> (i32, i32, i32) {
    %c0_i32 = arith.constant 0 : i32
    %c0_i32_0 = arith.constant 0 : i32
    %c0_i32_1 = arith.constant 0 : i32
    %c0_i32_2 = arith.constant 0 : i32
    return %c0_i32, %c0_i32_0, %c0_i32_1 : i32, i32, i32
  }
  func.func @transform_2(%arg0: i32) -> (i32, i32, i32, i32) {
    %c0_i32 = arith.constant 0 : i32
    %c0_i32_0 = arith.constant 0 : i32
    %c0_i32_1 = arith.constant 0 : i32
    %c0_i32_2 = arith.constant 0 : i32
    return %arg0, %c0_i32, %c0_i32_0, %c0_i32_1 : i32, i32, i32, i32
  }
  func.func @transform_3(%arg0: i32) -> (i32, i32, i32) {
    %c0_i32 = arith.constant 0 : i32
    %c0_i32_0 = arith.constant 0 : i32
    %c0_i32_1 = arith.constant 0 : i32
    return %arg0, %c0_i32, %c0_i32_0 : i32, i32, i32
  }
  func.func @transform_4(%arg0: i32) -> (i32, i32, i32) {
    %c0_i32 = arith.constant 0 : i32
    %c0_i32_0 = arith.constant 0 : i32
    %c0_i32_1 = arith.constant 0 : i32
    return %arg0, %c0_i32, %c0_i32_0 : i32, i32, i32
  }
}

module attributes {stable_mosaic.version = 11 : i64} {
  func.func @_bn_relu_conv_kernel(%arg0: i32, %arg1: memref<1x16x16x4xbf16, #tpu.memory_space<vmem>>, %arg2: memref<1x4xf32, #tpu.memory_space<vmem>>, %arg3: memref<1x4xf32, #tpu.memory_space<vmem>>, %arg4: memref<9x4x4xbf16, #tpu.memory_space<vmem>>, %arg5: memref<1x16x16x4xbf16, #tpu.memory_space<vmem>>, %arg6: memref<1x1x4xf32, #tpu.memory_space<vmem>>, %arg7: memref<1x1x4xf32, #tpu.memory_space<vmem>>, %arg8: memref<9x16x16x4xbf16, #tpu.memory_space<vmem>>) attributes {dimension_semantics = [#tpu.dimension_semantics<parallel>], iteration_bounds = array<i64: 2>, scalar_prefetch = 0 : i64, scratch_operands = 1 : i64, tpu.core_type = #tpu.core_type<tc>, window_params = [{transform_indices = @transform_0, window_bounds = array<i64: 1, 16, 16, 4>}, {pipeline_mode = #tpu.pipeline_mode<synchronous>, transform_indices = @transform_1, window_bounds = array<i64: 1, 4>}, {pipeline_mode = #tpu.pipeline_mode<synchronous>, transform_indices = @transform_2, window_bounds = array<i64: 1, 4>}, {pipeline_mode = #tpu.pipeline_mode<synchronous>, transform_indices = @transform_3, window_bounds = array<i64: 9, 4, 4>}, {transform_indices = @transform_4, window_bounds = array<i64: 1, 16, 16, 4>}, {transform_indices = @transform_5, window_bounds = array<i64: 1, 1, 4>}, {transform_indices = @transform_6, window_bounds = array<i64: 1, 1, 4>}]} {
    %c0 = arith.constant 0 : index
    %c0_0 = arith.constant 0 : index
    %0 = vector.load %arg2[%c0, %c0_0] : memref<1x4xf32, #tpu.memory_space<vmem>>, vector<1x4xf32>
    %1 = vector.shape_cast %0 : vector<1x4xf32> to vector<1x1x1x4xf32>
    %c0_1 = arith.constant 0 : index
    %c0_2 = arith.constant 0 : index
    %2 = vector.load %arg3[%c0_1, %c0_2] : memref<1x4xf32, #tpu.memory_space<vmem>>, vector<1x4xf32>
    %3 = vector.shape_cast %2 : vector<1x4xf32> to vector<1x1x1x4xf32>
    %c0_3 = arith.constant 0 : index
    %c0_4 = arith.constant 0 : index
    %c0_5 = arith.constant 0 : index
    %c0_6 = arith.constant 0 : index
    %4 = vector.load %arg1[%c0_3, %c0_4, %c0_5, %c0_6] : memref<1x16x16x4xbf16, #tpu.memory_space<vmem>>, vector<1x16x16x4xbf16>
    %5 = arith.extf %4 : vector<1x16x16x4xbf16> to vector<1x16x16x4xf32>
    %6 = vector.broadcast %1 : vector<1x1x1x4xf32> to vector<1x16x16x4xf32>
    %7 = arith.mulf %5, %6 : vector<1x16x16x4xf32>
    %8 = vector.broadcast %3 : vector<1x1x1x4xf32> to vector<1x16x16x4xf32>
    %9 = arith.addf %7, %8 : vector<1x16x16x4xf32>
    %cst = arith.constant 0.000000e+00 : f32
    %10 = vector.broadcast %cst : f32 to vector<1x16x16x4xf32>
    %11 = arith.maximumf %9, %10 : vector<1x16x16x4xf32>
    %12 = arith.truncf %11 : vector<1x16x16x4xf32> to vector<1x16x16x4xbf16>
    %cst_7 = arith.constant 0.000000e+00 : bf16
    %13 = vector.broadcast %cst_7 : bf16 to vector<3x1x16x4xbf16>
    %c0_8 = arith.constant 0 : index
    %c0_9 = arith.constant 0 : index
    %c0_10 = arith.constant 0 : index
    %c0_11 = arith.constant 0 : index
    %14 = vector.load %arg8[%c0_8, %c0_9, %c0_10, %c0_11] : memref<9x16x16x4xbf16, #tpu.memory_space<vmem>>, vector<3x1x16x4xbf16>
    tpu.vector_store %arg8[%c0_8, %c0_9, %c0_10, %c0_11], %13 {strides = array<i32>} : memref<9x16x16x4xbf16, #tpu.memory_space<vmem>>, vector<3x1x16x4xbf16>,
    %cst_12 = arith.constant 0.000000e+00 : bf16
    %15 = vector.broadcast %cst_12 : bf16 to vector<3x1x16x4xbf16>
    %c6 = arith.constant 6 : index
    %c15 = arith.constant 15 : index
    %c0_13 = arith.constant 0 : index
    %c0_14 = arith.constant 0 : index
    %16 = vector.load %arg8[%c6, %c15, %c0_13, %c0_14] : memref<9x16x16x4xbf16, #tpu.memory_space<vmem>>, vector<3x1x16x4xbf16>
    tpu.vector_store %arg8[%c6, %c15, %c0_13, %c0_14], %15 {strides = array<i32>} : memref<9x16x16x4xbf16, #tpu.memory_space<vmem>>, vector<3x1x16x4xbf16>,
    %cst_15 = arith.constant 0.000000e+00 : bf16
    %17 = vector.broadcast %cst_15 : bf16 to vector<16x1x4xbf16>
    %c0_16 = arith.constant 0 : index
    %c0_17 = arith.constant 0 : index
    %c0_18 = arith.constant 0 : index
    %c0_19 = arith.constant 0 : index
    %18 = vector.load %arg8[%c0_16, %c0_17, %c0_18, %c0_19] : memref<9x16x16x4xbf16, #tpu.memory_space<vmem>>, vector<1x16x1x4xbf16>
    %19 = vector.shape_cast %18 : vector<1x16x1x4xbf16> to vector<16x1x4xbf16>
    %20 = vector.shape_cast %17 : vector<16x1x4xbf16> to vector<1x16x1x4xbf16>
    tpu.vector_store %arg8[%c0_16, %c0_17, %c0_18, %c0_19], %20 {strides = array<i32>} : memref<9x16x16x4xbf16, #tpu.memory_space<vmem>>, vector<1x16x1x4xbf16>,
    %21 = vector.extract_strided_slice %12 {offsets = [0, 0, 0, 0], sizes = [1, 15, 15, 4], strides = [1, 1, 1, 1]} : vector<1x16x16x4xbf16> to vector<1x15x15x4xbf16>
    %22 = vector.shape_cast %21 : vector<1x15x15x4xbf16> to vector<15x15x4xbf16>
    %c0_20 = arith.constant 0 : index
    %c1 = arith.constant 1 : index
    %c1_21 = arith.constant 1 : index
    %c0_22 = arith.constant 0 : index
    %23 = vector.load %arg8[%c0_20, %c1, %c1_21, %c0_22] : memref<9x16x16x4xbf16, #tpu.memory_space<vmem>>, vector<1x15x15x4xbf16>
    %24 = vector.shape_cast %23 : vector<1x15x15x4xbf16> to vector<15x15x4xbf16>
    %25 = vector.shape_cast %22 : vector<15x15x4xbf16> to vector<1x15x15x4xbf16>
    tpu.vector_store %arg8[%c0_20, %c1, %c1_21, %c0_22], %25 {strides = array<i32>} : memref<9x16x16x4xbf16, #tpu.memory_space<vmem>>, vector<1x15x15x4xbf16>,
    %26 = vector.extract_strided_slice %12 {offsets = [0, 0, 0, 0], sizes = [1, 15, 16, 4], strides = [1, 1, 1, 1]} : vector<1x16x16x4xbf16> to vector<1x15x16x4xbf16>
    %27 = vector.shape_cast %26 : vector<1x15x16x4xbf16> to vector<15x16x4xbf16>
    %c1_23 = arith.constant 1 : index
    %c1_24 = arith.constant 1 : index
    %c0_25 = arith.constant 0 : index
    %c0_26 = arith.constant 0 : index
    %28 = vector.load %arg8[%c1_23, %c1_24, %c0_25, %c0_26] : memref<9x16x16x4xbf16, #tpu.memory_space<vmem>>, vector<1x15x16x4xbf16>
    %29 = vector.shape_cast %28 : vector<1x15x16x4xbf16> to vector<15x16x4xbf16>
    %30 = vector.shape_cast %27 : vector<15x16x4xbf16> to vector<1x15x16x4xbf16>
    tpu.vector_store %arg8[%c1_23, %c1_24, %c0_25, %c0_26], %30 {strides = array<i32>} : memref<9x16x16x4xbf16, #tpu.memory_space<vmem>>, vector<1x15x16x4xbf16>,
    %cst_27 = arith.constant 0.000000e+00 : bf16
    %31 = vector.broadcast %cst_27 : bf16 to vector<16x1x4xbf16>
    %c2 = arith.constant 2 : index
    %c0_28 = arith.constant 0 : index
    %c15_29 = arith.constant 15 : index
    %c0_30 = arith.constant 0 : index
    %32 = vector.load %arg8[%c2, %c0_28, %c15_29, %c0_30] : memref<9x16x16x4xbf16, #tpu.memory_space<vmem>>, vector<1x16x1x4xbf16>
    %33 = vector.shape_cast %32 : vector<1x16x1x4xbf16> to vector<16x1x4xbf16>
    %34 = vector.shape_cast %31 : vector<16x1x4xbf16> to vector<1x16x1x4xbf16>
    tpu.vector_store %arg8[%c2, %c0_28, %c15_29, %c0_30], %34 {strides = array<i32>} : memref<9x16x16x4xbf16, #tpu.memory_space<vmem>>, vector<1x16x1x4xbf16>,
    %35 = vector.extract_strided_slice %12 {offsets = [0, 0, 1, 0], sizes = [1, 15, 15, 4], strides = [1, 1, 1, 1]} : vector<1x16x16x4xbf16> to vector<1x15x15x4xbf16>
    %36 = vector.shape_cast %35 : vector<1x15x15x4xbf16> to vector<15x15x4xbf16>
    %c2_31 = arith.constant 2 : index
    %c1_32 = arith.constant 1 : index
    %c0_33 = arith.constant 0 : index
    %c0_34 = arith.constant 0 : index
    %37 = vector.load %arg8[%c2_31, %c1_32, %c0_33, %c0_34] : memref<9x16x16x4xbf16, #tpu.memory_space<vmem>>, vector<1x15x15x4xbf16>
    %38 = vector.shape_cast %37 : vector<1x15x15x4xbf16> to vector<15x15x4xbf16>
    %39 = vector.shape_cast %36 : vector<15x15x4xbf16> to vector<1x15x15x4xbf16>
    tpu.vector_store %arg8[%c2_31, %c1_32, %c0_33, %c0_34], %39 {strides = array<i32>} : memref<9x16x16x4xbf16, #tpu.memory_space<vmem>>, vector<1x15x15x4xbf16>,
    %cst_35 = arith.constant 0.000000e+00 : bf16
    %40 = vector.broadcast %cst_35 : bf16 to vector<16x1x4xbf16>
    %c3 = arith.constant 3 : index
    %c0_36 = arith.constant 0 : index
    %c0_37 = arith.constant 0 : index
    %c0_38 = arith.constant 0 : index
    %41 = vector.load %arg8[%c3, %c0_36, %c0_37, %c0_38] : memref<9x16x16x4xbf16, #tpu.memory_space<vmem>>, vector<1x16x1x4xbf16>
    %42 = vector.shape_cast %41 : vector<1x16x1x4xbf16> to vector<16x1x4xbf16>
    %43 = vector.shape_cast %40 : vector<16x1x4xbf16> to vector<1x16x1x4xbf16>
    tpu.vector_store %arg8[%c3, %c0_36, %c0_37, %c0_38], %43 {strides = array<i32>} : memref<9x16x16x4xbf16, #tpu.memory_space<vmem>>, vector<1x16x1x4xbf16>,
    %44 = vector.extract_strided_slice %12 {offsets = [0, 0, 0, 0], sizes = [1, 16, 15, 4], strides = [1, 1, 1, 1]} : vector<1x16x16x4xbf16> to vector<1x16x15x4xbf16>
    %45 = vector.shape_cast %44 : vector<1x16x15x4xbf16> to vector<16x15x4xbf16>
    %c3_39 = arith.constant 3 : index
    %c0_40 = arith.constant 0 : index
    %c1_41 = arith.constant 1 : index
    %c0_42 = arith.constant 0 : index
    %46 = vector.load %arg8[%c3_39, %c0_40, %c1_41, %c0_42] : memref<9x16x16x4xbf16, #tpu.memory_space<vmem>>, vector<1x16x15x4xbf16>
    %47 = vector.shape_cast %46 : vector<1x16x15x4xbf16> to vector<16x15x4xbf16>
    %48 = vector.shape_cast %45 : vector<16x15x4xbf16> to vector<1x16x15x4xbf16>
    tpu.vector_store %arg8[%c3_39, %c0_40, %c1_41, %c0_42], %48 {strides = array<i32>} : memref<9x16x16x4xbf16, #tpu.memory_space<vmem>>, vector<1x16x15x4xbf16>,
    %49 = vector.shape_cast %12 : vector<1x16x16x4xbf16> to vector<16x16x4xbf16>
    %c4 = arith.constant 4 : index
    %c0_43 = arith.constant 0 : index
    %c0_44 = arith.constant 0 : index
    %c0_45 = arith.constant 0 : index
    %50 = vector.load %arg8[%c4, %c0_43, %c0_44, %c0_45] : memref<9x16x16x4xbf16, #tpu.memory_space<vmem>>, vector<1x16x16x4xbf16>
    %51 = vector.shape_cast %50 : vector<1x16x16x4xbf16> to vector<16x16x4xbf16>
    %52 = vector.shape_cast %49 : vector<16x16x4xbf16> to vector<1x16x16x4xbf16>
    tpu.vector_store %arg8[%c4, %c0_43, %c0_44, %c0_45], %52 {strides = array<i32>} : memref<9x16x16x4xbf16, #tpu.memory_space<vmem>>, vector<1x16x16x4xbf16>,
    %cst_46 = arith.constant 0.000000e+00 : bf16
    %53 = vector.broadcast %cst_46 : bf16 to vector<16x1x4xbf16>
    %c5 = arith.constant 5 : index
    %c0_47 = arith.constant 0 : index
    %c15_48 = arith.constant 15 : index
    %c0_49 = arith.constant 0 : index
    %54 = vector.load %arg8[%c5, %c0_47, %c15_48, %c0_49] : memref<9x16x16x4xbf16, #tpu.memory_space<vmem>>, vector<1x16x1x4xbf16>
    %55 = vector.shape_cast %54 : vector<1x16x1x4xbf16> to vector<16x1x4xbf16>
    %56 = vector.shape_cast %53 : vector<16x1x4xbf16> to vector<1x16x1x4xbf16>
    tpu.vector_store %arg8[%c5, %c0_47, %c15_48, %c0_49], %56 {strides = array<i32>} : memref<9x16x16x4xbf16, #tpu.memory_space<vmem>>, vector<1x16x1x4xbf16>,
    %57 = vector.extract_strided_slice %12 {offsets = [0, 0, 1, 0], sizes = [1, 16, 15, 4], strides = [1, 1, 1, 1]} : vector<1x16x16x4xbf16> to vector<1x16x15x4xbf16>
    %58 = vector.shape_cast %57 : vector<1x16x15x4xbf16> to vector<16x15x4xbf16>
    %c5_50 = arith.constant 5 : index
    %c0_51 = arith.constant 0 : index
    %c0_52 = arith.constant 0 : index
    %c0_53 = arith.constant 0 : index
    %59 = vector.load %arg8[%c5_50, %c0_51, %c0_52, %c0_53] : memref<9x16x16x4xbf16, #tpu.memory_space<vmem>>, vector<1x16x15x4xbf16>
    %60 = vector.shape_cast %59 : vector<1x16x15x4xbf16> to vector<16x15x4xbf16>
    %61 = vector.shape_cast %58 : vector<16x15x4xbf16> to vector<1x16x15x4xbf16>
    tpu.vector_store %arg8[%c5_50, %c0_51, %c0_52, %c0_53], %61 {strides = array<i32>} : memref<9x16x16x4xbf16, #tpu.memory_space<vmem>>, vector<1x16x15x4xbf16>,
    %cst_54 = arith.constant 0.000000e+00 : bf16
    %62 = vector.broadcast %cst_54 : bf16 to vector<16x1x4xbf16>
    %c6_55 = arith.constant 6 : index
    %c0_56 = arith.constant 0 : index
    %c0_57 = arith.constant 0 : index
    %c0_58 = arith.constant 0 : index
    %63 = vector.load %arg8[%c6_55, %c0_56, %c0_57, %c0_58] : memref<9x16x16x4xbf16, #tpu.memory_space<vmem>>, vector<1x16x1x4xbf16>
    %64 = vector.shape_cast %63 : vector<1x16x1x4xbf16> to vector<16x1x4xbf16>
    %65 = vector.shape_cast %62 : vector<16x1x4xbf16> to vector<1x16x1x4xbf16>
    tpu.vector_store %arg8[%c6_55, %c0_56, %c0_57, %c0_58], %65 {strides = array<i32>} : memref<9x16x16x4xbf16, #tpu.memory_space<vmem>>, vector<1x16x1x4xbf16>,
    %66 = vector.extract_strided_slice %12 {offsets = [0, 1, 0, 0], sizes = [1, 15, 15, 4], strides = [1, 1, 1, 1]} : vector<1x16x16x4xbf16> to vector<1x15x15x4xbf16>
    %67 = vector.shape_cast %66 : vector<1x15x15x4xbf16> to vector<15x15x4xbf16>
    %c6_59 = arith.constant 6 : index
    %c0_60 = arith.constant 0 : index
    %c1_61 = arith.constant 1 : index
    %c0_62 = arith.constant 0 : index
    %68 = vector.load %arg8[%c6_59, %c0_60, %c1_61, %c0_62] : memref<9x16x16x4xbf16, #tpu.memory_space<vmem>>, vector<1x15x15x4xbf16>
    %69 = vector.shape_cast %68 : vector<1x15x15x4xbf16> to vector<15x15x4xbf16>
    %70 = vector.shape_cast %67 : vector<15x15x4xbf16> to vector<1x15x15x4xbf16>
    tpu.vector_store %arg8[%c6_59, %c0_60, %c1_61, %c0_62], %70 {strides = array<i32>} : memref<9x16x16x4xbf16, #tpu.memory_space<vmem>>, vector<1x15x15x4xbf16>,
    %71 = vector.extract_strided_slice %12 {offsets = [0, 1, 0, 0], sizes = [1, 15, 16, 4], strides = [1, 1, 1, 1]} : vector<1x16x16x4xbf16> to vector<1x15x16x4xbf16>
    %72 = vector.shape_cast %71 : vector<1x15x16x4xbf16> to vector<15x16x4xbf16>
    %c7 = arith.constant 7 : index
    %c0_63 = arith.constant 0 : index
    %c0_64 = arith.constant 0 : index
    %c0_65 = arith.constant 0 : index
    %73 = vector.load %arg8[%c7, %c0_63, %c0_64, %c0_65] : memref<9x16x16x4xbf16, #tpu.memory_space<vmem>>, vector<1x15x16x4xbf16>
    %74 = vector.shape_cast %73 : vector<1x15x16x4xbf16> to vector<15x16x4xbf16>
    %75 = vector.shape_cast %72 : vector<15x16x4xbf16> to vector<1x15x16x4xbf16>
    tpu.vector_store %arg8[%c7, %c0_63, %c0_64, %c0_65], %75 {strides = array<i32>} : memref<9x16x16x4xbf16, #tpu.memory_space<vmem>>, vector<1x15x16x4xbf16>,
    %cst_66 = arith.constant 0.000000e+00 : bf16
    %76 = vector.broadcast %cst_66 : bf16 to vector<16x1x4xbf16>
    %c8 = arith.constant 8 : index
    %c0_67 = arith.constant 0 : index
    %c15_68 = arith.constant 15 : index
    %c0_69 = arith.constant 0 : index
    %77 = vector.load %arg8[%c8, %c0_67, %c15_68, %c0_69] : memref<9x16x16x4xbf16, #tpu.memory_space<vmem>>, vector<1x16x1x4xbf16>
    %78 = vector.shape_cast %77 : vector<1x16x1x4xbf16> to vector<16x1x4xbf16>
    %79 = vector.shape_cast %76 : vector<16x1x4xbf16> to vector<1x16x1x4xbf16>
    tpu.vector_store %arg8[%c8, %c0_67, %c15_68, %c0_69], %79 {strides = array<i32>} : memref<9x16x16x4xbf16, #tpu.memory_space<vmem>>, vector<1x16x1x4xbf16>,
    %80 = vector.extract_strided_slice %12 {offsets = [0, 1, 1, 0], sizes = [1, 15, 15, 4], strides = [1, 1, 1, 1]} : vector<1x16x16x4xbf16> to vector<1x15x15x4xbf16>
    %81 = vector.shape_cast %80 : vector<1x15x15x4xbf16> to vector<15x15x4xbf16>
    %c8_70 = arith.constant 8 : index
    %c0_71 = arith.constant 0 : index
    %c0_72 = arith.constant 0 : index
    %c0_73 = arith.constant 0 : index
    %82 = vector.load %arg8[%c8_70, %c0_71, %c0_72, %c0_73] : memref<9x16x16x4xbf16, #tpu.memory_space<vmem>>, vector<1x15x15x4xbf16>
    %83 = vector.shape_cast %82 : vector<1x15x15x4xbf16> to vector<15x15x4xbf16>
    %84 = vector.shape_cast %81 : vector<15x15x4xbf16> to vector<1x15x15x4xbf16>
    tpu.vector_store %arg8[%c8_70, %c0_71, %c0_72, %c0_73], %84 {strides = array<i32>} : memref<9x16x16x4xbf16, #tpu.memory_space<vmem>>, vector<1x15x15x4xbf16>,
    %c0_74 = arith.constant 0 : index
    %c0_75 = arith.constant 0 : index
    %c0_76 = arith.constant 0 : index
    %c0_77 = arith.constant 0 : index
    %85 = vector.load %arg8[%c0_74, %c0_75, %c0_76, %c0_77] : memref<9x16x16x4xbf16, #tpu.memory_space<vmem>>, vector<1x16x16x4xbf16>
    %86 = vector.shape_cast %85 : vector<1x16x16x4xbf16> to vector<16x16x4xbf16>
    %87 = vector.shape_cast %86 : vector<16x16x4xbf16> to vector<256x4xbf16>
    %c0_78 = arith.constant 0 : index
    %c0_79 = arith.constant 0 : index
    %c0_80 = arith.constant 0 : index
    %88 = vector.load %arg4[%c0_78, %c0_79, %c0_80] : memref<9x4x4xbf16, #tpu.memory_space<vmem>>, vector<1x4x4xbf16>
    %89 = vector.shape_cast %88 : vector<1x4x4xbf16> to vector<4x4xbf16>
    %cst_81 = arith.constant dense<0.000000e+00> : vector<256x4xf32>
    %90 = tpu.matmul %87, %89, %cst_81 {dimension_numbers = #tpu.dot_dimension_numbers<[1], [0], [0], [1], [0, 0, 1, 1], [], []>} : vector<256x4xbf16>, vector<4x4xbf16>, vector<256x4xf32> -> vector<256x4xf32>
    %c1_82 = arith.constant 1 : index
    %c0_83 = arith.constant 0 : index
    %c0_84 = arith.constant 0 : index
    %c0_85 = arith.constant 0 : index
    %91 = vector.load %arg8[%c1_82, %c0_83, %c0_84, %c0_85] : memref<9x16x16x4xbf16, #tpu.memory_space<vmem>>, vector<1x16x16x4xbf16>
    %92 = vector.shape_cast %91 : vector<1x16x16x4xbf16> to vector<16x16x4xbf16>
    %93 = vector.shape_cast %92 : vector<16x16x4xbf16> to vector<256x4xbf16>
    %c1_86 = arith.constant 1 : index
    %c0_87 = arith.constant 0 : index
    %c0_88 = arith.constant 0 : index
    %94 = vector.load %arg4[%c1_86, %c0_87, %c0_88] : memref<9x4x4xbf16, #tpu.memory_space<vmem>>, vector<1x4x4xbf16>
    %95 = vector.shape_cast %94 : vector<1x4x4xbf16> to vector<4x4xbf16>
    %cst_89 = arith.constant dense<0.000000e+00> : vector<256x4xf32>
    %96 = tpu.matmul %93, %95, %cst_89 {dimension_numbers = #tpu.dot_dimension_numbers<[1], [0], [0], [1], [0, 0, 1, 1], [], []>} : vector<256x4xbf16>, vector<4x4xbf16>, vector<256x4xf32> -> vector<256x4xf32>
    %97 = arith.addf %90, %96 : vector<256x4xf32>
    %c2_90 = arith.constant 2 : index
    %c0_91 = arith.constant 0 : index
    %c0_92 = arith.constant 0 : index
    %c0_93 = arith.constant 0 : index
    %98 = vector.load %arg8[%c2_90, %c0_91, %c0_92, %c0_93] : memref<9x16x16x4xbf16, #tpu.memory_space<vmem>>, vector<1x16x16x4xbf16>
    %99 = vector.shape_cast %98 : vector<1x16x16x4xbf16> to vector<16x16x4xbf16>
    %100 = vector.shape_cast %99 : vector<16x16x4xbf16> to vector<256x4xbf16>
    %c2_94 = arith.constant 2 : index
    %c0_95 = arith.constant 0 : index
    %c0_96 = arith.constant 0 : index
    %101 = vector.load %arg4[%c2_94, %c0_95, %c0_96] : memref<9x4x4xbf16, #tpu.memory_space<vmem>>, vector<1x4x4xbf16>
    %102 = vector.shape_cast %101 : vector<1x4x4xbf16> to vector<4x4xbf16>
    %cst_97 = arith.constant dense<0.000000e+00> : vector<256x4xf32>
    %103 = tpu.matmul %100, %102, %cst_97 {dimension_numbers = #tpu.dot_dimension_numbers<[1], [0], [0], [1], [0, 0, 1, 1], [], []>} : vector<256x4xbf16>, vector<4x4xbf16>, vector<256x4xf32> -> vector<256x4xf32>
    %104 = arith.addf %97, %103 : vector<256x4xf32>
    %c3_98 = arith.constant 3 : index
    %c0_99 = arith.constant 0 : index
    %c0_100 = arith.constant 0 : index
    %c0_101 = arith.constant 0 : index
    %105 = vector.load %arg8[%c3_98, %c0_99, %c0_100, %c0_101] : memref<9x16x16x4xbf16, #tpu.memory_space<vmem>>, vector<1x16x16x4xbf16>
    %106 = vector.shape_cast %105 : vector<1x16x16x4xbf16> to vector<16x16x4xbf16>
    %107 = vector.shape_cast %106 : vector<16x16x4xbf16> to vector<256x4xbf16>
    %c3_102 = arith.constant 3 : index
    %c0_103 = arith.constant 0 : index
    %c0_104 = arith.constant 0 : index
    %108 = vector.load %arg4[%c3_102, %c0_103, %c0_104] : memref<9x4x4xbf16, #tpu.memory_space<vmem>>, vector<1x4x4xbf16>
    %109 = vector.shape_cast %108 : vector<1x4x4xbf16> to vector<4x4xbf16>
    %cst_105 = arith.constant dense<0.000000e+00> : vector<256x4xf32>
    %110 = tpu.matmul %107, %109, %cst_105 {dimension_numbers = #tpu.dot_dimension_numbers<[1], [0], [0], [1], [0, 0, 1, 1], [], []>} : vector<256x4xbf16>, vector<4x4xbf16>, vector<256x4xf32> -> vector<256x4xf32>
    %111 = arith.addf %104, %110 : vector<256x4xf32>
    %c4_106 = arith.constant 4 : index
    %c0_107 = arith.constant 0 : index
    %c0_108 = arith.constant 0 : index
    %c0_109 = arith.constant 0 : index
    %112 = vector.load %arg8[%c4_106, %c0_107, %c0_108, %c0_109] : memref<9x16x16x4xbf16, #tpu.memory_space<vmem>>, vector<1x16x16x4xbf16>
    %113 = vector.shape_cast %112 : vector<1x16x16x4xbf16> to vector<16x16x4xbf16>
    %114 = vector.shape_cast %113 : vector<16x16x4xbf16> to vector<256x4xbf16>
    %c4_110 = arith.constant 4 : index
    %c0_111 = arith.constant 0 : index
    %c0_112 = arith.constant 0 : index
    %115 = vector.load %arg4[%c4_110, %c0_111, %c0_112] : memref<9x4x4xbf16, #tpu.memory_space<vmem>>, vector<1x4x4xbf16>
    %116 = vector.shape_cast %115 : vector<1x4x4xbf16> to vector<4x4xbf16>
    %cst_113 = arith.constant dense<0.000000e+00> : vector<256x4xf32>
    %117 = tpu.matmul %114, %116, %cst_113 {dimension_numbers = #tpu.dot_dimension_numbers<[1], [0], [0], [1], [0, 0, 1, 1], [], []>} : vector<256x4xbf16>, vector<4x4xbf16>, vector<256x4xf32> -> vector<256x4xf32>
    %118 = arith.addf %111, %117 : vector<256x4xf32>
    %c5_114 = arith.constant 5 : index
    %c0_115 = arith.constant 0 : index
    %c0_116 = arith.constant 0 : index
    %c0_117 = arith.constant 0 : index
    %119 = vector.load %arg8[%c5_114, %c0_115, %c0_116, %c0_117] : memref<9x16x16x4xbf16, #tpu.memory_space<vmem>>, vector<1x16x16x4xbf16>
    %120 = vector.shape_cast %119 : vector<1x16x16x4xbf16> to vector<16x16x4xbf16>
    %121 = vector.shape_cast %120 : vector<16x16x4xbf16> to vector<256x4xbf16>
    %c5_118 = arith.constant 5 : index
    %c0_119 = arith.constant 0 : index
    %c0_120 = arith.constant 0 : index
    %122 = vector.load %arg4[%c5_118, %c0_119, %c0_120] : memref<9x4x4xbf16, #tpu.memory_space<vmem>>, vector<1x4x4xbf16>
    %123 = vector.shape_cast %122 : vector<1x4x4xbf16> to vector<4x4xbf16>
    %cst_121 = arith.constant dense<0.000000e+00> : vector<256x4xf32>
    %124 = tpu.matmul %121, %123, %cst_121 {dimension_numbers = #tpu.dot_dimension_numbers<[1], [0], [0], [1], [0, 0, 1, 1], [], []>} : vector<256x4xbf16>, vector<4x4xbf16>, vector<256x4xf32> -> vector<256x4xf32>
    %125 = arith.addf %118, %124 : vector<256x4xf32>
    %c6_122 = arith.constant 6 : index
    %c0_123 = arith.constant 0 : index
    %c0_124 = arith.constant 0 : index
    %c0_125 = arith.constant 0 : index
    %126 = vector.load %arg8[%c6_122, %c0_123, %c0_124, %c0_125] : memref<9x16x16x4xbf16, #tpu.memory_space<vmem>>, vector<1x16x16x4xbf16>
    %127 = vector.shape_cast %126 : vector<1x16x16x4xbf16> to vector<16x16x4xbf16>
    %128 = vector.shape_cast %127 : vector<16x16x4xbf16> to vector<256x4xbf16>
    %c6_126 = arith.constant 6 : index
    %c0_127 = arith.constant 0 : index
    %c0_128 = arith.constant 0 : index
    %129 = vector.load %arg4[%c6_126, %c0_127, %c0_128] : memref<9x4x4xbf16, #tpu.memory_space<vmem>>, vector<1x4x4xbf16>
    %130 = vector.shape_cast %129 : vector<1x4x4xbf16> to vector<4x4xbf16>
    %cst_129 = arith.constant dense<0.000000e+00> : vector<256x4xf32>
    %131 = tpu.matmul %128, %130, %cst_129 {dimension_numbers = #tpu.dot_dimension_numbers<[1], [0], [0], [1], [0, 0, 1, 1], [], []>} : vector<256x4xbf16>, vector<4x4xbf16>, vector<256x4xf32> -> vector<256x4xf32>
    %132 = arith.addf %125, %131 : vector<256x4xf32>
    %c7_130 = arith.constant 7 : index
    %c0_131 = arith.constant 0 : index
    %c0_132 = arith.constant 0 : index
    %c0_133 = arith.constant 0 : index
    %133 = vector.load %arg8[%c7_130, %c0_131, %c0_132, %c0_133] : memref<9x16x16x4xbf16, #tpu.memory_space<vmem>>, vector<1x16x16x4xbf16>
    %134 = vector.shape_cast %133 : vector<1x16x16x4xbf16> to vector<16x16x4xbf16>
    %135 = vector.shape_cast %134 : vector<16x16x4xbf16> to vector<256x4xbf16>
    %c7_134 = arith.constant 7 : index
    %c0_135 = arith.constant 0 : index
    %c0_136 = arith.constant 0 : index
    %136 = vector.load %arg4[%c7_134, %c0_135, %c0_136] : memref<9x4x4xbf16, #tpu.memory_space<vmem>>, vector<1x4x4xbf16>
    %137 = vector.shape_cast %136 : vector<1x4x4xbf16> to vector<4x4xbf16>
    %cst_137 = arith.constant dense<0.000000e+00> : vector<256x4xf32>
    %138 = tpu.matmul %135, %137, %cst_137 {dimension_numbers = #tpu.dot_dimension_numbers<[1], [0], [0], [1], [0, 0, 1, 1], [], []>} : vector<256x4xbf16>, vector<4x4xbf16>, vector<256x4xf32> -> vector<256x4xf32>
    %139 = arith.addf %132, %138 : vector<256x4xf32>
    %c8_138 = arith.constant 8 : index
    %c0_139 = arith.constant 0 : index
    %c0_140 = arith.constant 0 : index
    %c0_141 = arith.constant 0 : index
    %140 = vector.load %arg8[%c8_138, %c0_139, %c0_140, %c0_141] : memref<9x16x16x4xbf16, #tpu.memory_space<vmem>>, vector<1x16x16x4xbf16>
    %141 = vector.shape_cast %140 : vector<1x16x16x4xbf16> to vector<16x16x4xbf16>
    %142 = vector.shape_cast %141 : vector<16x16x4xbf16> to vector<256x4xbf16>
    %c8_142 = arith.constant 8 : index
    %c0_143 = arith.constant 0 : index
    %c0_144 = arith.constant 0 : index
    %143 = vector.load %arg4[%c8_142, %c0_143, %c0_144] : memref<9x4x4xbf16, #tpu.memory_space<vmem>>, vector<1x4x4xbf16>
    %144 = vector.shape_cast %143 : vector<1x4x4xbf16> to vector<4x4xbf16>
    %cst_145 = arith.constant dense<0.000000e+00> : vector<256x4xf32>
    %145 = tpu.matmul %142, %144, %cst_145 {dimension_numbers = #tpu.dot_dimension_numbers<[1], [0], [0], [1], [0, 0, 1, 1], [], []>} : vector<256x4xbf16>, vector<4x4xbf16>, vector<256x4xf32> -> vector<256x4xf32>
    %146 = arith.addf %139, %145 : vector<256x4xf32>
    %147 = vector.shape_cast %146 : vector<256x4xf32> to vector<1x16x16x4xf32>
    %148 = arith.truncf %147 : vector<1x16x16x4xf32> to vector<1x16x16x4xbf16>
    %c0_146 = arith.constant 0 : index
    %c0_147 = arith.constant 0 : index
    %c0_148 = arith.constant 0 : index
    %c0_149 = arith.constant 0 : index
    %149 = vector.load %arg5[%c0_146, %c0_147, %c0_148, %c0_149] : memref<1x16x16x4xbf16, #tpu.memory_space<vmem>>, vector<1x16x16x4xbf16>
    tpu.vector_store %arg5[%c0_146, %c0_147, %c0_148, %c0_149], %148 {strides = array<i32>} : memref<1x16x16x4xbf16, #tpu.memory_space<vmem>>, vector<1x16x16x4xbf16>,
    %cst_150 = arith.constant dense<0.000000e+00> : vector<4xf32>
    %150 = vector.multi_reduction <add>, %146, %cst_150 [0] : vector<256x4xf32> to vector<4xf32>
    %151 = vector.shape_cast %150 : vector<4xf32> to vector<1x1x4xf32>
    %c0_151 = arith.constant 0 : index
    %c0_152 = arith.constant 0 : index
    %c0_153 = arith.constant 0 : index
    %152 = vector.load %arg6[%c0_151, %c0_152, %c0_153] : memref<1x1x4xf32, #tpu.memory_space<vmem>>, vector<1x1x4xf32>
    tpu.vector_store %arg6[%c0_151, %c0_152, %c0_153], %151 {strides = array<i32>} : memref<1x1x4xf32, #tpu.memory_space<vmem>>, vector<1x1x4xf32>,
    %153 = arith.mulf %146, %146 : vector<256x4xf32>
    %cst_154 = arith.constant dense<0.000000e+00> : vector<4xf32>
    %154 = vector.multi_reduction <add>, %153, %cst_154 [0] : vector<256x4xf32> to vector<4xf32>
    %155 = vector.shape_cast %154 : vector<4xf32> to vector<1x1x4xf32>
    %c0_155 = arith.constant 0 : index
    %c0_156 = arith.constant 0 : index
    %c0_157 = arith.constant 0 : index
    %156 = vector.load %arg7[%c0_155, %c0_156, %c0_157] : memref<1x1x4xf32, #tpu.memory_space<vmem>>, vector<1x1x4xf32>
    tpu.vector_store %arg7[%c0_155, %c0_156, %c0_157], %155 {strides = array<i32>} : memref<1x1x4xf32, #tpu.memory_space<vmem>>, vector<1x1x4xf32>,
    return
  }
  func.func @transform_0(%arg0: i32) -> (i32, i32, i32, i32) {
    %c0_i32 = arith.constant 0 : i32
    %c0_i32_0 = arith.constant 0 : i32
    %c0_i32_1 = arith.constant 0 : i32
    %c0_i32_2 = arith.constant 0 : i32
    return %arg0, %c0_i32, %c0_i32_0, %c0_i32_1 : i32, i32, i32, i32
  }
  func.func @transform_1(%arg0: i32) -> (i32, i32) {
    %c0_i32 = arith.constant 0 : i32
    %c0_i32_0 = arith.constant 0 : i32
    %c0_i32_1 = arith.constant 0 : i32
    return %c0_i32, %c0_i32_0 : i32, i32
  }
  func.func @transform_2(%arg0: i32) -> (i32, i32) {
    %c0_i32 = arith.constant 0 : i32
    %c0_i32_0 = arith.constant 0 : i32
    %c0_i32_1 = arith.constant 0 : i32
    return %c0_i32, %c0_i32_0 : i32, i32
  }
  func.func @transform_3(%arg0: i32) -> (i32, i32, i32) {
    %c0_i32 = arith.constant 0 : i32
    %c0_i32_0 = arith.constant 0 : i32
    %c0_i32_1 = arith.constant 0 : i32
    %c0_i32_2 = arith.constant 0 : i32
    return %c0_i32, %c0_i32_0, %c0_i32_1 : i32, i32, i32
  }
  func.func @transform_4(%arg0: i32) -> (i32, i32, i32, i32) {
    %c0_i32 = arith.constant 0 : i32
    %c0_i32_0 = arith.constant 0 : i32
    %c0_i32_1 = arith.constant 0 : i32
    %c0_i32_2 = arith.constant 0 : i32
    return %arg0, %c0_i32, %c0_i32_0, %c0_i32_1 : i32, i32, i32, i32
  }
  func.func @transform_5(%arg0: i32) -> (i32, i32, i32) {
    %c0_i32 = arith.constant 0 : i32
    %c0_i32_0 = arith.constant 0 : i32
    %c0_i32_1 = arith.constant 0 : i32
    return %arg0, %c0_i32, %c0_i32_0 : i32, i32, i32
  }
  func.func @transform_6(%arg0: i32) -> (i32, i32, i32) {
    %c0_i32 = arith.constant 0 : i32
    %c0_i32_0 = arith.constant 0 : i32
    %c0_i32_1 = arith.constant 0 : i32
    return %arg0, %c0_i32, %c0_i32_0 : i32, i32, i32
  }
}

module attributes {stable_mosaic.version = 11 : i64} {
  func.func @_bn_residual_relu_kernel(%arg0: i32, %arg1: memref<1x16x16x4xf32, #tpu.memory_space<vmem>>, %arg2: memref<1x16x16x4xbf16, #tpu.memory_space<vmem>>, %arg3: memref<1x4xf32, #tpu.memory_space<vmem>>, %arg4: memref<1x4xf32, #tpu.memory_space<vmem>>, %arg5: memref<1x16x16x4xf32, #tpu.memory_space<vmem>>) attributes {dimension_semantics = [#tpu.dimension_semantics<parallel>], iteration_bounds = array<i64: 2>, scalar_prefetch = 0 : i64, scratch_operands = 0 : i64, tpu.core_type = #tpu.core_type<tc>, window_params = [{transform_indices = @transform_0, window_bounds = array<i64: 1, 16, 16, 4>}, {transform_indices = @transform_1, window_bounds = array<i64: 1, 16, 16, 4>}, {pipeline_mode = #tpu.pipeline_mode<synchronous>, transform_indices = @transform_2, window_bounds = array<i64: 1, 4>}, {pipeline_mode = #tpu.pipeline_mode<synchronous>, transform_indices = @transform_3, window_bounds = array<i64: 1, 4>}, {transform_indices = @transform_4, window_bounds = array<i64: 1, 16, 16, 4>}]} {
    %c0 = arith.constant 0 : index
    %c0_0 = arith.constant 0 : index
    %0 = vector.load %arg3[%c0, %c0_0] : memref<1x4xf32, #tpu.memory_space<vmem>>, vector<1x4xf32>
    %1 = vector.shape_cast %0 : vector<1x4xf32> to vector<1x1x1x4xf32>
    %c0_1 = arith.constant 0 : index
    %c0_2 = arith.constant 0 : index
    %2 = vector.load %arg4[%c0_1, %c0_2] : memref<1x4xf32, #tpu.memory_space<vmem>>, vector<1x4xf32>
    %3 = vector.shape_cast %2 : vector<1x4xf32> to vector<1x1x1x4xf32>
    %c0_3 = arith.constant 0 : index
    %c0_4 = arith.constant 0 : index
    %c0_5 = arith.constant 0 : index
    %c0_6 = arith.constant 0 : index
    %4 = vector.load %arg2[%c0_3, %c0_4, %c0_5, %c0_6] : memref<1x16x16x4xbf16, #tpu.memory_space<vmem>>, vector<1x16x16x4xbf16>
    %5 = arith.extf %4 : vector<1x16x16x4xbf16> to vector<1x16x16x4xf32>
    %6 = vector.broadcast %1 : vector<1x1x1x4xf32> to vector<1x16x16x4xf32>
    %7 = arith.mulf %5, %6 : vector<1x16x16x4xf32>
    %8 = vector.broadcast %3 : vector<1x1x1x4xf32> to vector<1x16x16x4xf32>
    %9 = arith.addf %7, %8 : vector<1x16x16x4xf32>
    %c0_7 = arith.constant 0 : index
    %c0_8 = arith.constant 0 : index
    %c0_9 = arith.constant 0 : index
    %c0_10 = arith.constant 0 : index
    %10 = vector.load %arg1[%c0_7, %c0_8, %c0_9, %c0_10] : memref<1x16x16x4xf32, #tpu.memory_space<vmem>>, vector<1x16x16x4xf32>
    %11 = arith.addf %10, %9 : vector<1x16x16x4xf32>
    %cst = arith.constant 0.000000e+00 : f32
    %12 = vector.broadcast %cst : f32 to vector<1x16x16x4xf32>
    %13 = arith.maximumf %11, %12 : vector<1x16x16x4xf32>
    %c0_11 = arith.constant 0 : index
    %c0_12 = arith.constant 0 : index
    %c0_13 = arith.constant 0 : index
    %c0_14 = arith.constant 0 : index
    %14 = vector.load %arg5[%c0_11, %c0_12, %c0_13, %c0_14] : memref<1x16x16x4xf32, #tpu.memory_space<vmem>>, vector<1x16x16x4xf32>
    tpu.vector_store %arg5[%c0_11, %c0_12, %c0_13, %c0_14], %13 {strides = array<i32>} : memref<1x16x16x4xf32, #tpu.memory_space<vmem>>, vector<1x16x16x4xf32>,
    return
  }
  func.func @transform_0(%arg0: i32) -> (i32, i32, i32, i32) {
    %c0_i32 = arith.constant 0 : i32
    %c0_i32_0 = arith.constant 0 : i32
    %c0_i32_1 = arith.constant 0 : i32
    %c0_i32_2 = arith.constant 0 : i32
    return %arg0, %c0_i32, %c0_i32_0, %c0_i32_1 : i32, i32, i32, i32
  }
  func.func @transform_1(%arg0: i32) -> (i32, i32, i32, i32) {
    %c0_i32 = arith.constant 0 : i32
    %c0_i32_0 = arith.constant 0 : i32
    %c0_i32_1 = arith.constant 0 : i32
    %c0_i32_2 = arith.constant 0 : i32
    return %arg0, %c0_i32, %c0_i32_0, %c0_i32_1 : i32, i32, i32, i32
  }
  func.func @transform_2(%arg0: i32) -> (i32, i32) {
    %c0_i32 = arith.constant 0 : i32
    %c0_i32_0 = arith.constant 0 : i32
    %c0_i32_1 = arith.constant 0 : i32
    return %c0_i32, %c0_i32_0 : i32, i32
  }
  func.func @transform_3(%arg0: i32) -> (i32, i32) {
    %c0_i32 = arith.constant 0 : i32
    %c0_i32_0 = arith.constant 0 : i32
    %c0_i32_1 = arith.constant 0 : i32
    return %c0_i32, %c0_i32_0 : i32, i32
  }
  func.func @transform_4(%arg0: i32) -> (i32, i32, i32, i32) {
    %c0_i32 = arith.constant 0 : i32
    %c0_i32_0 = arith.constant 0 : i32
    %c0_i32_1 = arith.constant 0 : i32
    %c0_i32_2 = arith.constant 0 : i32
    return %arg0, %c0_i32, %c0_i32_0, %c0_i32_1 : i32, i32, i32, i32
  }
}

</mosaic_0001>

<bundles_post_ra>
// kernel: restnet_basic_block.5
= control target key start
LH: loop header
LB: loop body
LE: loop exit
PB: predicated region body
PF: predicated region fallthrough
CT: control target
= control target key end

     0   :  { %s694_s15 = smov 0   ;;  %s914_s0 = inlined_call_operand.vmem [shape: f32[2,16,16,4], index: 0, kind: input, shape index: {}]   ;;  %s915_s1 = inlined_call_operand.vmem [shape: bf16[2,16,16,4], index: 1, kind: input, shape index: {}]   ;;  %s916_s2 = inlined_call_operand.vmem [shape: f32[1,4], index: 2, kind: input, shape index: {}]   ;;  %s917_s3 = inlined_call_operand.vmem [shape: f32[1,4], index: 3, kind: input, shape index: {}]   ;;  %s918_s4 = inlined_call_operand.vmem [shape: f32[2,16,16,4], index: 4, kind: output, shape index: {}]  }
   0x1 LB: > { %s556_s16 = sadd.s32 4294967295, %s667_s15   ;;  %p560_p0 = scmp.ge.s32.totalorder %s667_s15, 1  ;;  %s667_s15 = sphi %s694_s15, %s14_s15  }
   0x2   : > { %p172_p1 = scmp.lt.s32.totalorder %s667_s15, 3 }
   0x4   : > { %p173_p2 = pnand %p560_p0, %p172_p1 }
   0x5   : > { %p203_p3 = scmp.lt.s32.totalorder (!%p173_p2), %s556_s16, 1  ;;  %v714_v0 = vld [vmem:[%s916_s2] ss:$0 sm:$0xff] (!%p173_p2)  ;;  %vm456_vm0 = vcmask (!%p173_p2), 31744  }
   0x6   : > { %176 = sbr.rel (%p173_p2) target bundleno = 60 (0x3c), region = 36  ;;  %v728_v5 = vld [vmem:[%s917_s3] ss:$0 sm:$0xff] (!%p173_p2) }
   0xd   : > { %s920_s16 = smov (!%p203_p3, %s556_s16), 1 }
   0xe   : > { %s571_s17 = sshll.u32 %s920_s16, 8  ;;  %s572_s18 = sshll.u32 %s920_s16, 7 }
   0xf   : > { %s709_s21 = scalar_lea.vmem %s915_s1, %s572_s18  ;;  %s722_s26 = scalar_lea.vmem %s914_s0, %s571_s17 }
  0x10   : > { %v575_v1 = vld [vmem:[%s709_s21] sm:$0xff]   ;;  %v638_v4 = vld [vmem:[%s709_s21 + $0x8] sm:$0xff]   ;;  %v639_v8 = vld [vmem:[%s709_s21 + $0x10] sm:$0xff]   ;;  %s759_s5 = scalar_lea.vmem %s918_s4, %s571_s17 }
  0x11   : > { %v576_v2 = vunpack.c.l.bf16 %v575_v1  ;;  %v577_v3 = vunpack.c.h.bf16 %v575_v1  ;;  %v580_v6 = vunpack.c.l.bf16 %v638_v4  ;;  %v581_v7 = vunpack.c.h.bf16 %v638_v4  ;;  %v640_v13 = vld [vmem:[%s709_s21 + $0x18] sm:$0xff]   ;;  %v360_v14 = vld [vmem:[%s722_s26] sm:$0xff]  ;;  %v361_v15 = vld [vmem:[%s722_s26 + $0x8] sm:$0xff] }
  0x12   : > { %v584_v11 = vunpack.c.l.bf16 %v639_v8  ;;  %v585_v12 = vunpack.c.h.bf16 %v639_v8  ;;  %v588_v18 = vunpack.c.l.bf16 %v640_v13  ;;  %v589_v19 = vunpack.c.h.bf16 %v640_v13  ;;  %v362_v22 = vld [vmem:[%s722_s26 + $0x10] sm:$0xff]  ;;  %v363_v23 = vld [vmem:[%s722_s26 + $0x18] sm:$0xff]  ;;  %v364_v28 = vld [vmem:[%s722_s26 + $0x20] sm:$0xff] }
  0x13   : > { %v290_v9 = vmul.f32 %v576_v2, %v714_v0  ;;  %v291_v10 = vmul.f32 %v577_v3, %v714_v0  ;;  %v292_v16 = vmul.f32 %v580_v6, %v714_v0  ;;  %v293_v17 = vmul.f32 %v581_v7, %v714_v0  ;;  %v365_v29 = vld [vmem:[%s722_s26 + $0x28] sm:$0xff]  ;;  %v366_v36 = vld [vmem:[%s722_s26 + $0x30] sm:$0xff]  ;;  %v367_v37 = vld [vmem:[%s722_s26 + $0x38] sm:$0xff] }
  0x14   : > { %v294_v24 = vmul.f32 %v584_v11, %v714_v0  ;;  %v295_v25 = vmul.f32 %v585_v12, %v714_v0  ;;  %v296_v30 = vmul.f32 %v588_v18, %v714_v0  ;;  %v297_v31 = vmul.f32 %v589_v19, %v714_v0  ;;  %v641_v42 = vld [vmem:[%s709_s21 + $0x20] sm:$0xff]   ;;  %v642_v47 = vld [vmem:[%s709_s21 + $0x28] sm:$0xff]   ;;  %v643_v52 = vld [vmem:[%s709_s21 + $0x30] sm:$0xff]  }
  0x15   : > { %v328_v20 = vadd.f32 %v728_v5, %v290_v9  ;;  %v329_v21 = vadd.f32 %v728_v5, %v291_v10  ;;  %v330_v26 = vadd.f32 %v728_v5, %v292_v16  ;;  %v331_v27 = vadd.f32 %v728_v5, %v293_v17  ;;  %v644_v57 = vld [vmem:[%s709_s21 + $0x38] sm:$0xff]   ;;  %v368_v3 = vld [vmem:[%s722_s26 + $0x40] sm:$0xff]  ;;  %v369_v4 = vld [vmem:[%s722_s26 + $0x48] sm:$0xff] }
  0x16   : > { %v332_v34 = vadd.f32 %v728_v5, %v294_v24  ;;  %v333_v35 = vadd.f32 %v728_v5, %v295_v25  ;;  %v334_v40 = vadd.f32 %v728_v5, %v296_v30  ;;  %v335_v41 = vadd.f32 %v728_v5, %v297_v31  ;;  %v370_v12 = vld [vmem:[%s722_s26 + $0x50] sm:$0xff]  ;;  %v371_v13 = vld [vmem:[%s722_s26 + $0x58] sm:$0xff]  ;;  %v372_v18 = vld [vmem:[%s722_s26 + $0x60] sm:$0xff] }
  0x17   : > { %v392_v32 = vadd.f32 %v360_v14, %v328_v20  ;;  %v393_v33 = vadd.f32 %v361_v15, %v329_v21  ;;  %v394_v38 = vadd.f32 %v362_v22, %v330_v26  ;;  %v395_v39 = vadd.f32 %v363_v23, %v331_v27  ;;  %v373_v19 = vld [vmem:[%s722_s26 + $0x68] sm:$0xff]  ;;  %v374_v26 = vld [vmem:[%s722_s26 + $0x70] sm:$0xff]  ;;  %v375_v27 = vld [vmem:[%s722_s26 + $0x78] sm:$0xff] }
  0x18   : > { %v396_v45 = vadd.f32 %v364_v28, %v332_v34  ;;  %v397_v46 = vadd.f32 %v365_v29, %v333_v35  ;;  %v398_v50 = vadd.f32 %v366_v36, %v334_v40  ;;  %v399_v51 = vadd.f32 %v367_v37, %v335_v41  ;;  %v646_v37 = vld [vmem:[%s709_s21 + $0x48] sm:$0xff]  }
  0x19   : > { %v424_v43 = vmax.f32 %v392_v32, 0.0  ;;  %v425_v44 = vmax.f32 %v393_v33, 0.0  ;;  %v426_v48 = vmax.f32 %v394_v38, 0.0  ;;  %v427_v49 = vmax.f32 %v395_v39, 0.0  ;;  %v645_v32 = vld [vmem:[%s709_s21 + $0x40] sm:$0xff]  }
  0x1a   : > { %v428_v53 = vmax.f32 %v396_v45, 0.0  ;;  %v429_v54 = vmax.f32 %v397_v46, 0.0  ;;  %v592_v55 = vunpack.c.l.bf16 %v641_v42  ;;  %v593_v56 = vunpack.c.h.bf16 %v641_v42  ;;  %v647_v42 = vld [vmem:[%s709_s21 + $0x50] sm:$0xff]  }
  0x1b   : > { %457 = vst.msk [vmem:[%s759_s5] sm:$0xff] %vm456_vm0, %v424_v43  ;;  %458 = vst.msk [vmem:[%s759_s5 + $0x8] sm:$0xff] %vm456_vm0, %v425_v44  ;;  %v430_v58 = vmax.f32 %v398_v50, 0.0  ;;  %v431_v59 = vmax.f32 %v399_v51, 0.0  ;;  %v596_v60 = vunpack.c.l.bf16 %v642_v47  ;;  %v597_v61 = vunpack.c.h.bf16 %v642_v47  ;;  %v648_v47 = vld [vmem:[%s709_s21 + $0x58] sm:$0xff]  }
  0x1c   : > { %459 = vst.msk [vmem:[%s759_s5 + $0x10] sm:$0xff] %vm456_vm0, %v426_v48  ;;  %460 = vst.msk [vmem:[%s759_s5 + $0x18] sm:$0xff] %vm456_vm0, %v427_v49  ;;  %v298_v62 = vmul.f32 %v592_v55, %v714_v0  ;;  %v299_v63 = vmul.f32 %v593_v56, %v714_v0  ;;  %v600_v1 = vunpack.c.l.bf16 %v643_v52  ;;  %v601_v2 = vunpack.c.h.bf16 %v643_v52  ;;  %v376_v56 = vld [vmem:[%s722_s26 + $0x80] sm:$0xff] }
  0x1d   : > { %461 = vst.msk [vmem:[%s759_s5 + $0x20] sm:$0xff] %vm456_vm0, %v428_v53  ;;  %462 = vst.msk [vmem:[%s759_s5 + $0x28] sm:$0xff] %vm456_vm0, %v429_v54  ;;  %v300_v6 = vmul.f32 %v596_v60, %v714_v0  ;;  %v301_v7 = vmul.f32 %v597_v61, %v714_v0  ;;  %v604_v8 = vunpack.c.l.bf16 %v644_v57  ;;  %v605_v9 = vunpack.c.h.bf16 %v644_v57  ;;  %v377_v57 = vld [vmem:[%s722_s26 + $0x88] sm:$0xff] }
  0x1e   : > { %463 = vst.msk [vmem:[%s759_s5 + $0x30] sm:$0xff] %vm456_vm0, %v430_v58  ;;  %464 = vst.msk [vmem:[%s759_s5 + $0x38] sm:$0xff] %vm456_vm0, %v431_v59  ;;  %v336_v10 = vadd.f32 %v728_v5, %v298_v62  ;;  %v337_v11 = vadd.f32 %v728_v5, %v299_v63  ;;  %v302_v14 = vmul.f32 %v600_v1, %v714_v0  ;;  %v608_v45 = vunpack.c.l.bf16 %v645_v32  ;;  %v378_v1 = vld [vmem:[%s722_s26 + $0x90] sm:$0xff] }
  0x1f   : > { %v303_v15 = vmul.f32 %v601_v2, %v714_v0  ;;  %v338_v16 = vadd.f32 %v728_v5, %v300_v6  ;;  %v339_v17 = vadd.f32 %v728_v5, %v301_v7  ;;  %v304_v20 = vmul.f32 %v604_v8, %v714_v0  ;;  %v379_v2 = vld [vmem:[%s722_s26 + $0x98] sm:$0xff]  ;;  %v380_v8 = vld [vmem:[%s722_s26 + $0xa0] sm:$0xff] }
  0x20   : > { %v305_v21 = vmul.f32 %v605_v9, %v714_v0  ;;  %v400_v22 = vadd.f32 %v368_v3, %v336_v10  ;;  %v401_v23 = vadd.f32 %v369_v4, %v337_v11  ;;  %v340_v24 = vadd.f32 %v728_v5, %v302_v14  ;;  %v381_v9 = vld [vmem:[%s722_s26 + $0xa8] sm:$0xff] }
  0x21   : > { %v341_v25 = vadd.f32 %v728_v5, %v303_v15  ;;  %v402_v28 = vadd.f32 %v370_v12, %v338_v16  ;;  %v403_v29 = vadd.f32 %v371_v13, %v339_v17  ;;  %v342_v30 = vadd.f32 %v728_v5, %v304_v20  ;;  %v382_v16 = vld [vmem:[%s722_s26 + $0xb0] sm:$0xff]  ;;  %v383_v17 = vld [vmem:[%s722_s26 + $0xb8] sm:$0xff] }
  0x22   : > { %v343_v31 = vadd.f32 %v728_v5, %v305_v21  ;;  %v432_v33 = vmax.f32 %v400_v22, 0.0  ;;  %v433_v34 = vmax.f32 %v401_v23, 0.0  ;;  %v404_v35 = vadd.f32 %v372_v18, %v340_v24  ;;  %v649_v22 = vld [vmem:[%s709_s21 + $0x60] sm:$0xff]  }
  0x23   : > { %v405_v36 = vadd.f32 %v373_v19, %v341_v25  ;;  %v434_v38 = vmax.f32 %v402_v28, 0.0  ;;  %v435_v39 = vmax.f32 %v403_v29, 0.0  ;;  %v406_v40 = vadd.f32 %v374_v26, %v342_v30 }
  0x24   : > { %v407_v41 = vadd.f32 %v375_v27, %v343_v31  ;;  %465 = vst.msk [vmem:[%s759_s5 + $0x40] sm:$0xff] %vm456_vm0, %v432_v33  ;;  %466 = vst.msk [vmem:[%s759_s5 + $0x48] sm:$0xff] %vm456_vm0, %v433_v34  ;;  %v436_v43 = vmax.f32 %v404_v35, 0.0  ;;  %v609_v46 = vunpack.c.h.bf16 %v645_v32  ;;  %v612_v50 = vunpack.c.l.bf16 %v646_v37  ;;  %v650_v27 = vld [vmem:[%s709_s21 + $0x68] sm:$0xff]   ;;  %v651_v32 = vld [vmem:[%s709_s21 + $0x70] sm:$0xff]  }
  0x25   : > { %v437_v44 = vmax.f32 %v405_v36, 0.0  ;;  %467 = vst.msk [vmem:[%s759_s5 + $0x50] sm:$0xff] %vm456_vm0, %v434_v38  ;;  %468 = vst.msk [vmem:[%s759_s5 + $0x58] sm:$0xff] %vm456_vm0, %v435_v39  ;;  %v438_v48 = vmax.f32 %v406_v40, 0.0  ;;  %v613_v51 = vunpack.c.h.bf16 %v646_v37  ;;  %v306_v52 = vmul.f32 %v608_v45, %v714_v0  ;;  %v652_v37 = vld [vmem:[%s709_s21 + $0x78] sm:$0xff]  }
  0x26   : > { %v439_v49 = vmax.f32 %v407_v41, 0.0  ;;  %469 = vst.msk [vmem:[%s759_s5 + $0x60] sm:$0xff] %vm456_vm0, %v436_v43  ;;  %v307_v53 = vmul.f32 %v609_v46, %v714_v0  ;;  %v616_v54 = vunpack.c.l.bf16 %v647_v42  ;;  %v617_v55 = vunpack.c.h.bf16 %v647_v42  ;;  %v384_v46 = vld [vmem:[%s722_s26 + $0xc0] sm:$0xff] }
  0x27   : > { %470 = vst.msk [vmem:[%s759_s5 + $0x68] sm:$0xff] %vm456_vm0, %v437_v44  ;;  %471 = vst.msk [vmem:[%s759_s5 + $0x70] sm:$0xff] %vm456_vm0, %v438_v48  ;;  %v308_v58 = vmul.f32 %v612_v50, %v714_v0  ;;  %v309_v59 = vmul.f32 %v613_v51, %v714_v0  ;;  %v620_v60 = vunpack.c.l.bf16 %v648_v47  ;;  %v621_v61 = vunpack.c.h.bf16 %v648_v47  ;;  %v385_v47 = vld [vmem:[%s722_s26 + $0xc8] sm:$0xff] }
  0x28   : > { %472 = vst.msk [vmem:[%s759_s5 + $0x78] sm:$0xff] %vm456_vm0, %v439_v49  ;;  %v344_v62 = vadd.f32 %v728_v5, %v306_v52  ;;  %v345_v63 = vadd.f32 %v728_v5, %v307_v53  ;;  %v310_v3 = vmul.f32 %v616_v54, %v714_v0  ;;  %v311_v4 = vmul.f32 %v617_v55, %v714_v0  ;;  %v386_v54 = vld [vmem:[%s722_s26 + $0xd0] sm:$0xff]  ;;  %v387_v55 = vld [vmem:[%s722_s26 + $0xd8] sm:$0xff] }
  0x29   : > { %v346_v6 = vadd.f32 %v728_v5, %v308_v58  ;;  %v347_v7 = vadd.f32 %v728_v5, %v309_v59  ;;  %v312_v10 = vmul.f32 %v620_v60, %v714_v0  ;;  %v313_v11 = vmul.f32 %v621_v61, %v714_v0  ;;  %v388_v60 = vld [vmem:[%s722_s26 + $0xe0] sm:$0xff]  ;;  %v389_v61 = vld [vmem:[%s722_s26 + $0xe8] sm:$0xff] }
  0x2a   : > { %v408_v12 = vadd.f32 %v376_v56, %v344_v62  ;;  %v409_v13 = vadd.f32 %v377_v57, %v345_v63  ;;  %v348_v14 = vadd.f32 %v728_v5, %v310_v3  ;;  %v349_v15 = vadd.f32 %v728_v5, %v311_v4 }
  0x2b   : > { %v410_v18 = vadd.f32 %v378_v1, %v346_v6  ;;  %v411_v19 = vadd.f32 %v379_v2, %v347_v7  ;;  %v350_v20 = vadd.f32 %v728_v5, %v312_v10  ;;  %v351_v21 = vadd.f32 %v728_v5, %v313_v11  ;;  %v390_v6 = vld [vmem:[%s722_s26 + $0xf0] sm:$0xff]  ;;  %v391_v7 = vld [vmem:[%s722_s26 + $0xf8] sm:$0xff] }
  0x2c   : > { %v440_v23 = vmax.f32 %v408_v12, 0.0  ;;  %v441_v24 = vmax.f32 %v409_v13, 0.0  ;;  %v412_v25 = vadd.f32 %v380_v8, %v348_v14  ;;  %v413_v26 = vadd.f32 %v381_v9, %v349_v15 }
  0x2d   : > { %v442_v28 = vmax.f32 %v410_v18, 0.0  ;;  %v443_v29 = vmax.f32 %v411_v19, 0.0  ;;  %v414_v30 = vadd.f32 %v382_v16, %v350_v20  ;;  %v415_v31 = vadd.f32 %v383_v17, %v351_v21 }
  0x2e   : > { %473 = vst.msk [vmem:[%s759_s5 + $0x80] sm:$0xff] %vm456_vm0, %v440_v23  ;;  %474 = vst.msk [vmem:[%s759_s5 + $0x88] sm:$0xff] %vm456_vm0, %v441_v24  ;;  %v444_v33 = vmax.f32 %v412_v25, 0.0  ;;  %v445_v34 = vmax.f32 %v413_v26, 0.0  ;;  %v624_v35 = vunpack.c.l.bf16 %v649_v22  ;;  %v625_v36 = vunpack.c.h.bf16 %v649_v22 }
  0x2f   : > { %475 = vst.msk [vmem:[%s759_s5 + $0x90] sm:$0xff] %vm456_vm0, %v442_v28  ;;  %476 = vst.msk [vmem:[%s759_s5 + $0x98] sm:$0xff] %vm456_vm0, %v443_v29  ;;  %v446_v38 = vmax.f32 %v414_v30, 0.0  ;;  %v447_v39 = vmax.f32 %v415_v31, 0.0  ;;  %v628_v40 = vunpack.c.l.bf16 %v650_v27  ;;  %v629_v41 = vunpack.c.h.bf16 %v650_v27 }
  0x30   : > { %477 = vst.msk [vmem:[%s759_s5 + $0xa0] sm:$0xff] %vm456_vm0, %v444_v33  ;;  %478 = vst.msk [vmem:[%s759_s5 + $0xa8] sm:$0xff] %vm456_vm0, %v445_v34  ;;  %v314_v42 = vmul.f32 %v624_v35, %v714_v0  ;;  %v315_v43 = vmul.f32 %v625_v36, %v714_v0  ;;  %v632_v44 = vunpack.c.l.bf16 %v651_v32  ;;  %v633_v45 = vunpack.c.h.bf16 %v651_v32 }
  0x31   : > { %479 = vst.msk [vmem:[%s759_s5 + $0xb0] sm:$0xff] %vm456_vm0, %v446_v38  ;;  %480 = vst.msk [vmem:[%s759_s5 + $0xb8] sm:$0xff] %vm456_vm0, %v447_v39  ;;  %v316_v48 = vmul.f32 %v628_v40, %v714_v0  ;;  %v317_v49 = vmul.f32 %v629_v41, %v714_v0  ;;  %v636_v50 = vunpack.c.l.bf16 %v652_v37  ;;  %v637_v51 = vunpack.c.h.bf16 %v652_v37 }
  0x32   : > { %v352_v52 = vadd.f32 %v728_v5, %v314_v42  ;;  %v353_v53 = vadd.f32 %v728_v5, %v315_v43  ;;  %v318_v56 = vmul.f32 %v632_v44, %v714_v0  ;;  %v319_v57 = vmul.f32 %v633_v45, %v714_v0 }
  0x33   : > { %v354_v58 = vadd.f32 %v728_v5, %v316_v48  ;;  %v355_v59 = vadd.f32 %v728_v5, %v317_v49  ;;  %v320_v62 = vmul.f32 %v636_v50, %v714_v0  ;;  %v321_v63 = vmul.f32 %v637_v51, %v714_v0 }
  0x34   : > { %v416_v1 = vadd.f32 %v384_v46, %v352_v52  ;;  %v417_v2 = vadd.f32 %v385_v47, %v353_v53  ;;  %v356_v3 = vadd.f32 %v728_v5, %v318_v56  ;;  %v357_v4 = vadd.f32 %v728_v5, %v319_v57 }
  0x35   : > { %v418_v8 = vadd.f32 %v386_v54, %v354_v58  ;;  %v419_v9 = vadd.f32 %v387_v55, %v355_v59  ;;  %v358_v10 = vadd.f32 %v728_v5, %v320_v62  ;;  %v359_v11 = vadd.f32 %v728_v5, %v321_v63 }
  0x36   : > { %v448_v12 = vmax.f32 %v416_v1, 0.0  ;;  %v449_v0 = vmax.f32 %v417_v2, 0.0  ;;  %v420_v13 = vadd.f32 %v388_v60, %v356_v3  ;;  %v421_v14 = vadd.f32 %v389_v61, %v357_v4 }
  0x37   : > { %v450_v15 = vmax.f32 %v418_v8, 0.0  ;;  %v451_v16 = vmax.f32 %v419_v9, 0.0  ;;  %v422_v17 = vadd.f32 %v390_v6, %v358_v10  ;;  %v423_v18 = vadd.f32 %v391_v7, %v359_v11 }
  0x38   : > { %481 = vst.msk [vmem:[%s759_s5 + $0xc0] sm:$0xff] %vm456_vm0, %v448_v12  ;;  %482 = vst.msk [vmem:[%s759_s5 + $0xc8] sm:$0xff] %vm456_vm0, %v449_v0  ;;  %v452_v19 = vmax.f32 %v420_v13, 0.0  ;;  %v453_v20 = vmax.f32 %v421_v14, 0.0 }
  0x39   : > { %483 = vst.msk [vmem:[%s759_s5 + $0xd0] sm:$0xff] %vm456_vm0, %v450_v15  ;;  %484 = vst.msk [vmem:[%s759_s5 + $0xd8] sm:$0xff] %vm456_vm0, %v451_v16  ;;  %v454_v5 = vmax.f32 %v422_v17, 0.0  ;;  %v455_v21 = vmax.f32 %v423_v18, 0.0 }
  0x3a   : > { %485 = vst.msk [vmem:[%s759_s5 + $0xe0] sm:$0xff] %vm456_vm0, %v452_v19  ;;  %486 = vst.msk [vmem:[%s759_s5 + $0xe8] sm:$0xff] %vm456_vm0, %v453_v20 }
  0x3b   : > { %487 = vst.msk [vmem:[%s759_s5 + $0xf0] sm:$0xff] %vm456_vm0, %v454_v5  ;;  %488 = vst.msk [vmem:[%s759_s5 + $0xf8] sm:$0xff] %vm456_vm0, %v455_v21 }
  0x3c PF: > { %s14_s15 = sadd.s32 1, %s667_s15  }
  0x3d   : > { %p11_p4 = scmp.ge.s32.totalorder %s14_s15, 4  }
  0x3f   :  { %13 = sbr.rel (!%p11_p4) target bundleno = 1 (0x1), region = 69 }

// kernel: restnet_basic_block.3
= control target key start
LH: loop header
LB: loop body
LE: loop exit
PB: predicated region body
PF: predicated region fallthrough
CT: control target
= control target key end

     0   :  { %s4813_s15 = smov 0   ;;  %s6472_s0 = inlined_call_operand.vmem [shape: f32[2,16,16,4], index: 0, kind: input, shape index: {}]   ;;  %s6473_s1 = inlined_call_operand.vmem [shape: bf16[9,4,4], index: 1, kind: input, shape index: {}]   ;;  %s6474_s2 = inlined_call_operand.vmem [shape: bf16[2,16,16,4], index: 2, kind: output, shape index: {0}]   ;;  %s6475_s3 = inlined_call_operand.vmem [shape: f32[2,1,4], index: 3, kind: output, shape index: {1}]   ;;  %s6476_s4 = inlined_call_operand.vmem [shape: f32[2,1,4], index: 4, kind: output, shape index: {2}]  }
   0x1 LB: > { %s3813_s16 = sadd.s32 4294967295, %s4785_s15   ;;  %p3817_p0 = scmp.ge.s32.totalorder %s4785_s15, 1  ;;  %s4785_s15 = sphi %s4813_s15, %s15_s15  }
   0x2   : > { %p167_p1 = scmp.lt.s32.totalorder %s4785_s15, 3 }
   0x4   : > { %p168_p2 = pnand %p3817_p0, %p167_p1 }
   0x6   : > { %171 = sbr.rel (%p168_p2) target bundleno = 590 (0x24e), region = 28 }
   0xd   : > { %v3822_v0 = vld [vmem:[%s6473_s1 + $0x2] sm:$0x3]  ;;  %vm1163_vm0 = vcmask 1041408   ;;  %v3889_v1 = vld [vmem:[%s6473_s1 + $0x8] sm:$0x3]  ;;  %vm264_vm1 = vcmask 31744  }
   0xe   : > { %4759 = vmatprep.subr.msk.bf16.mxu1 %vm1163_vm0, %v3822_v0  ;;  %4763 = vmatprep.subr.msk.bf16.mxu0 %vm1163_vm0, %v3889_v1  ;;  %v1165_v2 = vsel %vm1163_vm0, %v3822_v0, 0  ;;  %v4831_v3 = vsel %vm1163_vm0, %v3889_v1, 0  ;;  %p4833_p3 = scmp.lt.s32.totalorder %s3813_s16, 1  ;;  %v1095_v4 = vld [vmem:[%s6473_s1] sm:$0x3]  ;;  %v4787_v5 = vmov 0  }
   0xf   : > { %6528 = vst [vmem:[#allocation3_spill] sm:$0xff] %v4831_v3  ;;  %4196 = vmatpush3.bf16.msra.mxu1 %v1165_v2  ;;  %4332 = vmatpush3.bf16.msra.mxu0 %v4831_v3  ;;  %266 = vst.msk [vmem:[#allocation2 + $0x80] sm:$0xff] %vm264_vm1, %v4787_v5  ;;  %v4850_v6 = vld [vmem:[%s6473_s1 + $0xa] sm:$0x3]  ;;  %vm509_vm2 = vcmask 31751   ;;  %v4911_v37 = vsel %vm1163_vm0, %v1095_v4, 0 }
  0x10   : > { %265 = vst.msk [vmem:[#allocation2] sm:$0xff] %vm264_vm1, %v4787_v5  ;;  %267 = vst.msk [vmem:[#allocation2 + $0x100] sm:$0xff] %vm264_vm1, %v4787_v5  ;;  %vm510_vm3 = vsmask.f32 7966  ;;  %s6632_s16 = smov (!%p4833_p3, %s3813_s16), 1  ;;  %4760 = vmatprep.subr.msk.bf16.mxu1 %vm1163_vm0, %v1095_v4  ;;  %4765 = vmatprep.subr.msk.bf16.mxu0 %vm1163_vm0, %v4850_v6  ;;  %vm272_vm7 = vcmask 24576  }
  0x11   : > { %269 = vst.msk [vmem:[#allocation2 + $0x378] sm:$0xff] %vm264_vm1, %v4787_v5  ;;  %270 = vst.msk [vmem:[#allocation2 + $0x3f8] sm:$0xff] %vm264_vm1, %v4787_v5  ;;  %vm606_vm5 = vsmask.f32 7424  ;;  %v776_v8 = vld [vmem:[#allocation2 + $0x280] sm:$0x80]  ;;  %s211_s24 = scalar_lea.vmem %s6475_s3, %s6632_s16  ;;  %s214_s27 = scalar_lea.vmem %s6476_s4, %s6632_s16 }
  0x12   : > { %271 = vst.msk [vmem:[#allocation2 + $0x478] sm:$0xff] %vm264_vm1, %v4787_v5  ;;  %vm4859_vm4 = vmand %vm509_vm2, %vm510_vm3  ;;  %v779_v10 = vld [vmem:[#allocation2 + $0x288] sm:$0x80]  ;;  %s4008_s26 = sshll.u32 %s6632_s16, 8  ;;  %v782_v12 = vld [vmem:[#allocation2 + $0x290] sm:$0x80] }
  0x13   : > { %v777_v9 = vsel %vm4859_vm4, 0, %v776_v8  ;;  %v780_v11 = vsel %vm4859_vm4, 0, %v779_v10  ;;  %s4871_s29 = scalar_lea.vmem %s6472_s0, %s4008_s26  ;;  %vm4874_vm6 = vmand %vm264_vm1, %vm606_vm5  ;;  %v783_v14 = vsel %vm4859_vm4, 0, %v782_v12  ;;  %v785_v15 = vld [vmem:[#allocation2 + $0x298] sm:$0x80]  ;;  %v2393_v12 = vsel %vm1163_vm0, %v4850_v6, 0 }
  0x14   : > { %778 = vst [vmem:[#allocation2 + $0x280] sm:$0x80] %v777_v9  ;;  %781 = vst [vmem:[#allocation2 + $0x288] sm:$0x80] %v780_v11  ;;  %v788_v16 = vld [vmem:[#allocation2 + $0x2a0] sm:$0x80] }
  0x15   : > { %v216_v17 = vld [vmem:[%s4871_s29] sm:$0xff]  ;;  %v217_v18 = vld [vmem:[%s4871_s29 + $0x8] sm:$0xff]  ;;  %v218_v19 = vld [vmem:[%s4871_s29 + $0x10] sm:$0xff]  ;;  %784 = vst [vmem:[#allocation2 + $0x290] sm:$0x80] %v783_v14  ;;  %v786_v20 = vsel %vm4859_vm4, 0, %v785_v15 }
  0x16   : > { %v789_v21 = vsel %vm4859_vm4, 0, %v788_v16  ;;  %v4887_v22 = vpack.c.bf16 %v217_v18, %v216_v17  ;;  %v219_v23 = vld [vmem:[%s4871_s29 + $0x18] sm:$0xff]  ;;  %v220_v24 = vld [vmem:[%s4871_s29 + $0x20] sm:$0xff]  ;;  %v221_v25 = vld [vmem:[%s4871_s29 + $0x28] sm:$0xff]  ;;  %787 = vst [vmem:[#allocation2 + $0x298] sm:$0x80] %v786_v20 }
  0x17   : > { %790 = vst [vmem:[#allocation2 + $0x2a0] sm:$0x80] %v789_v21  ;;  %v1097_v26 = vld [vmem:[#allocation2 + $0x80] sm:$0xff]  ;;  %v4892_v27 = vpack.c.bf16 %v219_v23, %v218_v19  ;;  %v4894_v28 = vpack.c.bf16 %v221_v25, %v220_v24  ;;  %v222_v29 = vld [vmem:[%s4871_s29 + $0x30] sm:$0xff]  ;;  %v223_v30 = vld [vmem:[%s4871_s29 + $0x38] sm:$0xff]  ;;  %s4009_s18 = sshll.u32 %s6632_s16, 7 }
  0x18   : > { %4197 = vmatprep.mubr.msk.bf16.mxu1 %vm264_vm1, %v1097_v26  ;;  %493 = vst.msk [vmem:[#allocation2 + $0x88] sm:$0xff] %vm264_vm1, %v4887_v22  ;;  %759 = vst.msk [vmem:[#allocation2 + $0x200] sm:$0xff] %vm264_vm1, %v4887_v22  ;;  %v4903_v31 = vpack.c.bf16 %v223_v30, %v222_v29  ;;  %v224_v32 = vld [vmem:[%s4871_s29 + $0x40] sm:$0xff]  ;;  %v225_v33 = vld [vmem:[%s4871_s29 + $0x48] sm:$0xff]  ;;  %v324_v35 = vshrl.u32 %v4887_v22, 16  ;;  %v327_v36 = vshll.u32 %v4887_v22, 16  ;;  %s6321_s21 = scalar_lea.vmem %s6474_s2, %s4009_s18 }
  0x19   : > { %v226_v34 = vld [vmem:[%s4871_s29 + $0x50] sm:$0xff]  ;;  %760 = vst.msk [vmem:[#allocation2 + $0x208] sm:$0xff] %vm264_vm1, %v4892_v27  ;;  %494 = vst.msk [vmem:[#allocation2 + $0x90] sm:$0xff] %vm264_vm1, %v4892_v27  ;;  %v4925_v38 = vpack.c.bf16 %v225_v33, %v224_v32  ;;  %v227_v39 = vld [vmem:[%s4871_s29 + $0x58] sm:$0xff]  ;;  %v331_v42 = vshrl.u32 %v4892_v27, 16  ;;  %v334_v43 = vshll.u32 %v4892_v27, 16 }
  0x1a   : > { %970 = vst.msk [vmem:[#allocation2 + $0x380] sm:$0xff] %vm264_vm1, %v4892_v27  ;;  %495 = vst.msk [vmem:[#allocation2 + $0x98] sm:$0xff] %vm264_vm1, %v4894_v28  ;;  %v228_v40 = vld [vmem:[%s4871_s29 + $0x60] sm:$0xff]  ;;  %v229_v41 = vld [vmem:[%s4871_s29 + $0x68] sm:$0xff]  ;;  %v4938_v44 = vpack.c.bf16 %v227_v39, %v226_v34  ;;  %v560_v49 = vrot.slane %v327_v36, 1  ;;  %v338_v50 = vshrl.u32 %v4894_v28, 16 }
  0x1b   : > { %761 = vst.msk [vmem:[#allocation2 + $0x210] sm:$0xff] %vm264_vm1, %v4894_v28  ;;  %971 = vst.msk [vmem:[#allocation2 + $0x388] sm:$0xff] %vm264_vm1, %v4894_v28  ;;  %v4940_v45 = vpack.c.bf16 %v229_v41, %v228_v40  ;;  %v230_v46 = vld [vmem:[%s4871_s29 + $0x70] sm:$0xff]  ;;  %v231_v47 = vld [vmem:[%s4871_s29 + $0x78] sm:$0xff]  ;;  %v562_v54 = vrot.slane %v334_v43, 1  ;;  %v341_v56 = vshll.u32 %v4894_v28, 16 }
  0x1c   : > { %762 = vst.msk [vmem:[#allocation2 + $0x218] sm:$0xff] %vm264_vm1, %v4903_v31  ;;  %496 = vst.msk [vmem:[#allocation2 + $0xa0] sm:$0xff] %vm264_vm1, %v4903_v31  ;;  %v232_v48 = vld [vmem:[%s4871_s29 + $0x80] sm:$0xff]  ;;  %v4954_v51 = vpack.c.bf16 %v231_v47, %v230_v46  ;;  %v233_v52 = vld [vmem:[%s4871_s29 + $0x88] sm:$0xff]  ;;  %v345_v57 = vshrl.u32 %v4903_v31, 16  ;;  %v4977_v59 = vor.u32 %v560_v49, %v324_v35  ;;  %v348_v63 = vshll.u32 %v4903_v31, 16 }
  0x1d   : > { %972 = vst.msk [vmem:[#allocation2 + $0x390] sm:$0xff] %vm264_vm1, %v4903_v31  ;;  %497 = vst.msk [vmem:[#allocation2 + $0xa8] sm:$0xff] %vm264_vm1, %v4925_v38  ;;  %v827_v53 = vld [vmem:[#allocation2 + $0x280] sm:$0xff]  ;;  %v830_v55 = vld [vmem:[#allocation2 + $0x288] sm:$0xff]  ;;  %v4973_v58 = vpack.c.bf16 %v233_v52, %v232_v48  ;;  %v352_v0 = vshrl.u32 %v4925_v38, 16  ;;  %v4995_v2 = vor.u32 %v562_v54, %v331_v42  ;;  %v564_v8 = vrot.slane %v341_v56, 1 }
  0x1e   : > { %763 = vst.msk [vmem:[#allocation2 + $0x220] sm:$0xff] %vm264_vm1, %v4925_v38  ;;  %973 = vst.msk [vmem:[#allocation2 + $0x398] sm:$0xff] %vm264_vm1, %v4925_v38  ;;  %v234_v60 = vld [vmem:[%s4871_s29 + $0x90] sm:$0xff]  ;;  %v235_v61 = vld [vmem:[%s4871_s29 + $0x98] sm:$0xff]  ;;  %v355_v11 = vshll.u32 %v4925_v38, 16  ;;  %v5014_v14 = vsel %vm4874_vm6, %v4977_v59, %v827_v53  ;;  %v566_v6 = vrot.slane %v348_v63, 1 }
  0x1f   : > { %764 = vst.msk [vmem:[#allocation2 + $0x228] sm:$0xff] %vm264_vm1, %v4938_v44  ;;  %498 = vst.msk [vmem:[#allocation2 + $0xb0] sm:$0xff] %vm264_vm1, %v4938_v44  ;;  %v236_v62 = vld [vmem:[%s4871_s29 + $0xa0] sm:$0xff]  ;;  %v3923_v1 = vld [vmem:[%s6473_s1 + $0xc] sm:$0x3]  ;;  %v4997_v4 = vpack.c.bf16 %v235_v61, %v234_v60  ;;  %v5027_v21 = vsel %vm4874_vm6, %v4995_v2, %v830_v55  ;;  %v5037_v23 = vor.u32 %v564_v8, %v338_v50  ;;  %v362_v47 = vshll.u32 %v4938_v44, 16 }
  0x20   : > { %974 = vst.msk [vmem:[#allocation2 + $0x3a0] sm:$0xff] %vm264_vm1, %v4938_v44  ;;  %499 = vst.msk [vmem:[#allocation2 + $0xb8] sm:$0xff] %vm264_vm1, %v4940_v45  ;;  %v237_v5 = vld [vmem:[%s4871_s29 + $0xa8] sm:$0xff]  ;;  %v833_v9 = vld [vmem:[#allocation2 + $0x290] sm:$0xff]  ;;  %v568_v26 = vrot.slane %v355_v11, 1  ;;  %v5055_v32 = vor.u32 %v566_v6, %v345_v57  ;;  %v5078_v40 = vsel %vm1163_vm0, %v3923_v1, 0 }
  0x21   : > { %765 = vst.msk [vmem:[#allocation2 + $0x230] sm:$0xff] %vm264_vm1, %v4940_v45  ;;  %975 = vst.msk [vmem:[#allocation2 + $0x3a8] sm:$0xff] %vm264_vm1, %v4940_v45  ;;  %v836_v10 = vld [vmem:[#allocation2 + $0x298] sm:$0xff]  ;;  %v5016_v15 = vpack.c.bf16 %v237_v5, %v236_v62  ;;  %v238_v16 = vld [vmem:[%s4871_s29 + $0xb0] sm:$0xff]  ;;  %v5064_v39 = vsel %vm4874_vm6, %v5037_v23, %v833_v9  ;;  %v6482_v48 = vshll.u32 %v4940_v45, 16  ;;  %v6479_v52 = vshll.u32 %v4954_v51, 16 }
  0x22   : > { %766 = vst.msk [vmem:[#allocation2 + $0x238] sm:$0xff] %vm264_vm1, %v4954_v51  ;;  %500 = vst.msk [vmem:[#allocation2 + $0xc0] sm:$0xff] %vm264_vm1, %v4954_v51  ;;  %v239_v17 = vld [vmem:[%s4871_s29 + $0xb8] sm:$0xff]  ;;  %v240_v18 = vld [vmem:[%s4871_s29 + $0xc0] sm:$0xff]  ;;  %v5084_v41 = vsel %vm4874_vm6, %v5055_v32, %v836_v10  ;;  %vm273_vm8 = vsmask.f32 256 }
  0x23   : > { %976 = vst.msk [vmem:[#allocation2 + $0x3b0] sm:$0xff] %vm264_vm1, %v4954_v51  ;;  %501 = vst.msk [vmem:[#allocation2 + $0xc8] sm:$0xff] %vm264_vm1, %v4973_v58  ;;  %v1098_v19 = vld [vmem:[#allocation2 + $0x88] sm:$0xff]  ;;  %v2064_v20 = vld [vmem:[#allocation2 + $0x200] sm:$0xff]  ;;  %v5039_v24 = vpack.c.bf16 %v239_v17, %v238_v16  ;;  %v6477_v53 = vshll.u32 %v4973_v58, 16  ;;  %v326_v61 = vrot.slane %v324_v35, 7 }
  0x24   : > { %767 = vst.msk [vmem:[#allocation2 + $0x240] sm:$0xff] %vm264_vm1, %v4973_v58  ;;  %977 = vst.msk [vmem:[#allocation2 + $0x3b8] sm:$0xff] %vm264_vm1, %v4973_v58  ;;  %v241_v25 = vld [vmem:[%s4871_s29 + $0xc8] sm:$0xff]  ;;  %4198 = vmatmul.mubr.msk.bf16.vlgmr.msra.gmra.mrb[0].mxu1 %vm264_vm1, %v1098_v19  ;;  %4333 = vmatprep.mubr.msk.bf16.mxu0 %vm264_vm1, %v2064_v20  ;;  %v1099_v30 = vld [vmem:[#allocation2 + $0x90] sm:$0xff]  ;;  %v359_v62 = vshrl.u32 %v4938_v44, 16  ;;  %v6483_v10 = vshrl.u32 %v4940_v45, 16 }
  0x25   : > { %829 = vst [vmem:[#allocation2 + $0x280] sm:$0xff] %v5014_v14  ;;  %502 = vst.msk [vmem:[#allocation2 + $0xd0] sm:$0xff] %vm264_vm1, %v4997_v4  ;;  %v2065_v29 = vld [vmem:[#allocation2 + $0x208] sm:$0xff]  ;;  %v5057_v33 = vpack.c.bf16 %v241_v25, %v240_v18  ;;  %4230 = vmatpush3.bf16.msra.mxu1 %v4911_v37  ;;  %v2066_v34 = vld [vmem:[#allocation2 + $0x210] sm:$0xff]  ;;  %v5074_v37 = vor.u32 %v568_v26, %v352_v0  ;;  %4201 = vmatprep.mubr.msk.bf16.mxu1 %vm264_vm1, %v1099_v30  ;;  %vm445_vm9 = vsmask.f32 7938 }
  0x26   : > { %768 = vst.msk [vmem:[#allocation2 + $0x248] sm:$0xff] %vm264_vm1, %v4997_v4  ;;  %978 = vst.msk [vmem:[#allocation2 + $0x3c0] sm:$0xff] %vm264_vm1, %v4997_v4  ;;  %4334 = vmatmul.mubr.msk.bf16.vlgmr.msra.gmra.mrb[0].mxu0 %vm264_vm1, %v2065_v29  ;;  %v839_v46 = vld [vmem:[#allocation2 + $0x2a0] sm:$0xff]  ;;  %v1100_v54 = vld [vmem:[#allocation2 + $0x98] sm:$0xff]  ;;  %v570_v6 = vrot.slane %v362_v47, 1  ;;  %v572_v18 = vrot.slane %v6482_v48, 1 }
  0x27   : > { %832 = vst [vmem:[#allocation2 + $0x288] sm:$0xff] %v5027_v21  ;;  %503 = vst.msk [vmem:[#allocation2 + $0xd8] sm:$0xff] %vm264_vm1, %v5016_v15  ;;  %4366 = vmatpush3.bf16.msra.mxu0 %v2393_v12  ;;  %4337 = vmatprep.mubr.msk.bf16.mxu0 %vm264_vm1, %v2066_v34  ;;  %v5100_v49 = vsel %vm4874_vm6, %v5074_v37, %v839_v46  ;;  %v2067_v55 = vld [vmem:[#allocation2 + $0x218] sm:$0xff]  ;;  %v1101_v60 = vld [vmem:[#allocation2 + $0xa0] sm:$0xff]  ;;  %v6481_v12 = vshrl.u32 %v4954_v51, 16  ;;  %v6480_v19 = vshrl.u32 %v4973_v58, 16 }
  0x28   : > { %769 = vst.msk [vmem:[#allocation2 + $0x250] sm:$0xff] %vm264_vm1, %v5016_v15  ;;  %979 = vst.msk [vmem:[#allocation2 + $0x3c8] sm:$0xff] %vm264_vm1, %v5016_v15  ;;  %4766 = vmatprep.subr.msk.bf16.mxu0 %vm1163_vm0, %v3923_v1  ;;  %v6478_v1 = vshll.u32 %v4997_v4, 16  ;;  %v2068_v5 = vld [vmem:[#allocation2 + $0x220] sm:$0xff]  ;;  %v791_v8 = vld [vmem:[#allocation2 + $0x2a8] sm:$0x80]  ;;  %v5173_v22 = vor.u32 %v572_v18, %v6483_v10 }
  0x29   : > { %504 = vst.msk [vmem:[#allocation2 + $0xe0] sm:$0xff] %vm264_vm1, %v5039_v24  ;;  %770 = vst.msk [vmem:[#allocation2 + $0x258] sm:$0xff] %vm264_vm1, %v5039_v24  ;;  %v242_v9 = vld [vmem:[%s4871_s29 + $0xd0] sm:$0xff]  ;;  %v792_v35 = vsel %vm4859_vm4, 0, %v791_v8  ;;  %v243_v16 = vld [vmem:[%s4871_s29 + $0xd8] sm:$0xff]  ;;  %v574_v29 = vrot.slane %v6479_v52, 1 }
  0x2a   : > { %980 = vst.msk [vmem:[#allocation2 + $0x3d0] sm:$0xff] %vm264_vm1, %v5039_v24  ;;  %835 = vst [vmem:[#allocation2 + $0x290] sm:$0xff] %v5064_v39  ;;  %v244_v17 = vld [vmem:[%s4871_s29 + $0xe0] sm:$0xff]  ;;  %v5121_v20 = vpack.c.bf16 %v243_v16, %v242_v9  ;;  %v245_v25 = vld [vmem:[%s4871_s29 + $0xe8] sm:$0xff]  ;;  %v576_v30 = vrot.slane %v6477_v53, 1  ;;  %v6489_v34 = vshrl.u32 %v4997_v4, 16 }
  0x2b   : > { %505 = vst.msk [vmem:[#allocation2 + $0xe8] sm:$0xff] %vm264_vm1, %v5057_v33  ;;  %771 = vst.msk [vmem:[#allocation2 + $0x260] sm:$0xff] %vm264_vm1, %v5057_v33  ;;  %v794_v26 = vld [vmem:[#allocation2 + $0x2b0] sm:$0x80]  ;;  %v5130_v46 = vpack.c.bf16 %v245_v25, %v244_v17  ;;  %v578_v16 = vrot.slane %v6478_v1, 1  ;;  %v333_v53 = vrot.slane %v331_v42, 7  ;;  %v5156_v42 = vor.u32 %v327_v36, %v326_v61 }
  0x2c   : > { %981 = vst.msk [vmem:[#allocation2 + $0x3d8] sm:$0xff] %vm264_vm1, %v5057_v33  ;;  %838 = vst [vmem:[#allocation2 + $0x298] sm:$0xff] %v5084_v41  ;;  %4202 = vmatmul.mubr.msk.bf16.gmra.mrb[4].mxu1 %vm264_vm1, %v1100_v54  ;;  %v795_v8 = vsel %vm4859_vm4, 0, %v794_v26  ;;  %v275_v17 = vld [vmem:[#allocation2] sm:$0x1]  ;;  %v5186_v26 = vor.u32 %v574_v29, %v6481_v12  ;;  %v5192_v18 = vor.u32 %v576_v30, %v6480_v19  ;;  %v1103_v1 = vld [vmem:[#allocation2 + $0xb0] sm:$0xff] }
  0x2d   : > { %841 = vst [vmem:[#allocation2 + $0x2a0] sm:$0xff] %v5100_v49  ;;  %793 = vst [vmem:[#allocation2 + $0x2a8] sm:$0x80] %v792_v35  ;;  %v797_v35 = vld [vmem:[#allocation2 + $0x2b8] sm:$0x80]  ;;  %4205 = vmatprep.mubr.msk.bf16.mxu1 %vm264_vm1, %v1101_v60  ;;  %v5163_v60 = vor.u32 %v570_v6, %v359_v62  ;;  %v1102_v6 = vld [vmem:[#allocation2 + $0xa8] sm:$0xff] }
  0x2e   : > { %vm5136_vm10 = vmand %vm272_vm7, %vm273_vm8  ;;  %4338 = vmatmul.mubr.msk.bf16.gmra.mrb[4].mxu0 %vm264_vm1, %v2067_v55  ;;  %506 = vst.msk [vmem:[#allocation2 + $0xf0] sm:$0xff] %vm264_vm1, %v5121_v20  ;;  %v798_v54 = vsel %vm4859_vm4, 0, %v797_v35  ;;  %v278_v25 = vld [vmem:[#allocation2 + $0x8] sm:$0x1]  ;;  %v340_v55 = vrot.slane %v338_v50, 7  ;;  %v6485_v30 = vshll.u32 %v5016_v15, 16 }
  0x2f   : > { %772 = vst.msk [vmem:[#allocation2 + $0x268] sm:$0xff] %vm264_vm1, %v5121_v20  ;;  %982 = vst.msk [vmem:[#allocation2 + $0x3e0] sm:$0xff] %vm264_vm1, %v5121_v20  ;;  %4341 = vmatprep.mubr.msk.bf16.mxu0 %vm264_vm1, %v2068_v5  ;;  %v276_v36 = vsel %vm5136_vm10, 0, %v275_v17  ;;  %v279_v50 = vsel %vm5136_vm10, 0, %v278_v25  ;;  %v5182_v61 = vld [vmem:[%s6473_s1 + $0x4] sm:$0x3] }
  0x30   : > { %796 = vst [vmem:[#allocation2 + $0x2b0] sm:$0x80] %v795_v8  ;;  %6536 = vst [vmem:[#allocation4_spill] sm:$0xff] %v5156_v42  ;;  %v800_v5 = vld [vmem:[#allocation2 + $0x2c0] sm:$0x80]  ;;  %4761 = vmatprep.subr.msk.bf16.mxu1 %vm1163_vm0, %v5182_v61  ;;  %v6488_v17 = vshrl.u32 %v5016_v15, 16  ;;  %v5216_v10 = vor.u32 %v341_v56, %v340_v55 }
  0x31   : > { %507 = vst.msk [vmem:[#allocation2 + $0xf8] sm:$0xff] %vm264_vm1, %v5130_v46  ;;  %773 = vst.msk [vmem:[#allocation2 + $0x270] sm:$0xff] %vm264_vm1, %v5130_v46  ;;  %v801_v8 = vsel %vm4859_vm4, 0, %v800_v5  ;;  %v803_v35 = vld [vmem:[#allocation2 + $0x2c8] sm:$0x80]  ;;  %v6486_v52 = vshrl.u32 %v5039_v24, 16  ;;  %v5205_v5 = vor.u32 %v578_v16, %v6489_v34 }
  0x32   : > { %983 = vst.msk [vmem:[#allocation2 + $0x3e8] sm:$0xff] %vm264_vm1, %v5130_v46  ;;  %799 = vst [vmem:[#allocation2 + $0x2b8] sm:$0x80] %v798_v54  ;;  %v281_v54 = vld [vmem:[#allocation2 + $0x10] sm:$0x1]  ;;  %v2069_v25 = vld [vmem:[#allocation2 + $0x228] sm:$0xff] }
  0x33   : > { %277 = vst [vmem:[#allocation2] sm:$0x1] %v276_v36  ;;  %280 = vst [vmem:[#allocation2 + $0x8] sm:$0x1] %v279_v50  ;;  %v804_v29 = vsel %vm4859_vm4, 0, %v803_v35  ;;  %v282_v36 = vsel %vm5136_vm10, 0, %v281_v54 }
  0x34   : > { %802 = vst [vmem:[#allocation2 + $0x2c0] sm:$0x80] %v801_v8  ;;  %v284_v50 = vld [vmem:[#allocation2 + $0x18] sm:$0x1]  ;;  %805 = vst [vmem:[#allocation2 + $0x2c8] sm:$0x80] %v804_v29  ;;  %v5209_v8 = vor.u32 %v334_v43, %v333_v53  ;;  %4206 = vmatmul.mubr.msk.bf16.gmra.mrb[8].mxu1 %vm264_vm1, %v1102_v6 }
  0x35   : > { %283 = vst [vmem:[#allocation2 + $0x10] sm:$0x1] %v282_v36  ;;  %v285_v35 = vsel %vm5136_vm10, 0, %v284_v50  ;;  %v806_v19 = vld [vmem:[#allocation2 + $0x2d0] sm:$0x80]  ;;  %v6484_v54 = vshll.u32 %v5039_v24, 16  ;;  %vm5239_vm11 = vmand %vm264_vm1, %vm445_vm9  ;;  %4209 = vmatprep.mubr.msk.bf16.mxu1 %vm264_vm1, %v1103_v1 }
  0x36   : > { %v809_v12 = vld [vmem:[#allocation2 + $0x2d8] sm:$0x80]  ;;  %v842_v48 = vld [vmem:[#allocation2 + $0x2a8] sm:$0xff]  ;;  %286 = vst [vmem:[#allocation2 + $0x18] sm:$0x1] %v285_v35  ;;  %v580_v16 = vrot.slane %v6485_v30, 1  ;;  %4342 = vmatmul.mubr.msk.bf16.gmra.mrb[8].mxu0 %vm264_vm1, %v2069_v25 }
  0x37   : > { %v807_v27 = vsel %vm4859_vm4, 0, %v806_v19  ;;  %v810_v43 = vsel %vm4859_vm4, 0, %v809_v12  ;;  %v287_v53 = vld [vmem:[#allocation2 + $0x20] sm:$0x1]  ;;  %v2070_v29 = vld [vmem:[#allocation2 + $0x230] sm:$0xff]  ;;  %v5227_v36 = vsel %vm4874_vm6, %v5163_v60, %v842_v48  ;;  %v582_v28 = vrot.slane %v6484_v54, 1 }
  0x38   : > { %808 = vst [vmem:[#allocation2 + $0x2d0] sm:$0x80] %v807_v27  ;;  %811 = vst [vmem:[#allocation2 + $0x2d8] sm:$0x80] %v810_v43  ;;  %v288_v56 = vsel %vm5136_vm10, 0, %v287_v53  ;;  %v347_v19 = vrot.slane %v345_v57, 7  ;;  %v5245_v50 = vor.u32 %v580_v16, %v6488_v17  ;;  %4345 = vmatprep.mubr.msk.bf16.mxu0 %vm264_vm1, %v2070_v29 }
  0x39   : > { %v290_v12 = vld [vmem:[#allocation2 + $0x28] sm:$0x1]  ;;  %844 = vst [vmem:[#allocation2 + $0x2a8] sm:$0xff] %v5227_v36  ;;  %v845_v55 = vld [vmem:[#allocation2 + $0x2b0] sm:$0xff]  ;;  %289 = vst [vmem:[#allocation2 + $0x20] sm:$0x1] %v288_v56  ;;  %v5262_v53 = vor.u32 %v582_v28, %v6486_v52 }
  0x3a   : > { %v291_v57 = vsel %vm5136_vm10, 0, %v290_v12  ;;  %v354_v6 = vrot.slane %v352_v0, 7  ;;  %v6491_v35 = vshrl.u32 %v5057_v33, 16  ;;  %v246_v27 = vld [vmem:[%s4871_s29 + $0xf0] sm:$0xff]  ;;  %v5258_v43 = vsel %vm4874_vm6, %v5173_v22, %v845_v55  ;;  %v848_v16 = vld [vmem:[#allocation2 + $0x2b8] sm:$0xff]  ;;  %v447_v28 = vld [vmem:[#allocation2 + $0x8] sm:$0xff] }
  0x3b   : > { %v5266_v0 = vor.u32 %v348_v63, %v347_v19  ;;  %292 = vst [vmem:[#allocation2 + $0x28] sm:$0x1] %v291_v57  ;;  %v6487_v56 = vshll.u32 %v5057_v33, 16  ;;  %v812_v25 = vld [vmem:[#allocation2 + $0x2e0] sm:$0x80]  ;;  %v247_v12 = vld [vmem:[%s4871_s29 + $0xf8] sm:$0xff]  ;;  %v5275_v1 = vsel %vm4874_vm6, %v5186_v26, %v848_v16  ;;  %v5288_v29 = vsel %vm5239_vm11, %v5156_v42, %v447_v28 }
  0x3c   : > { %847 = vst [vmem:[#allocation2 + $0x2b0] sm:$0xff] %v5258_v43  ;;  %v5279_v31 = vor.u32 %v355_v11, %v354_v6  ;;  %v813_v63 = vsel %vm4859_vm4, 0, %v812_v25  ;;  %v815_v55 = vld [vmem:[#allocation2 + $0x2e8] sm:$0x80]  ;;  %v1104_v57 = vld [vmem:[#allocation2 + $0xb8] sm:$0xff]  ;;  %850 = vst [vmem:[#allocation2 + $0x2b8] sm:$0xff] %v5275_v1 }
  0x3d   : > { %v851_v16 = vld [vmem:[#allocation2 + $0x2c0] sm:$0xff]  ;;  %v584_v38 = vrot.slane %v6487_v56, 1  ;;  %814 = vst [vmem:[#allocation2 + $0x2e0] sm:$0x80] %v813_v63  ;;  %v6490_v11 = vshll.u32 %v5121_v20, 16  ;;  %v816_v6 = vsel %vm4859_vm4, 0, %v815_v55  ;;  %v5305_v55 = vpack.c.bf16 %v247_v12, %v246_v27  ;;  %4210 = vmatmul.mubr.msk.bf16.gmra.mrb[12].mxu1 %vm264_vm1, %v1104_v57 }
  0x3e   : > { %v293_v25 = vld [vmem:[#allocation2 + $0x30] sm:$0x1]  ;;  %v2071_v54 = vld [vmem:[#allocation2 + $0x238] sm:$0xff]  ;;  %449 = vst [vmem:[#allocation2 + $0x8] sm:$0xff] %v5288_v29  ;;  %v5299_v30 = vsel %vm4874_vm6, %v5192_v18, %v851_v16  ;;  %v854_v28 = vld [vmem:[#allocation2 + $0x2c8] sm:$0xff]  ;;  %v361_v56 = vrot.slane %v359_v62, 7 }
  0x3f   : > { %v450_v52 = vld [vmem:[#allocation2 + $0x10] sm:$0xff]  ;;  %817 = vst [vmem:[#allocation2 + $0x2e8] sm:$0x80] %v816_v6  ;;  %v294_v63 = vsel %vm5136_vm10, 0, %v293_v25  ;;  %v296_v17 = vld [vmem:[#allocation2 + $0x38] sm:$0x1]  ;;  %v5311_v16 = vsel %vm4874_vm6, %v5205_v5, %v854_v28  ;;  %v5320_v62 = vor.u32 %v584_v38, %v6491_v35  ;;  %4346 = vmatmul.mubr.msk.bf16.gmra.mrb[12].mxu0 %vm264_vm1, %v2071_v54 }
  0x40   : > { %v1105_v34 = vld [vmem:[#allocation2 + $0xc0] sm:$0xff]  ;;  %853 = vst [vmem:[#allocation2 + $0x2c0] sm:$0xff] %v5299_v30  ;;  %6539 = vst [vmem:[#allocation5_spill] sm:$0xff] %v5311_v16  ;;  %v5316_v6 = vsel %vm5239_vm11, %v5209_v8, %v450_v52  ;;  %v453_v25 = vld [vmem:[#allocation2 + $0x18] sm:$0xff]  ;;  %v586_v27 = vrot.slane %v6490_v11, 1  ;;  %v5333_v38 = vor.u32 %v362_v47, %v361_v56  ;;  %v297_v11 = vsel %vm5136_vm10, 0, %v296_v17  ;;  %4367 = vmatprep.mubr.msk.bf16.mxu0 %vm264_vm1, %v5014_v14 }
  0x41   : > { %6540 = vst [vmem:[#allocation6_spill] sm:$0xff] %v5316_v6  ;;  %295 = vst [vmem:[#allocation2 + $0x30] sm:$0x1] %v294_v63  ;;  %v818_v12 = vld [vmem:[#allocation2 + $0x2f0] sm:$0x80]  ;;  %v5329_v28 = vsel %vm5239_vm11, %v5216_v10, %v453_v25  ;;  %v860_v19 = vld [vmem:[#allocation2 + $0x2d8] sm:$0xff]  ;;  %4213 = vmatprep.mubr.msk.bf16.mxu1 %vm264_vm1, %v1105_v34 }
  0x42   : > { %856 = vst [vmem:[#allocation2 + $0x2c8] sm:$0xff] %v5311_v16  ;;  %452 = vst [vmem:[#allocation2 + $0x10] sm:$0xff] %v5316_v6  ;;  %v857_v52 = vld [vmem:[#allocation2 + $0x2d0] sm:$0xff]  ;;  %v6542_v63 = vshrl.u32 %v4940_v45, 16  ;;  %v821_v3 = vld [vmem:[#allocation2 + $0x2f8] sm:$0x80]  ;;  %v5352_v47 = vsel %vm4874_vm6, %v5262_v53, %v860_v19 }
  0x43   : > { %6541 = vst [vmem:[#allocation7_spill] sm:$0xff] %v5329_v28  ;;  %774 = vst.msk [vmem:[#allocation2 + $0x278] sm:$0xff] %vm264_vm1, %v5305_v55  ;;  %v5347_v44 = vsel %vm4874_vm6, %v5245_v50, %v857_v52  ;;  %v456_v17 = vld [vmem:[#allocation2 + $0x20] sm:$0xff]  ;;  %v6545_v56 = vshrl.u32 %v5121_v20, 16  ;;  %v459_v52 = vld [vmem:[#allocation2 + $0x28] sm:$0xff]  ;;  %vm3502_vm12 = vcmask 27648  }
  0x44   : > { %v368_v35 = vrot.slane %v6542_v63, 7  ;;  %984 = vst.msk [vmem:[#allocation2 + $0x3f0] sm:$0xff] %vm264_vm1, %v5305_v55  ;;  %455 = vst [vmem:[#allocation2 + $0x18] sm:$0xff] %v5329_v28  ;;  %v299_v42 = vld [vmem:[#allocation2 + $0x40] sm:$0x1]  ;;  %v5365_v19 = vsel %vm5239_vm11, %v5266_v0, %v456_v17  ;;  %v819_v63 = vsel %vm4859_vm4, 0, %v818_v12  ;;  %v5380_v17 = vsel %vm5239_vm11, %v5279_v31, %v459_v52 }
  0x45   : > { %6543 = vst [vmem:[#allocation8_spill] sm:$0xff] %v5347_v44  ;;  %6544 = vst [vmem:[#allocation9_spill] sm:$0xff] %v5352_v47  ;;  %v5356_v25 = vor.u32 %v586_v27, %v6545_v56  ;;  %v302_v28 = vld [vmem:[#allocation2 + $0x48] sm:$0x1]  ;;  %v6547_v27 = vshll.u32 %v4940_v45, 16  ;;  %v822_v12 = vsel %vm4859_vm4, 0, %v821_v3 }
  0x46   : > { %298 = vst [vmem:[#allocation2 + $0x38] sm:$0x1] %v297_v11  ;;  %859 = vst [vmem:[#allocation2 + $0x2d0] sm:$0xff] %v5347_v44  ;;  %v6497_v11 = vshll.u32 %v5130_v46, 16  ;;  %v876_v57 = vld [vmem:[#allocation2 + $0x300] sm:$0x1] }
  0x47   : > { %862 = vst [vmem:[#allocation2 + $0x2d8] sm:$0xff] %v5352_v47  ;;  %6546 = vst [vmem:[#allocation10_spill] sm:$0xff] %v5365_v19  ;;  %v5369_v56 = vor.u32 %v6547_v27, %v368_v35  ;;  %v879_v27 = vld [vmem:[#allocation2 + $0x308] sm:$0x1]  ;;  %v863_v34 = vld [vmem:[#allocation2 + $0x2e0] sm:$0xff]  ;;  %v6549_v52 = vshrl.u32 %v4954_v51, 16  ;;  %4368 = vmatmul.mubr.msk.bf16.vlgmr.msra.gmra.mrb[0].mxu0 %vm264_vm1, %v5027_v21 }
  0x48   : > { %458 = vst [vmem:[#allocation2 + $0x20] sm:$0xff] %v5365_v19  ;;  %6548 = vst [vmem:[#allocation11_spill] sm:$0xff] %v5380_v17  ;;  %v588_v54 = vrot.slane %v6497_v11, 1  ;;  %v303_v3 = vsel %vm5136_vm10, 0, %v302_v28  ;;  %v5400_v14 = vsel %vm4874_vm6, %v5320_v62, %v863_v34  ;;  %v866_v35 = vld [vmem:[#allocation2 + $0x2e8] sm:$0xff]  ;;  %v462_v34 = vld [vmem:[#allocation2 + $0x30] sm:$0xff]  ;;  %4400 = vmatpush3.bf16.msra.mxu0 %v5078_v40  ;;  %4371 = vmatprep.mubr.msk.bf16.mxu0 %vm264_vm1, %v5064_v39 }
  0x49   : > { %820 = vst [vmem:[#allocation2 + $0x2f0] sm:$0x80] %v819_v63  ;;  %461 = vst [vmem:[#allocation2 + $0x28] sm:$0xff] %v5380_v17  ;;  %v300_v63 = vsel %vm5136_vm10, 0, %v299_v42  ;;  %v375_v45 = vrot.slane %v6549_v52, 7  ;;  %v6551_v17 = vshll.u32 %v5305_v55, 16  ;;  %v5412_v28 = vsel %vm4874_vm6, %v5356_v25, %v866_v35 }
  0x4a   : > { %823 = vst [vmem:[#allocation2 + $0x2f8] sm:$0x80] %v822_v12  ;;  %6550 = vst [vmem:[#allocation12_spill] sm:$0xff] %v5400_v14  ;;  %v6552_v12 = vshrl.u32 %v4973_v58, 16  ;;  %v877_v52 = vsel %vm5136_vm10, 0, %v876_v57  ;;  %v6554_v47 = vshrl.u32 %v5130_v46, 16 }
  0x4b   : > { %v824_v19 = vrot.slane %v6551_v17, 1  ;;  %301 = vst [vmem:[#allocation2 + $0x40] sm:$0x1] %v300_v63  ;;  %304 = vst [vmem:[#allocation2 + $0x48] sm:$0x1] %v303_v3  ;;  %v880_v63 = vsel %vm5136_vm10, 0, %v879_v27 }
  0x4c   : > { %v382_v42 = vrot.slane %v6552_v12, 7  ;;  %v305_v11 = vld [vmem:[#allocation2 + $0x50] sm:$0x1]  ;;  %865 = vst [vmem:[#allocation2 + $0x2e0] sm:$0xff] %v5400_v14  ;;  %6553 = vst [vmem:[#allocation13_spill] sm:$0xff] %v5412_v28  ;;  %v5416_v17 = vor.u32 %v588_v54, %v6554_v47  ;;  %v1106_v57 = vld [vmem:[#allocation2 + $0xc8] sm:$0xff]  ;;  %v5424_v14 = vsel %vm5239_vm11, %v5333_v38, %v462_v34 }
  0x4d   : > { %878 = vst [vmem:[#allocation2 + $0x300] sm:$0x1] %v877_v52  ;;  %v308_v3 = vld [vmem:[#allocation2 + $0x58] sm:$0x1]  ;;  %v882_v12 = vld [vmem:[#allocation2 + $0x310] sm:$0x1]  ;;  %4214 = vmatmul.mubr.msk.bf16.gmra.mrb[16].mxu1 %vm264_vm1, %v1106_v57 }
  0x4e   : > { %868 = vst [vmem:[#allocation2 + $0x2e8] sm:$0xff] %v5412_v28  ;;  %v6555_v35 = vshrl.u32 %v5305_v55, 16  ;;  %v6557_v47 = vshll.u32 %v4954_v51, 16  ;;  %v6558_v27 = vshll.u32 %v4973_v58, 16  ;;  %881 = vst [vmem:[#allocation2 + $0x308] sm:$0x1] %v880_v63 }
  0x4f   : > { %v885_v6 = vld [vmem:[#allocation2 + $0x318] sm:$0x1]  ;;  %v311_v28 = vld [vmem:[#allocation2 + $0x60] sm:$0x1]  ;;  %v1107_v16 = vld [vmem:[#allocation2 + $0xd0] sm:$0xff]  ;;  %464 = vst [vmem:[#allocation2 + $0x30] sm:$0xff] %v5424_v14  ;;  %4372 = vmatmul.mubr.msk.bf16.gmra.mrb[4].mxu0 %vm264_vm1, %v5084_v41 }
  0x50   : > { %v5428_v44 = vor.u32 %v824_v19, %v6555_v35  ;;  %v5432_v54 = vor.u32 %v6557_v47, %v375_v45  ;;  %v5436_v52 = vor.u32 %v6558_v27, %v382_v42  ;;  %v465_v34 = vld [vmem:[#allocation2 + $0x38] sm:$0xff]  ;;  %v5442_v19 = vld [vmem:[%s6473_s1 + $0xe] sm:$0x3]  ;;  %v306_v51 = vsel %vm5136_vm10, 0, %v305_v11  ;;  %4217 = vmatprep.mubr.msk.bf16.mxu1 %vm264_vm1, %v1107_v16  ;;  %4375 = vmatprep.mubr.msk.bf16.mxu0 %vm264_vm1, %v5100_v49 }
  0x51   : > { %6559 = vst [vmem:[#allocation15_spill] sm:$0xff] %v5442_v19  ;;  %v6560_v45 = vshrl.u32 %v4997_v4, 16  ;;  %v309_v42 = vsel %vm5136_vm10, 0, %v308_v3  ;;  %v6561_v63 = vshrl.u32 %v5016_v15, 16  ;;  %v5455_v47 = vsel %vm5239_vm11, %v5369_v56, %v465_v34  ;;  %307 = vst [vmem:[#allocation2 + $0x50] sm:$0x1] %v306_v51  ;;  %4767 = vmatprep.subr.msk.bf16.mxu0 %vm1163_vm0, %v5442_v19 }
  0x52   : > { %6556 = vst [vmem:[#allocation14_spill] sm:$0xff] %v5428_v44  ;;  %310 = vst [vmem:[#allocation2 + $0x58] sm:$0x1] %v309_v42  ;;  %v883_v27 = vsel %vm5136_vm10, 0, %v882_v12  ;;  %v886_v11 = vsel %vm5136_vm10, 0, %v885_v6  ;;  %v6562_v34 = vshrl.u32 %v5039_v24, 16 }
  0x53   : > { %v389_v58 = vrot.slane %v6560_v45, 7  ;;  %v396_v35 = vrot.slane %v6561_v63, 7  ;;  %v312_v45 = vsel %vm5136_vm10, 0, %v311_v28  ;;  %v314_v3 = vld [vmem:[#allocation2 + $0x68] sm:$0x1]  ;;  %467 = vst [vmem:[#allocation2 + $0x38] sm:$0xff] %v5455_v47 }
  0x54   : > { %v869_v63 = vld [vmem:[#allocation2 + $0x2f0] sm:$0xff]  ;;  %884 = vst [vmem:[#allocation2 + $0x310] sm:$0x1] %v883_v27  ;;  %887 = vst [vmem:[#allocation2 + $0x318] sm:$0x1] %v886_v11  ;;  %v403_v51 = vrot.slane %v6562_v34, 7 }
  0x55   : > { %313 = vst [vmem:[#allocation2 + $0x60] sm:$0x1] %v312_v45  ;;  %v315_v12 = vsel %vm5136_vm10, 0, %v314_v3  ;;  %v888_v42 = vld [vmem:[#allocation2 + $0x320] sm:$0x1]  ;;  %v5475_v6 = vsel %vm4874_vm6, %v5416_v17, %v869_v63  ;;  %v872_v28 = vld [vmem:[#allocation2 + $0x2f8] sm:$0xff] }
  0x56   : > { %316 = vst [vmem:[#allocation2 + $0x68] sm:$0x1] %v315_v12  ;;  %v6563_v57 = vshrl.u32 %v5057_v33, 16  ;;  %v889_v11 = vsel %vm5136_vm10, 0, %v888_v42  ;;  %v891_v45 = vld [vmem:[#allocation2 + $0x328] sm:$0x1]  ;;  %v5490_v21 = vsel %vm4874_vm6, %v5428_v44, %v872_v28 }
  0x57   : > { %v6564_v3 = vshrl.u32 %v5121_v20, 16  ;;  %871 = vst [vmem:[#allocation2 + $0x2f0] sm:$0xff] %v5475_v6  ;;  %v468_v16 = vld [vmem:[#allocation2 + $0x40] sm:$0xff]  ;;  %v471_v63 = vld [vmem:[#allocation2 + $0x48] sm:$0xff]  ;;  %v6565_v12 = vshll.u32 %v4997_v4, 16  ;;  %v892_v40 = vsel %vm5136_vm10, 0, %v891_v45  ;;  %4376 = vmatmul.mubr.msk.bf16.gmra.mrb[8].mxu0 %vm264_vm1, %v5227_v36 }
  0x58   : > { %v410_v27 = vrot.slane %v6563_v57, 7  ;;  %890 = vst [vmem:[#allocation2 + $0x320] sm:$0x1] %v889_v11  ;;  %v317_v57 = vld [vmem:[#allocation2 + $0x70] sm:$0x1]  ;;  %v6566_v39 = vshrl.u32 %v5130_v46, 16  ;;  %v5504_v28 = vsel %vm5239_vm11, %v5432_v54, %v468_v16  ;;  %v5509_v4 = vsel %vm5239_vm11, %v5436_v52, %v471_v63  ;;  %4379 = vmatprep.mubr.msk.bf16.mxu0 %vm264_vm1, %v5258_v43 }
  0x59   : > { %v417_v34 = vrot.slane %v6564_v3, 7  ;;  %v5494_v42 = vor.u32 %v6565_v12, %v389_v58  ;;  %874 = vst [vmem:[#allocation2 + $0x2f8] sm:$0xff] %v5490_v21  ;;  %6567 = vst [vmem:[#allocation16_spill] sm:$0xff] %v5504_v28  ;;  %v924_v58 = vld [vmem:[#allocation2 + $0x300] sm:$0xff]  ;;  %v6569_v11 = vshll.u32 %v5016_v15, 16  ;;  %v318_v12 = vsel %vm5136_vm10, 0, %v317_v57 }
  0x5a   : > { %v424_v3 = vrot.slane %v6566_v39, 7  ;;  %6568 = vst [vmem:[#allocation17_spill] sm:$0xff] %v5509_v4  ;;  %893 = vst [vmem:[#allocation2 + $0x328] sm:$0x1] %v892_v40  ;;  %v320_v39 = vld [vmem:[#allocation2 + $0x78] sm:$0x1]  ;;  %v5524_v63 = vsel %vm5239_vm11, %v5209_v8, %v924_v58 }
  0x5b   : > { %v5515_v45 = vor.u32 %v6569_v11, %v396_v35  ;;  %v894_v16 = vld [vmem:[#allocation2 + $0x330] sm:$0x1]  ;;  %470 = vst [vmem:[#allocation2 + $0x40] sm:$0xff] %v5504_v28  ;;  %473 = vst [vmem:[#allocation2 + $0x48] sm:$0xff] %v5509_v4  ;;  %v927_v44 = vld [vmem:[#allocation2 + $0x308] sm:$0xff]  ;;  %v6570_v15 = vshll.u32 %v5039_v24, 16 }
  0x5c   : > { %v6571_v40 = vshll.u32 %v5057_v33, 16  ;;  %319 = vst [vmem:[#allocation2 + $0x70] sm:$0x1] %v318_v12  ;;  %v321_v57 = vsel %vm5136_vm10, 0, %v320_v39  ;;  %v897_v19 = vld [vmem:[#allocation2 + $0x338] sm:$0x1]  ;;  %v5540_v58 = vsel %vm5239_vm11, %v5216_v10, %v927_v44 }
  0x5d   : > { %v5528_v35 = vor.u32 %v6570_v15, %v403_v51  ;;  %v512_v4 = vld [vmem:[#allocation2 + $0x100] sm:$0x80]  ;;  %v1108_v28 = vld [vmem:[#allocation2 + $0xd8] sm:$0xff]  ;;  %926 = vst [vmem:[#allocation2 + $0x300] sm:$0xff] %v5524_v63  ;;  %322 = vst [vmem:[#allocation2 + $0x78] sm:$0x1] %v321_v57 }
  0x5e   : > { %v5532_v11 = vor.u32 %v6571_v40, %v410_v27  ;;  %v895_v24 = vsel %vm5136_vm10, 0, %v894_v16  ;;  %v898_v33 = vsel %vm5136_vm10, 0, %v897_v19  ;;  %v513_v51 = vsel %vm4859_vm4, 0, %v512_v4  ;;  %v515_v27 = vld [vmem:[#allocation2 + $0x108] sm:$0x80]  ;;  %v1109_v12 = vld [vmem:[#allocation2 + $0xe0] sm:$0xff]  ;;  %4218 = vmatmul.mubr.msk.bf16.gmra.mrb[20].mxu1 %vm264_vm1, %v1108_v28 }
  0x5f   : > { %929 = vst [vmem:[#allocation2 + $0x308] sm:$0xff] %v5540_v58  ;;  %v474_v39 = vld [vmem:[#allocation2 + $0x50] sm:$0xff]  ;;  %v477_v15 = vld [vmem:[#allocation2 + $0x58] sm:$0xff]  ;;  %896 = vst [vmem:[#allocation2 + $0x330] sm:$0x1] %v895_v24  ;;  %v516_v44 = vsel %vm4859_vm4, 0, %v515_v27  ;;  %4221 = vmatprep.mubr.msk.bf16.mxu1 %vm264_vm1, %v1109_v12  ;;  %4380 = vmatmul.mubr.msk.bf16.gmra.mrb[12].mxu0 %vm264_vm1, %v5275_v1 }
  0x60   : > { %899 = vst [vmem:[#allocation2 + $0x338] sm:$0x1] %v898_v33  ;;  %514 = vst [vmem:[#allocation2 + $0x100] sm:$0x80] %v513_v51  ;;  %v5554_v16 = vsel %vm5239_vm11, %v5494_v42, %v474_v39  ;;  %v5559_v19 = vsel %vm5239_vm11, %v5515_v45, %v477_v15  ;;  %v930_v4 = vld [vmem:[#allocation2 + $0x310] sm:$0xff]  ;;  %v933_v40 = vld [vmem:[#allocation2 + $0x318] sm:$0xff]  ;;  %4383 = vmatprep.mubr.msk.bf16.mxu0 %vm264_vm1, %v5299_v30 }
  0x61   : > { %v480_v57 = vld [vmem:[#allocation2 + $0x60] sm:$0xff]  ;;  %517 = vst [vmem:[#allocation2 + $0x108] sm:$0x80] %v516_v44  ;;  %476 = vst [vmem:[#allocation2 + $0x50] sm:$0xff] %v5554_v16  ;;  %v5567_v24 = vsel %vm5239_vm11, %v5266_v0, %v930_v4  ;;  %v5572_v33 = vsel %vm5239_vm11, %v5279_v31, %v933_v40  ;;  %v483_v28 = vld [vmem:[#allocation2 + $0x68] sm:$0xff]  ;;  %v6573_v27 = vshll.u32 %v5121_v20, 16 }
  0x62   : > { %479 = vst [vmem:[#allocation2 + $0x58] sm:$0xff] %v5559_v19  ;;  %v5577_v51 = vsel %vm5239_vm11, %v5528_v35, %v480_v57  ;;  %v900_v15 = vld [vmem:[#allocation2 + $0x340] sm:$0x1]  ;;  %v903_v44 = vld [vmem:[#allocation2 + $0x348] sm:$0x1]  ;;  %932 = vst [vmem:[#allocation2 + $0x310] sm:$0xff] %v5567_v24  ;;  %v5592_v4 = vsel %vm5239_vm11, %v5532_v11, %v483_v28 }
  0x63   : > { %6572 = vst [vmem:[#allocation18_spill] sm:$0xff] %v5577_v51  ;;  %v5581_v39 = vor.u32 %v6573_v27, %v417_v34  ;;  %935 = vst [vmem:[#allocation2 + $0x318] sm:$0xff] %v5572_v33  ;;  %v936_v20 = vld [vmem:[#allocation2 + $0x320] sm:$0xff]  ;;  %v6575_v34 = vshll.u32 %v5130_v46, 16  ;;  %v901_v41 = vsel %vm5136_vm10, 0, %v900_v15  ;;  %v904_v12 = vsel %vm5136_vm10, 0, %v903_v44 }
  0x64   : > { %482 = vst [vmem:[#allocation2 + $0x60] sm:$0xff] %v5577_v51  ;;  %6574 = vst [vmem:[#allocation19_spill] sm:$0xff] %v5592_v4  ;;  %v518_v57 = vld [vmem:[#allocation2 + $0x110] sm:$0x80]  ;;  %v5608_v28 = vsel %vm5239_vm11, %v5333_v38, %v936_v20  ;;  %v939_v46 = vld [vmem:[#allocation2 + $0x328] sm:$0xff] }
  0x65   : > { %v5596_v40 = vor.u32 %v6575_v34, %v424_v3  ;;  %485 = vst [vmem:[#allocation2 + $0x68] sm:$0xff] %v5592_v4  ;;  %6576 = vst [vmem:[#allocation20_spill] sm:$0xff] %v5608_v28  ;;  %v519_v3 = vsel %vm4859_vm4, 0, %v518_v57  ;;  %v521_v27 = vld [vmem:[#allocation2 + $0x118] sm:$0x80]  ;;  %v1110_v44 = vld [vmem:[#allocation2 + $0xe8] sm:$0xff]  ;;  %v5616_v49 = vsel %vm5239_vm11, %v5369_v56, %v939_v46 }
  0x66   : > { %902 = vst [vmem:[#allocation2 + $0x340] sm:$0x1] %v901_v41  ;;  %905 = vst [vmem:[#allocation2 + $0x348] sm:$0x1] %v904_v12  ;;  %v906_v15 = vld [vmem:[#allocation2 + $0x350] sm:$0x1]  ;;  %4222 = vmatmul.mubr.msk.bf16.gmra.mrb[24].mxu1 %vm264_vm1, %v1110_v44 }
  0x67   : > { %938 = vst [vmem:[#allocation2 + $0x320] sm:$0xff] %v5608_v28  ;;  %6577 = vst [vmem:[#allocation21_spill] sm:$0xff] %v5616_v49  ;;  %v486_v34 = vld [vmem:[#allocation2 + $0x70] sm:$0xff]  ;;  %v522_v20 = vsel %vm4859_vm4, 0, %v521_v27  ;;  %v907_v41 = vsel %vm5136_vm10, 0, %v906_v15  ;;  %v489_v4 = vld [vmem:[#allocation2 + $0x78] sm:$0xff] }
  0x68   : > { %520 = vst [vmem:[#allocation2 + $0x110] sm:$0x80] %v519_v3  ;;  %v909_v12 = vld [vmem:[#allocation2 + $0x358] sm:$0x1]  ;;  %941 = vst [vmem:[#allocation2 + $0x328] sm:$0xff] %v5616_v49  ;;  %v5626_v57 = vsel %vm5239_vm11, %v5581_v39, %v486_v34  ;;  %v1111_v27 = vld [vmem:[#allocation2 + $0xf0] sm:$0xff]  ;;  %v5634_v15 = vsel %vm5239_vm11, %v5596_v40, %v489_v4 }
  0x69   : > { %523 = vst [vmem:[#allocation2 + $0x118] sm:$0x80] %v522_v20  ;;  %908 = vst [vmem:[#allocation2 + $0x350] sm:$0x1] %v907_v41  ;;  %v910_v46 = vsel %vm5136_vm10, 0, %v909_v12  ;;  %v942_v49 = vld [vmem:[#allocation2 + $0x330] sm:$0xff]  ;;  %4225 = vmatprep.mubr.msk.bf16.mxu1 %vm264_vm1, %v1111_v27 }
  0x6a   : > { %v524_v3 = vld [vmem:[#allocation2 + $0x120] sm:$0x80]  ;;  %v527_v28 = vld [vmem:[#allocation2 + $0x128] sm:$0x80]  ;;  %488 = vst [vmem:[#allocation2 + $0x70] sm:$0xff] %v5626_v57  ;;  %6578 = vst [vmem:[#allocation22_spill] sm:$0xff] %v5634_v15  ;;  %v5644_v41 = vsel %vm5239_vm11, %v5432_v54, %v942_v49 }
  0x6b   : > { %v945_v51 = vld [vmem:[#allocation2 + $0x338] sm:$0xff]  ;;  %911 = vst [vmem:[#allocation2 + $0x358] sm:$0x1] %v910_v46  ;;  %v525_v34 = vsel %vm4859_vm4, 0, %v524_v3  ;;  %v528_v20 = vsel %vm4859_vm4, 0, %v527_v28  ;;  %491 = vst [vmem:[#allocation2 + $0x78] sm:$0xff] %v5634_v15 }
  0x6c   : > { %6579 = vst [vmem:[#allocation23_spill] sm:$0xff] %v5644_v41  ;;  %v5649_v4 = vsel %vm5239_vm11, %v5436_v52, %v945_v51  ;;  %v608_v12 = vld [vmem:[#allocation2 + $0x108] sm:$0xff]  ;;  %526 = vst [vmem:[#allocation2 + $0x120] sm:$0x80] %v525_v34  ;;  %v912_v46 = vld [vmem:[#allocation2 + $0x360] sm:$0x1] }
  0x6d   : > { %6580 = vst [vmem:[#allocation24_spill] sm:$0xff] %v5649_v4  ;;  %529 = vst [vmem:[#allocation2 + $0x128] sm:$0x80] %v528_v20  ;;  %v915_v3 = vld [vmem:[#allocation2 + $0x368] sm:$0x1]  ;;  %v5656_v28 = vsel %vm4874_vm6, %v4977_v59, %v608_v12  ;;  %v913_v49 = vsel %vm5136_vm10, 0, %v912_v46 }
  0x6e   : > { %944 = vst [vmem:[#allocation2 + $0x330] sm:$0xff] %v5644_v41  ;;  %947 = vst [vmem:[#allocation2 + $0x338] sm:$0xff] %v5649_v4  ;;  %v916_v51 = vsel %vm5136_vm10, 0, %v915_v3  ;;  %v530_v15 = vld [vmem:[#allocation2 + $0x130] sm:$0x80]  ;;  %v948_v46 = vld [vmem:[#allocation2 + $0x340] sm:$0xff] }
  0x6f   : > { %6581 = vst [vmem:[#allocation25_spill] sm:$0xff] %v5656_v28  ;;  %v533_v34 = vld [vmem:[#allocation2 + $0x138] sm:$0x80]  ;;  %610 = vst [vmem:[#allocation2 + $0x108] sm:$0xff] %v5656_v28  ;;  %v531_v20 = vsel %vm4859_vm4, 0, %v530_v15  ;;  %v951_v3 = vld [vmem:[#allocation2 + $0x348] sm:$0xff]  ;;  %v5680_v36 = vsel %vm5239_vm11, %v5494_v42, %v948_v46 }
  0x70   : > { %914 = vst [vmem:[#allocation2 + $0x360] sm:$0x1] %v913_v49  ;;  %917 = vst [vmem:[#allocation2 + $0x368] sm:$0x1] %v916_v51  ;;  %v534_v59 = vsel %vm4859_vm4, 0, %v533_v34  ;;  %v5685_v27 = vsel %vm5239_vm11, %v5515_v45, %v951_v3  ;;  %v611_v51 = vld [vmem:[#allocation2 + $0x110] sm:$0xff] }
  0x71   : > { %v918_v12 = vld [vmem:[#allocation2 + $0x370] sm:$0x1]  ;;  %v921_v4 = vld [vmem:[#allocation2 + $0x378] sm:$0x1]  ;;  %532 = vst [vmem:[#allocation2 + $0x130] sm:$0x80] %v531_v20 }
  0x72   : > { %535 = vst [vmem:[#allocation2 + $0x138] sm:$0x80] %v534_v59  ;;  %v919_v44 = vsel %vm5136_vm10, 0, %v918_v12  ;;  %v922_v15 = vsel %vm5136_vm10, 0, %v921_v4  ;;  %v536_v49 = vld [vmem:[#allocation2 + $0x140] sm:$0x80]  ;;  %v5696_v12 = vsel %vm4874_vm6, %v4995_v2, %v611_v51 }
  0x73   : > { %6582 = vst [vmem:[#allocation26_spill] sm:$0xff] %v5680_v36  ;;  %6583 = vst [vmem:[#allocation27_spill] sm:$0xff] %v5685_v27  ;;  %v6584_v34 = vshrl.u32 %v5305_v55, 16  ;;  %v537_v4 = vsel %vm4859_vm4, 0, %v536_v49  ;;  %v539_v43 = vld [vmem:[#allocation2 + $0x148] sm:$0x80] }
  0x74   : > { %920 = vst [vmem:[#allocation2 + $0x370] sm:$0x1] %v919_v44  ;;  %923 = vst [vmem:[#allocation2 + $0x378] sm:$0x1] %v922_v15  ;;  %v1112_v59 = vld [vmem:[#allocation2 + $0xf8] sm:$0xff]  ;;  %v954_v3 = vld [vmem:[#allocation2 + $0x350] sm:$0xff] }
  0x75   : > { %v705_v20 = vrot.slane %v6584_v34, 7  ;;  %950 = vst [vmem:[#allocation2 + $0x340] sm:$0xff] %v5680_v36  ;;  %953 = vst [vmem:[#allocation2 + $0x348] sm:$0xff] %v5685_v27  ;;  %v614_v46 = vld [vmem:[#allocation2 + $0x118] sm:$0xff]  ;;  %v540_v44 = vsel %vm4859_vm4, 0, %v539_v43  ;;  %v5709_v34 = vsel %vm5239_vm11, %v5528_v35, %v954_v3  ;;  %v620_v28 = vld [vmem:[#allocation2 + $0x128] sm:$0xff]  ;;  %4226 = vmatmul.mubr.msk.bf16.gmra.mrb[28].mxu1 %vm264_vm1, %v1112_v59 }
  0x76   : > { %6585 = vst [vmem:[#allocation28_spill] sm:$0xff] %v5696_v12  ;;  %538 = vst [vmem:[#allocation2 + $0x140] sm:$0x80] %v537_v4  ;;  %v542_v15 = vld [vmem:[#allocation2 + $0x150] sm:$0x80]  ;;  %v5704_v49 = vsel %vm4874_vm6, %v5037_v23, %v614_v46  ;;  %v957_v51 = vld [vmem:[#allocation2 + $0x358] sm:$0xff] }
  0x77   : > { %613 = vst [vmem:[#allocation2 + $0x110] sm:$0xff] %v5696_v12  ;;  %6586 = vst [vmem:[#allocation29_spill] sm:$0xff] %v5704_v49  ;;  %v543_v4 = vsel %vm4859_vm4, 0, %v542_v15  ;;  %v545_v27 = vld [vmem:[#allocation2 + $0x158] sm:$0x80]  ;;  %v5718_v46 = vsel %vm5239_vm11, %v5532_v11, %v957_v51  ;;  %v617_v12 = vld [vmem:[#allocation2 + $0x120] sm:$0xff]  ;;  %v5733_v51 = vsel %vm4874_vm6, %v5074_v37, %v620_v28 }
  0x78   : > { %6587 = vst [vmem:[#allocation30_spill] sm:$0xff] %v5709_v34  ;;  %541 = vst [vmem:[#allocation2 + $0x148] sm:$0x80] %v540_v44  ;;  %v548_v43 = vld [vmem:[#allocation2 + $0x160] sm:$0x80]  ;;  %v546_v3 = vsel %vm4859_vm4, 0, %v545_v27 }
  0x79   : > { %616 = vst [vmem:[#allocation2 + $0x118] sm:$0xff] %v5704_v49  ;;  %956 = vst [vmem:[#allocation2 + $0x350] sm:$0xff] %v5709_v34  ;;  %v549_v44 = vsel %vm4859_vm4, 0, %v548_v43  ;;  %v551_v15 = vld [vmem:[#allocation2 + $0x168] sm:$0x80]  ;;  %v1079_v36 = vld [vmem:[#allocation2] sm:$0xff]  ;;  %v5728_v49 = vsel %vm4874_vm6, %v5055_v32, %v617_v12 }
  0x7a   : > { %6588 = vst [vmem:[#allocation31_spill] sm:$0xff] %v5718_v46  ;;  %544 = vst [vmem:[#allocation2 + $0x150] sm:$0x80] %v543_v4  ;;  %v6589_v4 = vshll.u32 %v5305_v55, 16  ;;  %v552_v43 = vsel %vm4859_vm4, 0, %v551_v15  ;;  %v960_v12 = vld [vmem:[#allocation2 + $0x360] sm:$0xff]  ;;  %4231 = vmatprep.mubr.msk.bf16.mxu1 %vm264_vm1, %v1079_v36 }
  0x7b   : > { %959 = vst [vmem:[#allocation2 + $0x358] sm:$0xff] %v5718_v46  ;;  %547 = vst [vmem:[#allocation2 + $0x158] sm:$0x80] %v546_v3  ;;  %v554_v46 = vld [vmem:[#allocation2 + $0x170] sm:$0x80]  ;;  %v963_v34 = vld [vmem:[#allocation2 + $0x368] sm:$0xff]  ;;  %v5749_v55 = vsel %vm5239_vm11, %v5581_v39, %v960_v12 }
  0x7c   : > { %v5737_v27 = vor.u32 %v6589_v4, %v705_v20  ;;  %550 = vst [vmem:[#allocation2 + $0x160] sm:$0x80] %v549_v44  ;;  %619 = vst [vmem:[#allocation2 + $0x120] sm:$0xff] %v5728_v49  ;;  %v555_v28 = vsel %vm4859_vm4, 0, %v554_v46  ;;  %v557_v41 = vld [vmem:[#allocation2 + $0x178] sm:$0x80]  ;;  %v5754_v20 = vsel %vm5239_vm11, %v5596_v40, %v963_v34 }
  0x7d   : > { %622 = vst [vmem:[#allocation2 + $0x128] sm:$0xff] %v5733_v51  ;;  %553 = vst [vmem:[#allocation2 + $0x168] sm:$0x80] %v552_v43  ;;  %v623_v3 = vld [vmem:[#allocation2 + $0x130] sm:$0xff]  ;;  %v626_v44 = vld [vmem:[#allocation2 + $0x138] sm:$0xff]  ;;  %v558_v15 = vsel %vm4859_vm4, 0, %v557_v41  ;;  %4232 = vmatmul.mubr.msk.bf16.vlgmr.msra.gmra.mrb[0].mxu1 %vm264_vm1, %v5288_v29 }
  0x7e   : > { %556 = vst [vmem:[#allocation2 + $0x170] sm:$0x80] %v555_v28  ;;  %962 = vst [vmem:[#allocation2 + $0x360] sm:$0xff] %v5749_v55  ;;  %v5766_v59 = vsel %vm4874_vm6, %v5163_v60, %v623_v3  ;;  %v5771_v34 = vsel %vm4874_vm6, %v5173_v22, %v626_v44  ;;  %v966_v41 = vld [vmem:[#allocation2 + $0x370] sm:$0xff]  ;;  %v629_v36 = vld [vmem:[#allocation2 + $0x140] sm:$0xff] }
  0x7f   : > { %965 = vst [vmem:[#allocation2 + $0x368] sm:$0xff] %v5754_v20  ;;  %559 = vst [vmem:[#allocation2 + $0x178] sm:$0x80] %v558_v15  ;;  %v5780_v1 = vsel %vm5239_vm11, %v5737_v27, %v966_v41  ;;  %v654_v46 = vld [vmem:[#allocation2 + $0x180] sm:$0x1]  ;;  %v5786_v43 = vsel %vm4874_vm6, %v5186_v26, %v629_v36  ;;  %v632_v30 = vld [vmem:[#allocation2 + $0x148] sm:$0xff] }
  0x80   : > { %625 = vst [vmem:[#allocation2 + $0x130] sm:$0xff] %v5766_v59  ;;  %628 = vst [vmem:[#allocation2 + $0x138] sm:$0xff] %v5771_v34  ;;  %v657_v4 = vld [vmem:[#allocation2 + $0x188] sm:$0x1]  ;;  %v655_v12 = vsel %vm5136_vm10, 0, %v654_v46  ;;  %v5796_v3 = vsel %vm4874_vm6, %v5192_v18, %v632_v30  ;;  %v1607_v30 = vsel %vm1163_vm0, %v5182_v61, 0 }
  0x81   : > { %968 = vst [vmem:[#allocation2 + $0x370] sm:$0xff] %v5780_v1  ;;  %6590 = vst [vmem:[#allocation32_spill] sm:$0xff] %v5786_v43  ;;  %v658_v28 = vsel %vm5136_vm10, 0, %v657_v4  ;;  %v635_v44 = vld [vmem:[#allocation2 + $0x150] sm:$0xff]  ;;  %4264 = vmatpush3.bf16.msra.mxu1 %v1607_v30  ;;  %v2853_v13 = vld [vmem:[#allocation2 + $0x398] sm:$0xff] }
  0x82   : > { %631 = vst [vmem:[#allocation2 + $0x140] sm:$0xff] %v5786_v43  ;;  %656 = vst [vmem:[#allocation2 + $0x180] sm:$0x1] %v655_v12  ;;  %v660_v15 = vld [vmem:[#allocation2 + $0x190] sm:$0x1]  ;;  %v5802_v41 = vsel %vm4874_vm6, %v5205_v5, %v635_v44  ;;  %v638_v36 = vld [vmem:[#allocation2 + $0x158] sm:$0xff] }
  0x83   : > { %659 = vst [vmem:[#allocation2 + $0x188] sm:$0x1] %v658_v28  ;;  %634 = vst [vmem:[#allocation2 + $0x148] sm:$0xff] %v5796_v3  ;;  %v641_v46 = vld [vmem:[#allocation2 + $0x160] sm:$0xff]  ;;  %v661_v4 = vsel %vm5136_vm10, 0, %v660_v15  ;;  %v5812_v12 = vsel %vm4874_vm6, %v5245_v50, %v638_v36 }
  0x84   : > { %v663_v43 = vld [vmem:[#allocation2 + $0x198] sm:$0x1]  ;;  %637 = vst [vmem:[#allocation2 + $0x150] sm:$0xff] %v5802_v41  ;;  %v5817_v28 = vsel %vm4874_vm6, %v5262_v53, %v641_v46  ;;  %v644_v44 = vld [vmem:[#allocation2 + $0x168] sm:$0xff]  ;;  %662 = vst [vmem:[#allocation2 + $0x190] sm:$0x1] %v661_v4 }
  0x85   : > { %6591 = vst [vmem:[#allocation33_spill] sm:$0xff] %v5817_v28  ;;  %v664_v15 = vsel %vm5136_vm10, 0, %v663_v43  ;;  %640 = vst [vmem:[#allocation2 + $0x158] sm:$0xff] %v5812_v12  ;;  %v5826_v61 = vsel %vm4874_vm6, %v5320_v62, %v644_v44  ;;  %v647_v36 = vld [vmem:[#allocation2 + $0x170] sm:$0xff]  ;;  %v5833_v46 = vld [vmem:[%s6473_s1 + $0x6] sm:$0x3] }
  0x86   : > { %643 = vst [vmem:[#allocation2 + $0x160] sm:$0xff] %v5817_v28  ;;  %6592 = vst [vmem:[#allocation34_spill] sm:$0xff] %v5826_v61  ;;  %v5839_v43 = vsel %vm4874_vm6, %v5356_v25, %v647_v36  ;;  %v650_v4 = vld [vmem:[#allocation2 + $0x178] sm:$0xff]  ;;  %v6594_v44 = vld [vmem:[#allocation5_spill] sm:$0xff]  ;;  %4762 = vmatprep.subr.msk.bf16.mxu1 %vm1163_vm0, %v5833_v46 }
  0x87   : > { %665 = vst [vmem:[#allocation2 + $0x198] sm:$0x1] %v664_v15  ;;  %646 = vst [vmem:[#allocation2 + $0x168] sm:$0xff] %v5826_v61  ;;  %4384 = vmatmul.mubr.msk.bf16.gmra.mrb[16].mxu0 %vm264_vm1, %v6594_v44  ;;  %v5847_v29 = vsel %vm4874_vm6, %v5416_v17, %v650_v4  ;;  %v6596_v15 = vld [vmem:[#allocation6_spill] sm:$0xff]  ;;  %v6597_v61 = vld [vmem:[#allocation8_spill] sm:$0xff] }
  0x88   : > { %6593 = vst [vmem:[#allocation35_spill] sm:$0xff] %v5839_v43  ;;  %649 = vst [vmem:[#allocation2 + $0x170] sm:$0xff] %v5839_v43  ;;  %4235 = vmatprep.mubr.msk.bf16.mxu1 %vm264_vm1, %v6596_v15  ;;  %4387 = vmatprep.mubr.msk.bf16.mxu0 %vm264_vm1, %v6597_v61  ;;  %v6598_v44 = vld [vmem:[#allocation4_spill] sm:$0xff]  ;;  %v666_v15 = vld [vmem:[#allocation2 + $0x1a0] sm:$0x1] }
  0x89   : > { %6595 = vst [vmem:[#allocation5_spill] sm:$0xff] %v5847_v29  ;;  %652 = vst [vmem:[#allocation2 + $0x178] sm:$0xff] %v5847_v29  ;;  %v710_v30 = vld [vmem:[#allocation2 + $0x180] sm:$0xff]  ;;  %v667_v29 = vsel %vm5136_vm10, 0, %v666_v15  ;;  %v669_v28 = vld [vmem:[#allocation2 + $0x1a8] sm:$0x1] }
  0x8a   : > { %v713_v36 = vld [vmem:[#allocation2 + $0x188] sm:$0xff]  ;;  %v5859_v43 = vsel %vm5239_vm11, %v6598_v44, %v710_v30  ;;  %668 = vst [vmem:[#allocation2 + $0x1a0] sm:$0x1] %v667_v29  ;;  %v6600_v15 = vld [vmem:[#allocation7_spill] sm:$0xff]  ;;  %v6602_v29 = vld [vmem:[#allocation10_spill] sm:$0xff] }
  0x8b   : > { %v5864_v4 = vsel %vm5239_vm11, %v5209_v8, %v713_v36  ;;  %712 = vst [vmem:[#allocation2 + $0x180] sm:$0xff] %v5859_v43  ;;  %v716_v61 = vld [vmem:[#allocation2 + $0x190] sm:$0xff]  ;;  %v670_v8 = vsel %vm5136_vm10, 0, %v669_v28  ;;  %4236 = vmatmul.mubr.msk.bf16.gmra.mrb[4].mxu1 %vm264_vm1, %v6600_v15  ;;  %v6603_v28 = vld [vmem:[#allocation12_spill] sm:$0xff] }
  0x8c   : > { %715 = vst [vmem:[#allocation2 + $0x188] sm:$0xff] %v5864_v4  ;;  %v5873_v30 = vsel %vm5239_vm11, %v5216_v10, %v716_v61  ;;  %671 = vst [vmem:[#allocation2 + $0x1a8] sm:$0x1] %v670_v8  ;;  %v6601_v10 = vld [vmem:[#allocation9_spill] sm:$0xff]  ;;  %4239 = vmatprep.mubr.msk.bf16.mxu1 %vm264_vm1, %v6602_v29 }
  0x8d   : > { %6599 = vst [vmem:[#allocation6_spill] sm:$0xff] %v5873_v30  ;;  %718 = vst [vmem:[#allocation2 + $0x190] sm:$0xff] %v5873_v30  ;;  %v672_v61 = vld [vmem:[#allocation2 + $0x1b0] sm:$0x1] }
  0x8e   : > { %v719_v44 = vld [vmem:[#allocation2 + $0x198] sm:$0xff] }
  0x8f   : > { %v5881_v36 = vsel %vm5239_vm11, %v5266_v0, %v719_v44  ;;  %4388 = vmatmul.mubr.msk.bf16.gmra.mrb[20].mxu0 %vm264_vm1, %v6601_v10  ;;  %v673_v0 = vsel %vm5136_vm10, 0, %v672_v61  ;;  %v675_v44 = vld [vmem:[#allocation2 + $0x1b8] sm:$0x1] }
  0x90   : > { %721 = vst [vmem:[#allocation2 + $0x198] sm:$0xff] %v5881_v36  ;;  %4391 = vmatprep.mubr.msk.bf16.mxu0 %vm264_vm1, %v6603_v28  ;;  %674 = vst [vmem:[#allocation2 + $0x1b0] sm:$0x1] %v673_v0  ;;  %v676_v10 = vsel %vm5136_vm10, 0, %v675_v44  ;;  %v6604_v28 = vld [vmem:[#allocation11_spill] sm:$0xff] }
  0x91   : > { %v722_v30 = vld [vmem:[#allocation2 + $0x1a0] sm:$0xff]  ;;  %677 = vst [vmem:[#allocation2 + $0x1b8] sm:$0x1] %v676_v10  ;;  %v681_v0 = vld [vmem:[#allocation2 + $0x1c8] sm:$0x1] }
  0x92   : > { %v5897_v8 = vsel %vm5239_vm11, %v5279_v31, %v722_v30  ;;  %v6605_v31 = vld [vmem:[#allocation13_spill] sm:$0xff]  ;;  %v678_v30 = vld [vmem:[#allocation2 + $0x1c0] sm:$0x1]  ;;  %v986_v44 = vld [vmem:[#allocation2 + $0x400] sm:$0x80] }
  0x93   : > { %v725_v15 = vld [vmem:[#allocation2 + $0x1a8] sm:$0xff]  ;;  %724 = vst [vmem:[#allocation2 + $0x1a0] sm:$0xff] %v5897_v8  ;;  %4240 = vmatmul.mubr.msk.bf16.gmra.mrb[8].mxu1 %vm264_vm1, %v6604_v28 }
  0x94   : > { %v5905_v29 = vsel %vm5239_vm11, %v5333_v38, %v725_v15  ;;  %4243 = vmatprep.mubr.msk.bf16.mxu1 %vm264_vm1, %v5424_v14  ;;  %v679_v38 = vsel %vm5136_vm10, 0, %v678_v30  ;;  %v682_v14 = vsel %vm5136_vm10, 0, %v681_v0  ;;  %v989_v28 = vld [vmem:[#allocation2 + $0x408] sm:$0x80]  ;;  %v687_v0 = vld [vmem:[#allocation2 + $0x1d8] sm:$0x1] }
  0x95   : > { %727 = vst [vmem:[#allocation2 + $0x1a8] sm:$0xff] %v5905_v29  ;;  %680 = vst [vmem:[#allocation2 + $0x1c0] sm:$0x1] %v679_v38  ;;  %v6606_v30 = vld [vmem:[#allocation16_spill] sm:$0xff] }
  0x96   : > { %683 = vst [vmem:[#allocation2 + $0x1c8] sm:$0x1] %v682_v14  ;;  %v688_v14 = vsel %vm5136_vm10, 0, %v687_v0  ;;  %v5975_v0 = vld [vmem:[%s6473_s1 + $0x10] sm:$0x3] }
  0x97   : > { %4392 = vmatmul.mubr.msk.bf16.gmra.mrb[24].mxu0 %vm264_vm1, %v6605_v31  ;;  %v728_v61 = vld [vmem:[#allocation2 + $0x1b0] sm:$0xff]  ;;  %689 = vst [vmem:[#allocation2 + $0x1d8] sm:$0x1] %v688_v14 }
  0x98   : > { %4395 = vmatprep.mubr.msk.bf16.mxu0 %vm264_vm1, %v5475_v6  ;;  %v5921_v15 = vsel %vm5239_vm11, %v5369_v56, %v728_v61  ;;  %v731_v10 = vld [vmem:[#allocation2 + $0x1b8] sm:$0xff]  ;;  %v987_v6 = vsel %vm4859_vm4, 0, %v986_v44  ;;  %v990_v56 = vsel %vm4859_vm4, 0, %v989_v28  ;;  %v992_v44 = vld [vmem:[#allocation2 + $0x410] sm:$0x80]  ;;  %v6607_v28 = vld [vmem:[#allocation15_spill] sm:$0xff] }
  0x99   : > { %730 = vst [vmem:[#allocation2 + $0x1b0] sm:$0xff] %v5921_v15  ;;  %v5931_v31 = vsel %vm5239_vm11, %v5432_v54, %v731_v10  ;;  %988 = vst [vmem:[#allocation2 + $0x400] sm:$0x80] %v987_v6  ;;  %v684_v54 = vld [vmem:[#allocation2 + $0x1d0] sm:$0x1] }
  0x9a   : > { %733 = vst [vmem:[#allocation2 + $0x1b8] sm:$0xff] %v5931_v31  ;;  %991 = vst [vmem:[#allocation2 + $0x408] sm:$0x80] %v990_v56  ;;  %v685_v38 = vsel %vm5136_vm10, 0, %v684_v54  ;;  %v995_v6 = vld [vmem:[#allocation2 + $0x418] sm:$0x80] }
  0x9b   : > { %4244 = vmatmul.mubr.msk.bf16.gmra.mrb[12].mxu1 %vm264_vm1, %v5455_v47  ;;  %686 = vst [vmem:[#allocation2 + $0x1d0] sm:$0x1] %v685_v38  ;;  %v2917_v56 = vsel %vm1163_vm0, %v6607_v28, 0  ;;  %v6608_v38 = vld [vmem:[#allocation17_spill] sm:$0xff] }
  0x9c   : > { %4247 = vmatprep.mubr.msk.bf16.mxu1 %vm264_vm1, %v6606_v30  ;;  %v734_v61 = vld [vmem:[#allocation2 + $0x1c0] sm:$0xff] }
  0x9d   : > { %v5949_v47 = vsel %vm5239_vm11, %v5436_v52, %v734_v61  ;;  %v737_v10 = vld [vmem:[#allocation2 + $0x1c8] sm:$0xff]  ;;  %v996_v61 = vsel %vm4859_vm4, 0, %v995_v6 }
  0x9e   : > { %736 = vst [vmem:[#allocation2 + $0x1c0] sm:$0xff] %v5949_v47  ;;  %v5961_v52 = vsel %vm5239_vm11, %v5494_v42, %v737_v10  ;;  %997 = vst [vmem:[#allocation2 + $0x418] sm:$0x80] %v996_v61  ;;  %v690_v42 = vld [vmem:[#allocation2 + $0x1e0] sm:$0x1]  ;;  %v6610_v61 = vld [vmem:[#allocation20_spill] sm:$0xff] }
  0x9f   : > { %4396 = vmatmul.mubr.msk.bf16.gmra.mrb[28].mxu0 %vm264_vm1, %v5490_v21  ;;  %739 = vst [vmem:[#allocation2 + $0x1c8] sm:$0xff] %v5961_v52  ;;  %v693_v10 = vld [vmem:[#allocation2 + $0x1e8] sm:$0x1]  ;;  %v1001_v6 = vld [vmem:[#allocation2 + $0x428] sm:$0x80] }
  0xa0   : > { %4401 = vmatprep.mubr.msk.bf16.mxu0 %vm264_vm1, %v5524_v63  ;;  %v1034_v21 = vld [vmem:[#allocation2 + $0x400] sm:$0xff]  ;;  %v993_v63 = vsel %vm4859_vm4, 0, %v992_v44 }
  0xa1   : > { %v5966_v30 = vsel %vm4874_vm6, %v4995_v2, %v1034_v21  ;;  %v1037_v54 = vld [vmem:[#allocation2 + $0x408] sm:$0xff]  ;;  %994 = vst [vmem:[#allocation2 + $0x410] sm:$0x80] %v993_v63  ;;  %v998_v21 = vld [vmem:[#allocation2 + $0x420] sm:$0x80] }
  0xa2   : > { %1036 = vst [vmem:[#allocation2 + $0x400] sm:$0xff] %v5966_v30  ;;  %v5982_v2 = vsel %vm4874_vm6, %v5037_v23, %v1037_v54  ;;  %v740_v44 = vld [vmem:[#allocation2 + $0x1d0] sm:$0xff]  ;;  %v691_v23 = vsel %vm5136_vm10, 0, %v690_v42  ;;  %v999_v63 = vsel %vm4859_vm4, 0, %v998_v21  ;;  %v1002_v54 = vsel %vm4859_vm4, 0, %v1001_v6  ;;  %v6611_v6 = vld [vmem:[#allocation19_spill] sm:$0xff] }
  0xa3   : > { %4248 = vmatmul.mubr.msk.bf16.gmra.mrb[16].mxu1 %vm264_vm1, %v6608_v38  ;;  %1039 = vst [vmem:[#allocation2 + $0x408] sm:$0xff] %v5982_v2  ;;  %692 = vst [vmem:[#allocation2 + $0x1e0] sm:$0x1] %v691_v23 }
  0xa4   : > { %4251 = vmatprep.mubr.msk.bf16.mxu1 %vm264_vm1, %v5554_v16  ;;  %v743_v16 = vld [vmem:[#allocation2 + $0x1d8] sm:$0xff]  ;;  %1000 = vst [vmem:[#allocation2 + $0x420] sm:$0x80] %v999_v63  ;;  %1003 = vst [vmem:[#allocation2 + $0x428] sm:$0x80] %v1002_v54  ;;  %v1540_v54 = vld [vmem:[#allocation2 + $0x100] sm:$0xff] }
  0xa5   : > { %v6008_v28 = vsel %vm5239_vm11, %v5528_v35, %v743_v16 }
  0xa6   : > { %745 = vst [vmem:[#allocation2 + $0x1d8] sm:$0xff] %v6008_v28 }
  0xa7   : > { %4402 = vmatmul.mubr.msk.bf16.vlgmr.msra.gmra.mrb[0].mxu0 %vm264_vm1, %v5540_v58  ;;  %v5998_v58 = vsel %vm5239_vm11, %v5515_v45, %v740_v44  ;;  %v699_v44 = vld [vmem:[#allocation2 + $0x1f8] sm:$0x1] }
  0xa8   : > { %4434 = vmatpush3.bf16.msra.mxu0 %v2917_v56  ;;  %4405 = vmatprep.mubr.msk.bf16.mxu0 %vm264_vm1, %v5567_v24  ;;  %v1040_v14 = vld [vmem:[#allocation2 + $0x410] sm:$0xff]  ;;  %v694_v24 = vsel %vm5136_vm10, 0, %v693_v10  ;;  %742 = vst [vmem:[#allocation2 + $0x1d0] sm:$0xff] %v5998_v58  ;;  %v1043_v56 = vld [vmem:[#allocation2 + $0x418] sm:$0xff]  ;;  %v700_v21 = vsel %vm5136_vm10, 0, %v699_v44 }
  0xa9   : > { %4768 = vmatprep.subr.msk.bf16.mxu0 %vm1163_vm0, %v5975_v0  ;;  %v6013_v45 = vsel %vm4874_vm6, %v5055_v32, %v1040_v14  ;;  %695 = vst [vmem:[#allocation2 + $0x1e8] sm:$0x1] %v694_v24  ;;  %v6024_v35 = vsel %vm4874_vm6, %v5074_v37, %v1043_v56  ;;  %v6609_v32 = vld [vmem:[#allocation18_spill] sm:$0xff]  ;;  %v1004_v37 = vld [vmem:[#allocation2 + $0x430] sm:$0x80]  ;;  %v6613_v56 = vld [vmem:[#allocation23_spill] sm:$0xff] }
  0xaa   : > { %1042 = vst [vmem:[#allocation2 + $0x410] sm:$0xff] %v6013_v45  ;;  %1045 = vst [vmem:[#allocation2 + $0x418] sm:$0xff] %v6024_v35  ;;  %v746_v38 = vld [vmem:[#allocation2 + $0x1e0] sm:$0xff]  ;;  %v1005_v16 = vsel %vm4859_vm4, 0, %v1004_v37  ;;  %v1007_v14 = vld [vmem:[#allocation2 + $0x438] sm:$0x80] }
  0xab   : > { %4252 = vmatmul.mubr.msk.bf16.gmra.mrb[20].mxu1 %vm264_vm1, %v5559_v19  ;;  %v696_v19 = vld [vmem:[#allocation2 + $0x1f0] sm:$0x1]  ;;  %v6038_v23 = vsel %vm5239_vm11, %v5532_v11, %v746_v38  ;;  %v1046_v10 = vld [vmem:[#allocation2 + $0x420] sm:$0xff]  ;;  %v1049_v63 = vld [vmem:[#allocation2 + $0x428] sm:$0xff]  ;;  %701 = vst [vmem:[#allocation2 + $0x1f8] sm:$0x1] %v700_v21 }
  0xac   : > { %4255 = vmatprep.mubr.msk.bf16.mxu1 %vm264_vm1, %v6609_v32  ;;  %v697_v42 = vsel %vm5136_vm10, 0, %v696_v19  ;;  %748 = vst [vmem:[#allocation2 + $0x1e0] sm:$0xff] %v6038_v23  ;;  %v6053_v11 = vsel %vm4874_vm6, %v5163_v60, %v1046_v10  ;;  %1006 = vst [vmem:[#allocation2 + $0x430] sm:$0x80] %v1005_v16  ;;  %v1008_v9 = vsel %vm4859_vm4, 0, %v1007_v14  ;;  %v6612_v60 = vld [vmem:[#allocation21_spill] sm:$0xff] }
  0xad   : > { %698 = vst [vmem:[#allocation2 + $0x1f0] sm:$0x1] %v697_v42  ;;  %1048 = vst [vmem:[#allocation2 + $0x420] sm:$0xff] %v6053_v11  ;;  %v1013_v44 = vld [vmem:[#allocation2 + $0x448] sm:$0x80]  ;;  %v6614_v10 = vld [vmem:[#allocation22_spill] sm:$0xff] }
  0xae   : > { %1009 = vst [vmem:[#allocation2 + $0x438] sm:$0x80] %v1008_v9  ;;  %v1016_v21 = vld [vmem:[#allocation2 + $0x450] sm:$0x80]  ;;  %v1869_v16 = vsel %vm1163_vm0, %v5833_v46, 0 }
  0xaf   : > { %4406 = vmatmul.mubr.msk.bf16.gmra.mrb[4].mxu0 %vm264_vm1, %v5572_v33 }
  0xb0   : > { %4409 = vmatprep.mubr.msk.bf16.mxu0 %vm264_vm1, %v6610_v61  ;;  %v749_v33 = vld [vmem:[#allocation2 + $0x1e8] sm:$0xff]  ;;  %v1010_v61 = vld [vmem:[#allocation2 + $0x440] sm:$0x80] }
  0xb1   : > { %v6048_v24 = vsel %vm5239_vm11, %v5581_v39, %v749_v33  ;;  %v6064_v39 = vsel %vm4874_vm6, %v5173_v22, %v1049_v63  ;;  %v1011_v42 = vsel %vm4859_vm4, 0, %v1010_v61  ;;  %v1014_v33 = vsel %vm4859_vm4, 0, %v1013_v44  ;;  %v1019_v63 = vld [vmem:[#allocation2 + $0x458] sm:$0x80]  ;;  %v4778_v61 = vld [vmem:[%s6473_s1 + $0x8] sm:$0x3] }
  0xb2   : > { %751 = vst [vmem:[#allocation2 + $0x1e8] sm:$0xff] %v6048_v24  ;;  %1051 = vst [vmem:[#allocation2 + $0x428] sm:$0xff] %v6064_v39  ;;  %v755_v19 = vld [vmem:[#allocation2 + $0x1f8] sm:$0xff] }
  0xb3   : > { %4256 = vmatmul.mubr.msk.bf16.gmra.mrb[24].mxu1 %vm264_vm1, %v6611_v6  ;;  %v1052_v38 = vld [vmem:[#allocation2 + $0x430] sm:$0xff]  ;;  %1012 = vst [vmem:[#allocation2 + $0x440] sm:$0x80] %v1011_v42  ;;  %1015 = vst [vmem:[#allocation2 + $0x448] sm:$0x80] %v1014_v33 }
  0xb4   : > { %4259 = vmatprep.mubr.msk.bf16.mxu1 %vm264_vm1, %v5626_v57  ;;  %v752_v32 = vld [vmem:[#allocation2 + $0x1f0] sm:$0xff]  ;;  %v6084_v57 = vsel %vm5239_vm11, %v5737_v27, %v755_v19  ;;  %v6089_v37 = vsel %vm4874_vm6, %v5186_v26, %v1052_v38  ;;  %v6615_v26 = vld [vmem:[#allocation24_spill] sm:$0xff]  ;;  %v6616_v27 = vld [vmem:[#allocation26_spill] sm:$0xff] }
  0xb5   : > { %v6076_v22 = vsel %vm5239_vm11, %v5596_v40, %v752_v32  ;;  %v1055_v40 = vld [vmem:[#allocation2 + $0x438] sm:$0xff]  ;;  %757 = vst [vmem:[#allocation2 + $0x1f8] sm:$0xff] %v6084_v57  ;;  %1054 = vst [vmem:[#allocation2 + $0x430] sm:$0xff] %v6089_v37  ;;  %v1025_v42 = vld [vmem:[#allocation2 + $0x468] sm:$0x80] }
  0xb6   : > { %754 = vst [vmem:[#allocation2 + $0x1f0] sm:$0xff] %v6076_v22  ;;  %v6100_v48 = vsel %vm4874_vm6, %v5192_v18, %v1055_v40  ;;  %v1017_v18 = vsel %vm4859_vm4, 0, %v1016_v21  ;;  %v6620_v32 = vld [vmem:[#allocation30_spill] sm:$0xff]  ;;  %v1026_v33 = vsel %vm4859_vm4, 0, %v1025_v42  ;;  %v2862_v42 = vld [vmem:[#allocation2 + $0x3e0] sm:$0xff] }
  0xb7   : > { %4410 = vmatmul.mubr.msk.bf16.gmra.mrb[8].mxu0 %vm264_vm1, %v6612_v60  ;;  %1057 = vst [vmem:[#allocation2 + $0x438] sm:$0xff] %v6100_v48  ;;  %1018 = vst [vmem:[#allocation2 + $0x450] sm:$0x80] %v1017_v18  ;;  %v1020_v60 = vsel %vm4859_vm4, 0, %v1019_v63  ;;  %v1031_v18 = vld [vmem:[#allocation2 + $0x478] sm:$0x80] }
  0xb8   : > { %4413 = vmatprep.mubr.msk.bf16.mxu0 %vm264_vm1, %v6613_v56  ;;  %v6617_v56 = vld [vmem:[#allocation25_spill] sm:$0xff]  ;;  %1021 = vst [vmem:[#allocation2 + $0x458] sm:$0x80] %v1020_v60  ;;  %1027 = vst [vmem:[#allocation2 + $0x468] sm:$0x80] %v1026_v33  ;;  %v2850_v63 = vld [vmem:[#allocation2 + $0x380] sm:$0xff] }
  0xb9   : > { %v2856_v60 = vld [vmem:[#allocation2 + $0x3b0] sm:$0xff] }
  0xba   : > { %v1058_v14 = vld [vmem:[#allocation2 + $0x440] sm:$0xff]  ;;  %v1061_v6 = vld [vmem:[#allocation2 + $0x448] sm:$0xff] }
  0xbb   : > { %4260 = vmatmul.mubr.msk.bf16.gmra.mrb[28].mxu1 %vm264_vm1, %v6614_v10  ;;  %v6115_v9 = vsel %vm4874_vm6, %v5205_v5, %v1058_v14  ;;  %v6125_v46 = vsel %vm4874_vm6, %v5245_v50, %v1061_v6  ;;  %v6619_v5 = vld [vmem:[#allocation28_spill] sm:$0xff]  ;;  %v1022_v50 = vld [vmem:[#allocation2 + $0x460] sm:$0x80]  ;;  %v6621_v10 = vld [vmem:[#allocation29_spill] sm:$0xff] }
  0xbc   : > { %4265 = vmatprep.mubr.msk.bf16.mxu1 %vm264_vm1, %v1540_v54  ;;  %1060 = vst [vmem:[#allocation2 + $0x440] sm:$0xff] %v6115_v9  ;;  %v6618_v54 = vld [vmem:[#allocation27_spill] sm:$0xff]  ;;  %1063 = vst [vmem:[#allocation2 + $0x448] sm:$0xff] %v6125_v46  ;;  %v1023_v38 = vsel %vm4859_vm4, 0, %v1022_v50  ;;  %v2852_v6 = vld [vmem:[#allocation2 + $0x390] sm:$0xff] }
  0xbd   : > { %1024 = vst [vmem:[#allocation2 + $0x460] sm:$0x80] %v1023_v38  ;;  %v6629_v50 = vld [vmem:[#allocation3_spill] sm:$0xff]  ;;  %v2861_v38 = vld [vmem:[#allocation2 + $0x3d8] sm:$0xff] }
  0xbe   : > { %v1064_v19 = vld [vmem:[#allocation2 + $0x450] sm:$0xff] }
  0xbf   : > { %4414 = vmatmul.mubr.msk.bf16.gmra.mrb[12].mxu0 %vm264_vm1, %v6615_v26  ;;  %v6143_v44 = vsel %vm4874_vm6, %v5262_v53, %v1064_v19  ;;  %v1067_v40 = vld [vmem:[#allocation2 + $0x458] sm:$0xff]  ;;  %v1028_v53 = vld [vmem:[#allocation2 + $0x470] sm:$0x80]  ;;  %v1073_v14 = vld [vmem:[#allocation2 + $0x468] sm:$0xff] }
  0xc0   : > { %4417 = vmatprep.mubr.msk.bf16.mxu0 %vm264_vm1, %v6616_v27  ;;  %1066 = vst [vmem:[#allocation2 + $0x450] sm:$0xff] %v6143_v44  ;;  %v6153_v26 = vsel %vm4874_vm6, %v5320_v62, %v1067_v40  ;;  %v6622_v27 = vld [vmem:[#allocation31_spill] sm:$0xff]  ;;  %v6630_v19 = vld [vmem:[#allocation6_spill] sm:$0xff] }
  0xc1   : > { %1069 = vst [vmem:[#allocation2 + $0x458] sm:$0xff] %v6153_v26 }
  0xc3   : > { %4266 = vmatmul.mubr.msk.bf16.vlgmr.msra.gmra.mrb[0].mxu1 %vm264_vm1, %v6617_v56  ;;  %v6626_v56 = vld [vmem:[#allocation34_spill] sm:$0xff] }
  0xc4   : > { %4298 = vmatpush3.bf16.msra.mxu1 %v1869_v16  ;;  %4269 = vmatprep.mubr.msk.bf16.mxu1 %vm264_vm1, %v6619_v5  ;;  %v1070_v21 = vld [vmem:[#allocation2 + $0x460] sm:$0xff]  ;;  %v1029_v16 = vsel %vm4859_vm4, 0, %v1028_v53  ;;  %v6628_v5 = vld [vmem:[#allocation5_spill] sm:$0xff] }
  0xc5   : > { %4764 = vmatprep.subr.msk.bf16.mxu1 %vm1163_vm0, %v4778_v61  ;;  %v6167_v62 = vsel %vm4874_vm6, %v5356_v25, %v1070_v21  ;;  %1030 = vst [vmem:[#allocation2 + $0x470] sm:$0x80] %v1029_v16  ;;  %v2603_v25 = vld [vmem:[#allocation2 + $0x378] sm:$0xff]  ;;  %v2860_v61 = vld [vmem:[#allocation2 + $0x3d0] sm:$0xff] }
  0xc6   : > { %1072 = vst [vmem:[#allocation2 + $0x460] sm:$0xff] %v6167_v62 }
  0xc7   : > { %4418 = vmatmul.mubr.msk.bf16.gmra.mrb[16].mxu0 %vm264_vm1, %v6618_v54  ;;  %v2858_v54 = vld [vmem:[#allocation2 + $0x3c0] sm:$0xff] }
  0xc8   : > { %4421 = vmatprep.mubr.msk.bf16.mxu0 %vm264_vm1, %v6620_v32  ;;  %v2859_v32 = vld [vmem:[#allocation2 + $0x3c8] sm:$0xff] }
  0xcb   : > { %4270 = vmatmul.mubr.msk.bf16.gmra.mrb[4].mxu1 %vm264_vm1, %v6621_v10 }
  0xcc   : > { %4273 = vmatprep.mubr.msk.bf16.mxu1 %vm264_vm1, %v5728_v49  ;;  %v6175_v49 = vsel %vm4874_vm6, %v5416_v17, %v1073_v14  ;;  %v6623_v17 = vld [vmem:[#allocation14_spill] sm:$0xff] }
  0xcd   : > { %1075 = vst [vmem:[#allocation2 + $0x468] sm:$0xff] %v6175_v49 }
  0xcf   : > { %4422 = vmatmul.mubr.msk.bf16.gmra.mrb[20].mxu0 %vm264_vm1, %v6622_v27 }
  0xd0   : > { %4425 = vmatprep.mubr.msk.bf16.mxu0 %vm264_vm1, %v5749_v55  ;;  %v1032_v55 = vsel %vm4859_vm4, 0, %v1031_v18 }
  0xd1   : > { %1033 = vst [vmem:[#allocation2 + $0x478] sm:$0x80] %v1032_v55 }
  0xd3   : > { %4274 = vmatmul.mubr.msk.bf16.gmra.mrb[8].mxu1 %vm264_vm1, %v5733_v51  ;;  %v1076_v51 = vld [vmem:[#allocation2 + $0x470] sm:$0xff] }
  0xd4   : > { %4277 = vmatprep.mubr.msk.bf16.mxu1 %vm264_vm1, %v5766_v59  ;;  %v6189_v7 = vsel %vm4874_vm6, %v6623_v17, %v1076_v51  ;;  %v2851_v59 = vld [vmem:[#allocation2 + $0x388] sm:$0xff] }
  0xd5   : > { %1078 = vst [vmem:[#allocation2 + $0x470] sm:$0xff] %v6189_v7 }
  0xd7   : > { %4426 = vmatmul.mubr.msk.bf16.gmra.mrb[24].mxu0 %vm264_vm1, %v5754_v20  ;;  %v6624_v20 = vld [vmem:[#allocation32_spill] sm:$0xff] }
  0xd8   : > { %4429 = vmatprep.mubr.msk.bf16.mxu0 %vm264_vm1, %v5780_v1  ;;  %v3179_v1 = vsel %vm1163_vm0, %v5975_v0, 0  ;;  %v6625_v0 = vld [vmem:[#allocation33_spill] sm:$0xff] }
  0xdb   : > { %4278 = vmatmul.mubr.msk.bf16.gmra.mrb[12].mxu1 %vm264_vm1, %v5771_v34  ;;  %v2854_v34 = vld [vmem:[#allocation2 + $0x3a0] sm:$0xff] }
  0xdc   : > { %4281 = vmatprep.mubr.msk.bf16.mxu1 %vm264_vm1, %v6624_v20 }
  0xdf   : > { %4430 = vmatmul.mubr.msk.bf16.gmra.mrb[28].mxu0 %vm264_vm1, %v2603_v25 }
  0xe0   : > { %4435 = vmatprep.mubr.msk.bf16.mxu0 %vm264_vm1, %v2850_v63 }
  0xe3   : > { %4282 = vmatmul.mubr.msk.bf16.gmra.mrb[16].mxu1 %vm264_vm1, %v5796_v3  ;;  %v2855_v3 = vld [vmem:[#allocation2 + $0x3a8] sm:$0xff] }
  0xe4   : > { %4285 = vmatprep.mubr.msk.bf16.mxu1 %vm264_vm1, %v5802_v41  ;;  %v6627_v41 = vld [vmem:[#allocation35_spill] sm:$0xff] }
  0xe7   : > { %4436 = vmatmul.mubr.msk.bf16.vlgmr.msra.gmra.mrb[0].mxu0 %vm264_vm1, %v2851_v59 }
  0xe8   : > { %4468 = vmatpush3.bf16.msra.mxu0 %v3179_v1  ;;  %4439 = vmatprep.mubr.msk.bf16.mxu0 %vm264_vm1, %v2852_v6 }
  0xeb   : > { %4286 = vmatmul.mubr.msk.bf16.gmra.mrb[20].mxu1 %vm264_vm1, %v5812_v12  ;;  %v2857_v12 = vld [vmem:[#allocation2 + $0x3b8] sm:$0xff] }
  0xec   : > { %4289 = vmatprep.mubr.msk.bf16.mxu1 %vm264_vm1, %v6625_v0 }
  0xef   : > { %4440 = vmatmul.mubr.msk.bf16.gmra.mrb[4].mxu0 %vm264_vm1, %v2853_v13 }
  0xf0   : > { %4443 = vmatprep.mubr.msk.bf16.mxu0 %vm264_vm1, %v2854_v34 }
  0xf3   : > { %4290 = vmatmul.mubr.msk.bf16.gmra.mrb[24].mxu1 %vm264_vm1, %v6626_v56 }
  0xf4   : > { %4293 = vmatprep.mubr.msk.bf16.mxu1 %vm264_vm1, %v6627_v41 }
  0xf7   : > { %4444 = vmatmul.mubr.msk.bf16.gmra.mrb[8].mxu0 %vm264_vm1, %v2855_v3 }
  0xf8   : > { %4447 = vmatprep.mubr.msk.bf16.mxu0 %vm264_vm1, %v2856_v60 }
  0xfb   : > { %4294 = vmatmul.mubr.msk.bf16.gmra.mrb[28].mxu1 %vm264_vm1, %v6628_v5 }
  0xfc   : > { %4299 = vmatprep.mubr.msk.bf16.mxu1 %vm264_vm1, %v5859_v43  ;;  %v2863_v43 = vld [vmem:[#allocation2 + $0x3e8] sm:$0xff] }
  0xff   : > { %4448 = vmatmul.mubr.msk.bf16.gmra.mrb[12].mxu0 %vm264_vm1, %v2857_v12 }
 0x100   : > { %4451 = vmatprep.mubr.msk.bf16.mxu0 %vm264_vm1, %v2858_v54 }
 0x103   : > { %4300 = vmatmul.mubr.msk.bf16.vlgmr.msra.gmra.mrb[0].mxu1 %vm264_vm1, %v5864_v4  ;;  %v2864_v4 = vld [vmem:[#allocation2 + $0x3f0] sm:$0xff] }
 0x104   : > { %4502 = vmatpush3.bf16.msra.mxu1 %v6629_v50  ;;  %4303 = vmatprep.mubr.msk.bf16.mxu1 %vm264_vm1, %v6630_v19 }
 0x107   : > { %4452 = vmatmul.mubr.msk.bf16.gmra.mrb[16].mxu0 %vm264_vm1, %v2859_v32 }
 0x108   : > { %4455 = vmatprep.mubr.msk.bf16.mxu0 %vm264_vm1, %v2860_v61 }
 0x10b   : > { %4304 = vmatmul.mubr.msk.bf16.gmra.mrb[4].mxu1 %vm264_vm1, %v5881_v36  ;;  %v2865_v36 = vld [vmem:[#allocation2 + $0x3f8] sm:$0xff] }
 0x10c   : > { %4307 = vmatprep.mubr.msk.bf16.mxu1 %vm264_vm1, %v5897_v8  ;;  %v2072_v8 = vld [vmem:[#allocation2 + $0x240] sm:$0xff] }
 0x10f   : > { %4456 = vmatmul.mubr.msk.bf16.gmra.mrb[20].mxu0 %vm264_vm1, %v2861_v38 }
 0x110   : > { %4459 = vmatprep.mubr.msk.bf16.mxu0 %vm264_vm1, %v2862_v42 }
 0x113   : > { %4308 = vmatmul.mubr.msk.bf16.gmra.mrb[8].mxu1 %vm264_vm1, %v5905_v29  ;;  %v2073_v29 = vld [vmem:[#allocation2 + $0x248] sm:$0xff] }
 0x114   : > { %4311 = vmatprep.mubr.msk.bf16.mxu1 %vm264_vm1, %v5921_v15  ;;  %v2074_v15 = vld [vmem:[#allocation2 + $0x250] sm:$0xff] }
 0x117   : > { %4460 = vmatmul.mubr.msk.bf16.gmra.mrb[24].mxu0 %vm264_vm1, %v2863_v43 }
 0x118   : > { %4463 = vmatprep.mubr.msk.bf16.mxu0 %vm264_vm1, %v2864_v4 }
 0x11b   : > { %4312 = vmatmul.mubr.msk.bf16.gmra.mrb[12].mxu1 %vm264_vm1, %v5931_v31  ;;  %v2075_v31 = vld [vmem:[#allocation2 + $0x258] sm:$0xff] }
 0x11c   : > { %4315 = vmatprep.mubr.msk.bf16.mxu1 %vm264_vm1, %v5949_v47  ;;  %v2076_v47 = vld [vmem:[#allocation2 + $0x260] sm:$0xff] }
 0x11f   : > { %4464 = vmatmul.mubr.msk.bf16.gmra.mrb[28].mxu0 %vm264_vm1, %v2865_v36 }
 0x120   : > { %4469 = vmatprep.mubr.msk.bf16.mxu0 %vm264_vm1, %v5966_v30  ;;  %v2078_v30 = vld [vmem:[#allocation2 + $0x270] sm:$0xff] }
 0x123   : > { %4316 = vmatmul.mubr.msk.bf16.gmra.mrb[16].mxu1 %vm264_vm1, %v5961_v52  ;;  %v2077_v52 = vld [vmem:[#allocation2 + $0x268] sm:$0xff] }
 0x124   : > { %4319 = vmatprep.mubr.msk.bf16.mxu1 %vm264_vm1, %v5998_v58  ;;  %v3127_v58 = vld [vmem:[#allocation2 + $0x478] sm:$0xff] }
 0x127   : > { %4470 = vmatmul.mubr.msk.bf16.vlgmr.msra.gmra.mrb[0].mxu0 %vm264_vm1, %v5982_v2  ;;  %v2079_v2 = vld [vmem:[#allocation2 + $0x278] sm:$0xff] }
 0x128   : > { %4473 = vmatprep.mubr.msk.bf16.mxu0 %vm264_vm1, %v6013_v45 }
 0x12b   : > { %4320 = vmatmul.mubr.msk.bf16.gmra.mrb[20].mxu1 %vm264_vm1, %v6008_v28 }
 0x12c   : > { %4323 = vmatprep.mubr.msk.bf16.mxu1 %vm264_vm1, %v6038_v23 }
 0x12f   : > { %4474 = vmatmul.mubr.msk.bf16.gmra.mrb[4].mxu0 %vm264_vm1, %v6024_v35 }
 0x130   : > { %4477 = vmatprep.mubr.msk.bf16.mxu0 %vm264_vm1, %v6053_v11 }
 0x133   : > { %4324 = vmatmul.mubr.msk.bf16.gmra.mrb[24].mxu1 %vm264_vm1, %v6048_v24 }
 0x134   : > { %4327 = vmatprep.mubr.msk.bf16.mxu1 %vm264_vm1, %v6076_v22 }
 0x137   : > { %4478 = vmatmul.mubr.msk.bf16.gmra.mrb[8].mxu0 %vm264_vm1, %v6064_v39 }
 0x138   : > { %4481 = vmatprep.mubr.msk.bf16.mxu0 %vm264_vm1, %v6089_v37 }
 0x13b   : > { %4328 = vmatmul.mubr.msk.bf16.gmra.mrb[28].mxu1 %vm264_vm1, %v6084_v57 }
 0x13c   : > { %4349 = vmatprep.mubr.msk.bf16.mxu1 %vm264_vm1, %v2072_v8 }
 0x13f   : > { %4482 = vmatmul.mubr.msk.bf16.gmra.mrb[12].mxu0 %vm264_vm1, %v6100_v48 }
 0x140   : > { %4485 = vmatprep.mubr.msk.bf16.mxu0 %vm264_vm1, %v6115_v9 }
 0x143   : > { %4350 = vmatmul.mubr.msk.bf16.vlgmr.msra.gmra.mrb[16].mxu1 %vm264_vm1, %v2073_v29 }
 0x144   : > { %4353 = vmatprep.mubr.msk.bf16.mxu1 %vm264_vm1, %v2074_v15 }
 0x147   : > { %4486 = vmatmul.mubr.msk.bf16.gmra.mrb[16].mxu0 %vm264_vm1, %v6125_v46 }
 0x148   : > { %4489 = vmatprep.mubr.msk.bf16.mxu0 %vm264_vm1, %v6143_v44 }
 0x14b   : > { %4354 = vmatmul.mubr.msk.bf16.gmra.mrb[20].mxu1 %vm264_vm1, %v2075_v31 }
 0x14c   : > { %4357 = vmatprep.mubr.msk.bf16.mxu1 %vm264_vm1, %v2076_v47 }
 0x14f   : > { %4490 = vmatmul.mubr.msk.bf16.gmra.mrb[20].mxu0 %vm264_vm1, %v6153_v26 }
 0x150   : > { %4493 = vmatprep.mubr.msk.bf16.mxu0 %vm264_vm1, %v6167_v62 }
 0x153   : > { %4358 = vmatmul.mubr.msk.bf16.gmra.mrb[24].mxu1 %vm264_vm1, %v2077_v52 }
 0x154   : > { %4361 = vmatprep.mubr.msk.bf16.mxu1 %vm264_vm1, %v2078_v30 }
 0x157   : > { %4494 = vmatmul.mubr.msk.bf16.gmra.mrb[24].mxu0 %vm264_vm1, %v6175_v49 }
 0x158   : > { %4497 = vmatprep.mubr.msk.bf16.mxu0 %vm264_vm1, %v6189_v7 }
 0x15b   : > { %4362 = vmatmul.mubr.msk.bf16.gmra.mrb[28].mxu1 %vm264_vm1, %v2079_v2 }
 0x15f   : > { %4498 = vmatmul.mubr.msk.bf16.gmra.mrb[28].mxu0 %vm264_vm1, %v3127_v58 }
 0x1d6   : > { %v4301_v28 = vpop.f32.mrb[0].mxu1 }
 0x1d7   : > { %v1905_v45 = vpop.f32.mrb[1].mxu1 }
 0x1d8   : > { %v4302_v35 = vpop.f32.mrb[2].mxu1 }
 0x1d9   : > { %v1908_v23 = vpop.f32.mrb[3].mxu1 }
 0x1de   : > { %v4305_v24 = vpop.f32.mrb[4].mxu1 }
 0x1df   : > { %v1921_v11 = vpop.f32.mrb[5].mxu1 }
 0x1e0   : > { %v4306_v39 = vpop.f32.mrb[6].mxu1 }
 0x1e1   : > { %v1924_v22 = vpop.f32.mrb[7].mxu1 }
 0x1e6   : > { %v6301_v57 = vpop.f32.mrb[8].mxu1 }
 0x1e7   : > { %v6303_v37 = vpop.f32.mrb[9].mxu1 }
 0x1e8   : > { %v6305_v48 = vpop.f32.mrb[10].mxu1 }
 0x1e9   : > { %v6307_v9 = vpop.f32.mrb[11].mxu1 }
 0x1ee   : > { %v6309_v46 = vpop.f32.mrb[12].mxu1 }
 0x1ef   : > { %v6311_v44 = vpop.f32.mrb[13].mxu1 }
 0x1f0   : > { %v6313_v40 = vpop.f32.mrb[14].mxu1 }
 0x1f1   : > { %v6315_v33 = vpop.f32.mrb[15].mxu1 }
 0x1fa   : > { %v4471_v10 = vpop.f32.mrb[0].mxu0 }
 0x1fb   : > { %v4503_v26 = vadd.f32 %v4471_v10, %v4301_v28  ;;  %v3215_v27 = vpop.f32.mrb[1].mxu0 }
 0x1fc   : > { %v4504_v53 = vadd.f32 %v3215_v27, %v1905_v45  ;;  %v4472_v21 = vpop.f32.mrb[2].mxu0 }
 0x1fd   : > { %v4012_v16 = vpack.c.bf16 %v4503_v26, %v4503_v26  ;;  %v4505_v62 = vadd.f32 %v4472_v21, %v4302_v35  ;;  %v3218_v14 = vpop.f32.mrb[3].mxu0  ;;  %v3608_v25 = vmul.f32 %v4503_v26, %v4503_v26  ;;  %v3538_v6 = vsel %vm264_vm1, %v4503_v26, 0.0 }
 0x1fe   : > { %v4010_v18 = vpack.c.bf16 %v4504_v53, %v4504_v53  ;;  %v3606_v49 = vmul.f32 %v4504_v53, %v4504_v53  ;;  %v4506_v55 = vadd.f32 %v3218_v14, %v1908_v23  ;;  %v3535_v63 = vsel %vm264_vm1, %v4504_v53, 0.0 }
 0x1ff   : > { %3505 = vst.msk [vmem:[%s6321_s21 + $0x8] sm:$0xf] %vm3502_vm12, %v4012_v16  ;;  %v4013_v51 = vpack.c.bf16 %v4505_v62, %v4505_v62  ;;  %v3609_v59 = vmul.f32 %v4505_v62, %v4505_v62  ;;  %v3641_v12 = vsel %vm264_vm1, %v3608_v25, 0.0  ;;  %v3540_v32 = vsel %vm264_vm1, %v4505_v62, 0.0 }
 0x200   : > { %3503 = vst.msk [vmem:[%s6321_s21] sm:$0xf] %vm3502_vm12, %v4010_v18  ;;  %v4011_v17 = vpack.c.bf16 %v4506_v55, %v4506_v55  ;;  %v3536_v7 = vsel %vm264_vm1, %v4506_v55, 0.0  ;;  %v3607_v20 = vmul.f32 %v4506_v55, %v4506_v55  ;;  %v3638_v13 = vsel %vm264_vm1, %v3606_v49, 0.0 }
 0x201   : > { %3506 = vst.msk [vmem:[%s6321_s21 + $0xc] sm:$0xf] %vm3502_vm12, %v4013_v51  ;;  %v3537_v1 = vadd.f32 %v3536_v7, %v3535_v63  ;;  %v3643_v61 = vsel %vm264_vm1, %v3609_v59, 0.0 }
 0x202   : > { %3504 = vst.msk [vmem:[%s6321_s21 + $0x4] sm:$0xf] %vm3502_vm12, %v4011_v17  ;;  %v3639_v34 = vsel %vm264_vm1, %v3607_v20, 0.0  ;;  %v4475_v0 = vpop.f32.mrb[4].mxu0 }
 0x203   : > { %v3539_v3 = vadd.f32 %v3538_v6, %v3537_v1  ;;  %v3640_v60 = vadd.f32 %v3639_v34, %v3638_v13  ;;  %v4507_v56 = vadd.f32 %v4475_v0, %v4305_v24  ;;  %v3231_v41 = vpop.f32.mrb[5].mxu0 }
 0x204   : > { %v4508_v54 = vadd.f32 %v3231_v41, %v1921_v11  ;;  %v4476_v5 = vpop.f32.mrb[6].mxu0 }
 0x205   : > { %v3642_v50 = vadd.f32 %v3641_v12, %v3640_v60  ;;  %v4016_v19 = vpack.c.bf16 %v4507_v56, %v4507_v56  ;;  %v3234_v38 = vpop.f32.mrb[7].mxu0  ;;  %v3541_v43 = vadd.f32 %v3540_v32, %v3539_v3  ;;  %v4509_v29 = vadd.f32 %v4476_v5, %v4306_v39 }
 0x206   : > { %v4014_v42 = vpack.c.bf16 %v4508_v54, %v4508_v54  ;;  %v3542_v4 = vsel %vm264_vm1, %v4508_v54, 0.0  ;;  %v3610_v36 = vmul.f32 %v4508_v54, %v4508_v54  ;;  %v4510_v15 = vadd.f32 %v3234_v38, %v1924_v22 }
 0x207   : > { %3509 = vst.msk [vmem:[%s6321_s21 + $0x18] sm:$0xf] %vm3502_vm12, %v4016_v19  ;;  %v3644_v8 = vadd.f32 %v3643_v61, %v3642_v50  ;;  %v3543_v31 = vadd.f32 %v3542_v4, %v3541_v43  ;;  %v3612_v52 = vmul.f32 %v4507_v56, %v4507_v56  ;;  %v4017_v2 = vpack.c.bf16 %v4509_v29, %v4509_v29 }
 0x208   : > { %3507 = vst.msk [vmem:[%s6321_s21 + $0x10] sm:$0xf] %vm3502_vm12, %v4014_v42  ;;  %v3645_v47 = vsel %vm264_vm1, %v3610_v36, 0.0  ;;  %v4015_v58 = vpack.c.bf16 %v4510_v15, %v4510_v15  ;;  %v3544_v28 = vsel %vm264_vm1, %v4510_v15, 0.0  ;;  %v3611_v45 = vmul.f32 %v4510_v15, %v4510_v15 }
 0x209   : > { %v3646_v30 = vadd.f32 %v3645_v47, %v3644_v8  ;;  %3510 = vst.msk [vmem:[%s6321_s21 + $0x1c] sm:$0xf] %vm3502_vm12, %v4017_v2  ;;  %v3545_v23 = vadd.f32 %v3544_v28, %v3543_v31  ;;  %v3546_v39 = vsel %vm264_vm1, %v4507_v56, 0.0  ;;  %v3613_v22 = vmul.f32 %v4509_v29, %v4509_v29 }
 0x20a   : > { %v4479_v35 = vpop.f32.mrb[8].mxu0  ;;  %3508 = vst.msk [vmem:[%s6321_s21 + $0x14] sm:$0xf] %vm3502_vm12, %v4015_v58  ;;  %v3647_v10 = vsel %vm264_vm1, %v3611_v45, 0.0  ;;  %v3649_v53 = vsel %vm264_vm1, %v3612_v52, 0.0 }
 0x20b   : > { %v4511_v24 = vadd.f32 %v4479_v35, %v6301_v57  ;;  %v3247_v11 = vpop.f32.mrb[9].mxu0  ;;  %v3547_v21 = vadd.f32 %v3546_v39, %v3545_v23  ;;  %v3648_v16 = vadd.f32 %v3647_v10, %v3646_v30  ;;  %v3548_v57 = vsel %vm264_vm1, %v4509_v29, 0.0 }
 0x20c   : > { %v4512_v26 = vadd.f32 %v3247_v11, %v6303_v37  ;;  %v4480_v27 = vpop.f32.mrb[10].mxu0  ;;  %v3651_v17 = vsel %vm264_vm1, %v3613_v22, 0.0 }
 0x20d   : > { %v4020_v62 = vpack.c.bf16 %v4511_v24, %v4511_v24  ;;  %v3250_v14 = vpop.f32.mrb[11].mxu0  ;;  %v3650_v25 = vadd.f32 %v3649_v53, %v3648_v16  ;;  %v3549_v51 = vadd.f32 %v3548_v57, %v3547_v21  ;;  %v4513_v37 = vadd.f32 %v4480_v27, %v6305_v48 }
 0x20e   : > { %v4018_v18 = vpack.c.bf16 %v4512_v26, %v4512_v26  ;;  %v3550_v49 = vsel %vm264_vm1, %v4512_v26, 0.0  ;;  %v3614_v55 = vmul.f32 %v4512_v26, %v4512_v26  ;;  %v4514_v63 = vadd.f32 %v3250_v14, %v6307_v9 }
 0x20f   : > { %3513 = vst.msk [vmem:[%s6321_s21 + $0x28] sm:$0xf] %vm3502_vm12, %v4020_v62  ;;  %v3616_v20 = vmul.f32 %v4511_v24, %v4511_v24  ;;  %v3551_v59 = vadd.f32 %v3550_v49, %v3549_v51  ;;  %v3652_v1 = vadd.f32 %v3651_v17, %v3650_v25  ;;  %v4021_v6 = vpack.c.bf16 %v4513_v37, %v4513_v37 }
 0x210   : > { %3511 = vst.msk [vmem:[%s6321_s21 + $0x20] sm:$0xf] %vm3502_vm12, %v4018_v18  ;;  %v3653_v7 = vsel %vm264_vm1, %v3614_v55, 0.0  ;;  %v4019_v13 = vpack.c.bf16 %v4514_v63, %v4514_v63  ;;  %v3552_v34 = vsel %vm264_vm1, %v4514_v63, 0.0  ;;  %v3615_v0 = vmul.f32 %v4514_v63, %v4514_v63 }
 0x211   : > { %v3654_v60 = vadd.f32 %v3653_v7, %v3652_v1  ;;  %3514 = vst.msk [vmem:[%s6321_s21 + $0x2c] sm:$0xf] %vm3502_vm12, %v4021_v6  ;;  %v3553_v48 = vadd.f32 %v3552_v34, %v3551_v59  ;;  %v3554_v41 = vsel %vm264_vm1, %v4511_v24, 0.0  ;;  %v3617_v12 = vmul.f32 %v4513_v37, %v4513_v37 }
 0x212   : > { %v4483_v3 = vpop.f32.mrb[12].mxu0  ;;  %3512 = vst.msk [vmem:[%s6321_s21 + $0x24] sm:$0xf] %vm3502_vm12, %v4019_v13  ;;  %v3655_v54 = vsel %vm264_vm1, %v3615_v0, 0.0  ;;  %v3657_v61 = vsel %vm264_vm1, %v3616_v20, 0.0 }
 0x213   : > { %v4515_v9 = vadd.f32 %v4483_v3, %v6309_v46  ;;  %v3263_v56 = vpop.f32.mrb[13].mxu0  ;;  %v3555_v50 = vadd.f32 %v3554_v41, %v3553_v48  ;;  %v3656_v19 = vadd.f32 %v3655_v54, %v3654_v60  ;;  %v3556_v46 = vsel %vm264_vm1, %v4513_v37, 0.0 }
 0x214   : > { %v4516_v5 = vadd.f32 %v3263_v56, %v6311_v44  ;;  %v4484_v32 = vpop.f32.mrb[14].mxu0  ;;  %v3659_v31 = vsel %vm264_vm1, %v3617_v12, 0.0 }
 0x215   : > { %v4024_v38 = vpack.c.bf16 %v4515_v9, %v4515_v9  ;;  %v3266_v42 = vpop.f32.mrb[15].mxu0  ;;  %v3658_v8 = vadd.f32 %v3657_v61, %v3656_v19  ;;  %v3557_v29 = vadd.f32 %v3556_v46, %v3555_v50  ;;  %v4517_v44 = vadd.f32 %v4484_v32, %v6313_v40 }
 0x216   : > { %v4022_v43 = vpack.c.bf16 %v4516_v5, %v4516_v5  ;;  %v3558_v4 = vsel %vm264_vm1, %v4516_v5, 0.0  ;;  %v3618_v36 = vmul.f32 %v4516_v5, %v4516_v5  ;;  %v4518_v15 = vadd.f32 %v3266_v42, %v6315_v33  ;;  %v4351_v28 = vpop.f32.mrb[16].mxu1 }
 0x217   : > { %3517 = vst.msk [vmem:[%s6321_s21 + $0x38] sm:$0xf] %vm3502_vm12, %v4024_v38  ;;  %v3620_v52 = vmul.f32 %v4515_v9, %v4515_v9  ;;  %v3559_v30 = vadd.f32 %v3558_v4, %v3557_v29  ;;  %v3660_v2 = vadd.f32 %v3659_v31, %v3658_v8  ;;  %v4025_v58 = vpack.c.bf16 %v4517_v44, %v4517_v44  ;;  %v2231_v40 = vpop.f32.mrb[17].mxu1 }
 0x218   : > { %3515 = vst.msk [vmem:[%s6321_s21 + $0x30] sm:$0xf] %vm3502_vm12, %v4022_v43  ;;  %v3661_v47 = vsel %vm264_vm1, %v3618_v36, 0.0  ;;  %v4023_v45 = vpack.c.bf16 %v4518_v15, %v4518_v15  ;;  %v3560_v35 = vsel %vm264_vm1, %v4518_v15, 0.0  ;;  %v3619_v23 = vmul.f32 %v4518_v15, %v4518_v15  ;;  %v4352_v22 = vpop.f32.mrb[18].mxu1 }
 0x219   : > { %v3662_v11 = vadd.f32 %v3661_v47, %v3660_v2  ;;  %3518 = vst.msk [vmem:[%s6321_s21 + $0x3c] sm:$0xf] %vm3502_vm12, %v4025_v58  ;;  %v3561_v33 = vadd.f32 %v3560_v35, %v3559_v30  ;;  %v3562_v26 = vsel %vm264_vm1, %v4515_v9, 0.0  ;;  %v3621_v27 = vmul.f32 %v4517_v44, %v4517_v44  ;;  %v2234_v16 = vpop.f32.mrb[19].mxu1 }
 0x21a   : > { %v4487_v24 = vpop.f32.mrb[16].mxu0  ;;  %3516 = vst.msk [vmem:[%s6321_s21 + $0x34] sm:$0xf] %vm3502_vm12, %v4023_v45  ;;  %v3663_v53 = vsel %vm264_vm1, %v3619_v23, 0.0  ;;  %v3665_v14 = vsel %vm264_vm1, %v3620_v52, 0.0  ;;  %v3564_v25 = vsel %vm264_vm1, %v4517_v44, 0.0 }
 0x21b   : > { %v4519_v39 = vadd.f32 %v4487_v24, %v4351_v28  ;;  %v3279_v10 = vpop.f32.mrb[17].mxu0  ;;  %v3563_v57 = vadd.f32 %v3562_v26, %v3561_v33  ;;  %v3664_v18 = vadd.f32 %v3663_v53, %v3662_v11  ;;  %v3667_v1 = vsel %vm264_vm1, %v3621_v27, 0.0 }
 0x21c   : > { %v4520_v21 = vadd.f32 %v3279_v10, %v2231_v40  ;;  %v4488_v62 = vpop.f32.mrb[18].mxu0 }
 0x21d   : > { %v4028_v49 = vpack.c.bf16 %v4519_v39, %v4519_v39  ;;  %v3282_v55 = vpop.f32.mrb[19].mxu0  ;;  %v3666_v17 = vadd.f32 %v3665_v14, %v3664_v18  ;;  %v3565_v7 = vadd.f32 %v3564_v25, %v3563_v57  ;;  %v4521_v20 = vadd.f32 %v4488_v62, %v4352_v22 }
 0x21e   : > { %v4026_v51 = vpack.c.bf16 %v4520_v21, %v4520_v21  ;;  %v3566_v37 = vsel %vm264_vm1, %v4520_v21, 0.0  ;;  %v3622_v63 = vmul.f32 %v4520_v21, %v4520_v21  ;;  %v4522_v59 = vadd.f32 %v3282_v55, %v2234_v16  ;;  %v4355_v60 = vpop.f32.mrb[20].mxu1 }
 0x21f   : > { %3521 = vst.msk [vmem:[%s6321_s21 + $0x48] sm:$0xf] %vm3502_vm12, %v4028_v49  ;;  %v3624_v13 = vmul.f32 %v4519_v39, %v4519_v39  ;;  %v3567_v34 = vadd.f32 %v3566_v37, %v3565_v7  ;;  %v3668_v0 = vadd.f32 %v3667_v1, %v3666_v17  ;;  %v4029_v3 = vpack.c.bf16 %v4521_v20, %v4521_v20  ;;  %v2247_v41 = vpop.f32.mrb[21].mxu1 }
 0x220   : > { %3519 = vst.msk [vmem:[%s6321_s21 + $0x40] sm:$0xf] %vm3502_vm12, %v4026_v51  ;;  %v3669_v6 = vsel %vm264_vm1, %v3622_v63, 0.0  ;;  %v4027_v48 = vpack.c.bf16 %v4522_v59, %v4522_v59  ;;  %v3568_v9 = vsel %vm264_vm1, %v4522_v59, 0.0  ;;  %v3623_v56 = vmul.f32 %v4522_v59, %v4522_v59  ;;  %v4356_v61 = vpop.f32.mrb[22].mxu1 }
 0x221   : > { %v3670_v54 = vadd.f32 %v3669_v6, %v3668_v0  ;;  %3522 = vst.msk [vmem:[%s6321_s21 + $0x4c] sm:$0xf] %vm3502_vm12, %v4029_v3  ;;  %v3569_v5 = vadd.f32 %v3568_v9, %v3567_v34  ;;  %v3570_v19 = vsel %vm264_vm1, %v4519_v39, 0.0  ;;  %v3625_v38 = vmul.f32 %v4521_v20, %v4521_v20  ;;  %v2250_v43 = vpop.f32.mrb[23].mxu1 }
 0x222   : > { %v4491_v12 = vpop.f32.mrb[20].mxu0  ;;  %3520 = vst.msk [vmem:[%s6321_s21 + $0x44] sm:$0xf] %vm3502_vm12, %v4027_v48  ;;  %v3671_v42 = vsel %vm264_vm1, %v3623_v56, 0.0  ;;  %v3673_v36 = vsel %vm264_vm1, %v3624_v13, 0.0  ;;  %v3572_v31 = vsel %vm264_vm1, %v4521_v20, 0.0 }
 0x223   : > { %v4523_v32 = vadd.f32 %v4491_v12, %v4355_v60  ;;  %v3295_v50 = vpop.f32.mrb[21].mxu0  ;;  %v3571_v8 = vadd.f32 %v3570_v19, %v3569_v5  ;;  %v3672_v29 = vadd.f32 %v3671_v42, %v3670_v54  ;;  %v3675_v35 = vsel %vm264_vm1, %v3625_v38, 0.0 }
 0x224   : > { %v4524_v46 = vadd.f32 %v3295_v50, %v2247_v41  ;;  %v4492_v4 = vpop.f32.mrb[22].mxu0 }
 0x225   : > { %v4032_v44 = vpack.c.bf16 %v4523_v32, %v4523_v32  ;;  %v3298_v15 = vpop.f32.mrb[23].mxu0  ;;  %v3674_v2 = vadd.f32 %v3673_v36, %v3672_v29  ;;  %v3573_v58 = vadd.f32 %v3572_v31, %v3571_v8  ;;  %v4525_v28 = vadd.f32 %v4492_v4, %v4356_v61 }
 0x226   : > { %v4030_v47 = vpack.c.bf16 %v4524_v46, %v4524_v46  ;;  %v3574_v52 = vsel %vm264_vm1, %v4524_v46, 0.0  ;;  %v3626_v30 = vmul.f32 %v4524_v46, %v4524_v46  ;;  %v4526_v45 = vadd.f32 %v3298_v15, %v2250_v43  ;;  %v4359_v39 = vpop.f32.mrb[24].mxu1 }
 0x227   : > { %3525 = vst.msk [vmem:[%s6321_s21 + $0x58] sm:$0xf] %vm3502_vm12, %v4032_v44  ;;  %v3628_v40 = vmul.f32 %v4523_v32, %v4523_v32  ;;  %v3575_v24 = vadd.f32 %v3574_v52, %v3573_v58  ;;  %v3676_v11 = vadd.f32 %v3675_v35, %v3674_v2  ;;  %v4033_v33 = vpack.c.bf16 %v4525_v28, %v4525_v28  ;;  %v2263_v27 = vpop.f32.mrb[25].mxu1 }
 0x228   : > { %3523 = vst.msk [vmem:[%s6321_s21 + $0x50] sm:$0xf] %vm3502_vm12, %v4030_v47  ;;  %v3677_v23 = vsel %vm264_vm1, %v3626_v30, 0.0  ;;  %v4031_v22 = vpack.c.bf16 %v4526_v45, %v4526_v45  ;;  %v3576_v10 = vsel %vm264_vm1, %v4526_v45, 0.0  ;;  %v3627_v26 = vmul.f32 %v4526_v45, %v4526_v45  ;;  %v4360_v14 = vpop.f32.mrb[26].mxu1 }
 0x229   : > { %v3678_v21 = vadd.f32 %v3677_v23, %v3676_v11  ;;  %3526 = vst.msk [vmem:[%s6321_s21 + $0x5c] sm:$0xf] %vm3502_vm12, %v4033_v33  ;;  %v3577_v16 = vadd.f32 %v3576_v10, %v3575_v24  ;;  %v3578_v18 = vsel %vm264_vm1, %v4523_v32, 0.0  ;;  %v3629_v49 = vmul.f32 %v4525_v28, %v4525_v28  ;;  %v2266_v51 = vpop.f32.mrb[27].mxu1 }
 0x22a   : > { %v4495_v53 = vpop.f32.mrb[24].mxu0  ;;  %3524 = vst.msk [vmem:[%s6321_s21 + $0x54] sm:$0xf] %vm3502_vm12, %v4031_v22  ;;  %v3679_v55 = vsel %vm264_vm1, %v3627_v26, 0.0  ;;  %v3681_v63 = vsel %vm264_vm1, %v3628_v40, 0.0  ;;  %v3580_v1 = vsel %vm264_vm1, %v4525_v28, 0.0 }
 0x22b   : > { %v4527_v62 = vadd.f32 %v4495_v53, %v4359_v39  ;;  %v3311_v57 = vpop.f32.mrb[25].mxu0  ;;  %v3579_v17 = vadd.f32 %v3578_v18, %v3577_v16  ;;  %v3680_v7 = vadd.f32 %v3679_v55, %v3678_v21  ;;  %v3683_v9 = vsel %vm264_vm1, %v3629_v49, 0.0 }
 0x22c   : > { %v4528_v25 = vadd.f32 %v3311_v57, %v2263_v27  ;;  %v4496_v37 = vpop.f32.mrb[26].mxu0 }
 0x22d   : > { %v4036_v20 = vpack.c.bf16 %v4527_v62, %v4527_v62  ;;  %v3314_v59 = vpop.f32.mrb[27].mxu0  ;;  %v3682_v0 = vadd.f32 %v3681_v63, %v3680_v7  ;;  %v3581_v3 = vadd.f32 %v3580_v1, %v3579_v17  ;;  %v4529_v60 = vadd.f32 %v4496_v37, %v4360_v14 }
 0x22e   : > { %v4034_v6 = vpack.c.bf16 %v4528_v25, %v4528_v25  ;;  %v3582_v13 = vsel %vm264_vm1, %v4528_v25, 0.0  ;;  %v3630_v34 = vmul.f32 %v4528_v25, %v4528_v25  ;;  %v4530_v48 = vadd.f32 %v3314_v59, %v2266_v51  ;;  %v4363_v32 = vpop.f32.mrb[28].mxu1 }
 0x22f   : > { %3529 = vst.msk [vmem:[%s6321_s21 + $0x68] sm:$0xf] %vm3502_vm12, %v4036_v20  ;;  %v3632_v41 = vmul.f32 %v4527_v62, %v4527_v62  ;;  %v3583_v12 = vadd.f32 %v3582_v13, %v3581_v3  ;;  %v3684_v54 = vadd.f32 %v3683_v9, %v3682_v0  ;;  %v4037_v5 = vpack.c.bf16 %v4529_v60, %v4529_v60  ;;  %v2279_v38 = vpop.f32.mrb[29].mxu1 }
 0x230   : > { %3527 = vst.msk [vmem:[%s6321_s21 + $0x60] sm:$0xf] %vm3502_vm12, %v4034_v6  ;;  %v3685_v56 = vsel %vm264_vm1, %v3630_v34, 0.0  ;;  %v4035_v61 = vpack.c.bf16 %v4530_v48, %v4530_v48  ;;  %v3584_v50 = vsel %vm264_vm1, %v4530_v48, 0.0  ;;  %v3631_v19 = vmul.f32 %v4530_v48, %v4530_v48  ;;  %v4364_v36 = vpop.f32.mrb[30].mxu1 }
 0x231   : > { %v3686_v46 = vadd.f32 %v3685_v56, %v3684_v54  ;;  %3530 = vst.msk [vmem:[%s6321_s21 + $0x6c] sm:$0xf] %vm3502_vm12, %v4037_v5  ;;  %v3585_v43 = vadd.f32 %v3584_v50, %v3583_v12  ;;  %v3586_v29 = vsel %vm264_vm1, %v4527_v62, 0.0  ;;  %v3633_v44 = vmul.f32 %v4529_v60, %v4529_v60  ;;  %v2282_v47 = vpop.f32.mrb[31].mxu1 }
 0x232   : > { %v4499_v42 = vpop.f32.mrb[28].mxu0  ;;  %3528 = vst.msk [vmem:[%s6321_s21 + $0x64] sm:$0xf] %vm3502_vm12, %v4035_v61  ;;  %v3687_v15 = vsel %vm264_vm1, %v3631_v19, 0.0  ;;  %v3689_v30 = vsel %vm264_vm1, %v3632_v41, 0.0  ;;  %v3588_v35 = vsel %vm264_vm1, %v4529_v60, 0.0 }
 0x233   : > { %v4531_v4 = vadd.f32 %v4499_v42, %v4363_v32  ;;  %v3327_v8 = vpop.f32.mrb[29].mxu0  ;;  %v3587_v2 = vadd.f32 %v3586_v29, %v3585_v43  ;;  %v3688_v58 = vadd.f32 %v3687_v15, %v3686_v46  ;;  %v3691_v10 = vsel %vm264_vm1, %v3633_v44, 0.0 }
 0x234   : > { %v4532_v31 = vadd.f32 %v3327_v8, %v2279_v38  ;;  %v4500_v52 = vpop.f32.mrb[30].mxu0 }
 0x235   : > { %v4040_v28 = vpack.c.bf16 %v4531_v4, %v4531_v4  ;;  %v3330_v45 = vpop.f32.mrb[31].mxu0  ;;  %v3690_v11 = vadd.f32 %v3689_v30, %v3688_v58  ;;  %v3589_v33 = vadd.f32 %v3588_v35, %v3587_v2  ;;  %v4533_v39 = vadd.f32 %v4500_v52, %v4364_v36 }
 0x236   : > { %v4038_v23 = vpack.c.bf16 %v4532_v31, %v4532_v31  ;;  %v3590_v40 = vsel %vm264_vm1, %v4532_v31, 0.0  ;;  %v3634_v24 = vmul.f32 %v4532_v31, %v4532_v31  ;;  %v4534_v22 = vadd.f32 %v3330_v45, %v2282_v47 }
 0x237   : > { %3533 = vst.msk [vmem:[%s6321_s21 + $0x78] sm:$0xf] %vm3502_vm12, %v4040_v28  ;;  %v3591_v27 = vadd.f32 %v3590_v40, %v3589_v33  ;;  %v3692_v53 = vadd.f32 %v3691_v10, %v3690_v11  ;;  %v4041_v21 = vpack.c.bf16 %v4533_v39, %v4533_v39  ;;  %v3636_v16 = vmul.f32 %v4531_v4, %v4531_v4 }
 0x238   : > { %3531 = vst.msk [vmem:[%s6321_s21 + $0x70] sm:$0xf] %vm3502_vm12, %v4038_v23  ;;  %v3693_v26 = vsel %vm264_vm1, %v3634_v24, 0.0  ;;  %v4039_v62 = vpack.c.bf16 %v4534_v22, %v4534_v22  ;;  %v3592_v14 = vsel %vm264_vm1, %v4534_v22, 0.0  ;;  %v3635_v57 = vmul.f32 %v4534_v22, %v4534_v22 }
 0x239   : > { %v3694_v18 = vadd.f32 %v3693_v26, %v3692_v53  ;;  %3534 = vst.msk [vmem:[%s6321_s21 + $0x7c] sm:$0xf] %vm3502_vm12, %v4041_v21  ;;  %v3593_v49 = vadd.f32 %v3592_v14, %v3591_v27  ;;  %v3594_v55 = vsel %vm264_vm1, %v4531_v4, 0.0  ;;  %v3637_v25 = vmul.f32 %v4533_v39, %v4533_v39 }
 0x23a   : > { %3532 = vst.msk [vmem:[%s6321_s21 + $0x74] sm:$0xf] %vm3502_vm12, %v4039_v62  ;;  %v3695_v51 = vsel %vm264_vm1, %v3635_v57, 0.0  ;;  %v3697_v17 = vsel %vm264_vm1, %v3636_v16, 0.0  ;;  %v3596_v7 = vsel %vm264_vm1, %v4533_v39, 0.0 }
 0x23b   : > { %v3595_v37 = vadd.f32 %v3594_v55, %v3593_v49  ;;  %v3696_v63 = vadd.f32 %v3695_v51, %v3694_v18  ;;  %v3699_v1 = vsel %vm264_vm1, %v3637_v25, 0.0 }
 0x23d   : > { %v3597_v20 = vadd.f32 %v3596_v7, %v3595_v37  ;;  %v3698_v59 = vadd.f32 %v3697_v17, %v3696_v63 }
 0x23f   : > { %v3598_v6 = vrot.slane %v3597_v20, 4  ;;  %v3700_v13 = vadd.f32 %v3699_v1, %v3698_v59 }
 0x241   : > { %v3599_v34 = vadd.f32 %v3598_v6, %v3597_v20  ;;  %v3701_v0 = vrot.slane %v3700_v13, 4 }
 0x243   : > { %v3600_v3 = vrot.slane %v3599_v34, 2  ;;  %v3702_v60 = vadd.f32 %v3701_v0, %v3700_v13 }
 0x245   : > { %v3601_v48 = vadd.f32 %v3600_v3, %v3599_v34  ;;  %v3703_v9 = vrot.slane %v3702_v60, 2 }
 0x247   : > { %v3602_v56 = vrot.slane %v3601_v48, 1  ;;  %v3704_v41 = vadd.f32 %v3703_v9, %v3702_v60 }
 0x249   : > { %v3603_v12 = vadd.f32 %v3602_v56, %v3601_v48  ;;  %v3705_v54 = vrot.slane %v3704_v41, 1 }
 0x24b   : > { %3605 = vst.msk [vmem:[%s211_s24] sm:$0x1] %vm272_vm7, %v3603_v12  ;;  %v3706_v5 = vadd.f32 %v3705_v54, %v3704_v41 }
 0x24d   : > { %3707 = vst.msk [vmem:[%s214_s27] sm:$0x1] %vm272_vm7, %v3706_v5 }
 0x24e PF: > { %s15_s15 = sadd.s32 1, %s4785_s15  }
 0x24f   : > { %p12_p4 = scmp.ge.s32.totalorder %s15_s15, 4  }
 0x251   :  { %14 = sbr.rel (!%p12_p4) target bundleno = 1 (0x1), region = 102 }

// kernel: restnet_basic_block.4
= control target key start
LH: loop header
LB: loop body
LE: loop exit
PB: predicated region body
PF: predicated region fallthrough
CT: control target
= control target key end

     0   :  { %s5100_s21 = smov 0   ;;  %s6840_s0 = inlined_call_operand.vmem [shape: bf16[2,16,16,4], index: 0, kind: input, shape index: {}]   ;;  %s6841_s1 = inlined_call_operand.vmem [shape: f32[1,4], index: 1, kind: input, shape index: {}]   ;;  %s6842_s2 = inlined_call_operand.vmem [shape: f32[1,4], index: 2, kind: input, shape index: {}]   ;;  %s6843_s3 = inlined_call_operand.vmem [shape: bf16[9,4,4], index: 3, kind: input, shape index: {}]   ;;  %s6844_s4 = inlined_call_operand.vmem [shape: bf16[2,16,16,4], index: 4, kind: output, shape index: {0}]   ;;  %s6845_s5 = inlined_call_operand.vmem [shape: f32[2,1,4], index: 5, kind: output, shape index: {1}]   ;;  %s6846_s6 = inlined_call_operand.vmem [shape: f32[2,1,4], index: 6, kind: output, shape index: {2}]  }
   0x1 LB: > { %s4009_s22 = sadd.s32 4294967295, %s5062_s21   ;;  %p4013_p0 = scmp.ge.s32.totalorder %s5062_s21, 1  ;;  %s5062_s21 = sphi %s5100_s21, %s17_s21  }
   0x2   : > { %p217_p1 = scmp.lt.s32.totalorder %s5062_s21, 3 }
   0x4   : > { %p218_p2 = pnand %p4013_p0, %p217_p1 }
   0x6   : > { %221 = sbr.rel (%p218_p2) target bundleno = 601 (0x259), region = 36 }
   0xd   : > { %v4020_v0 = vld [vmem:[%s6843_s3 + $0x2] sm:$0x3]  ;;  %vm1359_vm0 = vcmask 1041408   ;;  %v4087_v1 = vld [vmem:[%s6843_s3 + $0x8] sm:$0x3]  ;;  %vm460_vm1 = vcmask 31744  }
   0xe   : > { %5036 = vmatprep.subr.msk.bf16.mxu1 %vm1359_vm0, %v4020_v0  ;;  %5040 = vmatprep.subr.msk.bf16.mxu0 %vm1359_vm0, %v4087_v1  ;;  %v1361_v2 = vsel %vm1359_vm0, %v4020_v0, 0  ;;  %v5118_v3 = vsel %vm1359_vm0, %v4087_v1, 0  ;;  %p253_p3 = scmp.lt.s32.totalorder %s4009_s22, 1  ;;  %v5064_v4 = vmov 0   ;;  %v1291_v5 = vld [vmem:[%s6843_s3] sm:$0x3] }
   0xf   : > { %6906 = vst [vmem:[#allocation3_spill] sm:$0xff] %v5118_v3  ;;  %4473 = vmatpush3.bf16.msra.mxu1 %v1361_v2  ;;  %4609 = vmatpush3.bf16.msra.mxu0 %v5118_v3  ;;  %462 = vst.msk [vmem:[#allocation2 + $0x80] sm:$0xff] %vm460_vm1, %v5064_v4  ;;  %v4104_v6 = vld [vmem:[%s6843_s3 + $0xa] sm:$0x3]  ;;  %vm705_vm2 = vcmask 31751   ;;  %v5157_v12 = vsel %vm1359_vm0, %v1291_v5, 0 }
  0x10   : > { %461 = vst.msk [vmem:[#allocation2] sm:$0xff] %vm460_vm1, %v5064_v4  ;;  %463 = vst.msk [vmem:[#allocation2 + $0x100] sm:$0xff] %vm460_vm1, %v5064_v4  ;;  %s7009_s22 = smov (!%p253_p3, %s4009_s22), 1  ;;  %5037 = vmatprep.subr.msk.bf16.mxu1 %vm1359_vm0, %v1291_v5  ;;  %5042 = vmatprep.subr.msk.bf16.mxu0 %vm1359_vm0, %v4104_v6  ;;  %vm706_vm3 = vsmask.f32 7966  ;;  %v5164_v18 = vsel %vm1359_vm0, %v4104_v6, 0 }
  0x11   : > { %465 = vst.msk [vmem:[#allocation2 + $0x378] sm:$0xff] %vm460_vm1, %v5064_v4  ;;  %466 = vst.msk [vmem:[#allocation2 + $0x3f8] sm:$0xff] %vm460_vm1, %v5064_v4  ;;  %v972_v8 = vld [vmem:[#allocation2 + $0x280] sm:$0x80]  ;;  %s4206_s7 = sshll.u32 %s7009_s22, 7  ;;  %vm468_vm7 = vcmask 24576   ;;  %s265_s10 = scalar_lea.vmem %s6845_s5, %s7009_s22 }
  0x12   : > { %467 = vst.msk [vmem:[#allocation2 + $0x478] sm:$0xff] %vm460_vm1, %v5064_v4  ;;  %vm5137_vm4 = vmand %vm705_vm2, %vm706_vm3  ;;  %v5145_v9 = vld [vmem:[%s6841_s1] ss:$0 sm:$0xff]  ;;  %v975_v11 = vld [vmem:[#allocation2 + $0x288] sm:$0x80]  ;;  %s5154_s12 = scalar_lea.vmem %s6840_s0, %s4206_s7  ;;  %s6689_s8 = scalar_lea.vmem %s6844_s4, %s4206_s7  ;;  %vm3698_vm12 = vcmask 27648  }
  0x13   : > { %v973_v10 = vsel %vm5137_vm4, 0, %v972_v8  ;;  %v976_v13 = vsel %vm5137_vm4, 0, %v975_v11  ;;  %v978_v14 = vld [vmem:[#allocation2 + $0x290] sm:$0x80]  ;;  %v981_v15 = vld [vmem:[#allocation2 + $0x298] sm:$0x80]  ;;  %s268_s13 = scalar_lea.vmem %s6846_s6, %s7009_s22 }
  0x14   : > { %974 = vst [vmem:[#allocation2 + $0x280] sm:$0x80] %v973_v10  ;;  %v4241_v16 = vld [vmem:[%s5154_s12] sm:$0xff]   ;;  %v4304_v17 = vld [vmem:[%s5154_s12 + $0x8] sm:$0xff]   ;;  %v4305_v19 = vld [vmem:[%s5154_s12 + $0x10] sm:$0xff]   ;;  %v979_v20 = vsel %vm5137_vm4, 0, %v978_v14 }
  0x15   : > { %977 = vst [vmem:[#allocation2 + $0x288] sm:$0x80] %v976_v13  ;;  %v982_v21 = vsel %vm5137_vm4, 0, %v981_v15  ;;  %v4242_v22 = vunpack.c.l.bf16 %v4241_v16  ;;  %v4243_v23 = vunpack.c.h.bf16 %v4241_v16  ;;  %v4246_v24 = vunpack.c.l.bf16 %v4304_v17  ;;  %v4306_v26 = vld [vmem:[%s5154_s12 + $0x18] sm:$0xff]   ;;  %980 = vst [vmem:[#allocation2 + $0x290] sm:$0x80] %v979_v20 }
  0x16   : > { %v4247_v25 = vunpack.c.h.bf16 %v4304_v17  ;;  %983 = vst [vmem:[#allocation2 + $0x298] sm:$0x80] %v982_v21  ;;  %v1293_v27 = vld [vmem:[#allocation2 + $0x80] sm:$0xff]  ;;  %v4250_v29 = vunpack.c.l.bf16 %v4305_v19  ;;  %v4251_v30 = vunpack.c.h.bf16 %v4305_v19  ;;  %v4254_v31 = vunpack.c.l.bf16 %v4306_v26  ;;  %v4308_v54 = vld [vmem:[%s5154_s12 + $0x28] sm:$0xff]   ;;  %v4309_v59 = vld [vmem:[%s5154_s12 + $0x30] sm:$0xff]  }
  0x17   : > { %v5175_v28 = vld [vmem:[%s6842_s2] ss:$0 sm:$0xff]  ;;  %v4255_v32 = vunpack.c.h.bf16 %v4306_v26  ;;  %4474 = vmatprep.mubr.msk.bf16.mxu1 %vm460_vm1, %v1293_v27  ;;  %v342_v33 = vmul.f32 %v4242_v22, %v5145_v9  ;;  %v343_v34 = vmul.f32 %v4243_v23, %v5145_v9  ;;  %v344_v35 = vmul.f32 %v4246_v24, %v5145_v9  ;;  %v4310_v0 = vld [vmem:[%s5154_s12 + $0x38] sm:$0xff]  }
  0x18   : > { %v345_v36 = vmul.f32 %v4247_v25, %v5145_v9  ;;  %v346_v37 = vmul.f32 %v4250_v29, %v5145_v9  ;;  %v347_v38 = vmul.f32 %v4251_v30, %v5145_v9  ;;  %v348_v39 = vmul.f32 %v4254_v31, %v5145_v9  ;;  %v4307_v49 = vld [vmem:[%s5154_s12 + $0x20] sm:$0xff]  }
  0x19   : > { %v349_v40 = vmul.f32 %v4255_v32, %v5145_v9  ;;  %v380_v41 = vadd.f32 %v5175_v28, %v342_v33  ;;  %v381_v42 = vadd.f32 %v5175_v28, %v343_v34  ;;  %v382_v43 = vadd.f32 %v5175_v28, %v344_v35  ;;  %v4311_v26 = vld [vmem:[%s5154_s12 + $0x40] sm:$0xff]  }
  0x1a   : > { %v383_v44 = vadd.f32 %v5175_v28, %v345_v36  ;;  %v384_v45 = vadd.f32 %v5175_v28, %v346_v37  ;;  %v385_v46 = vadd.f32 %v5175_v28, %v347_v38  ;;  %v386_v47 = vadd.f32 %v5175_v28, %v348_v39 }
  0x1b   : > { %v387_v48 = vadd.f32 %v5175_v28, %v349_v40  ;;  %v412_v50 = vmax.f32 %v380_v41, 0.0  ;;  %v413_v51 = vmax.f32 %v381_v42, 0.0  ;;  %v414_v52 = vmax.f32 %v382_v43, 0.0  ;;  %v4121_v40 = vld [vmem:[%s6843_s3 + $0xc] sm:$0x3] }
  0x1c   : > { %v415_v53 = vmax.f32 %v383_v44, 0.0  ;;  %v416_v55 = vmax.f32 %v384_v45, 0.0  ;;  %v417_v56 = vmax.f32 %v385_v46, 0.0  ;;  %v418_v57 = vmax.f32 %v386_v47, 0.0  ;;  %v4312_v41 = vld [vmem:[%s5154_s12 + $0x48] sm:$0xff]  }
  0x1d   : > { %v419_v58 = vmax.f32 %v387_v48, 0.0  ;;  %v5197_v60 = vpack.c.bf16 %v413_v51, %v412_v50  ;;  %v4258_v62 = vunpack.c.l.bf16 %v4307_v49  ;;  %v4259_v63 = vunpack.c.h.bf16 %v4307_v49 }
  0x1e   : > { %v5199_v61 = vpack.c.bf16 %v415_v53, %v414_v52  ;;  %v5202_v1 = vpack.c.bf16 %v417_v56, %v416_v55  ;;  %v4262_v4 = vunpack.c.l.bf16 %v4308_v54  ;;  %v4263_v5 = vunpack.c.h.bf16 %v4308_v54  ;;  %v4313_v55 = vld [vmem:[%s5154_s12 + $0x50] sm:$0xff]  }
  0x1f   : > { %v5204_v2 = vpack.c.bf16 %v419_v58, %v418_v57  ;;  %689 = vst.msk [vmem:[#allocation2 + $0x88] sm:$0xff] %vm460_vm1, %v5197_v60  ;;  %955 = vst.msk [vmem:[#allocation2 + $0x200] sm:$0xff] %vm460_vm1, %v5197_v60  ;;  %v350_v6 = vmul.f32 %v4258_v62, %v5145_v9  ;;  %v351_v8 = vmul.f32 %v4259_v63, %v5145_v9  ;;  %v4266_v10 = vunpack.c.l.bf16 %v4309_v59 }
  0x20   : > { %956 = vst.msk [vmem:[#allocation2 + $0x208] sm:$0xff] %vm460_vm1, %v5199_v61  ;;  %690 = vst.msk [vmem:[#allocation2 + $0x90] sm:$0xff] %vm460_vm1, %v5199_v61  ;;  %v4267_v11 = vunpack.c.h.bf16 %v4309_v59  ;;  %vm802_vm5 = vsmask.f32 7424  ;;  %v352_v13 = vmul.f32 %v4262_v4, %v5145_v9  ;;  %v353_v14 = vmul.f32 %v4263_v5, %v5145_v9 }
  0x21   : > { %1166 = vst.msk [vmem:[#allocation2 + $0x380] sm:$0xff] %vm460_vm1, %v5199_v61  ;;  %691 = vst.msk [vmem:[#allocation2 + $0x98] sm:$0xff] %vm460_vm1, %v5202_v1  ;;  %v4270_v15 = vunpack.c.l.bf16 %v4310_v0  ;;  %v4271_v16 = vunpack.c.h.bf16 %v4310_v0  ;;  %v388_v17 = vadd.f32 %v5175_v28, %v350_v6  ;;  %v389_v19 = vadd.f32 %v5175_v28, %v351_v8  ;;  %v1023_v6 = vld [vmem:[#allocation2 + $0x280] sm:$0xff] }
  0x22   : > { %957 = vst.msk [vmem:[#allocation2 + $0x210] sm:$0xff] %vm460_vm1, %v5202_v1  ;;  %1167 = vst.msk [vmem:[#allocation2 + $0x388] sm:$0xff] %vm460_vm1, %v5202_v1  ;;  %v354_v20 = vmul.f32 %v4266_v10, %v5145_v9  ;;  %v355_v21 = vmul.f32 %v4267_v11, %v5145_v9  ;;  %v390_v22 = vadd.f32 %v5175_v28, %v352_v13  ;;  %v4274_v39 = vunpack.c.l.bf16 %v4311_v26 }
  0x23   : > { %958 = vst.msk [vmem:[#allocation2 + $0x218] sm:$0xff] %vm460_vm1, %v5204_v2  ;;  %692 = vst.msk [vmem:[#allocation2 + $0xa0] sm:$0xff] %vm460_vm1, %v5204_v2  ;;  %v391_v23 = vadd.f32 %v5175_v28, %v353_v14  ;;  %v356_v24 = vmul.f32 %v4270_v15, %v5145_v9  ;;  %v357_v25 = vmul.f32 %v4271_v16, %v5145_v9  ;;  %v420_v27 = vmax.f32 %v388_v17, 0.0  ;;  %v1026_v15 = vld [vmem:[#allocation2 + $0x288] sm:$0xff] }
  0x24   : > { %1168 = vst.msk [vmem:[#allocation2 + $0x390] sm:$0xff] %vm460_vm1, %v5204_v2  ;;  %v421_v29 = vmax.f32 %v389_v19, 0.0  ;;  %v392_v30 = vadd.f32 %v5175_v28, %v354_v20  ;;  %v393_v31 = vadd.f32 %v5175_v28, %v355_v21  ;;  %v422_v32 = vmax.f32 %v390_v22, 0.0  ;;  %vm5309_vm6 = vmand %vm460_vm1, %vm802_vm5 }
  0x25   : > { %v423_v33 = vmax.f32 %v391_v23, 0.0  ;;  %v394_v34 = vadd.f32 %v5175_v28, %v356_v24  ;;  %v395_v35 = vadd.f32 %v5175_v28, %v357_v25  ;;  %v4275_v48 = vunpack.c.h.bf16 %v4311_v26 }
  0x26   : > { %v5245_v36 = vpack.c.bf16 %v421_v29, %v420_v27  ;;  %v424_v37 = vmax.f32 %v392_v30, 0.0  ;;  %v425_v38 = vmax.f32 %v393_v31, 0.0  ;;  %v1294_v42 = vld [vmem:[#allocation2 + $0x88] sm:$0xff]  ;;  %v2260_v43 = vld [vmem:[#allocation2 + $0x200] sm:$0xff]  ;;  %v358_v52 = vmul.f32 %v4274_v39, %v5145_v9  ;;  %v4314_v31 = vld [vmem:[%s5154_s12 + $0x58] sm:$0xff]  }
  0x27   : > { %v2261_v44 = vld [vmem:[#allocation2 + $0x208] sm:$0xff]  ;;  %v5251_v45 = vpack.c.bf16 %v423_v33, %v422_v32  ;;  %v426_v46 = vmax.f32 %v394_v34, 0.0  ;;  %v427_v47 = vmax.f32 %v395_v35, 0.0  ;;  %4475 = vmatmul.mubr.msk.bf16.vlgmr.msra.gmra.mrb[0].mxu1 %vm460_vm1, %v1294_v42  ;;  %4610 = vmatprep.mubr.msk.bf16.mxu0 %vm460_vm1, %v2260_v43  ;;  %v1295_v49 = vld [vmem:[#allocation2 + $0x90] sm:$0xff]  ;;  %v520_v53 = vshrl.u32 %v5197_v60, 16 }
  0x28   : > { %693 = vst.msk [vmem:[#allocation2 + $0xa8] sm:$0xff] %vm460_vm1, %v5245_v36  ;;  %959 = vst.msk [vmem:[#allocation2 + $0x220] sm:$0xff] %vm460_vm1, %v5245_v36  ;;  %v5261_v51 = vpack.c.bf16 %v425_v38, %v424_v37  ;;  %v523_v54 = vshll.u32 %v5197_v60, 16  ;;  %4507 = vmatpush3.bf16.msra.mxu1 %v5157_v12  ;;  %4611 = vmatmul.mubr.msk.bf16.vlgmr.msra.gmra.mrb[0].mxu0 %vm460_vm1, %v2261_v44  ;;  %v359_v57 = vmul.f32 %v4275_v48, %v5145_v9  ;;  %v5283_v12 = vld [vmem:[%s6843_s3 + $0x4] sm:$0x3]  ;;  %v1296_v19 = vld [vmem:[#allocation2 + $0x98] sm:$0xff] }
  0x29   : > { %v2262_v50 = vld [vmem:[#allocation2 + $0x210] sm:$0xff]  ;;  %1169 = vst.msk [vmem:[#allocation2 + $0x398] sm:$0xff] %vm460_vm1, %v5245_v36  ;;  %960 = vst.msk [vmem:[#allocation2 + $0x228] sm:$0xff] %vm460_vm1, %v5251_v45  ;;  %v5275_v56 = vpack.c.bf16 %v427_v47, %v426_v46  ;;  %v527_v58 = vshrl.u32 %v5199_v61, 16  ;;  %v530_v59 = vshll.u32 %v5199_v61, 16  ;;  %4643 = vmatpush3.bf16.msra.mxu0 %v5164_v18  ;;  %4478 = vmatprep.mubr.msk.bf16.mxu1 %vm460_vm1, %v1295_v49  ;;  %v5297_v0 = vsel %vm1359_vm0, %v4121_v40, 0 }
  0x2a   : > { %694 = vst.msk [vmem:[#allocation2 + $0xb0] sm:$0xff] %vm460_vm1, %v5251_v45  ;;  %1170 = vst.msk [vmem:[#allocation2 + $0x3a0] sm:$0xff] %vm460_vm1, %v5251_v45  ;;  %v396_v62 = vadd.f32 %v5175_v28, %v358_v52  ;;  %v756_v63 = vrot.slane %v523_v54, 1  ;;  %v4278_v18 = vunpack.c.l.bf16 %v4312_v41  ;;  %4614 = vmatprep.mubr.msk.bf16.mxu0 %vm460_vm1, %v2262_v50  ;;  %v397_v4 = vadd.f32 %v5175_v28, %v359_v57  ;;  %v2263_v24 = vld [vmem:[#allocation2 + $0x218] sm:$0xff]  ;;  %v1297_v25 = vld [vmem:[#allocation2 + $0xa0] sm:$0xff] }
  0x2b   : > { %695 = vst.msk [vmem:[#allocation2 + $0xb8] sm:$0xff] %vm460_vm1, %v5261_v51  ;;  %961 = vst.msk [vmem:[#allocation2 + $0x230] sm:$0xff] %vm460_vm1, %v5261_v51  ;;  %5043 = vmatprep.subr.msk.bf16.mxu0 %vm1359_vm0, %v4121_v40  ;;  %v758_v8 = vrot.slane %v530_v59, 1  ;;  %v4279_v10 = vunpack.c.h.bf16 %v4312_v41  ;;  %v4282_v11 = vunpack.c.l.bf16 %v4313_v55  ;;  %v4283_v17 = vunpack.c.h.bf16 %v4313_v55  ;;  %5038 = vmatprep.subr.msk.bf16.mxu1 %vm1359_vm0, %v5283_v12  ;;  %v4315_v38 = vld [vmem:[%s5154_s12 + $0x60] sm:$0xff]   ;;  %v1029_v57 = vld [vmem:[#allocation2 + $0x290] sm:$0xff] }
  0x2c   : > { %1171 = vst.msk [vmem:[#allocation2 + $0x3a8] sm:$0xff] %vm460_vm1, %v5261_v51  ;;  %962 = vst.msk [vmem:[#allocation2 + $0x238] sm:$0xff] %vm460_vm1, %v5275_v56  ;;  %v428_v13 = vmax.f32 %v396_v62, 0.0  ;;  %v5318_v14 = vor.u32 %v756_v63, %v520_v53  ;;  %v360_v16 = vmul.f32 %v4278_v18, %v5145_v9  ;;  %v429_v20 = vmax.f32 %v397_v4, 0.0 }
  0x2d   : > { %696 = vst.msk [vmem:[#allocation2 + $0xc0] sm:$0xff] %vm460_vm1, %v5275_v56  ;;  %1172 = vst.msk [vmem:[#allocation2 + $0x3b0] sm:$0xff] %vm460_vm1, %v5275_v56  ;;  %v5325_v21 = vor.u32 %v758_v8, %v527_v58  ;;  %v361_v22 = vmul.f32 %v4279_v10, %v5145_v9  ;;  %v362_v23 = vmul.f32 %v4282_v11, %v5145_v9  ;;  %v534_v30 = vshrl.u32 %v5202_v1, 16  ;;  %v1032_v8 = vld [vmem:[#allocation2 + $0x298] sm:$0xff] }
  0x2e   : > { %v5332_v26 = vsel %vm5309_vm6, %v5318_v14, %v1023_v6  ;;  %v398_v27 = vadd.f32 %v5175_v28, %v360_v16  ;;  %v363_v29 = vmul.f32 %v4283_v17, %v5145_v9  ;;  %v5338_v33 = vpack.c.bf16 %v429_v20, %v428_v13  ;;  %v984_v13 = vld [vmem:[#allocation2 + $0x2a0] sm:$0x80] }
  0x2f   : > { %v2264_v32 = vld [vmem:[#allocation2 + $0x220] sm:$0xff]  ;;  %1025 = vst [vmem:[#allocation2 + $0x280] sm:$0xff] %v5332_v26  ;;  %v5344_v34 = vsel %vm5309_vm6, %v5325_v21, %v1026_v15  ;;  %v399_v35 = vadd.f32 %v5175_v28, %v361_v22  ;;  %v400_v37 = vadd.f32 %v5175_v28, %v362_v23  ;;  %4479 = vmatmul.mubr.msk.bf16.gmra.mrb[4].mxu1 %vm460_vm1, %v1296_v19  ;;  %v537_v41 = vshll.u32 %v5202_v1, 16  ;;  %v1298_v15 = vld [vmem:[#allocation2 + $0xa8] sm:$0xff] }
  0x30   : > { %1028 = vst [vmem:[#allocation2 + $0x288] sm:$0xff] %v5344_v34  ;;  %v430_v39 = vmax.f32 %v398_v27, 0.0  ;;  %v401_v40 = vadd.f32 %v5175_v28, %v363_v29  ;;  %v541_v42 = vshrl.u32 %v5204_v2, 16  ;;  %4615 = vmatmul.mubr.msk.bf16.gmra.mrb[4].mxu0 %vm460_vm1, %v2263_v24  ;;  %4482 = vmatprep.mubr.msk.bf16.mxu1 %vm460_vm1, %v1297_v25  ;;  %697 = vst.msk [vmem:[#allocation2 + $0xc8] sm:$0xff] %vm460_vm1, %v5338_v33  ;;  %v544_v46 = vshll.u32 %v5204_v2, 16  ;;  %v2265_v22 = vld [vmem:[#allocation2 + $0x228] sm:$0xff] }
  0x31   : > { %963 = vst.msk [vmem:[#allocation2 + $0x240] sm:$0xff] %vm460_vm1, %v5338_v33  ;;  %1173 = vst.msk [vmem:[#allocation2 + $0x3b8] sm:$0xff] %vm460_vm1, %v5338_v33  ;;  %v431_v43 = vmax.f32 %v399_v35, 0.0  ;;  %v432_v44 = vmax.f32 %v400_v37, 0.0  ;;  %v4286_v47 = vunpack.c.l.bf16 %v4314_v31  ;;  %4618 = vmatprep.mubr.msk.bf16.mxu0 %vm460_vm1, %v2264_v32  ;;  %v760_v49 = vrot.slane %v537_v41, 1  ;;  %v1299_v23 = vld [vmem:[#allocation2 + $0xb0] sm:$0xff] }
  0x32   : > { %v433_v48 = vmax.f32 %v401_v40, 0.0  ;;  %v4287_v50 = vunpack.c.h.bf16 %v4314_v31  ;;  %v4290_v52 = vunpack.c.l.bf16 %v4315_v38  ;;  %v762_v62 = vrot.slane %v544_v46, 1  ;;  %v4316_v31 = vld [vmem:[%s5154_s12 + $0x68] sm:$0xff]   ;;  %v2266_v32 = vld [vmem:[#allocation2 + $0x230] sm:$0xff] }
  0x33   : > { %v5366_v55 = vpack.c.bf16 %v431_v43, %v430_v39  ;;  %v364_v63 = vmul.f32 %v4286_v47, %v5145_v9  ;;  %v4291_v18 = vunpack.c.h.bf16 %v4315_v38  ;;  %v5375_v6 = vor.u32 %v760_v49, %v534_v30  ;;  %v4317_v40 = vld [vmem:[%s5154_s12 + $0x70] sm:$0xff]  }
  0x34   : > { %v5371_v4 = vpack.c.bf16 %v433_v48, %v432_v44  ;;  %v365_v10 = vmul.f32 %v4287_v50, %v5145_v9  ;;  %v366_v11 = vmul.f32 %v4290_v52, %v5145_v9  ;;  %v5381_v16 = vrot.slane %v520_v53, 7  ;;  %v987_v53 = vld [vmem:[#allocation2 + $0x2a8] sm:$0x80] }
  0x35   : > { %698 = vst.msk [vmem:[#allocation2 + $0xd0] sm:$0xff] %vm460_vm1, %v5366_v55  ;;  %964 = vst.msk [vmem:[#allocation2 + $0x248] sm:$0xff] %vm460_vm1, %v5366_v55  ;;  %v5391_v17 = vor.u32 %v762_v62, %v541_v42  ;;  %v402_v19 = vadd.f32 %v5175_v28, %v364_v63  ;;  %v367_v20 = vmul.f32 %v4291_v18, %v5145_v9  ;;  %v551_v29 = vshll.u32 %v5245_v36, 16 }
  0x36   : > { %1174 = vst.msk [vmem:[#allocation2 + $0x3c0] sm:$0xff] %vm460_vm1, %v5366_v55  ;;  %699 = vst.msk [vmem:[#allocation2 + $0xd8] sm:$0xff] %vm460_vm1, %v5371_v4  ;;  %v5404_v24 = vsel %vm5309_vm6, %v5375_v6, %v1029_v57  ;;  %v403_v25 = vadd.f32 %v5175_v28, %v365_v10  ;;  %v404_v27 = vadd.f32 %v5175_v28, %v366_v11  ;;  %v985_v39 = vsel %vm5137_vm4, 0, %v984_v13  ;;  %v990_v10 = vld [vmem:[#allocation2 + $0x2b0] sm:$0x80] }
  0x37   : > { %965 = vst.msk [vmem:[#allocation2 + $0x250] sm:$0xff] %vm460_vm1, %v5371_v4  ;;  %1175 = vst.msk [vmem:[#allocation2 + $0x3c8] sm:$0xff] %vm460_vm1, %v5371_v4  ;;  %v5414_v35 = vsel %vm5309_vm6, %v5391_v17, %v1032_v8  ;;  %v434_v37 = vmax.f32 %v402_v19, 0.0  ;;  %v405_v38 = vadd.f32 %v5175_v28, %v367_v20  ;;  %4483 = vmatmul.mubr.msk.bf16.gmra.mrb[8].mxu1 %vm460_vm1, %v1298_v15  ;;  %v548_v47 = vshrl.u32 %v5245_v36, 16 }
  0x38   : > { %1031 = vst [vmem:[#allocation2 + $0x290] sm:$0xff] %v5404_v24  ;;  %1034 = vst [vmem:[#allocation2 + $0x298] sm:$0xff] %v5414_v35  ;;  %v435_v43 = vmax.f32 %v403_v25, 0.0  ;;  %v436_v44 = vmax.f32 %v404_v27, 0.0  ;;  %v764_v48 = vrot.slane %v551_v29, 1  ;;  %4619 = vmatmul.mubr.msk.bf16.gmra.mrb[8].mxu0 %vm460_vm1, %v2265_v22  ;;  %4486 = vmatprep.mubr.msk.bf16.mxu1 %vm460_vm1, %v1299_v23  ;;  %v6851_v50 = vshll.u32 %v5251_v45, 16 }
  0x39   : > { %986 = vst [vmem:[#allocation2 + $0x2a0] sm:$0x80] %v985_v39  ;;  %v437_v49 = vmax.f32 %v405_v38, 0.0  ;;  %v988_v52 = vsel %vm5137_vm4, 0, %v987_v53  ;;  %v4294_v57 = vunpack.c.l.bf16 %v4316_v31  ;;  %4622 = vmatprep.mubr.msk.bf16.mxu0 %vm460_vm1, %v2266_v32  ;;  %v555_v63 = vshrl.u32 %v5251_v45, 16  ;;  %v1300_v27 = vld [vmem:[#allocation2 + $0xb8] sm:$0xff] }
  0x3a   : > { %v5431_v62 = vpack.c.bf16 %v435_v43, %v434_v37  ;;  %989 = vst [vmem:[#allocation2 + $0x2a8] sm:$0x80] %v988_v52  ;;  %v4295_v18 = vunpack.c.h.bf16 %v4316_v31  ;;  %v4298_v8 = vunpack.c.l.bf16 %v4317_v40  ;;  %v766_v13 = vrot.slane %v6851_v50, 1  ;;  %v993_v25 = vld [vmem:[#allocation2 + $0x2b8] sm:$0x80] }
  0x3b   : > { %v5434_v11 = vpack.c.bf16 %v437_v49, %v436_v44  ;;  %v368_v15 = vmul.f32 %v4294_v57, %v5145_v9  ;;  %v4299_v19 = vunpack.c.h.bf16 %v4317_v40  ;;  %v5447_v20 = vor.u32 %v764_v48, %v548_v47  ;;  %v2267_v39 = vld [vmem:[#allocation2 + $0x238] sm:$0xff]  ;;  %v1301_v40 = vld [vmem:[#allocation2 + $0xc0] sm:$0xff] }
  0x3c   : > { %700 = vst.msk [vmem:[#allocation2 + $0xe0] sm:$0xff] %vm460_vm1, %v5431_v62  ;;  %966 = vst.msk [vmem:[#allocation2 + $0x258] sm:$0xff] %vm460_vm1, %v5431_v62  ;;  %v369_v53 = vmul.f32 %v4295_v18, %v5145_v9  ;;  %v370_v22 = vmul.f32 %v4298_v8, %v5145_v9  ;;  %v6849_v23 = vshll.u32 %v5261_v51, 16  ;;  %v6850_v37 = vshrl.u32 %v5261_v51, 16  ;;  %v471_v52 = vld [vmem:[#allocation2] sm:$0x1] }
  0x3d   : > { %1176 = vst.msk [vmem:[#allocation2 + $0x3d0] sm:$0xff] %vm460_vm1, %v5431_v62  ;;  %701 = vst.msk [vmem:[#allocation2 + $0xe8] sm:$0xff] %vm460_vm1, %v5434_v11  ;;  %v406_v31 = vadd.f32 %v5175_v28, %v368_v15  ;;  %v371_v32 = vmul.f32 %v4299_v19, %v5145_v9  ;;  %v991_v38 = vsel %vm5137_vm4, 0, %v990_v10  ;;  %v5465_v43 = vor.u32 %v766_v13, %v555_v63  ;;  %v474_v13 = vld [vmem:[#allocation2 + $0x8] sm:$0x1] }
  0x3e   : > { %967 = vst.msk [vmem:[#allocation2 + $0x260] sm:$0xff] %vm460_vm1, %v5434_v11  ;;  %1177 = vst.msk [vmem:[#allocation2 + $0x3d8] sm:$0xff] %vm460_vm1, %v5434_v11  ;;  %v407_v44 = vadd.f32 %v5175_v28, %v369_v53  ;;  %v408_v48 = vadd.f32 %v5175_v28, %v370_v22  ;;  %v768_v49 = vrot.slane %v6849_v23, 1  ;;  %v6847_v10 = vshll.u32 %v5275_v56, 16 }
  0x3f   : > { %992 = vst [vmem:[#allocation2 + $0x2b0] sm:$0x80] %v991_v38  ;;  %v438_v18 = vmax.f32 %v406_v31, 0.0  ;;  %v409_v8 = vadd.f32 %v5175_v28, %v371_v32  ;;  %v994_v15 = vsel %vm5137_vm4, 0, %v993_v25  ;;  %4487 = vmatmul.mubr.msk.bf16.gmra.mrb[12].mxu1 %vm460_vm1, %v1300_v27  ;;  %v6848_v38 = vshrl.u32 %v5275_v56, 16 }
  0x40   : > { %v1035_v57 = vld [vmem:[#allocation2 + $0x2a0] sm:$0xff]  ;;  %v439_v53 = vmax.f32 %v407_v44, 0.0  ;;  %v440_v22 = vmax.f32 %v408_v48, 0.0  ;;  %995 = vst [vmem:[#allocation2 + $0x2b8] sm:$0x80] %v994_v15  ;;  %4623 = vmatmul.mubr.msk.bf16.gmra.mrb[12].mxu0 %vm460_vm1, %v2267_v39  ;;  %4490 = vmatprep.mubr.msk.bf16.mxu1 %vm460_vm1, %v1301_v40  ;;  %v5487_v27 = vor.u32 %v768_v49, %v6850_v37  ;;  %v770_v44 = vrot.slane %v6847_v10, 1 }
  0x41   : > { %v5479_v19 = vsel %vm5309_vm6, %v5447_v20, %v1035_v57  ;;  %v996_v31 = vld [vmem:[#allocation2 + $0x2c0] sm:$0x80]  ;;  %v1038_v25 = vld [vmem:[#allocation2 + $0x2a8] sm:$0xff]  ;;  %v441_v32 = vmax.f32 %v409_v8, 0.0  ;;  %vm469_vm8 = vsmask.f32 256  ;;  %4644 = vmatprep.mubr.msk.bf16.mxu0 %vm460_vm1, %v5332_v26  ;;  %v5508_v49 = vor.u32 %v523_v54, %v5381_v16 }
  0x42   : > { %1037 = vst [vmem:[#allocation2 + $0x2a0] sm:$0xff] %v5479_v19  ;;  %v5496_v39 = vsel %vm5309_vm6, %v5465_v43, %v1038_v25  ;;  %v5498_v40 = vpack.c.bf16 %v439_v53, %v438_v18  ;;  %vm5501_vm9 = vmand %vm468_vm7, %vm469_vm8  ;;  %vm641_vm10 = vsmask.f32 7938  ;;  %v999_v57 = vld [vmem:[#allocation2 + $0x2c8] sm:$0x80]  ;;  %v6862_v53 = vshrl.u32 %v5338_v33, 16 }
  0x43   : > { %6913 = vst [vmem:[#allocation4_spill] sm:$0xff] %v5508_v49  ;;  %v477_v26 = vld [vmem:[#allocation2 + $0x10] sm:$0x1]  ;;  %1040 = vst [vmem:[#allocation2 + $0x2a8] sm:$0xff] %v5496_v39  ;;  %v5511_v8 = vpack.c.bf16 %v441_v32, %v440_v22  ;;  %v472_v18 = vsel %vm5501_vm9, 0, %v471_v52  ;;  %v475_v15 = vsel %vm5501_vm9, 0, %v474_v13  ;;  %v5526_v60 = vor.u32 %v770_v44, %v6848_v38 }
  0x44   : > { %v480_v25 = vld [vmem:[#allocation2 + $0x18] sm:$0x1]  ;;  %702 = vst.msk [vmem:[#allocation2 + $0xf0] sm:$0xff] %vm460_vm1, %v5498_v40  ;;  %968 = vst.msk [vmem:[#allocation2 + $0x268] sm:$0xff] %vm460_vm1, %v5498_v40  ;;  %v6859_v54 = vshll.u32 %v5338_v33, 16  ;;  %v997_v16 = vsel %vm5137_vm4, 0, %v996_v31 }
  0x45   : > { %1178 = vst.msk [vmem:[#allocation2 + $0x3e0] sm:$0xff] %vm460_vm1, %v5498_v40  ;;  %6914 = vst [vmem:[#allocation5_spill] sm:$0xff] %v5526_v60  ;;  %v6858_v52 = vshrl.u32 %v5366_v55, 16  ;;  %v1002_v13 = vld [vmem:[#allocation2 + $0x2d0] sm:$0x80]  ;;  %v1302_v22 = vld [vmem:[#allocation2 + $0xc8] sm:$0xff] }
  0x46   : > { %473 = vst [vmem:[#allocation2] sm:$0x1] %v472_v18  ;;  %476 = vst [vmem:[#allocation2 + $0x8] sm:$0x1] %v475_v15  ;;  %v1041_v32 = vld [vmem:[#allocation2 + $0x2b0] sm:$0xff]  ;;  %v6852_v44 = vshll.u32 %v5366_v55, 16 }
  0x47   : > { %703 = vst.msk [vmem:[#allocation2 + $0xf8] sm:$0xff] %vm460_vm1, %v5511_v8  ;;  %969 = vst.msk [vmem:[#allocation2 + $0x270] sm:$0xff] %vm460_vm1, %v5511_v8  ;;  %v1000_v31 = vsel %vm5137_vm4, 0, %v999_v57  ;;  %v478_v18 = vsel %vm5501_vm9, 0, %v477_v26  ;;  %v529_v15 = vrot.slane %v527_v58, 7  ;;  %v1303_v38 = vld [vmem:[#allocation2 + $0xd0] sm:$0xff]  ;;  %v5548_v23 = vsel %vm5309_vm6, %v5487_v27, %v1041_v32  ;;  %4491 = vmatmul.mubr.msk.bf16.gmra.mrb[16].mxu1 %vm460_vm1, %v1302_v22 }
  0x48   : > { %1179 = vst.msk [vmem:[#allocation2 + $0x3e8] sm:$0xff] %vm460_vm1, %v5511_v8  ;;  %998 = vst [vmem:[#allocation2 + $0x2c0] sm:$0x80] %v997_v16  ;;  %v1005_v10 = vld [vmem:[#allocation2 + $0x2d8] sm:$0x80]  ;;  %v772_v16 = vrot.slane %v6859_v54, 1  ;;  %4645 = vmatmul.mubr.msk.bf16.vlgmr.msra.gmra.mrb[0].mxu0 %vm460_vm1, %v5344_v34  ;;  %4494 = vmatprep.mubr.msk.bf16.mxu1 %vm460_vm1, %v1303_v38 }
  0x49   : > { %1001 = vst [vmem:[#allocation2 + $0x2c8] sm:$0x80] %v1000_v31  ;;  %479 = vst [vmem:[#allocation2 + $0x10] sm:$0x1] %v478_v18  ;;  %v481_v57 = vsel %vm5501_vm9, 0, %v480_v25  ;;  %v536_v26 = vrot.slane %v534_v30, 7  ;;  %v5561_v32 = vor.u32 %v530_v59, %v529_v15  ;;  %4677 = vmatpush3.bf16.msra.mxu0 %v5297_v0  ;;  %4648 = vmatprep.mubr.msk.bf16.mxu0 %vm460_vm1, %v5404_v24 }
  0x4a   : > { %v483_v37 = vld [vmem:[#allocation2 + $0x20] sm:$0x1]  ;;  %1043 = vst [vmem:[#allocation2 + $0x2b0] sm:$0xff] %v5548_v23  ;;  %v1044_v58 = vld [vmem:[#allocation2 + $0x2b8] sm:$0xff]  ;;  %v774_v50 = vrot.slane %v6852_v44, 1  ;;  %v6855_v31 = vshrl.u32 %v5371_v4, 16  ;;  %v5573_v44 = vor.u32 %v772_v16, %v6862_v53  ;;  %vm5592_vm11 = vmand %vm460_vm1, %vm641_vm10 }
  0x4b   : > { %482 = vst [vmem:[#allocation2 + $0x18] sm:$0x1] %v481_v57  ;;  %v6854_v18 = vshll.u32 %v5371_v4, 16  ;;  %v486_v25 = vld [vmem:[#allocation2 + $0x28] sm:$0x1]  ;;  %v5569_v30 = vsel %vm5309_vm6, %v5526_v60, %v1044_v58  ;;  %v5577_v61 = vor.u32 %v537_v41, %v536_v26  ;;  %v1003_v59 = vsel %vm5137_vm4, 0, %v1002_v13 }
  0x4c   : > { %6915 = vst [vmem:[#allocation6_spill] sm:$0xff] %v5573_v44  ;;  %v5584_v22 = vld [vmem:[%s6843_s3 + $0xe] sm:$0x3]  ;;  %1046 = vst [vmem:[#allocation2 + $0x2b8] sm:$0xff] %v5569_v30  ;;  %v5598_v41 = vor.u32 %v774_v50, %v6858_v52  ;;  %v6857_v34 = vshrl.u32 %v5431_v62, 16  ;;  %v6853_v38 = vshll.u32 %v5431_v62, 16 }
  0x4d   : > { %6916 = vst [vmem:[#allocation7_spill] sm:$0xff] %v5584_v22  ;;  %v776_v13 = vrot.slane %v6854_v18, 1  ;;  %1004 = vst [vmem:[#allocation2 + $0x2d0] sm:$0x80] %v1003_v59  ;;  %v1008_v15 = vld [vmem:[#allocation2 + $0x2e0] sm:$0x80]  ;;  %5044 = vmatprep.subr.msk.bf16.mxu0 %vm1359_vm0, %v5584_v22 }
  0x4e   : > { %6919 = vst [vmem:[#allocation8_spill] sm:$0xff] %v5598_v41  ;;  %v1006_v16 = vsel %vm5137_vm4, 0, %v1005_v10  ;;  %v484_v50 = vsel %vm5501_vm9, 0, %v483_v37  ;;  %v543_v57 = vrot.slane %v541_v42, 7  ;;  %v487_v26 = vsel %vm5501_vm9, 0, %v486_v25  ;;  %v643_v59 = vld [vmem:[#allocation2 + $0x8] sm:$0xff] }
  0x4f   : > { %v1011_v58 = vld [vmem:[#allocation2 + $0x2e8] sm:$0x80]  ;;  %v5617_v0 = vor.u32 %v776_v13, %v6855_v31  ;;  %v778_v24 = vrot.slane %v6853_v38, 1  ;;  %1007 = vst [vmem:[#allocation2 + $0x2d8] sm:$0x80] %v1006_v16  ;;  %v550_v37 = vrot.slane %v548_v47, 7  ;;  %v5629_v25 = vsel %vm5592_vm11, %v5508_v49, %v643_v59 }
  0x50   : > { %485 = vst [vmem:[#allocation2 + $0x20] sm:$0x1] %v484_v50  ;;  %488 = vst [vmem:[#allocation2 + $0x28] sm:$0x1] %v487_v26  ;;  %v6860_v42 = vshrl.u32 %v5434_v11, 16  ;;  %v1047_v13 = vld [vmem:[#allocation2 + $0x2c0] sm:$0xff]  ;;  %v5633_v16 = vor.u32 %v544_v46, %v543_v57  ;;  %4649 = vmatmul.mubr.msk.bf16.gmra.mrb[4].mxu0 %vm460_vm1, %v5414_v35 }
  0x51   : > { %6920 = vst [vmem:[#allocation9_spill] sm:$0xff] %v5617_v0  ;;  %v489_v10 = vld [vmem:[#allocation2 + $0x30] sm:$0x1]  ;;  %v6856_v50 = vshll.u32 %v5434_v11, 16  ;;  %v1009_v47 = vsel %vm5137_vm4, 0, %v1008_v15  ;;  %v1304_v38 = vld [vmem:[#allocation2 + $0xd8] sm:$0xff]  ;;  %v5642_v18 = vsel %vm5309_vm6, %v5573_v44, %v1047_v13  ;;  %v5646_v2 = vor.u32 %v778_v24, %v6857_v34  ;;  %4652 = vmatprep.mubr.msk.bf16.mxu0 %vm460_vm1, %v5479_v19 }
  0x52   : > { %v492_v26 = vld [vmem:[#allocation2 + $0x38] sm:$0x1]  ;;  %645 = vst [vmem:[#allocation2 + $0x8] sm:$0xff] %v5629_v25  ;;  %v1050_v59 = vld [vmem:[#allocation2 + $0x2c8] sm:$0xff]  ;;  %v646_v31 = vld [vmem:[#allocation2 + $0x10] sm:$0xff]  ;;  %v5650_v46 = vor.u32 %v551_v29, %v550_v37  ;;  %v6863_v15 = vshrl.u32 %v5498_v40, 16  ;;  %4495 = vmatmul.mubr.msk.bf16.gmra.mrb[20].mxu1 %vm460_vm1, %v1304_v38 }
  0x53   : > { %6921 = vst [vmem:[#allocation10_spill] sm:$0xff] %v5646_v2  ;;  %1010 = vst [vmem:[#allocation2 + $0x2e0] sm:$0x80] %v1009_v47  ;;  %v1305_v57 = vld [vmem:[#allocation2 + $0xe0] sm:$0xff]  ;;  %v5657_v13 = vsel %vm5309_vm6, %v5598_v41, %v1050_v59  ;;  %v5662_v24 = vsel %vm5592_vm11, %v5561_v32, %v646_v31  ;;  %v649_v36 = vld [vmem:[#allocation2 + $0x18] sm:$0xff]  ;;  %v780_v29 = vrot.slane %v6856_v50, 1 }
  0x54   : > { %1049 = vst [vmem:[#allocation2 + $0x2c0] sm:$0xff] %v5642_v18  ;;  %v6861_v37 = vshll.u32 %v5498_v40, 16  ;;  %1052 = vst [vmem:[#allocation2 + $0x2c8] sm:$0xff] %v5657_v13  ;;  %v5672_v47 = vsel %vm5592_vm11, %v5577_v61, %v649_v36  ;;  %v1012_v59 = vsel %vm5137_vm4, 0, %v1011_v58  ;;  %v490_v31 = vsel %vm5501_vm9, 0, %v489_v10  ;;  %v4318_v52 = vld [vmem:[%s5154_s12 + $0x78] sm:$0xff]   ;;  %4498 = vmatprep.mubr.msk.bf16.mxu1 %vm460_vm1, %v1305_v57 }
  0x55   : > { %648 = vst [vmem:[#allocation2 + $0x10] sm:$0xff] %v5662_v24  ;;  %v557_v50 = vrot.slane %v555_v63, 7  ;;  %v1014_v34 = vld [vmem:[#allocation2 + $0x2f0] sm:$0x80]  ;;  %651 = vst [vmem:[#allocation2 + $0x18] sm:$0xff] %v5672_v47  ;;  %v5685_v36 = vor.u32 %v780_v29, %v6860_v42  ;;  %v493_v10 = vsel %vm5501_vm9, 0, %v492_v26 }
  0x56   : > { %v1053_v54 = vld [vmem:[#allocation2 + $0x2d0] sm:$0xff]  ;;  %v782_v58 = vrot.slane %v6861_v37, 1  ;;  %1013 = vst [vmem:[#allocation2 + $0x2e8] sm:$0x80] %v1012_v59  ;;  %491 = vst [vmem:[#allocation2 + $0x30] sm:$0x1] %v490_v31 }
  0x57   : > { %6922 = vst [vmem:[#allocation11_spill] sm:$0xff] %v5685_v36  ;;  %v1017_v63 = vld [vmem:[#allocation2 + $0x2f8] sm:$0x80]  ;;  %v5697_v38 = vsel %vm5309_vm6, %v5617_v0, %v1053_v54  ;;  %v6923_v29 = vshll.u32 %v5251_v45, 16  ;;  %494 = vst [vmem:[#allocation2 + $0x38] sm:$0x1] %v493_v10 }
  0x58   : > { %v6924_v59 = vshrl.u32 %v5261_v51, 16  ;;  %v6866_v26 = vshll.u32 %v5511_v8, 16  ;;  %v495_v37 = vld [vmem:[#allocation2 + $0x40] sm:$0x1]  ;;  %v498_v53 = vld [vmem:[#allocation2 + $0x48] sm:$0x1]  ;;  %v5711_v45 = vor.u32 %v782_v58, %v6863_v15  ;;  %4653 = vmatmul.mubr.msk.bf16.gmra.mrb[8].mxu0 %vm460_vm1, %v5496_v39 }
  0x59   : > { %v5701_v42 = vor.u32 %v6923_v29, %v557_v50  ;;  %1055 = vst [vmem:[#allocation2 + $0x2d0] sm:$0xff] %v5697_v38  ;;  %v1056_v35 = vld [vmem:[#allocation2 + $0x2d8] sm:$0xff]  ;;  %v652_v54 = vld [vmem:[#allocation2 + $0x20] sm:$0xff]  ;;  %v655_v57 = vld [vmem:[#allocation2 + $0x28] sm:$0xff]  ;;  %v1015_v10 = vsel %vm5137_vm4, 0, %v1014_v34  ;;  %v4302_v29 = vunpack.c.l.bf16 %v4318_v52  ;;  %v496_v22 = vsel %vm5501_vm9, 0, %v495_v37  ;;  %4656 = vmatprep.mubr.msk.bf16.mxu0 %vm460_vm1, %v5548_v23 }
  0x5a   : > { %v564_v31 = vrot.slane %v6924_v59, 7  ;;  %v5719_v59 = vsel %vm5309_vm6, %v5646_v2, %v1056_v35  ;;  %v5724_v19 = vsel %vm5592_vm11, %v5633_v16, %v652_v54  ;;  %v5729_v58 = vsel %vm5592_vm11, %v5650_v46, %v655_v57  ;;  %1016 = vst [vmem:[#allocation2 + $0x2f0] sm:$0x80] %v1015_v10  ;;  %v1072_v34 = vld [vmem:[#allocation2 + $0x300] sm:$0x1]  ;;  %v1306_v10 = vld [vmem:[#allocation2 + $0xe8] sm:$0xff] }
  0x5b   : > { %6925 = vst [vmem:[#allocation12_spill] sm:$0xff] %v5729_v58  ;;  %v784_v15 = vrot.slane %v6866_v26, 1  ;;  %v1075_v50 = vld [vmem:[#allocation2 + $0x308] sm:$0x1]  ;;  %1058 = vst [vmem:[#allocation2 + $0x2d8] sm:$0xff] %v5719_v59  ;;  %v1059_v35 = vld [vmem:[#allocation2 + $0x2e0] sm:$0xff]  ;;  %v4303_v54 = vunpack.c.h.bf16 %v4318_v52  ;;  %v372_v3 = vmul.f32 %v4302_v29, %v5145_v9  ;;  %4499 = vmatmul.mubr.msk.bf16.gmra.mrb[24].mxu1 %vm460_vm1, %v1306_v10 }
  0x5c   : > { %654 = vst [vmem:[#allocation2 + $0x20] sm:$0xff] %v5724_v19  ;;  %657 = vst [vmem:[#allocation2 + $0x28] sm:$0xff] %v5729_v58  ;;  %v1018_v57 = vsel %vm5137_vm4, 0, %v1017_v63  ;;  %v501_v26 = vld [vmem:[#allocation2 + $0x50] sm:$0x1]  ;;  %v5744_v49 = vsel %vm5309_vm6, %v5685_v36, %v1059_v35  ;;  %v6926_v2 = vshll.u32 %v5261_v51, 16 }
  0x5d   : > { %1019 = vst [vmem:[#allocation2 + $0x2f8] sm:$0x80] %v1018_v57  ;;  %497 = vst [vmem:[#allocation2 + $0x40] sm:$0x1] %v496_v22  ;;  %v6927_v52 = vshrl.u32 %v5275_v56, 16  ;;  %v499_v63 = vsel %vm5501_vm9, 0, %v498_v53  ;;  %v373_v41 = vmul.f32 %v4303_v54, %v5145_v9  ;;  %v410_v35 = vadd.f32 %v5175_v28, %v372_v3 }
  0x5e   : > { %v5748_v58 = vor.u32 %v6926_v2, %v564_v31  ;;  %v504_v37 = vld [vmem:[#allocation2 + $0x58] sm:$0x1]  ;;  %v1307_v0 = vld [vmem:[#allocation2 + $0xf0] sm:$0xff]  ;;  %1061 = vst [vmem:[#allocation2 + $0x2e0] sm:$0xff] %v5744_v49  ;;  %500 = vst [vmem:[#allocation2 + $0x48] sm:$0x1] %v499_v63 }
  0x5f   : > { %v571_v29 = vrot.slane %v6927_v52, 7  ;;  %v6928_v51 = vshrl.u32 %v5338_v33, 16  ;;  %v1073_v22 = vsel %vm5501_vm9, 0, %v1072_v34  ;;  %v1078_v31 = vld [vmem:[#allocation2 + $0x310] sm:$0x1]  ;;  %v1062_v57 = vld [vmem:[#allocation2 + $0x2e8] sm:$0xff]  ;;  %4502 = vmatprep.mubr.msk.bf16.mxu1 %vm460_vm1, %v1307_v0 }
  0x60   : > { %v658_v52 = vld [vmem:[#allocation2 + $0x30] sm:$0xff]  ;;  %v6929_v53 = vshrl.u32 %v5511_v8, 16  ;;  %v6931_v44 = vshll.u32 %v5275_v56, 16  ;;  %1074 = vst [vmem:[#allocation2 + $0x300] sm:$0x1] %v1073_v22  ;;  %v1076_v3 = vsel %vm5501_vm9, 0, %v1075_v50  ;;  %v5777_v34 = vsel %vm5309_vm6, %v5711_v45, %v1062_v57  ;;  %4657 = vmatmul.mubr.msk.bf16.gmra.mrb[12].mxu0 %vm460_vm1, %v5569_v30 }
  0x61   : > { %v578_v2 = vrot.slane %v6928_v51, 7  ;;  %v502_v9 = vsel %vm5501_vm9, 0, %v501_v26  ;;  %v1081_v54 = vld [vmem:[#allocation2 + $0x318] sm:$0x1]  ;;  %v5782_v56 = vsel %vm5592_vm11, %v5701_v42, %v658_v52  ;;  %v442_v50 = vmax.f32 %v410_v35, 0.0  ;;  %1064 = vst [vmem:[#allocation2 + $0x2e8] sm:$0xff] %v5777_v34  ;;  %4660 = vmatprep.mubr.msk.bf16.mxu0 %vm460_vm1, %v5642_v18 }
  0x62   : > { %v5763_v36 = vor.u32 %v784_v15, %v6929_v53  ;;  %v5767_v60 = vor.u32 %v6931_v44, %v571_v29  ;;  %6932 = vst [vmem:[#allocation14_spill] sm:$0xff] %v5782_v56  ;;  %v661_v44 = vld [vmem:[#allocation2 + $0x38] sm:$0xff]  ;;  %v411_v15 = vadd.f32 %v5175_v28, %v373_v41  ;;  %1077 = vst [vmem:[#allocation2 + $0x308] sm:$0x1] %v1076_v3  ;;  %v507_v26 = vld [vmem:[#allocation2 + $0x60] sm:$0x1] }
  0x63   : > { %503 = vst [vmem:[#allocation2 + $0x50] sm:$0x1] %v502_v9  ;;  %v510_v29 = vld [vmem:[#allocation2 + $0x68] sm:$0x1]  ;;  %660 = vst [vmem:[#allocation2 + $0x30] sm:$0xff] %v5782_v56  ;;  %v5793_v10 = vsel %vm5592_vm11, %v5748_v58, %v661_v44  ;;  %v6934_v28 = vshll.u32 %v5338_v33, 16 }
  0x64   : > { %6930 = vst [vmem:[#allocation13_spill] sm:$0xff] %v5763_v36  ;;  %6933 = vst [vmem:[#allocation15_spill] sm:$0xff] %v5793_v10  ;;  %v6935_v63 = vshrl.u32 %v5366_v55, 16  ;;  %v505_v39 = vsel %vm5501_vm9, 0, %v504_v37  ;;  %v1084_v0 = vld [vmem:[#allocation2 + $0x320] sm:$0x1] }
  0x65   : > { %v5797_v41 = vor.u32 %v6934_v28, %v578_v2  ;;  %v1087_v51 = vld [vmem:[#allocation2 + $0x328] sm:$0x1]  ;;  %663 = vst [vmem:[#allocation2 + $0x38] sm:$0xff] %v5793_v10  ;;  %v1065_v22 = vld [vmem:[#allocation2 + $0x2f0] sm:$0xff]  ;;  %v443_v57 = vmax.f32 %v411_v15, 0.0  ;;  %v6936_v33 = vshrl.u32 %v5371_v4, 16 }
  0x66   : > { %v585_v35 = vrot.slane %v6935_v63, 7  ;;  %506 = vst [vmem:[#allocation2 + $0x58] sm:$0x1] %v505_v39  ;;  %v1079_v52 = vsel %vm5501_vm9, 0, %v1078_v31  ;;  %v1082_v53 = vsel %vm5501_vm9, 0, %v1081_v54  ;;  %v5814_v3 = vsel %vm1359_vm0, %v5283_v12, 0 }
  0x67   : > { %v592_v2 = vrot.slane %v6936_v33, 7  ;;  %v513_v37 = vld [vmem:[#allocation2 + $0x70] sm:$0x1]  ;;  %v5819_v23 = vsel %vm5309_vm6, %v5763_v36, %v1065_v22  ;;  %1080 = vst [vmem:[#allocation2 + $0x310] sm:$0x1] %v1079_v52  ;;  %v508_v9 = vsel %vm5501_vm9, 0, %v507_v26  ;;  %v5826_v54 = vpack.c.bf16 %v443_v57, %v442_v50 }
  0x68   : > { %6937 = vst [vmem:[#allocation16_spill] sm:$0xff] %v5819_v23  ;;  %1083 = vst [vmem:[#allocation2 + $0x318] sm:$0x1] %v1082_v53  ;;  %v6938_v31 = vshrl.u32 %v5431_v62, 16  ;;  %v516_v15 = vld [vmem:[#allocation2 + $0x78] sm:$0x1]  ;;  %4661 = vmatmul.mubr.msk.bf16.gmra.mrb[16].mxu0 %vm460_vm1, %v5657_v13 }
  0x69   : > { %1067 = vst [vmem:[#allocation2 + $0x2f0] sm:$0xff] %v5819_v23  ;;  %v664_v12 = vld [vmem:[#allocation2 + $0x40] sm:$0xff]  ;;  %v6939_v28 = vshll.u32 %v5366_v55, 16  ;;  %v6940_v39 = vshll.u32 %v5371_v4, 16  ;;  %509 = vst [vmem:[#allocation2 + $0x60] sm:$0x1] %v508_v9  ;;  %4664 = vmatprep.mubr.msk.bf16.mxu0 %vm460_vm1, %v5697_v38 }
  0x6a   : > { %v599_v44 = vrot.slane %v6938_v31, 7  ;;  %v511_v26 = vsel %vm5501_vm9, 0, %v510_v29  ;;  %v1090_v33 = vld [vmem:[#allocation2 + $0x330] sm:$0x1]  ;;  %v1093_v52 = vld [vmem:[#allocation2 + $0x338] sm:$0x1]  ;;  %v5841_v50 = vsel %vm5592_vm11, %v5767_v60, %v664_v12 }
  0x6b   : > { %v5830_v63 = vor.u32 %v6939_v28, %v585_v35  ;;  %v5834_v22 = vor.u32 %v6940_v39, %v592_v2  ;;  %v708_v53 = vld [vmem:[#allocation2 + $0x100] sm:$0x80]  ;;  %v1308_v31 = vld [vmem:[#allocation2 + $0xf8] sm:$0xff]  ;;  %6941 = vst [vmem:[#allocation17_spill] sm:$0xff] %v5841_v50  ;;  %v667_v55 = vld [vmem:[#allocation2 + $0x48] sm:$0xff]  ;;  %v6942_v35 = vshrl.u32 %v5434_v11, 16 }
  0x6c   : > { %512 = vst [vmem:[#allocation2 + $0x68] sm:$0x1] %v511_v26  ;;  %v1085_v57 = vsel %vm5501_vm9, 0, %v1084_v0  ;;  %v1088_v29 = vsel %vm5501_vm9, 0, %v1087_v51  ;;  %v5849_v2 = vld [vmem:[#allocation2 + $0x108] sm:$0x80]  ;;  %v5861_v0 = vsel %vm5592_vm11, %v5797_v41, %v667_v55  ;;  %4503 = vmatmul.mubr.msk.bf16.gmra.mrb[28].mxu1 %vm460_vm1, %v1308_v31 }
  0x6d   : > { %v606_v4 = vrot.slane %v6942_v35, 7  ;;  %v1275_v9 = vld [vmem:[#allocation2] sm:$0xff]  ;;  %970 = vst.msk [vmem:[#allocation2 + $0x278] sm:$0xff] %vm460_vm1, %v5826_v54  ;;  %1180 = vst.msk [vmem:[#allocation2 + $0x3f0] sm:$0xff] %vm460_vm1, %v5826_v54  ;;  %v6944_v12 = vshll.u32 %v5431_v62, 16  ;;  %v1123_v39 = vld [vmem:[#allocation2 + $0x308] sm:$0xff] }
  0x6e   : > { %666 = vst [vmem:[#allocation2 + $0x40] sm:$0xff] %v5841_v50  ;;  %6943 = vst [vmem:[#allocation18_spill] sm:$0xff] %v5861_v0  ;;  %v1120_v51 = vld [vmem:[#allocation2 + $0x300] sm:$0xff]  ;;  %v670_v50 = vld [vmem:[#allocation2 + $0x50] sm:$0xff]  ;;  %v514_v55 = vsel %vm5501_vm9, 0, %v513_v37  ;;  %v6946_v10 = vshrl.u32 %v5498_v40, 16  ;;  %v5890_v37 = vsel %vm5592_vm11, %v5577_v61, %v1123_v39  ;;  %4508 = vmatprep.mubr.msk.bf16.mxu1 %vm460_vm1, %v1275_v9 }
  0x6f   : > { %v5865_v26 = vor.u32 %v6944_v12, %v599_v44  ;;  %1086 = vst [vmem:[#allocation2 + $0x320] sm:$0x1] %v1085_v57  ;;  %1089 = vst [vmem:[#allocation2 + $0x328] sm:$0x1] %v1088_v29  ;;  %v1096_v35 = vld [vmem:[#allocation2 + $0x340] sm:$0x1]  ;;  %v5871_v28 = vsel %vm5592_vm11, %v5561_v32, %v1120_v51 }
  0x70   : > { %669 = vst [vmem:[#allocation2 + $0x48] sm:$0xff] %v5861_v0  ;;  %6945 = vst [vmem:[#allocation19_spill] sm:$0xff] %v5871_v28  ;;  %v613_v62 = vrot.slane %v6946_v10, 7  ;;  %v517_v44 = vsel %vm5501_vm9, 0, %v516_v15  ;;  %v5879_v57 = vld [vmem:[#allocation2 + $0x348] sm:$0x1]  ;;  %v5895_v10 = vsel %vm5592_vm11, %v5830_v63, %v670_v50  ;;  %4665 = vmatmul.mubr.msk.bf16.gmra.mrb[20].mxu0 %vm460_vm1, %v5719_v59 }
  0x71   : > { %v5881_v29 = vld [vmem:[#allocation2 + $0x110] sm:$0x80]  ;;  %v6947_v51 = vshll.u32 %v5826_v54, 16  ;;  %1122 = vst [vmem:[#allocation2 + $0x300] sm:$0xff] %v5871_v28  ;;  %6948 = vst [vmem:[#allocation20_spill] sm:$0xff] %v5890_v37  ;;  %v6950_v15 = vshrl.u32 %v5511_v8, 16  ;;  %4668 = vmatprep.mubr.msk.bf16.mxu0 %vm460_vm1, %v5744_v49 }
  0x72   : > { %6949 = vst [vmem:[#allocation21_spill] sm:$0xff] %v5895_v10  ;;  %515 = vst [vmem:[#allocation2 + $0x70] sm:$0x1] %v514_v55  ;;  %v717_v0 = vld [vmem:[#allocation2 + $0x118] sm:$0x80]  ;;  %v6951_v55 = vshll.u32 %v5434_v11, 16 }
  0x73   : > { %v1020_v12 = vrot.slane %v6947_v51, 1  ;;  %518 = vst [vmem:[#allocation2 + $0x78] sm:$0x1] %v517_v44  ;;  %v620_v31 = vrot.slane %v6950_v15, 7  ;;  %v1102_v23 = vld [vmem:[#allocation2 + $0x350] sm:$0x1] }
  0x74   : > { %v1105_v51 = vld [vmem:[#allocation2 + $0x358] sm:$0x1]  ;;  %1125 = vst [vmem:[#allocation2 + $0x308] sm:$0xff] %v5890_v37  ;;  %672 = vst [vmem:[#allocation2 + $0x50] sm:$0xff] %v5895_v10  ;;  %v5906_v44 = vor.u32 %v6951_v55, %v606_v4  ;;  %v1091_v15 = vsel %vm5501_vm9, 0, %v1090_v33  ;;  %v1094_v28 = vsel %vm5501_vm9, 0, %v1093_v52  ;;  %4509 = vmatmul.mubr.msk.bf16.vlgmr.msra.gmra.mrb[0].mxu1 %vm460_vm1, %v5629_v25 }
  0x75   : > { %v1068_v39 = vld [vmem:[#allocation2 + $0x2f8] sm:$0xff]  ;;  %v709_v30 = vsel %vm5137_vm4, 0, %v708_v53  ;;  %v720_v9 = vld [vmem:[#allocation2 + $0x120] sm:$0x80]  ;;  %v723_v56 = vld [vmem:[#allocation2 + $0x128] sm:$0x80]  ;;  %4541 = vmatpush3.bf16.msra.mxu1 %v5814_v3  ;;  %4512 = vmatprep.mubr.msk.bf16.mxu1 %vm460_vm1, %v5662_v24 }
  0x76   : > { %v673_v50 = vld [vmem:[#allocation2 + $0x58] sm:$0xff]  ;;  %v6952_v10 = vshrl.u32 %v5826_v54, 16  ;;  %v1126_v33 = vld [vmem:[#allocation2 + $0x310] sm:$0xff]  ;;  %v6954_v52 = vshll.u32 %v5498_v40, 16  ;;  %1092 = vst [vmem:[#allocation2 + $0x330] sm:$0x1] %v1091_v15 }
  0x77   : > { %v5923_v11 = vsel %vm5592_vm11, %v5834_v22, %v673_v50  ;;  %v1129_v4 = vld [vmem:[#allocation2 + $0x318] sm:$0xff]  ;;  %1095 = vst [vmem:[#allocation2 + $0x338] sm:$0x1] %v1094_v28  ;;  %710 = vst [vmem:[#allocation2 + $0x100] sm:$0x80] %v709_v30  ;;  %v712_v18 = vsel %vm5137_vm4, 0, %v5849_v2  ;;  %v5936_v50 = vsel %vm5592_vm11, %v5633_v16, %v1126_v33 }
  0x78   : > { %v5918_v37 = vor.u32 %v1020_v12, %v6952_v10  ;;  %v5927_v55 = vor.u32 %v6954_v52, %v613_v62  ;;  %v1108_v53 = vld [vmem:[#allocation2 + $0x360] sm:$0x1]  ;;  %v1111_v12 = vld [vmem:[#allocation2 + $0x368] sm:$0x1]  ;;  %v726_v10 = vld [vmem:[#allocation2 + $0x130] sm:$0x80]  ;;  %v5941_v40 = vsel %vm5592_vm11, %v5650_v46, %v1129_v4  ;;  %4669 = vmatmul.mubr.msk.bf16.gmra.mrb[24].mxu0 %vm460_vm1, %v5777_v34 }
  0x79   : > { %675 = vst [vmem:[#allocation2 + $0x58] sm:$0xff] %v5923_v11  ;;  %6955 = vst [vmem:[#allocation23_spill] sm:$0xff] %v5941_v40  ;;  %v676_v28 = vld [vmem:[#allocation2 + $0x60] sm:$0xff]  ;;  %v6956_v62 = vshll.u32 %v5511_v8, 16  ;;  %v1097_v2 = vsel %vm5501_vm9, 0, %v1096_v35  ;;  %v1100_v35 = vsel %vm5501_vm9, 0, %v5879_v57 }
  0x7a   : > { %6953 = vst [vmem:[#allocation22_spill] sm:$0xff] %v5918_v37  ;;  %713 = vst [vmem:[#allocation2 + $0x108] sm:$0x80] %v712_v18  ;;  %v729_v30 = vld [vmem:[#allocation2 + $0x138] sm:$0x80]  ;;  %v5954_v33 = vsel %vm5309_vm6, %v5918_v37, %v1068_v39  ;;  %v5961_v8 = vsel %vm5592_vm11, %v5865_v26, %v676_v28  ;;  %v715_v39 = vsel %vm5137_vm4, 0, %v5881_v29 }
  0x7b   : > { %v5945_v15 = vor.u32 %v6956_v62, %v620_v31  ;;  %v5949_v52 = vld [vmem:[#allocation2 + $0x370] sm:$0x1]  ;;  %1128 = vst [vmem:[#allocation2 + $0x310] sm:$0xff] %v5936_v50  ;;  %1131 = vst [vmem:[#allocation2 + $0x318] sm:$0xff] %v5941_v40  ;;  %v679_v31 = vld [vmem:[#allocation2 + $0x68] sm:$0xff]  ;;  %v718_v29 = vsel %vm5137_vm4, 0, %v717_v0 }
  0x7c   : > { %6957 = vst [vmem:[#allocation24_spill] sm:$0xff] %v5961_v8  ;;  %1098 = vst [vmem:[#allocation2 + $0x340] sm:$0x1] %v1097_v2  ;;  %v5969_v4 = vld [vmem:[#allocation2 + $0x378] sm:$0x1]  ;;  %v5980_v28 = vsel %vm5592_vm11, %v5906_v44, %v679_v31  ;;  %v1132_v57 = vld [vmem:[#allocation2 + $0x320] sm:$0xff]  ;;  %4513 = vmatmul.mubr.msk.bf16.gmra.mrb[4].mxu1 %vm460_vm1, %v5672_v47 }
  0x7d   : > { %v5971_v18 = vld [vmem:[#allocation2 + $0x140] sm:$0x80]  ;;  %v5973_v62 = vld [vmem:[#allocation2 + $0x148] sm:$0x80]  ;;  %1070 = vst [vmem:[#allocation2 + $0x2f8] sm:$0xff] %v5954_v33  ;;  %678 = vst [vmem:[#allocation2 + $0x60] sm:$0xff] %v5961_v8  ;;  %v5992_v31 = vsel %vm5592_vm11, %v5701_v42, %v1132_v57  ;;  %4516 = vmatprep.mubr.msk.bf16.mxu1 %vm460_vm1, %v5724_v19 }
  0x7e   : > { %6958 = vst [vmem:[#allocation25_spill] sm:$0xff] %v5980_v28  ;;  %v1135_v2 = vld [vmem:[#allocation2 + $0x328] sm:$0xff]  ;;  %1101 = vst [vmem:[#allocation2 + $0x348] sm:$0x1] %v1100_v35  ;;  %v1103_v37 = vsel %vm5501_vm9, 0, %v1102_v23  ;;  %v1106_v40 = vsel %vm5501_vm9, 0, %v1105_v51 }
  0x7f   : > { %716 = vst [vmem:[#allocation2 + $0x110] sm:$0x80] %v715_v39  ;;  %681 = vst [vmem:[#allocation2 + $0x68] sm:$0xff] %v5980_v28  ;;  %v5997_v35 = vsel %vm5592_vm11, %v5748_v58, %v1135_v2  ;;  %v6002_v0 = vld [vmem:[%s6843_s3 + $0x6] sm:$0x3]  ;;  %v721_v23 = vsel %vm5137_vm4, 0, %v720_v9 }
  0x80   : > { %6959 = vst [vmem:[#allocation26_spill] sm:$0xff] %v5992_v31  ;;  %719 = vst [vmem:[#allocation2 + $0x118] sm:$0x80] %v718_v29  ;;  %v724_v51 = vsel %vm5137_vm4, 0, %v723_v56  ;;  %v738_v39 = vld [vmem:[#allocation2 + $0x150] sm:$0x80]  ;;  %5039 = vmatprep.subr.msk.bf16.mxu1 %vm1359_vm0, %v6002_v0 }
  0x81   : > { %1104 = vst [vmem:[#allocation2 + $0x350] sm:$0x1] %v1103_v37  ;;  %1107 = vst [vmem:[#allocation2 + $0x358] sm:$0x1] %v1106_v40  ;;  %v741_v57 = vld [vmem:[#allocation2 + $0x158] sm:$0x80] }
  0x82   : > { %v744_v28 = vld [vmem:[#allocation2 + $0x160] sm:$0x80]  ;;  %1134 = vst [vmem:[#allocation2 + $0x320] sm:$0xff] %v5992_v31  ;;  %1137 = vst [vmem:[#allocation2 + $0x328] sm:$0xff] %v5997_v35  ;;  %v682_v2 = vld [vmem:[#allocation2 + $0x70] sm:$0xff]  ;;  %v1109_v37 = vsel %vm5501_vm9, 0, %v1108_v53 }
  0x83   : > { %v685_v8 = vld [vmem:[#allocation2 + $0x78] sm:$0xff]  ;;  %722 = vst [vmem:[#allocation2 + $0x120] sm:$0x80] %v721_v23  ;;  %725 = vst [vmem:[#allocation2 + $0x128] sm:$0x80] %v724_v51  ;;  %v1112_v9 = vsel %vm5501_vm9, 0, %v1111_v12  ;;  %v6023_v23 = vsel %vm5592_vm11, %v5927_v55, %v682_v2 }
  0x84   : > { %v727_v56 = vsel %vm5137_vm4, 0, %v726_v10  ;;  %v730_v40 = vsel %vm5137_vm4, 0, %v729_v30  ;;  %v747_v29 = vld [vmem:[#allocation2 + $0x168] sm:$0x80]  ;;  %v750_v31 = vld [vmem:[#allocation2 + $0x170] sm:$0x80]  ;;  %v6028_v53 = vsel %vm5592_vm11, %v5945_v15, %v685_v8 }
  0x85   : > { %1110 = vst [vmem:[#allocation2 + $0x360] sm:$0x1] %v1109_v37  ;;  %1113 = vst [vmem:[#allocation2 + $0x368] sm:$0x1] %v1112_v9  ;;  %v6960_v12 = vshrl.u32 %v5826_v54, 16  ;;  %v1115_v25 = vsel %vm5501_vm9, 0, %v5949_v52 }
  0x86   : > { %728 = vst [vmem:[#allocation2 + $0x130] sm:$0x80] %v727_v56  ;;  %731 = vst [vmem:[#allocation2 + $0x138] sm:$0x80] %v730_v40  ;;  %v753_v30 = vld [vmem:[#allocation2 + $0x178] sm:$0x80] }
  0x87   : > { %v901_v10 = vrot.slane %v6960_v12, 7  ;;  %v850_v51 = vld [vmem:[#allocation2 + $0x180] sm:$0x1]  ;;  %684 = vst [vmem:[#allocation2 + $0x70] sm:$0xff] %v6023_v23  ;;  %687 = vst [vmem:[#allocation2 + $0x78] sm:$0xff] %v6028_v53  ;;  %v1138_v8 = vld [vmem:[#allocation2 + $0x330] sm:$0xff] }
  0x88   : > { %v1141_v2 = vld [vmem:[#allocation2 + $0x338] sm:$0xff]  ;;  %1116 = vst [vmem:[#allocation2 + $0x370] sm:$0x1] %v1115_v25  ;;  %v1118_v37 = vsel %vm5501_vm9, 0, %v5969_v4  ;;  %v733_v52 = vsel %vm5137_vm4, 0, %v5971_v18  ;;  %v736_v3 = vsel %vm5137_vm4, 0, %v5973_v62  ;;  %v6056_v13 = vsel %vm5592_vm11, %v5767_v60, %v1138_v8 }
  0x89   : > { %v6061_v4 = vsel %vm5592_vm11, %v5797_v41, %v1141_v2  ;;  %v804_v18 = vld [vmem:[#allocation2 + $0x108] sm:$0xff]  ;;  %v6961_v9 = vshll.u32 %v5826_v54, 16  ;;  %1119 = vst [vmem:[#allocation2 + $0x378] sm:$0x1] %v1118_v37  ;;  %734 = vst [vmem:[#allocation2 + $0x140] sm:$0x80] %v733_v52 }
  0x8a   : > { %737 = vst [vmem:[#allocation2 + $0x148] sm:$0x80] %v736_v3  ;;  %v853_v24 = vld [vmem:[#allocation2 + $0x188] sm:$0x1]  ;;  %v856_v38 = vld [vmem:[#allocation2 + $0x190] sm:$0x1]  ;;  %v6072_v56 = vsel %vm5309_vm6, %v5318_v14, %v804_v18 }
  0x8b   : > { %v6065_v62 = vor.u32 %v6961_v9, %v901_v10  ;;  %1140 = vst [vmem:[#allocation2 + $0x330] sm:$0xff] %v6056_v13  ;;  %1143 = vst [vmem:[#allocation2 + $0x338] sm:$0xff] %v6061_v4  ;;  %v1144_v54 = vld [vmem:[#allocation2 + $0x340] sm:$0xff]  ;;  %v739_v40 = vsel %vm5137_vm4, 0, %v738_v39  ;;  %v742_v12 = vsel %vm5137_vm4, 0, %v741_v57  ;;  %v745_v10 = vsel %vm5137_vm4, 0, %v744_v28 }
  0x8c   : > { %v859_v25 = vld [vmem:[#allocation2 + $0x198] sm:$0x1]  ;;  %806 = vst [vmem:[#allocation2 + $0x108] sm:$0xff] %v6072_v56  ;;  %v6086_v14 = vsel %vm5592_vm11, %v5830_v63, %v1144_v54  ;;  %v1147_v8 = vld [vmem:[#allocation2 + $0x348] sm:$0xff]  ;;  %v807_v2 = vld [vmem:[#allocation2 + $0x110] sm:$0xff]  ;;  %v748_v39 = vsel %vm5137_vm4, 0, %v747_v29 }
  0x8d   : > { %740 = vst [vmem:[#allocation2 + $0x150] sm:$0x80] %v739_v40  ;;  %743 = vst [vmem:[#allocation2 + $0x158] sm:$0x80] %v742_v12  ;;  %v751_v57 = vsel %vm5137_vm4, 0, %v750_v31  ;;  %v754_v28 = vsel %vm5137_vm4, 0, %v753_v30  ;;  %v6098_v37 = vsel %vm5592_vm11, %v5834_v22, %v1147_v8  ;;  %v6103_v52 = vsel %vm5309_vm6, %v5325_v21, %v807_v2 }
  0x8e   : > { %746 = vst [vmem:[#allocation2 + $0x160] sm:$0x80] %v745_v10  ;;  %1146 = vst [vmem:[#allocation2 + $0x340] sm:$0xff] %v6086_v14  ;;  %v810_v3 = vld [vmem:[#allocation2 + $0x118] sm:$0xff]  ;;  %v1150_v29 = vld [vmem:[#allocation2 + $0x350] sm:$0xff]  ;;  %v851_v31 = vsel %vm5501_vm9, 0, %v850_v51 }
  0x8f   : > { %v1153_v18 = vld [vmem:[#allocation2 + $0x358] sm:$0xff]  ;;  %749 = vst [vmem:[#allocation2 + $0x168] sm:$0x80] %v748_v39  ;;  %752 = vst [vmem:[#allocation2 + $0x170] sm:$0x80] %v751_v57  ;;  %v854_v30 = vsel %vm5501_vm9, 0, %v853_v24  ;;  %v6114_v9 = vsel %vm5309_vm6, %v5375_v6, %v810_v3  ;;  %v6119_v54 = vsel %vm5592_vm11, %v5865_v26, %v1150_v29 }
  0x90   : > { %755 = vst [vmem:[#allocation2 + $0x178] sm:$0x80] %v754_v28  ;;  %1149 = vst [vmem:[#allocation2 + $0x348] sm:$0xff] %v6098_v37  ;;  %v6124_v51 = vsel %vm5592_vm11, %v5906_v44, %v1153_v18  ;;  %v813_v24 = vld [vmem:[#allocation2 + $0x120] sm:$0xff]  ;;  %v816_v40 = vld [vmem:[#allocation2 + $0x128] sm:$0xff]  ;;  %v857_v12 = vsel %vm5501_vm9, 0, %v856_v38 }
  0x91   : > { %809 = vst [vmem:[#allocation2 + $0x110] sm:$0xff] %v6103_v52  ;;  %852 = vst [vmem:[#allocation2 + $0x180] sm:$0x1] %v851_v31  ;;  %v862_v10 = vld [vmem:[#allocation2 + $0x1a0] sm:$0x1]  ;;  %v6134_v8 = vsel %vm5309_vm6, %v5391_v17, %v813_v24  ;;  %v6139_v2 = vsel %vm5309_vm6, %v5447_v20, %v816_v40  ;;  %v1159_v57 = vld [vmem:[#allocation2 + $0x368] sm:$0xff] }
  0x92   : > { %855 = vst [vmem:[#allocation2 + $0x188] sm:$0x1] %v854_v30  ;;  %812 = vst [vmem:[#allocation2 + $0x118] sm:$0xff] %v6114_v9  ;;  %v1156_v39 = vld [vmem:[#allocation2 + $0x360] sm:$0xff]  ;;  %v819_v38 = vld [vmem:[#allocation2 + $0x130] sm:$0xff]  ;;  %v860_v28 = vsel %vm5501_vm9, 0, %v859_v25  ;;  %v6157_v18 = vsel %vm5592_vm11, %v5945_v15, %v1159_v57 }
  0x93   : > { %1152 = vst [vmem:[#allocation2 + $0x350] sm:$0xff] %v6119_v54  ;;  %1155 = vst [vmem:[#allocation2 + $0x358] sm:$0xff] %v6124_v51  ;;  %v863_v3 = vsel %vm5501_vm9, 0, %v862_v10  ;;  %v6152_v29 = vsel %vm5592_vm11, %v5927_v55, %v1156_v39  ;;  %v6162_v25 = vsel %vm5309_vm6, %v5465_v43, %v819_v38  ;;  %v822_v47 = vld [vmem:[#allocation2 + $0x138] sm:$0xff]  ;;  %v1162_v31 = vld [vmem:[#allocation2 + $0x370] sm:$0xff] }
  0x94   : > { %858 = vst [vmem:[#allocation2 + $0x190] sm:$0x1] %v857_v12  ;;  %815 = vst [vmem:[#allocation2 + $0x120] sm:$0xff] %v6134_v8  ;;  %v6174_v30 = vsel %vm5309_vm6, %v5487_v27, %v822_v47  ;;  %v6179_v24 = vsel %vm5592_vm11, %v6065_v62, %v1162_v31  ;;  %v825_v59 = vld [vmem:[#allocation2 + $0x140] sm:$0xff]  ;;  %v828_v40 = vld [vmem:[#allocation2 + $0x148] sm:$0xff] }
  0x95   : > { %818 = vst [vmem:[#allocation2 + $0x128] sm:$0xff] %v6139_v2  ;;  %6962 = vst [vmem:[#allocation27_spill] sm:$0xff] %v6157_v18  ;;  %v6966_v19 = vld [vmem:[#allocation5_spill] sm:$0xff]  ;;  %v6968_v10 = vld [vmem:[#allocation6_spill] sm:$0xff] }
  0x96   : > { %6963 = vst [vmem:[#allocation28_spill] sm:$0xff] %v6162_v25  ;;  %861 = vst [vmem:[#allocation2 + $0x198] sm:$0x1] %v860_v28  ;;  %v6188_v12 = vsel %vm5309_vm6, %v6966_v19, %v825_v59  ;;  %v6193_v39 = vsel %vm5309_vm6, %v6968_v10, %v828_v40  ;;  %v865_v57 = vld [vmem:[#allocation2 + $0x1a8] sm:$0x1]  ;;  %v831_v49 = vld [vmem:[#allocation2 + $0x150] sm:$0xff] }
  0x97   : > { %864 = vst [vmem:[#allocation2 + $0x1a0] sm:$0x1] %v863_v3  ;;  %1158 = vst [vmem:[#allocation2 + $0x360] sm:$0xff] %v6152_v29  ;;  %v834_v38 = vld [vmem:[#allocation2 + $0x158] sm:$0xff]  ;;  %v837_v28 = vld [vmem:[#allocation2 + $0x160] sm:$0xff]  ;;  %v866_v3 = vsel %vm5501_vm9, 0, %v865_v57 }
  0x98   : > { %1161 = vst [vmem:[#allocation2 + $0x368] sm:$0xff] %v6157_v18  ;;  %821 = vst [vmem:[#allocation2 + $0x130] sm:$0xff] %v6162_v25  ;;  %v6970_v47 = vld [vmem:[#allocation8_spill] sm:$0xff]  ;;  %v6972_v59 = vld [vmem:[#allocation9_spill] sm:$0xff] }
  0x99   : > { %6964 = vst [vmem:[#allocation29_spill] sm:$0xff] %v6174_v30  ;;  %6965 = vst [vmem:[#allocation30_spill] sm:$0xff] %v6179_v24  ;;  %v6202_v31 = vsel %vm5309_vm6, %v6970_v47, %v831_v49  ;;  %v6207_v40 = vsel %vm5309_vm6, %v6972_v59, %v834_v38  ;;  %v846_v25 = vld [vmem:[#allocation2 + $0x178] sm:$0xff]  ;;  %v6976_v57 = vld [vmem:[#allocation11_spill] sm:$0xff] }
  0x9a   : > { %824 = vst [vmem:[#allocation2 + $0x138] sm:$0xff] %v6174_v30  ;;  %1164 = vst [vmem:[#allocation2 + $0x370] sm:$0xff] %v6179_v24  ;;  %v6974_v30 = vld [vmem:[#allocation10_spill] sm:$0xff]  ;;  %v843_v24 = vld [vmem:[#allocation2 + $0x170] sm:$0xff] }
  0x9b   : > { %6967 = vst [vmem:[#allocation5_spill] sm:$0xff] %v6188_v12  ;;  %6969 = vst [vmem:[#allocation6_spill] sm:$0xff] %v6193_v39  ;;  %v6225_v38 = vsel %vm5309_vm6, %v5711_v45, %v843_v24 }
  0x9c   : > { %827 = vst [vmem:[#allocation2 + $0x140] sm:$0xff] %v6188_v12  ;;  %830 = vst [vmem:[#allocation2 + $0x148] sm:$0xff] %v6193_v39  ;;  %v6212_v39 = vsel %vm5309_vm6, %v6974_v30, %v837_v28  ;;  %v840_v12 = vld [vmem:[#allocation2 + $0x168] sm:$0xff]  ;;  %v6230_v28 = vsel %vm5309_vm6, %v5763_v36, %v846_v25  ;;  %v912_v25 = vld [vmem:[#allocation2 + $0x190] sm:$0xff] }
  0x9d   : > { %6971 = vst [vmem:[#allocation8_spill] sm:$0xff] %v6202_v31  ;;  %6973 = vst [vmem:[#allocation9_spill] sm:$0xff] %v6207_v40  ;;  %v6220_v49 = vsel %vm5309_vm6, %v6976_v57, %v840_v12  ;;  %v6978_v12 = vld [vmem:[#allocation4_spill] sm:$0xff]  ;;  %v871_v36 = vld [vmem:[#allocation2 + $0x1b8] sm:$0x1] }
  0x9e   : > { %6975 = vst [vmem:[#allocation10_spill] sm:$0xff] %v6212_v39  ;;  %867 = vst [vmem:[#allocation2 + $0x1a8] sm:$0x1] %v866_v3  ;;  %v906_v3 = vld [vmem:[#allocation2 + $0x180] sm:$0xff] }
  0x9f   : > { %833 = vst [vmem:[#allocation2 + $0x150] sm:$0xff] %v6202_v31  ;;  %836 = vst [vmem:[#allocation2 + $0x158] sm:$0xff] %v6207_v40  ;;  %v909_v31 = vld [vmem:[#allocation2 + $0x188] sm:$0xff]  ;;  %v868_v40 = vld [vmem:[#allocation2 + $0x1b0] sm:$0x1] }
  0xa0   : > { %839 = vst [vmem:[#allocation2 + $0x160] sm:$0xff] %v6212_v39  ;;  %6977 = vst [vmem:[#allocation11_spill] sm:$0xff] %v6230_v28  ;;  %v6238_v39 = vsel %vm5592_vm11, %v6978_v12, %v906_v3  ;;  %v6243_v24 = vsel %vm5592_vm11, %v5561_v32, %v909_v31  ;;  %v869_v18 = vsel %vm5501_vm9, 0, %v868_v40  ;;  %v915_v3 = vld [vmem:[#allocation2 + $0x198] sm:$0xff]  ;;  %v918_v12 = vld [vmem:[#allocation2 + $0x1a0] sm:$0xff]  ;;  %v872_v32 = vsel %vm5501_vm9, 0, %v871_v36 }
  0xa1   : > { %842 = vst [vmem:[#allocation2 + $0x168] sm:$0xff] %v6220_v49  ;;  %845 = vst [vmem:[#allocation2 + $0x170] sm:$0xff] %v6225_v38  ;;  %v6979_v31 = vld [vmem:[#allocation12_spill] sm:$0xff]  ;;  %v6262_v40 = vsel %vm5592_vm11, %v5633_v16, %v915_v3  ;;  %v6980_v36 = vld [vmem:[#allocation14_spill] sm:$0xff] }
  0xa2   : > { %848 = vst [vmem:[#allocation2 + $0x178] sm:$0xff] %v6230_v28  ;;  %908 = vst [vmem:[#allocation2 + $0x180] sm:$0xff] %v6238_v39  ;;  %v6252_v28 = vsel %vm5592_vm11, %v5577_v61, %v912_v25  ;;  %4517 = vmatmul.mubr.msk.bf16.gmra.mrb[8].mxu1 %vm460_vm1, %v6979_v31  ;;  %v6267_v61 = vsel %vm5592_vm11, %v5650_v46, %v918_v12  ;;  %v874_v25 = vld [vmem:[#allocation2 + $0x1c0] sm:$0x1]  ;;  %v877_v3 = vld [vmem:[#allocation2 + $0x1c8] sm:$0x1] }
  0xa3   : > { %911 = vst [vmem:[#allocation2 + $0x188] sm:$0xff] %v6243_v24  ;;  %870 = vst [vmem:[#allocation2 + $0x1b0] sm:$0x1] %v869_v18  ;;  %4520 = vmatprep.mubr.msk.bf16.mxu1 %vm460_vm1, %v6980_v36  ;;  %v6981_v18 = vld [vmem:[#allocation16_spill] sm:$0xff]  ;;  %v875_v34 = vsel %vm5501_vm9, 0, %v874_v25  ;;  %v878_v31 = vsel %vm5501_vm9, 0, %v877_v3 }
  0xa4   : > { %914 = vst [vmem:[#allocation2 + $0x190] sm:$0xff] %v6252_v28  ;;  %873 = vst [vmem:[#allocation2 + $0x1b8] sm:$0x1] %v872_v32  ;;  %4672 = vmatprep.mubr.msk.bf16.mxu0 %vm460_vm1, %v6981_v18  ;;  %v1182_v12 = vld [vmem:[#allocation2 + $0x400] sm:$0x80]  ;;  %v7001_v5 = vld [vmem:[#allocation6_spill] sm:$0xff] }
  0xa5   : > { %917 = vst [vmem:[#allocation2 + $0x198] sm:$0xff] %v6262_v40  ;;  %920 = vst [vmem:[#allocation2 + $0x1a0] sm:$0xff] %v6267_v61  ;;  %v921_v16 = vld [vmem:[#allocation2 + $0x1a8] sm:$0xff]  ;;  %v1183_v36 = vsel %vm5137_vm4, 0, %v1182_v12  ;;  %4673 = vmatmul.mubr.msk.bf16.gmra.mrb[28].mxu0 %vm460_vm1, %v5954_v33  ;;  %v6985_v3 = vld [vmem:[#allocation19_spill] sm:$0xff] }
  0xa6   : > { %v6280_v46 = vsel %vm5592_vm11, %v5701_v42, %v921_v16  ;;  %876 = vst [vmem:[#allocation2 + $0x1c0] sm:$0x1] %v875_v34  ;;  %v1185_v18 = vld [vmem:[#allocation2 + $0x408] sm:$0x80]  ;;  %879 = vst [vmem:[#allocation2 + $0x1c8] sm:$0x1] %v878_v31  ;;  %4678 = vmatprep.mubr.msk.bf16.mxu0 %vm460_vm1, %v6985_v3 }
  0xa7   : > { %6982 = vst [vmem:[#allocation4_spill] sm:$0xff] %v6280_v46  ;;  %923 = vst [vmem:[#allocation2 + $0x1a8] sm:$0xff] %v6280_v46  ;;  %v1186_v25 = vsel %vm5137_vm4, 0, %v1185_v18  ;;  %v6983_v46 = vld [vmem:[#allocation15_spill] sm:$0xff]  ;;  %v883_v31 = vld [vmem:[#allocation2 + $0x1d8] sm:$0x1] }
  0xa8   : > { %1184 = vst [vmem:[#allocation2 + $0x400] sm:$0x80] %v1183_v36  ;;  %1187 = vst [vmem:[#allocation2 + $0x408] sm:$0x80] %v1186_v25  ;;  %v6986_v3 = vld [vmem:[#allocation7_spill] sm:$0xff] }
  0xaa   : > { %v924_v32 = vld [vmem:[#allocation2 + $0x1b0] sm:$0xff]  ;;  %4521 = vmatmul.mubr.msk.bf16.gmra.mrb[12].mxu1 %vm460_vm1, %v6983_v46 }
  0xab   : > { %v6292_v42 = vsel %vm5592_vm11, %v5748_v58, %v924_v32  ;;  %v927_v16 = vld [vmem:[#allocation2 + $0x1b8] sm:$0xff]  ;;  %v6984_v58 = vld [vmem:[#allocation17_spill] sm:$0xff] }
  0xac   : > { %926 = vst [vmem:[#allocation2 + $0x1b0] sm:$0xff] %v6292_v42  ;;  %v6302_v34 = vsel %vm5592_vm11, %v5767_v60, %v927_v16  ;;  %4524 = vmatprep.mubr.msk.bf16.mxu1 %vm460_vm1, %v6984_v58  ;;  %v880_v46 = vld [vmem:[#allocation2 + $0x1d0] sm:$0x1]  ;;  %v1188_v60 = vld [vmem:[#allocation2 + $0x410] sm:$0x80]  ;;  %v884_v16 = vsel %vm5501_vm9, 0, %v883_v31 }
  0xad   : > { %929 = vst [vmem:[#allocation2 + $0x1b8] sm:$0xff] %v6302_v34  ;;  %v930_v12 = vld [vmem:[#allocation2 + $0x1c0] sm:$0xff]  ;;  %v881_v32 = vsel %vm5501_vm9, 0, %v880_v46  ;;  %v933_v33 = vld [vmem:[#allocation2 + $0x1c8] sm:$0xff]  ;;  %v1189_v25 = vsel %vm5137_vm4, 0, %v1188_v60  ;;  %v3113_v46 = vsel %vm1359_vm0, %v6986_v3, 0 }
  0xae   : > { %v6316_v36 = vsel %vm5592_vm11, %v5797_v41, %v930_v12  ;;  %882 = vst [vmem:[#allocation2 + $0x1d0] sm:$0x1] %v881_v32  ;;  %v1191_v58 = vld [vmem:[#allocation2 + $0x418] sm:$0x80]  ;;  %v6328_v41 = vsel %vm5592_vm11, %v5830_v63, %v933_v33  ;;  %885 = vst [vmem:[#allocation2 + $0x1d8] sm:$0x1] %v884_v16 }
  0xaf   : > { %v1230_v18 = vld [vmem:[#allocation2 + $0x400] sm:$0xff]  ;;  %932 = vst [vmem:[#allocation2 + $0x1c0] sm:$0xff] %v6316_v36  ;;  %v1233_v32 = vld [vmem:[#allocation2 + $0x408] sm:$0xff]  ;;  %1190 = vst [vmem:[#allocation2 + $0x410] sm:$0x80] %v1189_v25  ;;  %v1192_v31 = vsel %vm5137_vm4, 0, %v1191_v58 }
  0xb0   : > { %v6333_v12 = vsel %vm5309_vm6, %v5325_v21, %v1230_v18  ;;  %v6987_v60 = vld [vmem:[#allocation18_spill] sm:$0xff]  ;;  %v6342_v3 = vld [vmem:[%s6843_s3 + $0x10] sm:$0x3]  ;;  %935 = vst [vmem:[#allocation2 + $0x1c8] sm:$0xff] %v6328_v41  ;;  %v6349_v21 = vsel %vm5309_vm6, %v5375_v6, %v1233_v32  ;;  %1193 = vst [vmem:[#allocation2 + $0x418] sm:$0x80] %v1192_v31 }
  0xb1   : > { %1232 = vst [vmem:[#allocation2 + $0x400] sm:$0xff] %v6333_v12  ;;  %v6988_v63 = vld [vmem:[#allocation20_spill] sm:$0xff]  ;;  %v6989_v33 = vld [vmem:[#allocation21_spill] sm:$0xff]  ;;  %1235 = vst [vmem:[#allocation2 + $0x408] sm:$0xff] %v6349_v21 }
  0xb2   : > { %4525 = vmatmul.mubr.msk.bf16.gmra.mrb[16].mxu1 %vm460_vm1, %v6987_v60  ;;  %4679 = vmatmul.mubr.msk.bf16.vlgmr.msra.gmra.mrb[0].mxu0 %vm460_vm1, %v6988_v63  ;;  %v886_v18 = vld [vmem:[#allocation2 + $0x1e0] sm:$0x1]  ;;  %v889_v25 = vld [vmem:[#allocation2 + $0x1e8] sm:$0x1]  ;;  %v1194_v58 = vld [vmem:[#allocation2 + $0x420] sm:$0x80] }
  0xb3   : > { %4528 = vmatprep.mubr.msk.bf16.mxu1 %vm460_vm1, %v6989_v33  ;;  %4711 = vmatpush3.bf16.msra.mxu0 %v3113_v46  ;;  %v887_v6 = vsel %vm5501_vm9, 0, %v886_v18  ;;  %v1195_v60 = vsel %vm5137_vm4, 0, %v1194_v58  ;;  %v1197_v63 = vld [vmem:[#allocation2 + $0x428] sm:$0x80] }
  0xb4   : > { %4682 = vmatprep.mubr.msk.bf16.mxu0 %vm460_vm1, %v5936_v50  ;;  %5045 = vmatprep.subr.msk.bf16.mxu0 %vm1359_vm0, %v6342_v3  ;;  %888 = vst [vmem:[#allocation2 + $0x1e0] sm:$0x1] %v887_v6  ;;  %v890_v50 = vsel %vm5501_vm9, 0, %v889_v25  ;;  %1196 = vst [vmem:[#allocation2 + $0x420] sm:$0x80] %v1195_v60  ;;  %v6991_v6 = vld [vmem:[#allocation24_spill] sm:$0xff] }
  0xb5   : > { %v936_v16 = vld [vmem:[#allocation2 + $0x1d0] sm:$0xff]  ;;  %v939_v31 = vld [vmem:[#allocation2 + $0x1d8] sm:$0xff]  ;;  %891 = vst [vmem:[#allocation2 + $0x1e8] sm:$0x1] %v890_v50 }
  0xb6   : > { %v6365_v32 = vsel %vm5592_vm11, %v5834_v22, %v936_v16  ;;  %v1236_v46 = vld [vmem:[#allocation2 + $0x410] sm:$0xff]  ;;  %v6375_v33 = vsel %vm5592_vm11, %v5865_v26, %v939_v31  ;;  %v1198_v16 = vsel %vm5137_vm4, 0, %v1197_v63  ;;  %v6992_v25 = vld [vmem:[#allocation26_spill] sm:$0xff] }
  0xb7   : > { %938 = vst [vmem:[#allocation2 + $0x1d0] sm:$0xff] %v6365_v32  ;;  %v6380_v22 = vsel %vm5309_vm6, %v5391_v17, %v1236_v46  ;;  %v1239_v18 = vld [vmem:[#allocation2 + $0x418] sm:$0xff]  ;;  %941 = vst [vmem:[#allocation2 + $0x1d8] sm:$0xff] %v6375_v33  ;;  %v6990_v17 = vld [vmem:[#allocation23_spill] sm:$0xff] }
  0xb8   : > { %1238 = vst [vmem:[#allocation2 + $0x410] sm:$0xff] %v6380_v22  ;;  %v6391_v26 = vsel %vm5309_vm6, %v5447_v20, %v1239_v18  ;;  %1199 = vst [vmem:[#allocation2 + $0x428] sm:$0x80] %v1198_v16  ;;  %v895_v46 = vld [vmem:[#allocation2 + $0x1f8] sm:$0x1] }
  0xb9   : > { %1241 = vst [vmem:[#allocation2 + $0x418] sm:$0xff] %v6391_v26  ;;  %v1200_v20 = vld [vmem:[#allocation2 + $0x430] sm:$0x80]  ;;  %v896_v18 = vsel %vm5501_vm9, 0, %v895_v46 }
  0xba   : > { %4529 = vmatmul.mubr.msk.bf16.gmra.mrb[20].mxu1 %vm460_vm1, %v5923_v11  ;;  %4683 = vmatmul.mubr.msk.bf16.gmra.mrb[4].mxu0 %vm460_vm1, %v6990_v17  ;;  %v892_v11 = vld [vmem:[#allocation2 + $0x1f0] sm:$0x1]  ;;  %v1201_v16 = vsel %vm5137_vm4, 0, %v1200_v20  ;;  %v1203_v17 = vld [vmem:[#allocation2 + $0x438] sm:$0x80] }
  0xbb   : > { %4532 = vmatprep.mubr.msk.bf16.mxu1 %vm460_vm1, %v6991_v6  ;;  %4686 = vmatprep.mubr.msk.bf16.mxu0 %vm460_vm1, %v6992_v25  ;;  %v942_v58 = vld [vmem:[#allocation2 + $0x1e0] sm:$0xff]  ;;  %v893_v31 = vsel %vm5501_vm9, 0, %v892_v11  ;;  %897 = vst [vmem:[#allocation2 + $0x1f8] sm:$0x1] %v896_v18  ;;  %1202 = vst [vmem:[#allocation2 + $0x430] sm:$0x80] %v1201_v16 }
  0xbc   : > { %v6405_v50 = vsel %vm5592_vm11, %v5906_v44, %v942_v58  ;;  %v945_v60 = vld [vmem:[#allocation2 + $0x1e8] sm:$0xff]  ;;  %v1242_v63 = vld [vmem:[#allocation2 + $0x420] sm:$0xff]  ;;  %894 = vst [vmem:[#allocation2 + $0x1f0] sm:$0x1] %v893_v31  ;;  %v1204_v48 = vsel %vm5137_vm4, 0, %v1203_v17  ;;  %v6993_v11 = vld [vmem:[#allocation25_spill] sm:$0xff] }
  0xbd   : > { %944 = vst [vmem:[#allocation2 + $0x1e0] sm:$0xff] %v6405_v50  ;;  %v6415_v6 = vsel %vm5592_vm11, %v5927_v55, %v945_v60  ;;  %v6420_v44 = vsel %vm5309_vm6, %v5465_v43, %v1242_v63  ;;  %1205 = vst [vmem:[#allocation2 + $0x438] sm:$0x80] %v1204_v48  ;;  %v1736_v43 = vld [vmem:[#allocation2 + $0x100] sm:$0xff]  ;;  %v1209_v60 = vld [vmem:[#allocation2 + $0x448] sm:$0x80] }
  0xbe   : > { %947 = vst [vmem:[#allocation2 + $0x1e8] sm:$0xff] %v6415_v6  ;;  %1244 = vst [vmem:[#allocation2 + $0x420] sm:$0xff] %v6420_v44  ;;  %v1206_v31 = vld [vmem:[#allocation2 + $0x440] sm:$0x80]  ;;  %v1210_v63 = vsel %vm5137_vm4, 0, %v1209_v60  ;;  %v6998_v60 = vld [vmem:[#allocation22_spill] sm:$0xff] }
  0xbf   : > { %v1245_v25 = vld [vmem:[#allocation2 + $0x428] sm:$0xff]  ;;  %1211 = vst [vmem:[#allocation2 + $0x448] sm:$0x80] %v1210_v63  ;;  %v1215_v18 = vld [vmem:[#allocation2 + $0x458] sm:$0x80]  ;;  %v7000_v63 = vld [vmem:[#allocation5_spill] sm:$0xff] }
  0xc0   : > { %v6431_v55 = vsel %vm5309_vm6, %v5487_v27, %v1245_v25  ;;  %v1216_v17 = vsel %vm5137_vm4, 0, %v1215_v18  ;;  %v3049_v18 = vld [vmem:[#allocation2 + $0x398] sm:$0xff] }
  0xc1   : > { %1247 = vst [vmem:[#allocation2 + $0x428] sm:$0xff] %v6431_v55  ;;  %1217 = vst [vmem:[#allocation2 + $0x458] sm:$0x80] %v1216_v17  ;;  %v7003_v17 = vld [vmem:[#allocation9_spill] sm:$0xff] }
  0xc2   : > { %4533 = vmatmul.mubr.msk.bf16.gmra.mrb[24].mxu1 %vm460_vm1, %v6993_v11  ;;  %4687 = vmatmul.mubr.msk.bf16.gmra.mrb[8].mxu0 %vm460_vm1, %v5997_v35  ;;  %v951_v46 = vld [vmem:[#allocation2 + $0x1f8] sm:$0xff]  ;;  %v1248_v20 = vld [vmem:[#allocation2 + $0x430] sm:$0xff]  ;;  %v1207_v35 = vsel %vm5137_vm4, 0, %v1206_v31  ;;  %v6995_v31 = vld [vmem:[#allocation27_spill] sm:$0xff] }
  0xc3   : > { %4536 = vmatprep.mubr.msk.bf16.mxu1 %vm460_vm1, %v6023_v23  ;;  %4690 = vmatprep.mubr.msk.bf16.mxu0 %vm460_vm1, %v6056_v13  ;;  %v948_v58 = vld [vmem:[#allocation2 + $0x1f0] sm:$0xff]  ;;  %v6451_v23 = vsel %vm5592_vm11, %v6065_v62, %v951_v46  ;;  %v6456_v13 = vsel %vm5309_vm6, %v6966_v19, %v1248_v20  ;;  %1208 = vst [vmem:[#allocation2 + $0x440] sm:$0x80] %v1207_v35  ;;  %v2065_v62 = vsel %vm1359_vm0, %v6002_v0, 0  ;;  %v2799_v46 = vld [vmem:[#allocation2 + $0x378] sm:$0xff]  ;;  %v3046_v35 = vld [vmem:[#allocation2 + $0x380] sm:$0xff] }
  0xc4   : > { %v6443_v27 = vsel %vm5592_vm11, %v5945_v15, %v948_v58  ;;  %v1251_v15 = vld [vmem:[#allocation2 + $0x438] sm:$0xff]  ;;  %953 = vst [vmem:[#allocation2 + $0x1f8] sm:$0xff] %v6451_v23  ;;  %1250 = vst [vmem:[#allocation2 + $0x430] sm:$0xff] %v6456_v13 }
  0xc5   : > { %950 = vst [vmem:[#allocation2 + $0x1f0] sm:$0xff] %v6443_v27  ;;  %v6467_v1 = vsel %vm5309_vm6, %v6968_v10, %v1251_v15  ;;  %v6999_v15 = vld [vmem:[#allocation29_spill] sm:$0xff] }
  0xc6   : > { %1253 = vst [vmem:[#allocation2 + $0x438] sm:$0xff] %v6467_v1  ;;  %v1257_v16 = vld [vmem:[#allocation2 + $0x448] sm:$0xff] }
  0xc7   : > { %v6492_v0 = vsel %vm5309_vm6, %v6972_v59, %v1257_v16  ;;  %v3050_v16 = vld [vmem:[#allocation2 + $0x3a0] sm:$0xff] }
  0xc8   : > { %1259 = vst [vmem:[#allocation2 + $0x448] sm:$0xff] %v6492_v0 }
  0xca   : > { %4537 = vmatmul.mubr.msk.bf16.gmra.mrb[28].mxu1 %vm460_vm1, %v6028_v53  ;;  %4691 = vmatmul.mubr.msk.bf16.gmra.mrb[12].mxu0 %vm460_vm1, %v6061_v4  ;;  %v1212_v53 = vld [vmem:[#allocation2 + $0x450] sm:$0x80]  ;;  %v1254_v19 = vld [vmem:[#allocation2 + $0x440] sm:$0xff] }
  0xcb   : > { %4542 = vmatprep.mubr.msk.bf16.mxu1 %vm460_vm1, %v1736_v43  ;;  %4694 = vmatprep.mubr.msk.bf16.mxu0 %vm460_vm1, %v6086_v14  ;;  %v1213_v10 = vsel %vm5137_vm4, 0, %v1212_v53  ;;  %v6482_v4 = vsel %vm5309_vm6, %v6970_v47, %v1254_v19  ;;  %v1218_v14 = vld [vmem:[#allocation2 + $0x460] sm:$0x80]  ;;  %v3047_v53 = vld [vmem:[#allocation2 + $0x388] sm:$0xff]  ;;  %v3048_v19 = vld [vmem:[#allocation2 + $0x390] sm:$0xff] }
  0xcc   : > { %1214 = vst [vmem:[#allocation2 + $0x450] sm:$0x80] %v1213_v10  ;;  %1256 = vst [vmem:[#allocation2 + $0x440] sm:$0xff] %v6482_v4  ;;  %v1219_v59 = vsel %vm5137_vm4, 0, %v1218_v14  ;;  %v7002_v10 = vld [vmem:[#allocation8_spill] sm:$0xff]  ;;  %v3052_v14 = vld [vmem:[#allocation2 + $0x3b0] sm:$0xff] }
  0xcd   : > { %1220 = vst [vmem:[#allocation2 + $0x460] sm:$0x80] %v1219_v59  ;;  %v3054_v59 = vld [vmem:[#allocation2 + $0x3c0] sm:$0xff] }
  0xd2   : > { %4543 = vmatmul.mubr.msk.bf16.vlgmr.msra.gmra.mrb[0].mxu1 %vm460_vm1, %v6072_v56  ;;  %4695 = vmatmul.mubr.msk.bf16.gmra.mrb[16].mxu0 %vm460_vm1, %v6098_v37  ;;  %v5055_v56 = vld [vmem:[%s6843_s3 + $0x8] sm:$0x3]  ;;  %v1221_v37 = vld [vmem:[#allocation2 + $0x468] sm:$0x80] }
  0xd3   : > { %4575 = vmatpush3.bf16.msra.mxu1 %v2065_v62  ;;  %4546 = vmatprep.mubr.msk.bf16.mxu1 %vm460_vm1, %v6103_v52  ;;  %v1260_v47 = vld [vmem:[#allocation2 + $0x450] sm:$0xff]  ;;  %v1263_v52 = vld [vmem:[#allocation2 + $0x458] sm:$0xff]  ;;  %v3375_v62 = vsel %vm1359_vm0, %v6342_v3, 0 }
  0xd4   : > { %4698 = vmatprep.mubr.msk.bf16.mxu0 %vm460_vm1, %v6119_v54  ;;  %5041 = vmatprep.subr.msk.bf16.mxu1 %vm1359_vm0, %v5055_v56  ;;  %v6510_v25 = vsel %vm5309_vm6, %v6974_v30, %v1260_v47  ;;  %v1222_v54 = vsel %vm5137_vm4, 0, %v1221_v37  ;;  %v6520_v48 = vsel %vm5309_vm6, %v6976_v57, %v1263_v52  ;;  %v1266_v30 = vld [vmem:[#allocation2 + $0x460] sm:$0xff]  ;;  %v7004_v3 = vld [vmem:[#allocation10_spill] sm:$0xff]  ;;  %v3051_v56 = vld [vmem:[#allocation2 + $0x3a8] sm:$0xff] }
  0xd5   : > { %1262 = vst [vmem:[#allocation2 + $0x450] sm:$0xff] %v6510_v25  ;;  %1223 = vst [vmem:[#allocation2 + $0x468] sm:$0x80] %v1222_v54  ;;  %v6534_v57 = vsel %vm5309_vm6, %v5711_v45, %v1266_v30  ;;  %v6996_v45 = vld [vmem:[#allocation28_spill] sm:$0xff]  ;;  %v3053_v47 = vld [vmem:[#allocation2 + $0x3b8] sm:$0xff] }
  0xd6   : > { %1265 = vst [vmem:[#allocation2 + $0x458] sm:$0xff] %v6520_v48  ;;  %1268 = vst [vmem:[#allocation2 + $0x460] sm:$0xff] %v6534_v57  ;;  %v7005_v37 = vld [vmem:[#allocation11_spill] sm:$0xff]  ;;  %v3056_v52 = vld [vmem:[#allocation2 + $0x3d0] sm:$0xff] }
  0xd7   : > { %v3057_v54 = vld [vmem:[#allocation2 + $0x3d8] sm:$0xff]  ;;  %v7007_v30 = vld [vmem:[#allocation4_spill] sm:$0xff] }
  0xda   : > { %4547 = vmatmul.mubr.msk.bf16.gmra.mrb[4].mxu1 %vm460_vm1, %v6114_v9  ;;  %4699 = vmatmul.mubr.msk.bf16.gmra.mrb[20].mxu0 %vm460_vm1, %v6124_v51  ;;  %v1224_v9 = vld [vmem:[#allocation2 + $0x470] sm:$0x80]  ;;  %v1227_v51 = vld [vmem:[#allocation2 + $0x478] sm:$0x80] }
  0xdb   : > { %4550 = vmatprep.mubr.msk.bf16.mxu1 %vm460_vm1, %v6134_v8  ;;  %4702 = vmatprep.mubr.msk.bf16.mxu0 %vm460_vm1, %v6152_v29  ;;  %v1225_v11 = vsel %vm5137_vm4, 0, %v1224_v9  ;;  %v6994_v8 = vld [vmem:[#allocation13_spill] sm:$0xff]  ;;  %v1228_v58 = vsel %vm5137_vm4, 0, %v1227_v51  ;;  %v3058_v9 = vld [vmem:[#allocation2 + $0x3e0] sm:$0xff] }
  0xdc   : > { %v1269_v43 = vld [vmem:[#allocation2 + $0x468] sm:$0xff]  ;;  %1226 = vst [vmem:[#allocation2 + $0x470] sm:$0x80] %v1225_v11  ;;  %1229 = vst [vmem:[#allocation2 + $0x478] sm:$0x80] %v1228_v58 }
  0xdd   : > { %v6542_v29 = vsel %vm5309_vm6, %v6994_v8, %v1269_v43 }
  0xde   : > { %1271 = vst [vmem:[#allocation2 + $0x468] sm:$0xff] %v6542_v29 }
  0xe2   : > { %4551 = vmatmul.mubr.msk.bf16.gmra.mrb[8].mxu1 %vm460_vm1, %v6139_v2  ;;  %4703 = vmatmul.mubr.msk.bf16.gmra.mrb[24].mxu0 %vm460_vm1, %v6995_v31  ;;  %v6997_v2 = vld [vmem:[#allocation30_spill] sm:$0xff] }
  0xe3   : > { %4554 = vmatprep.mubr.msk.bf16.mxu1 %vm460_vm1, %v6996_v45  ;;  %4706 = vmatprep.mubr.msk.bf16.mxu0 %vm460_vm1, %v6997_v2  ;;  %v1272_v20 = vld [vmem:[#allocation2 + $0x470] sm:$0xff] }
  0xe4   : > { %v6556_v7 = vsel %vm5309_vm6, %v6998_v60, %v1272_v20 }
  0xe5   : > { %1274 = vst [vmem:[#allocation2 + $0x470] sm:$0xff] %v6556_v7 }
  0xea   : > { %4555 = vmatmul.mubr.msk.bf16.gmra.mrb[12].mxu1 %vm460_vm1, %v6999_v15  ;;  %4707 = vmatmul.mubr.msk.bf16.gmra.mrb[28].mxu0 %vm460_vm1, %v2799_v46 }
  0xeb   : > { %4558 = vmatprep.mubr.msk.bf16.mxu1 %vm460_vm1, %v7000_v63  ;;  %4712 = vmatprep.mubr.msk.bf16.mxu0 %vm460_vm1, %v3046_v35 }
  0xf2   : > { %4559 = vmatmul.mubr.msk.bf16.gmra.mrb[16].mxu1 %vm460_vm1, %v7001_v5  ;;  %4713 = vmatmul.mubr.msk.bf16.vlgmr.msra.gmra.mrb[0].mxu0 %vm460_vm1, %v3047_v53 }
  0xf3   : > { %4562 = vmatprep.mubr.msk.bf16.mxu1 %vm460_vm1, %v7002_v10  ;;  %4745 = vmatpush3.bf16.msra.mxu0 %v3375_v62 }
  0xf4   : > { %4716 = vmatprep.mubr.msk.bf16.mxu0 %vm460_vm1, %v3048_v19 }
  0xfa   : > { %4563 = vmatmul.mubr.msk.bf16.gmra.mrb[20].mxu1 %vm460_vm1, %v7003_v17  ;;  %4717 = vmatmul.mubr.msk.bf16.gmra.mrb[4].mxu0 %vm460_vm1, %v3049_v18 }
  0xfb   : > { %4566 = vmatprep.mubr.msk.bf16.mxu1 %vm460_vm1, %v7004_v3  ;;  %4720 = vmatprep.mubr.msk.bf16.mxu0 %vm460_vm1, %v3050_v16 }
 0x102   : > { %4567 = vmatmul.mubr.msk.bf16.gmra.mrb[24].mxu1 %vm460_vm1, %v6220_v49  ;;  %4721 = vmatmul.mubr.msk.bf16.gmra.mrb[8].mxu0 %vm460_vm1, %v3051_v56  ;;  %v3055_v49 = vld [vmem:[#allocation2 + $0x3c8] sm:$0xff] }
 0x103   : > { %4570 = vmatprep.mubr.msk.bf16.mxu1 %vm460_vm1, %v6225_v38  ;;  %4724 = vmatprep.mubr.msk.bf16.mxu0 %vm460_vm1, %v3052_v14  ;;  %v7006_v38 = vld [vmem:[#allocation3_spill] sm:$0xff] }
 0x10a   : > { %4571 = vmatmul.mubr.msk.bf16.gmra.mrb[28].mxu1 %vm460_vm1, %v7005_v37  ;;  %4725 = vmatmul.mubr.msk.bf16.gmra.mrb[12].mxu0 %vm460_vm1, %v3053_v47 }
 0x10b   : > { %4576 = vmatprep.mubr.msk.bf16.mxu1 %vm460_vm1, %v6238_v39  ;;  %4728 = vmatprep.mubr.msk.bf16.mxu0 %vm460_vm1, %v3054_v59  ;;  %v3059_v39 = vld [vmem:[#allocation2 + $0x3e8] sm:$0xff] }
 0x112   : > { %4577 = vmatmul.mubr.msk.bf16.vlgmr.msra.gmra.mrb[0].mxu1 %vm460_vm1, %v6243_v24  ;;  %4729 = vmatmul.mubr.msk.bf16.gmra.mrb[16].mxu0 %vm460_vm1, %v3055_v49  ;;  %v3060_v24 = vld [vmem:[#allocation2 + $0x3f0] sm:$0xff] }
 0x113   : > { %4779 = vmatpush3.bf16.msra.mxu1 %v7006_v38  ;;  %4580 = vmatprep.mubr.msk.bf16.mxu1 %vm460_vm1, %v6252_v28  ;;  %v3061_v28 = vld [vmem:[#allocation2 + $0x3f8] sm:$0xff] }
 0x114   : > { %4732 = vmatprep.mubr.msk.bf16.mxu0 %vm460_vm1, %v3056_v52 }
 0x11a   : > { %4581 = vmatmul.mubr.msk.bf16.gmra.mrb[4].mxu1 %vm460_vm1, %v6262_v40  ;;  %4733 = vmatmul.mubr.msk.bf16.gmra.mrb[20].mxu0 %vm460_vm1, %v3057_v54  ;;  %v2268_v40 = vld [vmem:[#allocation2 + $0x240] sm:$0xff] }
 0x11b   : > { %4584 = vmatprep.mubr.msk.bf16.mxu1 %vm460_vm1, %v6267_v61  ;;  %4736 = vmatprep.mubr.msk.bf16.mxu0 %vm460_vm1, %v3058_v9  ;;  %v2269_v61 = vld [vmem:[#allocation2 + $0x248] sm:$0xff] }
 0x122   : > { %4585 = vmatmul.mubr.msk.bf16.gmra.mrb[8].mxu1 %vm460_vm1, %v7007_v30  ;;  %4737 = vmatmul.mubr.msk.bf16.gmra.mrb[24].mxu0 %vm460_vm1, %v3059_v39 }
 0x123   : > { %4588 = vmatprep.mubr.msk.bf16.mxu1 %vm460_vm1, %v6292_v42  ;;  %4740 = vmatprep.mubr.msk.bf16.mxu0 %vm460_vm1, %v3060_v24  ;;  %v2270_v42 = vld [vmem:[#allocation2 + $0x250] sm:$0xff] }
 0x12a   : > { %4589 = vmatmul.mubr.msk.bf16.gmra.mrb[12].mxu1 %vm460_vm1, %v6302_v34  ;;  %4741 = vmatmul.mubr.msk.bf16.gmra.mrb[28].mxu0 %vm460_vm1, %v3061_v28  ;;  %v2271_v34 = vld [vmem:[#allocation2 + $0x258] sm:$0xff] }
 0x12b   : > { %4592 = vmatprep.mubr.msk.bf16.mxu1 %vm460_vm1, %v6316_v36  ;;  %4746 = vmatprep.mubr.msk.bf16.mxu0 %vm460_vm1, %v6333_v12  ;;  %v2272_v36 = vld [vmem:[#allocation2 + $0x260] sm:$0xff]  ;;  %v2274_v12 = vld [vmem:[#allocation2 + $0x270] sm:$0xff] }
 0x132   : > { %4593 = vmatmul.mubr.msk.bf16.gmra.mrb[16].mxu1 %vm460_vm1, %v6328_v41  ;;  %4747 = vmatmul.mubr.msk.bf16.vlgmr.msra.gmra.mrb[0].mxu0 %vm460_vm1, %v6349_v21  ;;  %v2273_v41 = vld [vmem:[#allocation2 + $0x268] sm:$0xff]  ;;  %v2275_v21 = vld [vmem:[#allocation2 + $0x278] sm:$0xff] }
 0x133   : > { %4596 = vmatprep.mubr.msk.bf16.mxu1 %vm460_vm1, %v6365_v32  ;;  %4750 = vmatprep.mubr.msk.bf16.mxu0 %vm460_vm1, %v6380_v22  ;;  %v3323_v32 = vld [vmem:[#allocation2 + $0x478] sm:$0xff] }
 0x13a   : > { %4597 = vmatmul.mubr.msk.bf16.gmra.mrb[20].mxu1 %vm460_vm1, %v6375_v33  ;;  %4751 = vmatmul.mubr.msk.bf16.gmra.mrb[4].mxu0 %vm460_vm1, %v6391_v26 }
 0x13b   : > { %4600 = vmatprep.mubr.msk.bf16.mxu1 %vm460_vm1, %v6405_v50  ;;  %4754 = vmatprep.mubr.msk.bf16.mxu0 %vm460_vm1, %v6420_v44 }
 0x142   : > { %4601 = vmatmul.mubr.msk.bf16.gmra.mrb[24].mxu1 %vm460_vm1, %v6415_v6  ;;  %4755 = vmatmul.mubr.msk.bf16.gmra.mrb[8].mxu0 %vm460_vm1, %v6431_v55 }
 0x143   : > { %4604 = vmatprep.mubr.msk.bf16.mxu1 %vm460_vm1, %v6443_v27  ;;  %4758 = vmatprep.mubr.msk.bf16.mxu0 %vm460_vm1, %v6456_v13 }
 0x14a   : > { %4605 = vmatmul.mubr.msk.bf16.gmra.mrb[28].mxu1 %vm460_vm1, %v6451_v23  ;;  %4759 = vmatmul.mubr.msk.bf16.gmra.mrb[12].mxu0 %vm460_vm1, %v6467_v1 }
 0x14b   : > { %4626 = vmatprep.mubr.msk.bf16.mxu1 %vm460_vm1, %v2268_v40  ;;  %4762 = vmatprep.mubr.msk.bf16.mxu0 %vm460_vm1, %v6482_v4 }
 0x152   : > { %4627 = vmatmul.mubr.msk.bf16.vlgmr.msra.gmra.mrb[16].mxu1 %vm460_vm1, %v2269_v61  ;;  %4763 = vmatmul.mubr.msk.bf16.gmra.mrb[16].mxu0 %vm460_vm1, %v6492_v0 }
 0x153   : > { %4630 = vmatprep.mubr.msk.bf16.mxu1 %vm460_vm1, %v2270_v42  ;;  %4766 = vmatprep.mubr.msk.bf16.mxu0 %vm460_vm1, %v6510_v25 }
 0x15a   : > { %4631 = vmatmul.mubr.msk.bf16.gmra.mrb[20].mxu1 %vm460_vm1, %v2271_v34  ;;  %4767 = vmatmul.mubr.msk.bf16.gmra.mrb[20].mxu0 %vm460_vm1, %v6520_v48 }
 0x15b   : > { %4634 = vmatprep.mubr.msk.bf16.mxu1 %vm460_vm1, %v2272_v36  ;;  %4770 = vmatprep.mubr.msk.bf16.mxu0 %vm460_vm1, %v6534_v57 }
 0x162   : > { %4635 = vmatmul.mubr.msk.bf16.gmra.mrb[24].mxu1 %vm460_vm1, %v2273_v41  ;;  %4771 = vmatmul.mubr.msk.bf16.gmra.mrb[24].mxu0 %vm460_vm1, %v6542_v29 }
 0x163   : > { %4638 = vmatprep.mubr.msk.bf16.mxu1 %vm460_vm1, %v2274_v12  ;;  %4774 = vmatprep.mubr.msk.bf16.mxu0 %vm460_vm1, %v6556_v7 }
 0x16a   : > { %4639 = vmatmul.mubr.msk.bf16.gmra.mrb[28].mxu1 %vm460_vm1, %v2275_v21  ;;  %4775 = vmatmul.mubr.msk.bf16.gmra.mrb[28].mxu0 %vm460_vm1, %v3323_v32 }
 0x1e5   : > { %v4578_v33 = vpop.f32.mrb[0].mxu1 }
 0x1e6   : > { %v2101_v22 = vpop.f32.mrb[1].mxu1 }
 0x1e7   : > { %v4579_v26 = vpop.f32.mrb[2].mxu1 }
 0x1e8   : > { %v2104_v50 = vpop.f32.mrb[3].mxu1 }
 0x1ed   : > { %v4582_v6 = vpop.f32.mrb[4].mxu1 }
 0x1ee   : > { %v2117_v44 = vpop.f32.mrb[5].mxu1 }
 0x1ef   : > { %v4583_v55 = vpop.f32.mrb[6].mxu1 }
 0x1f0   : > { %v2120_v27 = vpop.f32.mrb[7].mxu1 }
 0x1f5   : > { %v6668_v23 = vpop.f32.mrb[8].mxu1 }
 0x1f6   : > { %v6670_v13 = vpop.f32.mrb[9].mxu1 }
 0x1f7   : > { %v6672_v1 = vpop.f32.mrb[10].mxu1 }
 0x1f8   : > { %v6674_v4 = vpop.f32.mrb[11].mxu1 }
 0x1fd   : > { %v6676_v0 = vpop.f32.mrb[12].mxu1 }
 0x1fe   : > { %v6678_v25 = vpop.f32.mrb[13].mxu1 }
 0x1ff   : > { %v6680_v48 = vpop.f32.mrb[14].mxu1 }
 0x200   : > { %v6682_v11 = vpop.f32.mrb[15].mxu1 }
 0x205   : > { %v4748_v57 = vpop.f32.mrb[0].mxu0 }
 0x206   : > { %v4780_v43 = vadd.f32 %v4748_v57, %v4578_v33  ;;  %v3411_v51 = vpop.f32.mrb[1].mxu0 }
 0x207   : > { %v4781_v8 = vadd.f32 %v3411_v51, %v2101_v22  ;;  %v4749_v29 = vpop.f32.mrb[2].mxu0 }
 0x208   : > { %v4210_v58 = vpack.c.bf16 %v4780_v43, %v4780_v43  ;;  %v4782_v31 = vadd.f32 %v4749_v29, %v4579_v26  ;;  %v3414_v45 = vpop.f32.mrb[3].mxu0  ;;  %v3804_v35 = vmul.f32 %v4780_v43, %v4780_v43  ;;  %v3734_v5 = vsel %vm460_vm1, %v4780_v43, 0.0 }
 0x209   : > { %v4208_v2 = vpack.c.bf16 %v4781_v8, %v4781_v8  ;;  %v3802_v46 = vmul.f32 %v4781_v8, %v4781_v8  ;;  %v4783_v20 = vadd.f32 %v3414_v45, %v2104_v50  ;;  %v3731_v7 = vsel %vm460_vm1, %v4781_v8, 0.0 }
 0x20a   : > { %3701 = vst.msk [vmem:[%s6689_s8 + $0x8] sm:$0xf] %vm3698_vm12, %v4210_v58  ;;  %v4211_v60 = vpack.c.bf16 %v4782_v31, %v4782_v31  ;;  %v3805_v62 = vmul.f32 %v4782_v31, %v4782_v31  ;;  %v3837_v47 = vsel %vm460_vm1, %v3804_v35, 0.0  ;;  %v3736_v49 = vsel %vm460_vm1, %v4782_v31, 0.0 }
 0x20b   : > { %3699 = vst.msk [vmem:[%s6689_s8] sm:$0xf] %vm3698_vm12, %v4208_v2  ;;  %v4209_v15 = vpack.c.bf16 %v4783_v20, %v4783_v20  ;;  %v3732_v63 = vsel %vm460_vm1, %v4783_v20, 0.0  ;;  %v3803_v53 = vmul.f32 %v4783_v20, %v4783_v20  ;;  %v3834_v10 = vsel %vm460_vm1, %v3802_v46, 0.0 }
 0x20c   : > { %3702 = vst.msk [vmem:[%s6689_s8 + $0xc] sm:$0xf] %vm3698_vm12, %v4211_v60  ;;  %v3733_v19 = vadd.f32 %v3732_v63, %v3731_v7  ;;  %v3839_v52 = vsel %vm460_vm1, %v3805_v62, 0.0 }
 0x20d   : > { %3700 = vst.msk [vmem:[%s6689_s8 + $0x4] sm:$0xf] %vm3698_vm12, %v4209_v15  ;;  %v3835_v18 = vsel %vm460_vm1, %v3803_v53, 0.0  ;;  %v4752_v16 = vpop.f32.mrb[4].mxu0 }
 0x20e   : > { %v3735_v17 = vadd.f32 %v3734_v5, %v3733_v19  ;;  %v3836_v3 = vadd.f32 %v3835_v18, %v3834_v10  ;;  %v4784_v56 = vadd.f32 %v4752_v16, %v4582_v6  ;;  %v3427_v14 = vpop.f32.mrb[5].mxu0 }
 0x20f   : > { %v4785_v59 = vadd.f32 %v3427_v14, %v2117_v44  ;;  %v4753_v37 = vpop.f32.mrb[6].mxu0 }
 0x210   : > { %v3838_v38 = vadd.f32 %v3837_v47, %v3836_v3  ;;  %v4214_v54 = vpack.c.bf16 %v4784_v56, %v4784_v56  ;;  %v3430_v9 = vpop.f32.mrb[7].mxu0  ;;  %v3737_v24 = vadd.f32 %v3736_v49, %v3735_v17  ;;  %v4786_v61 = vadd.f32 %v4753_v37, %v4583_v55 }
 0x211   : > { %v4212_v39 = vpack.c.bf16 %v4785_v59, %v4785_v59  ;;  %v3738_v30 = vsel %vm460_vm1, %v4785_v59, 0.0  ;;  %v3806_v28 = vmul.f32 %v4785_v59, %v4785_v59  ;;  %v4787_v42 = vadd.f32 %v3430_v9, %v2120_v27 }
 0x212   : > { %3705 = vst.msk [vmem:[%s6689_s8 + $0x18] sm:$0xf] %vm3698_vm12, %v4214_v54  ;;  %v3840_v40 = vadd.f32 %v3839_v52, %v3838_v38  ;;  %v3739_v34 = vadd.f32 %v3738_v30, %v3737_v24  ;;  %v3808_v41 = vmul.f32 %v4784_v56, %v4784_v56  ;;  %v4215_v21 = vpack.c.bf16 %v4786_v61, %v4786_v61 }
 0x213   : > { %3703 = vst.msk [vmem:[%s6689_s8 + $0x10] sm:$0xf] %vm3698_vm12, %v4212_v39  ;;  %v3841_v36 = vsel %vm460_vm1, %v3806_v28, 0.0  ;;  %v4213_v32 = vpack.c.bf16 %v4787_v42, %v4787_v42  ;;  %v3740_v33 = vsel %vm460_vm1, %v4787_v42, 0.0  ;;  %v3807_v22 = vmul.f32 %v4787_v42, %v4787_v42 }
 0x214   : > { %v3842_v12 = vadd.f32 %v3841_v36, %v3840_v40  ;;  %3706 = vst.msk [vmem:[%s6689_s8 + $0x1c] sm:$0xf] %vm3698_vm12, %v4215_v21  ;;  %v3741_v50 = vadd.f32 %v3740_v33, %v3739_v34  ;;  %v3742_v55 = vsel %vm460_vm1, %v4784_v56, 0.0  ;;  %v3809_v27 = vmul.f32 %v4786_v61, %v4786_v61 }
 0x215   : > { %v4756_v26 = vpop.f32.mrb[8].mxu0  ;;  %3704 = vst.msk [vmem:[%s6689_s8 + $0x14] sm:$0xf] %vm3698_vm12, %v4213_v32  ;;  %v3843_v57 = vsel %vm460_vm1, %v3807_v22, 0.0  ;;  %v3845_v8 = vsel %vm460_vm1, %v3808_v41, 0.0 }
 0x216   : > { %v4788_v6 = vadd.f32 %v4756_v26, %v6668_v23  ;;  %v3443_v44 = vpop.f32.mrb[9].mxu0  ;;  %v3743_v29 = vadd.f32 %v3742_v55, %v3741_v50  ;;  %v3844_v58 = vadd.f32 %v3843_v57, %v3842_v12  ;;  %v3744_v23 = vsel %vm460_vm1, %v4786_v61, 0.0 }
 0x217   : > { %v4789_v43 = vadd.f32 %v3443_v44, %v6670_v13  ;;  %v4757_v51 = vpop.f32.mrb[10].mxu0  ;;  %v3847_v15 = vsel %vm460_vm1, %v3809_v27, 0.0 }
 0x218   : > { %v4218_v31 = vpack.c.bf16 %v4788_v6, %v4788_v6  ;;  %v3446_v45 = vpop.f32.mrb[11].mxu0  ;;  %v3846_v35 = vadd.f32 %v3845_v8, %v3844_v58  ;;  %v3745_v60 = vadd.f32 %v3744_v23, %v3743_v29  ;;  %v4790_v13 = vadd.f32 %v4757_v51, %v6672_v1 }
 0x219   : > { %v4216_v2 = vpack.c.bf16 %v4789_v43, %v4789_v43  ;;  %v3746_v46 = vsel %vm460_vm1, %v4789_v43, 0.0  ;;  %v3810_v20 = vmul.f32 %v4789_v43, %v4789_v43  ;;  %v4791_v7 = vadd.f32 %v3446_v45, %v6674_v4 }
 0x21a   : > { %3709 = vst.msk [vmem:[%s6689_s8 + $0x28] sm:$0xf] %vm3698_vm12, %v4218_v31  ;;  %v3812_v53 = vmul.f32 %v4788_v6, %v4788_v6  ;;  %v3747_v62 = vadd.f32 %v3746_v46, %v3745_v60  ;;  %v3848_v19 = vadd.f32 %v3847_v15, %v3846_v35  ;;  %v4219_v5 = vpack.c.bf16 %v4790_v13, %v4790_v13 }
 0x21b   : > { %3707 = vst.msk [vmem:[%s6689_s8 + $0x20] sm:$0xf] %vm3698_vm12, %v4216_v2  ;;  %v3849_v63 = vsel %vm460_vm1, %v3810_v20, 0.0  ;;  %v4217_v10 = vpack.c.bf16 %v4791_v7, %v4791_v7  ;;  %v3748_v18 = vsel %vm460_vm1, %v4791_v7, 0.0  ;;  %v3811_v16 = vmul.f32 %v4791_v7, %v4791_v7 }
 0x21c   : > { %v3850_v3 = vadd.f32 %v3849_v63, %v3848_v19  ;;  %3710 = vst.msk [vmem:[%s6689_s8 + $0x2c] sm:$0xf] %vm3698_vm12, %v4219_v5  ;;  %v3749_v1 = vadd.f32 %v3748_v18, %v3747_v62  ;;  %v3750_v14 = vsel %vm460_vm1, %v4788_v6, 0.0  ;;  %v3813_v47 = vmul.f32 %v4790_v13, %v4790_v13 }
 0x21d   : > { %v4760_v17 = vpop.f32.mrb[12].mxu0  ;;  %3708 = vst.msk [vmem:[%s6689_s8 + $0x24] sm:$0xf] %vm3698_vm12, %v4217_v10  ;;  %v3851_v59 = vsel %vm460_vm1, %v3811_v16, 0.0  ;;  %v3853_v52 = vsel %vm460_vm1, %v3812_v53, 0.0 }
 0x21e   : > { %v4792_v4 = vadd.f32 %v4760_v17, %v6676_v0  ;;  %v3459_v56 = vpop.f32.mrb[13].mxu0  ;;  %v3751_v38 = vadd.f32 %v3750_v14, %v3749_v1  ;;  %v3852_v54 = vadd.f32 %v3851_v59, %v3850_v3  ;;  %v3752_v0 = vsel %vm460_vm1, %v4790_v13, 0.0 }
 0x21f   : > { %v4793_v37 = vadd.f32 %v3459_v56, %v6678_v25  ;;  %v4761_v49 = vpop.f32.mrb[14].mxu0  ;;  %v3855_v34 = vsel %vm460_vm1, %v3813_v47, 0.0 }
 0x220   : > { %v4222_v9 = vpack.c.bf16 %v4792_v4, %v4792_v4  ;;  %v3462_v39 = vpop.f32.mrb[15].mxu0  ;;  %v3854_v40 = vadd.f32 %v3853_v52, %v3852_v54  ;;  %v3753_v61 = vadd.f32 %v3752_v0, %v3751_v38  ;;  %v4794_v25 = vadd.f32 %v4761_v49, %v6680_v48 }
 0x221   : > { %v4220_v24 = vpack.c.bf16 %v4793_v37, %v4793_v37  ;;  %v3754_v30 = vsel %vm460_vm1, %v4793_v37, 0.0  ;;  %v3814_v28 = vmul.f32 %v4793_v37, %v4793_v37  ;;  %v4795_v42 = vadd.f32 %v3462_v39, %v6682_v11 }
 0x222   : > { %3713 = vst.msk [vmem:[%s6689_s8 + $0x38] sm:$0xf] %vm3698_vm12, %v4222_v9  ;;  %v3816_v41 = vmul.f32 %v4792_v4, %v4792_v4  ;;  %v3755_v12 = vadd.f32 %v3754_v30, %v3753_v61  ;;  %v3856_v21 = vadd.f32 %v3855_v34, %v3854_v40  ;;  %v4223_v32 = vpack.c.bf16 %v4794_v25, %v4794_v25 }
 0x223   : > { %3711 = vst.msk [vmem:[%s6689_s8 + $0x30] sm:$0xf] %vm3698_vm12, %v4220_v24  ;;  %v3857_v36 = vsel %vm460_vm1, %v3814_v28, 0.0  ;;  %v4221_v22 = vpack.c.bf16 %v4795_v42, %v4795_v42  ;;  %v3756_v26 = vsel %vm460_vm1, %v4795_v42, 0.0  ;;  %v3815_v50 = vmul.f32 %v4795_v42, %v4795_v42 }
 0x224   : > { %v3858_v44 = vadd.f32 %v3857_v36, %v3856_v21  ;;  %3714 = vst.msk [vmem:[%s6689_s8 + $0x3c] sm:$0xf] %vm3698_vm12, %v4223_v32  ;;  %v3757_v11 = vadd.f32 %v3756_v26, %v3755_v12  ;;  %v3758_v43 = vsel %vm460_vm1, %v4792_v4, 0.0  ;;  %v3817_v51 = vmul.f32 %v4794_v25, %v4794_v25 }
 0x225   : > { %v4628_v33 = vpop.f32.mrb[16].mxu1  ;;  %v4764_v6 = vpop.f32.mrb[16].mxu0  ;;  %3712 = vst.msk [vmem:[%s6689_s8 + $0x34] sm:$0xf] %vm3698_vm12, %v4221_v22  ;;  %v3859_v8 = vsel %vm460_vm1, %v3815_v50, 0.0  ;;  %v3861_v45 = vsel %vm460_vm1, %v3816_v41, 0.0 }
 0x226   : > { %v2427_v48 = vpop.f32.mrb[17].mxu1  ;;  %v4796_v55 = vadd.f32 %v4764_v6, %v4628_v33  ;;  %v3475_v57 = vpop.f32.mrb[17].mxu0  ;;  %v3759_v23 = vadd.f32 %v3758_v43, %v3757_v11  ;;  %v3860_v2 = vadd.f32 %v3859_v8, %v3858_v44  ;;  %v3760_v35 = vsel %vm460_vm1, %v4794_v25, 0.0 }
 0x227   : > { %v4629_v27 = vpop.f32.mrb[18].mxu1  ;;  %v4797_v29 = vadd.f32 %v3475_v57, %v2427_v48  ;;  %v4765_v31 = vpop.f32.mrb[18].mxu0  ;;  %v3863_v19 = vsel %vm460_vm1, %v3817_v51, 0.0 }
 0x228   : > { %v2430_v58 = vpop.f32.mrb[19].mxu1  ;;  %v4226_v46 = vpack.c.bf16 %v4796_v55, %v4796_v55  ;;  %v3478_v20 = vpop.f32.mrb[19].mxu0  ;;  %v3862_v15 = vadd.f32 %v3861_v45, %v3860_v2  ;;  %v3761_v63 = vadd.f32 %v3760_v35, %v3759_v23  ;;  %v4798_v53 = vadd.f32 %v4765_v31, %v4629_v27 }
 0x229   : > { %v4224_v60 = vpack.c.bf16 %v4797_v29, %v4797_v29  ;;  %v3762_v13 = vsel %vm460_vm1, %v4797_v29, 0.0  ;;  %v3818_v7 = vmul.f32 %v4797_v29, %v4797_v29  ;;  %v4799_v62 = vadd.f32 %v3478_v20, %v2430_v58 }
 0x22a   : > { %3717 = vst.msk [vmem:[%s6689_s8 + $0x48] sm:$0xf] %vm3698_vm12, %v4226_v46  ;;  %v3820_v10 = vmul.f32 %v4796_v55, %v4796_v55  ;;  %v3763_v18 = vadd.f32 %v3762_v13, %v3761_v63  ;;  %v3864_v16 = vadd.f32 %v3863_v19, %v3862_v15  ;;  %v4227_v17 = vpack.c.bf16 %v4798_v53, %v4798_v53 }
 0x22b   : > { %3715 = vst.msk [vmem:[%s6689_s8 + $0x40] sm:$0xf] %vm3698_vm12, %v4224_v60  ;;  %v3865_v5 = vsel %vm460_vm1, %v3818_v7, 0.0  ;;  %v4225_v1 = vpack.c.bf16 %v4799_v62, %v4799_v62  ;;  %v3764_v4 = vsel %vm460_vm1, %v4799_v62, 0.0  ;;  %v3819_v56 = vmul.f32 %v4799_v62, %v4799_v62 }
 0x22c   : > { %v3866_v59 = vadd.f32 %v3865_v5, %v3864_v16  ;;  %3718 = vst.msk [vmem:[%s6689_s8 + $0x4c] sm:$0xf] %vm3698_vm12, %v4227_v17  ;;  %v3765_v37 = vadd.f32 %v3764_v4, %v3763_v18  ;;  %v3766_v54 = vsel %vm460_vm1, %v4796_v55, 0.0  ;;  %v3821_v9 = vmul.f32 %v4798_v53, %v4798_v53 }
 0x22d   : > { %v4632_v3 = vpop.f32.mrb[20].mxu1  ;;  %v4768_v47 = vpop.f32.mrb[20].mxu0  ;;  %3716 = vst.msk [vmem:[%s6689_s8 + $0x44] sm:$0xf] %vm3698_vm12, %v4225_v1  ;;  %v3867_v39 = vsel %vm460_vm1, %v3819_v56, 0.0  ;;  %v3869_v28 = vsel %vm460_vm1, %v3820_v10, 0.0 }
 0x22e   : > { %v2443_v14 = vpop.f32.mrb[21].mxu1  ;;  %v4800_v49 = vadd.f32 %v4768_v47, %v4632_v3  ;;  %v3491_v38 = vpop.f32.mrb[21].mxu0  ;;  %v3767_v40 = vadd.f32 %v3766_v54, %v3765_v37  ;;  %v3868_v61 = vadd.f32 %v3867_v39, %v3866_v59  ;;  %v3768_v34 = vsel %vm460_vm1, %v4798_v53, 0.0 }
 0x22f   : > { %v4633_v52 = vpop.f32.mrb[22].mxu1  ;;  %v4801_v0 = vadd.f32 %v3491_v38, %v2443_v14  ;;  %v4769_v30 = vpop.f32.mrb[22].mxu0  ;;  %v3871_v26 = vsel %vm460_vm1, %v3821_v9, 0.0 }
 0x230   : > { %v2446_v24 = vpop.f32.mrb[23].mxu1  ;;  %v4230_v25 = vpack.c.bf16 %v4800_v49, %v4800_v49  ;;  %v3494_v42 = vpop.f32.mrb[23].mxu0  ;;  %v3870_v21 = vadd.f32 %v3869_v28, %v3868_v61  ;;  %v3769_v32 = vadd.f32 %v3768_v34, %v3767_v40  ;;  %v4802_v33 = vadd.f32 %v4769_v30, %v4633_v52 }
 0x231   : > { %v4228_v36 = vpack.c.bf16 %v4801_v0, %v4801_v0  ;;  %v3770_v41 = vsel %vm460_vm1, %v4801_v0, 0.0  ;;  %v3822_v12 = vmul.f32 %v4801_v0, %v4801_v0  ;;  %v4803_v22 = vadd.f32 %v3494_v42, %v2446_v24 }
 0x232   : > { %3721 = vst.msk [vmem:[%s6689_s8 + $0x58] sm:$0xf] %vm3698_vm12, %v4230_v25  ;;  %v3824_v48 = vmul.f32 %v4800_v49, %v4800_v49  ;;  %v3771_v6 = vadd.f32 %v3770_v41, %v3769_v32  ;;  %v3872_v44 = vadd.f32 %v3871_v26, %v3870_v21  ;;  %v4231_v11 = vpack.c.bf16 %v4802_v33, %v4802_v33 }
 0x233   : > { %3719 = vst.msk [vmem:[%s6689_s8 + $0x50] sm:$0xf] %vm3698_vm12, %v4228_v36  ;;  %v3873_v50 = vsel %vm460_vm1, %v3822_v12, 0.0  ;;  %v4229_v27 = vpack.c.bf16 %v4803_v22, %v4803_v22  ;;  %v3772_v57 = vsel %vm460_vm1, %v4803_v22, 0.0  ;;  %v3823_v43 = vmul.f32 %v4803_v22, %v4803_v22 }
 0x234   : > { %v3874_v29 = vadd.f32 %v3873_v50, %v3872_v44  ;;  %3722 = vst.msk [vmem:[%s6689_s8 + $0x5c] sm:$0xf] %vm3698_vm12, %v4231_v11  ;;  %v3773_v58 = vadd.f32 %v3772_v57, %v3771_v6  ;;  %v3774_v2 = vsel %vm460_vm1, %v4800_v49, 0.0  ;;  %v3825_v46 = vmul.f32 %v4802_v33, %v4802_v33 }
 0x235   : > { %v4636_v55 = vpop.f32.mrb[24].mxu1  ;;  %v4772_v8 = vpop.f32.mrb[24].mxu0  ;;  %3720 = vst.msk [vmem:[%s6689_s8 + $0x54] sm:$0xf] %vm3698_vm12, %v4229_v27  ;;  %v3875_v20 = vsel %vm460_vm1, %v3823_v43, 0.0  ;;  %v3877_v7 = vsel %vm460_vm1, %v3824_v48, 0.0 }
 0x236   : > { %v2459_v51 = vpop.f32.mrb[25].mxu1  ;;  %v4804_v31 = vadd.f32 %v4772_v8, %v4636_v55  ;;  %v3507_v23 = vpop.f32.mrb[25].mxu0  ;;  %v3775_v15 = vadd.f32 %v3774_v2, %v3773_v58  ;;  %v3876_v63 = vadd.f32 %v3875_v20, %v3874_v29  ;;  %v3776_v19 = vsel %vm460_vm1, %v4802_v33, 0.0 }
 0x237   : > { %v4637_v45 = vpop.f32.mrb[26].mxu1  ;;  %v4805_v35 = vadd.f32 %v3507_v23, %v2459_v51  ;;  %v4773_v13 = vpop.f32.mrb[26].mxu0  ;;  %v3879_v4 = vsel %vm460_vm1, %v3825_v46, 0.0 }
 0x238   : > { %v2462_v60 = vpop.f32.mrb[27].mxu1  ;;  %v4234_v53 = vpack.c.bf16 %v4804_v31, %v4804_v31  ;;  %v3510_v62 = vpop.f32.mrb[27].mxu0  ;;  %v3878_v16 = vadd.f32 %v3877_v7, %v3876_v63  ;;  %v3777_v17 = vadd.f32 %v3776_v19, %v3775_v15  ;;  %v4806_v3 = vadd.f32 %v4773_v13, %v4637_v45 }
 0x239   : > { %v4232_v5 = vpack.c.bf16 %v4805_v35, %v4805_v35  ;;  %v3778_v10 = vsel %vm460_vm1, %v4805_v35, 0.0  ;;  %v3826_v18 = vmul.f32 %v4805_v35, %v4805_v35  ;;  %v4807_v1 = vadd.f32 %v3510_v62, %v2462_v60 }
 0x23a   : > { %3725 = vst.msk [vmem:[%s6689_s8 + $0x68] sm:$0xf] %vm3698_vm12, %v4234_v53  ;;  %v3828_v14 = vmul.f32 %v4804_v31, %v4804_v31  ;;  %v3779_v47 = vadd.f32 %v3778_v10, %v3777_v17  ;;  %v3880_v59 = vadd.f32 %v3879_v4, %v3878_v16  ;;  %v4235_v37 = vpack.c.bf16 %v4806_v3, %v4806_v3 }
 0x23b   : > { %3723 = vst.msk [vmem:[%s6689_s8 + $0x60] sm:$0xf] %vm3698_vm12, %v4232_v5  ;;  %v3881_v56 = vsel %vm460_vm1, %v3826_v18, 0.0  ;;  %v4233_v52 = vpack.c.bf16 %v4807_v1, %v4807_v1  ;;  %v3780_v38 = vsel %vm460_vm1, %v4807_v1, 0.0  ;;  %v3827_v54 = vmul.f32 %v4807_v1, %v4807_v1 }
 0x23c   : > { %v3882_v0 = vadd.f32 %v3881_v56, %v3880_v59  ;;  %3726 = vst.msk [vmem:[%s6689_s8 + $0x6c] sm:$0xf] %vm3698_vm12, %v4235_v37  ;;  %v3781_v24 = vadd.f32 %v3780_v38, %v3779_v47  ;;  %v3782_v61 = vsel %vm460_vm1, %v4804_v31, 0.0  ;;  %v3829_v25 = vmul.f32 %v4806_v3, %v4806_v3 }
 0x23d   : > { %v4640_v49 = vpop.f32.mrb[28].mxu1  ;;  %v4776_v39 = vpop.f32.mrb[28].mxu0  ;;  %3724 = vst.msk [vmem:[%s6689_s8 + $0x64] sm:$0xf] %vm3698_vm12, %v4233_v52  ;;  %v3883_v42 = vsel %vm460_vm1, %v3827_v54, 0.0  ;;  %v3885_v12 = vsel %vm460_vm1, %v3828_v14, 0.0 }
 0x23e   : > { %v2475_v9 = vpop.f32.mrb[29].mxu1  ;;  %v4808_v30 = vadd.f32 %v4776_v39, %v4640_v49  ;;  %v3523_v40 = vpop.f32.mrb[29].mxu0  ;;  %v3783_v21 = vadd.f32 %v3782_v61, %v3781_v24  ;;  %v3884_v32 = vadd.f32 %v3883_v42, %v3882_v0  ;;  %v3784_v26 = vsel %vm460_vm1, %v4806_v3, 0.0 }
 0x23f   : > { %v4641_v28 = vpop.f32.mrb[30].mxu1  ;;  %v4809_v34 = vadd.f32 %v3523_v40, %v2475_v9  ;;  %v4777_v41 = vpop.f32.mrb[30].mxu0  ;;  %v3887_v57 = vsel %vm460_vm1, %v3829_v25, 0.0 }
 0x240   : > { %v2478_v36 = vpop.f32.mrb[31].mxu1  ;;  %v4238_v33 = vpack.c.bf16 %v4808_v30, %v4808_v30  ;;  %v3526_v22 = vpop.f32.mrb[31].mxu0  ;;  %v3886_v44 = vadd.f32 %v3885_v12, %v3884_v32  ;;  %v3785_v11 = vadd.f32 %v3784_v26, %v3783_v21  ;;  %v4810_v55 = vadd.f32 %v4777_v41, %v4641_v28 }
 0x241   : > { %v4236_v50 = vpack.c.bf16 %v4809_v34, %v4809_v34  ;;  %v3786_v48 = vsel %vm460_vm1, %v4809_v34, 0.0  ;;  %v3830_v6 = vmul.f32 %v4809_v34, %v4809_v34  ;;  %v4811_v27 = vadd.f32 %v3526_v22, %v2478_v36 }
 0x242   : > { %3729 = vst.msk [vmem:[%s6689_s8 + $0x78] sm:$0xf] %vm3698_vm12, %v4238_v33  ;;  %v3787_v51 = vadd.f32 %v3786_v48, %v3785_v11  ;;  %v3888_v8 = vadd.f32 %v3887_v57, %v3886_v44  ;;  %v4239_v29 = vpack.c.bf16 %v4810_v55, %v4810_v55  ;;  %v3832_v58 = vmul.f32 %v4808_v30, %v4808_v30 }
 0x243   : > { %3727 = vst.msk [vmem:[%s6689_s8 + $0x70] sm:$0xf] %vm3698_vm12, %v4236_v50  ;;  %v3889_v43 = vsel %vm460_vm1, %v3830_v6, 0.0  ;;  %v4237_v31 = vpack.c.bf16 %v4811_v27, %v4811_v27  ;;  %v3788_v45 = vsel %vm460_vm1, %v4811_v27, 0.0  ;;  %v3831_v23 = vmul.f32 %v4811_v27, %v4811_v27 }
 0x244   : > { %v3890_v2 = vadd.f32 %v3889_v43, %v3888_v8  ;;  %3730 = vst.msk [vmem:[%s6689_s8 + $0x7c] sm:$0xf] %vm3698_vm12, %v4239_v29  ;;  %v3789_v46 = vadd.f32 %v3788_v45, %v3787_v51  ;;  %v3790_v20 = vsel %vm460_vm1, %v4808_v30, 0.0  ;;  %v3833_v35 = vmul.f32 %v4810_v55, %v4810_v55 }
 0x245   : > { %3728 = vst.msk [vmem:[%s6689_s8 + $0x74] sm:$0xf] %vm3698_vm12, %v4237_v31  ;;  %v3891_v60 = vsel %vm460_vm1, %v3831_v23, 0.0  ;;  %v3893_v15 = vsel %vm460_vm1, %v3832_v58, 0.0  ;;  %v3792_v63 = vsel %vm460_vm1, %v4810_v55, 0.0 }
 0x246   : > { %v3791_v13 = vadd.f32 %v3790_v20, %v3789_v46  ;;  %v3892_v7 = vadd.f32 %v3891_v60, %v3890_v2  ;;  %v3895_v19 = vsel %vm460_vm1, %v3833_v35, 0.0 }
 0x248   : > { %v3793_v53 = vadd.f32 %v3792_v63, %v3791_v13  ;;  %v3894_v62 = vadd.f32 %v3893_v15, %v3892_v7 }
 0x24a   : > { %v3794_v5 = vrot.slane %v3793_v53, 4  ;;  %v3896_v10 = vadd.f32 %v3895_v19, %v3894_v62 }
 0x24c   : > { %v3795_v18 = vadd.f32 %v3794_v5, %v3793_v53  ;;  %v3897_v16 = vrot.slane %v3896_v10, 4 }
 0x24e   : > { %v3796_v17 = vrot.slane %v3795_v18, 2  ;;  %v3898_v3 = vadd.f32 %v3897_v16, %v3896_v10 }
 0x250   : > { %v3797_v1 = vadd.f32 %v3796_v17, %v3795_v18  ;;  %v3899_v4 = vrot.slane %v3898_v3, 2 }
 0x252   : > { %v3798_v56 = vrot.slane %v3797_v1, 1  ;;  %v3900_v14 = vadd.f32 %v3899_v4, %v3898_v3 }
 0x254   : > { %v3799_v47 = vadd.f32 %v3798_v56, %v3797_v1  ;;  %v3901_v59 = vrot.slane %v3900_v14, 1 }
 0x256   : > { %3801 = vst.msk [vmem:[%s265_s10] sm:$0x1] %vm468_vm7, %v3799_v47  ;;  %v3902_v37 = vadd.f32 %v3901_v59, %v3900_v14 }
 0x258   : > { %3903 = vst.msk [vmem:[%s268_s13] sm:$0x1] %vm468_vm7, %v3902_v37 }
 0x259 PF: > { %s17_s21 = sadd.s32 1, %s5062_s21  }
 0x25a   : > { %p14_p4 = scmp.ge.s32.totalorder %s17_s21, 4  }
 0x25c   :  { %16 = sbr.rel (!%p14_p4) target bundleno = 1 (0x1), region = 110 }

</bundles_post_ra>
